<compile_context>
chip_gen: v6e
topology: v6e:2x2x1
jax: 0.10.0
libtpu: 0.0.40
codegen_flags: <defaults>
</compile_context>

<pallas_src>
import functools

import jax
import jax.numpy as jnp
from jax.experimental import pallas as pl
from jax.experimental.pallas import tpu as pltpu


# ------------------------------ small helpers ------------------------------

_MIN_GRID_STEPS = 2  # keep both v7x TensorCores busy even at tiny batch


def _round_up(n, m):
    return ((n + m - 1) // m) * m


def _pad_axis(x, axis, target):
    pad = target - x.shape[axis]
    if pad == 0:
        return x
    widths = [(0, 0)] * x.ndim
    widths[axis] = (0, pad)
    return jnp.pad(x, widths)


def _vmem_cap_bytes():
    try:
        return int(pltpu.get_tpu_info().vmem_capacity_bytes)
    except Exception:  # pragma: no cover - conservative fallback
        return 64 * 1024 * 1024


def _vmem_limit(need_bytes, cap_bytes):
    """Generous-but-bounded scoped VMEM limit for a pallas_call."""
    lim = max(32 * 1024 * 1024, 2 * int(need_bytes) + 8 * 1024 * 1024)
    return int(min(lim, cap_bytes // 2))


def _row_tiles(m, cap_rows):
    """Balanced row tiling: >=_MIN_GRID_STEPS tiles when possible and the last
    tile never mostly padding (tm = round_up(ceil(m/n), 8))."""
    m8 = _round_up(max(m, 1), 8)
    m8 = max(m8, _MIN_GRID_STEPS * 8)
    n = max(_MIN_GRID_STEPS, pl.cdiv(m8, cap_rows))
    n = max(1, min(n, m8 // 8))          # never make tiles smaller than 8 rows
    tm = _round_up(pl.cdiv(m8, n), 8)
    n = pl.cdiv(m8, tm)
    return tm, tm * n


# ----------------------------- Pallas kernels ------------------------------

def _conv1_pool_kernel(x_ref, w_ref, b_ref, o_ref):
    """Fused im2col-matmul + 2x2 max-pool + bias + ReLU (conv1).

    x:(4, tm, Kp) bf16 -- 4 pool-window candidates per pooled output row
    w:(Kp, Np)    bf16 -- weights, K/N zero-padded to multiples of 128
    b:(1, Np)     f32
    o:(tm, Np)    bf16
    """
    four, tm, kp = x_ref.shape
    # One MXU matmul over all 4 candidates (tile-aligned reshape: tm % 8 == 0).
    y = jnp.dot(x_ref[...].reshape(four * tm, kp), w_ref[...],
                preferred_element_type=jnp.float32)
    pooled = jnp.maximum(jnp.maximum(y[0:tm], y[tm:2 * tm]),
                         jnp.maximum(y[2 * tm:3 * tm], y[3 * tm:4 * tm]))
    # max-first, then one bias add + ReLU (equivalent: bias const, ReLU mono).
    o_ref[...] = jnp.maximum(pooled + b_ref[...], 0.0).astype(o_ref.dtype)


def _conv_taps_pool_kernel(x_ref, w_ref, b_ref, o_ref, *, H, W, KH, KW):
    """Direct conv + 2x2 max-pool + bias + ReLU for one image (no im2col).

    x:(H*W, Cp)        bf16 -- row-flattened NHWC image
    w:(KH*KW, Cp, Np)  bf16 -- per-tap weights (padded channels => zero rows)
    b:(1, Np)          f32
    o:(Hp*Wp, Np)      bf16

    Over-complete trick: with m = oh*W + ow, the rows needed for tap (kh,kw)
    are x[m + kh*W + kw], a single contiguous 2-D slice per tap; columns
    ow >= OW of the accumulator are garbage and never read by the pooler.
    """
    OH, OW = H - KH + 1, W - KW + 1
    Hp, Wp = OH // 2, OW // 2
    M = (OH - 1) * W + OW            # over-complete conv rows per image

    acc = None
    for kh in range(KH):
        for kw in range(KW):
            lhs = x_ref[pl.ds(kh * W + kw, M), :]
            part = jnp.dot(lhs, w_ref[kh * KW + kw],
                           preferred_element_type=jnp.float32)
            acc = part if acc is None else acc + part

    # 2x2/stride-2 max pool on the over-complete grid.
    rmax = jnp.maximum(acc[:M - W], acc[W:])       # max over dh in {0,1}
    wmax = jnp.maximum(rmax[:-1], rmax[1:])        # max over dw in {0,1}
    rows = []
    for ph in range(Hp):
        for pw in range(Wp):
            m = 2 * ph * W + 2 * pw
            rows.append(wmax[m:m + 1, :])
    pooled = jnp.concatenate(rows, axis=0)          # (Hp*Wp, Np) f32
    o_ref[...] = jnp.maximum(pooled + b_ref[...], 0.0).astype(o_ref.dtype)


def _fc_chain_kernel(x_ref, w1_ref, b1_ref, w2_ref, b2_ref, w3_ref, b3_ref,
                     o_ref):
    """fc1+ReLU -> fc2+ReLU -> fc3, all weights VMEM-resident (128-padded)."""
    h = jnp.dot(x_ref[...], w1_ref[...], preferred_element_type=jnp.float32)
    h = jnp.maximum(h + b1_ref[...], 0.0).astype(w2_ref.dtype)
    h = jnp.dot(h, w2_ref[...], preferred_element_type=jnp.float32)
    h = jnp.maximum(h + b2_ref[...], 0.0).astype(w3_ref.dtype)
    h = jnp.dot(h, w3_ref[...], preferred_element_type=jnp.float32)
    o_ref[...] = (h + b3_ref[...]).astype(o_ref.dtype)


# ------------------------------- wrappers ----------------------------------

def conv1_relu_pool(x_nhwc, w_oihw, b, *, use_pallas=True):
    """conv1 (Cin=3): 5x5 VALID conv + bias + ReLU + 2x2/2 max-pool via a
    small glue im2col (K=75) and the fused candidate-merged kernel."""
    B, H, W, Cin = x_nhwc.shape
    Cout, Cw, KH, KW = w_oihw.shape
    assert Cw == Cin
    OH, OW = H - KH + 1, W - KW + 1
    Hp, Wp = OH // 2, OW // 2

    # im2col with the 4 pool candidates as the leading axis.
    cols = jnp.stack(
        [x_nhwc[:, kh:kh + OH, kw:kw + OW, :]
         for kh in range(KH) for kw in range(KW)],
        axis=3)                                    # (B, OH, OW, KH*KW, Cin)
    cols = cols[:, :2 * Hp, :2 * Wp]
    K = KH * KW * Cin
    cols = cols.reshape(B, Hp, 2, Wp, 2, K)
    patches = jnp.transpose(cols, (2, 4, 0, 1, 3, 5)).reshape(
        4, B * Hp * Wp, K)
    Kp = _round_up(K, 128)
    patches = _pad_axis(patches, 2, Kp).astype(jnp.bfloat16)

    Np = _round_up(Cout, 128)
    wmat = jnp.transpose(w_oihw, (2, 3, 1, 0)).reshape(K, Cout)
    wmat = _pad_axis(_pad_axis(wmat, 0, Kp), 1, Np).astype(jnp.bfloat16)
    bias = _pad_axis(b, 0, Np).reshape(1, Np).astype(jnp.float32)

    M = B * Hp * Wp
    if not use_pallas:  # pure-JAX reference path (same math, same casts)
        y = jnp.dot(patches.reshape(4 * M, Kp), wmat,
                    preferred_element_type=jnp.float32).reshape(4, M, Np)
        pooled = jnp.max(y, axis=0)
        y = jnp.maximum(pooled + bias, 0.0).astype(jnp.bfloat16)
        return y.reshape(B, Hp, Wp, Np)

    cap = _vmem_cap_bytes()
    # x block bytes = 4*tm*Kp*2; allow large tiles (VMEM-derived), up to 2048.
    row_cap = max(256, min(2048, ((cap // 32) // (4 * Kp * 2)) // 8 * 8))
    tm, mp = _row_tiles(M, row_cap)
    patches = _pad_axis(patches, 1, mp)

    xb = 4 * tm * Kp * 2
    ob = tm * Np * 2
    need = 2 * xb + 2 * ob + Kp * Np * 2 + Np * 4 + 4 * tm * Np * 4
    cost = pl.CostEstimate(
        flops=2 * 4 * mp * Kp * Np, transcendentals=0,
        bytes_accessed=4 * mp * Kp * 2 + Kp * Np * 2 + Np * 4 + mp * Np * 2)

    out = pl.pallas_call(
        _conv1_pool_kernel,
        out_shape=jax.ShapeDtypeStruct((mp, Np), jnp.bfloat16),
        grid=(mp // tm,),
        in_specs=[
            pl.BlockSpec((4, tm, Kp), lambda i: (0, i, 0)),
            pl.BlockSpec((Kp, Np), lambda i: (0, 0)),    # resident weights
            pl.BlockSpec((1, Np), lambda i: (0, 0)),     # resident bias
        ],
        out_specs=pl.BlockSpec((tm, Np), lambda i: (i, 0)),
        compiler_params=pltpu.CompilerParams(
            dimension_semantics=("parallel",),
            vmem_limit_bytes=_vmem_limit(need, cap)),
        cost_estimate=cost,
    )(patches, wmat, bias)
    return out[:M].reshape(B, Hp, Wp, Np)


def conv2_relu_pool(x_nhwc, w_oihw, b, *, use_pallas=True):
    """conv2: 5x5 VALID conv + bias + ReLU + 2x2/2 max-pool computed directly
    from the NHWC activation (no im2col materialization).  Channels of x
    beyond the weight's Cin must be zero; they meet zero weight rows."""
    B, H, W, Cp = x_nhwc.shape
    Cout, Cin, KH, KW = w_oihw.shape
    assert Cin <= Cp
    OH, OW = H - KH + 1, W - KW + 1
    Hp, Wp = OH // 2, OW // 2
    M = (OH - 1) * W + OW
    Np = _round_up(Cout, 128)

    # Per-tap weights (KH*KW, Cp, Np); padded in-channels => zero rows.
    w = jnp.transpose(w_oihw, (2, 3, 1, 0))                # (KH, KW, Cin, Cout)
    w = _pad_axis(_pad_axis(w, 2, Cp), 3, Np)
    w_taps = w.reshape(KH * KW, Cp, Np).astype(jnp.bfloat16)
    bias = _pad_axis(b, 0, Np).reshape(1, Np).astype(jnp.float32)

    x_flat = x_nhwc.reshape(B, H * W, Cp).astype(jnp.bfloat16)

    if not use_pallas:  # pure-JAX reference path (same ordering / casts)
        acc = jnp.zeros((B, M, Np), jnp.float32)
        for kh in range(KH):
            for kw in range(KW):
                s = kh * W + kw
                acc = acc + jnp.einsum(
                    'bmc,cn->bmn',
                    x_flat[:, s:s + M, :].astype(jnp.float32),
                    w_taps[kh * KW + kw].astype(jnp.float32))
        rmax = jnp.maximum(acc[:, :M - W], acc[:, W:])
        wmax = jnp.maximum(rmax[:, :-1], rmax[:, 1:])
        idx = jnp.array([2 * ph * W + 2 * pw
                         for ph in range(Hp) for pw in range(Wp)], jnp.int32)
        pooled = wmax[:, idx, :]
        y = jnp.maximum(pooled + bias, 0.0).astype(jnp.bfloat16)
        return y.reshape(B, Hp, Wp, Np)

    kern = functools.partial(_conv_taps_pool_kernel, H=H, W=W, KH=KH, KW=KW)
    need = (2 * H * W * Cp * 2 + KH * KW * Cp * Np * 2 + Np * 4
            + 2 * Hp * Wp * Np * 2 + 4 * M * Np * 4)
    cost = pl.CostEstimate(
        flops=2 * B * KH * KW * M * Cp * Np, transcendentals=0,
        bytes_accessed=(B * H * W * Cp * 2 + KH * KW * Cp * Np * 2
                        + Np * 4 + B * Hp * Wp * Np * 2))

    out = pl.pallas_call(
        kern,
        out_shape=jax.ShapeDtypeStruct((B, Hp * Wp, Np), jnp.bfloat16),
        grid=(B,),
        in_specs=[
            pl.BlockSpec((None, H * W, Cp), lambda bi: (bi, 0, 0)),
            pl.BlockSpec((KH * KW, Cp, Np), lambda bi: (0, 0, 0)),
            pl.BlockSpec((1, Np), lambda bi: (0, 0)),
        ],
        out_specs=pl.BlockSpec((None, Hp * Wp, Np), lambda bi: (bi, 0, 0)),
        compiler_params=pltpu.CompilerParams(
            dimension_semantics=("parallel",),
            vmem_limit_bytes=_vmem_limit(need, _vmem_cap_bytes())),
        cost_estimate=cost,
    )(x_flat, w_taps, bias)
    return out.reshape(B, Hp, Wp, Np)


def fc_chain(x, fcs, *, use_pallas=True):
    """Fused fc1+ReLU -> fc2+ReLU -> fc3.  x:(B,400), fcs: [(w,b)]*3 torch
    layout (out,in).  Returns (B, 10) f32."""
    B = x.shape[0]
    dims = [(400, 120), (120, 84), (84, 10)]
    kp0 = _round_up(dims[0][0], 128)                            # 512
    x = _pad_axis(x.astype(jnp.bfloat16), 1, kp0)

    ws, bs = [], []
    for (w, b), (kin, kout) in zip(fcs, dims):
        kinp, koutp = _round_up(kin, 128), _round_up(kout, 128)
        ws.append(_pad_axis(_pad_axis(w.T, 0, kinp), 1, koutp)
                  .astype(jnp.bfloat16))
        bs.append(_pad_axis(b, 0, koutp).reshape(1, koutp).astype(jnp.float32))

    if not use_pallas:  # pure-JAX reference path (same casts / padding)
        h = x
        for li, (wp, bp) in enumerate(zip(ws, bs)):
            h = jnp.dot(h, wp, preferred_element_type=jnp.float32) + bp
            if li < 2:
                h = jnp.maximum(h, 0.0).astype(jnp.bfloat16)
        return h[:B, :10]

    tmb, mb = _row_tiles(B, 512)
    xq = _pad_axis(x, 0, mb)
    nout = ws[2].shape[1]

    wbytes = sum(int(w.size) * 2 for w in ws) + sum(int(bp.size) * 4
                                                    for bp in bs)
    need = 2 * tmb * kp0 * 2 + 2 * tmb * nout * 4 + wbytes
    flops = 2 * mb * (kp0 * ws[0].shape[1]
                      + ws[1].shape[0] * ws[1].shape[1]
                      + ws[2].shape[0] * nout)
    cost = pl.CostEstimate(flops=flops, transcendentals=0,
                           bytes_accessed=mb * kp0 * 2 + wbytes
                           + mb * nout * 4)

    out = pl.pallas_call(
        _fc_chain_kernel,
        out_shape=jax.ShapeDtypeStruct((mb, nout), jnp.float32),
        grid=(mb // tmb,),
        in_specs=[
            pl.BlockSpec((tmb, kp0), lambda i: (i, 0)),
            pl.BlockSpec(ws[0].shape, lambda i: (0, 0)),
            pl.BlockSpec(bs[0].shape, lambda i: (0, 0)),
            pl.BlockSpec(ws[1].shape, lambda i: (0, 0)),
            pl.BlockSpec(bs[1].shape, lambda i: (0, 0)),
            pl.BlockSpec(ws[2].shape, lambda i: (0, 0)),
            pl.BlockSpec(bs[2].shape, lambda i: (0, 0)),
        ],
        out_specs=pl.BlockSpec((tmb, nout), lambda i: (i, 0)),
        compiler_params=pltpu.CompilerParams(
            dimension_semantics=("parallel",),
            vmem_limit_bytes=_vmem_limit(need, _vmem_cap_bytes())),
        cost_estimate=cost,
    )(xq, ws[0], bs[0], ws[1], bs[1], ws[2], bs[2])
    return out[:B, :10]


def forward(params, x_nchw, *, use_pallas=True):
    """Forward pass of Net.  x_nchw: (B, 3, 32, 32) f32 -> (B, 10) f32."""
    x = jnp.transpose(x_nchw, (0, 2, 3, 1)).astype(jnp.bfloat16)   # NHWC, C=3
    x = conv1_relu_pool(x, params["conv1_w"], params["conv1_b"],
                        use_pallas=use_pallas)  # (B,14,14,128); 64 real ch
    x = conv2_relu_pool(x, params["conv2_w"], params["conv2_b"],
                        use_pallas=use_pallas)  # (B, 5, 5,128); 16 real ch
    B = x.shape[0]
    # PyTorch flattens in NCHW order: take real channels, (c, h, w) ordering.
    x = jnp.transpose(x[:, :, :, :16], (0, 3, 1, 2)).reshape(B, 16 * 5 * 5)
    return fc_chain(
        x,
        [(params["fc1_w"], params["fc1_b"]),
         (params["fc2_w"], params["fc2_b"]),
         (params["fc3_w"], params["fc3_b"])],
        use_pallas=use_pallas)


def init_params(key):
    """Deterministic PyTorch-default-style init (U(-1/sqrt(fan_in), +))."""
    ks = jax.random.split(key, 10)

    def u(k, shape, fan_in):
        bound = 1.0 / float(fan_in) ** 0.5
        return jax.random.uniform(k, shape, jnp.float32, -bound, bound)

    return {
        "conv1_w": u(ks[0], (64, 3, 5, 5), 3 * 25),
        "conv1_b": u(ks[1], (64,), 3 * 25),
        "conv2_w": u(ks[2], (16, 64, 5, 5), 64 * 25),
        "conv2_b": u(ks[3], (16,), 64 * 25),
        "fc1_w": u(ks[4], (120, 400), 400),
        "fc1_b": u(ks[5], (120,), 400),
        "fc2_w": u(ks[6], (84, 120), 120),
        "fc2_b": u(ks[7], (84,), 120),
        "fc3_w": u(ks[8], (10, 84), 84),
        "fc3_b": u(ks[9], (10,), 84),
    }


if __name__ == "__main__":
    key = jax.random.PRNGKey(0)
    pkey, xkey = jax.random.split(key)
    params = init_params(pkey)
    # fc1 expects 16*5*5 = 400 features => spatial size is fixed at 32x32.
    x = jax.random.normal(xkey, (2, 3, 32, 32), jnp.float32)

    fwd = jax.jit(forward, static_argnames=("use_pallas",))
    out = jax.block_until_ready(fwd(params, x, use_pallas=True))
    ref = jax.block_until_ready(fwd(params, x, use_pallas=False))

    assert out.shape == (2, 10), out.shape
    assert jnp.allclose(out, ref, rtol=1e-2, atol=1e-2), "mismatch vs JAX ref"
    print("KERNEL_OK")
</pallas_src>

<mosaic_0001>
module attributes {stable_mosaic.version = 11 : i64} {
  func.func @_conv1_pool_kernel(%arg0: i32, %arg1: memref<4x200x128xbf16, #tpu.memory_space<vmem>>, %arg2: memref<128x128xbf16, #tpu.memory_space<vmem>>, %arg3: memref<1x128xf32, #tpu.memory_space<vmem>>, %arg4: memref<200x128xbf16, #tpu.memory_space<vmem>>) attributes {dimension_semantics = [#tpu.dimension_semantics<parallel>], iteration_bounds = array<i64: 2>, scalar_prefetch = 0 : i64, scratch_operands = 0 : i64, tpu.core_type = #tpu.core_type<tc>, window_params = [{transform_indices = @transform_0, window_bounds = array<i64: 4, 200, 128>}, {pipeline_mode = #tpu.pipeline_mode<synchronous>, transform_indices = @transform_1, window_bounds = array<i64: 128, 128>}, {pipeline_mode = #tpu.pipeline_mode<synchronous>, transform_indices = @transform_2, window_bounds = array<i64: 1, 128>}, {transform_indices = @transform_3, window_bounds = array<i64: 200, 128>}]} {
    %c0 = arith.constant 0 : index
    %c0_0 = arith.constant 0 : index
    %c0_1 = arith.constant 0 : index
    %0 = vector.load %arg1[%c0, %c0_0, %c0_1] : memref<4x200x128xbf16, #tpu.memory_space<vmem>>, vector<4x200x128xbf16>
    %1 = vector.shape_cast %0 : vector<4x200x128xbf16> to vector<800x128xbf16>
    %c0_2 = arith.constant 0 : index
    %c0_3 = arith.constant 0 : index
    %2 = vector.load %arg2[%c0_2, %c0_3] : memref<128x128xbf16, #tpu.memory_space<vmem>>, vector<128x128xbf16>
    %cst = arith.constant dense<0.000000e+00> : vector<800x128xf32>
    %3 = tpu.matmul %1, %2, %cst {dimension_numbers = #tpu.dot_dimension_numbers<[1], [0], [0], [1], [0, 0, 1, 1], [], []>} : vector<800x128xbf16>, vector<128x128xbf16>, vector<800x128xf32> -> vector<800x128xf32>
    %4 = vector.extract_strided_slice %3 {offsets = [0, 0], sizes = [200, 128], strides = [1, 1]} : vector<800x128xf32> to vector<200x128xf32>
    %5 = vector.extract_strided_slice %3 {offsets = [200, 0], sizes = [200, 128], strides = [1, 1]} : vector<800x128xf32> to vector<200x128xf32>
    %6 = arith.maximumf %4, %5 : vector<200x128xf32>
    %7 = vector.extract_strided_slice %3 {offsets = [400, 0], sizes = [200, 128], strides = [1, 1]} : vector<800x128xf32> to vector<200x128xf32>
    %8 = vector.extract_strided_slice %3 {offsets = [600, 0], sizes = [200, 128], strides = [1, 1]} : vector<800x128xf32> to vector<200x128xf32>
    %9 = arith.maximumf %7, %8 : vector<200x128xf32>
    %10 = arith.maximumf %6, %9 : vector<200x128xf32>
    %c0_4 = arith.constant 0 : index
    %c0_5 = arith.constant 0 : index
    %11 = vector.load %arg3[%c0_4, %c0_5] : memref<1x128xf32, #tpu.memory_space<vmem>>, vector<1x128xf32>
    %12 = vector.broadcast %11 : vector<1x128xf32> to vector<200x128xf32>
    %13 = arith.addf %10, %12 : vector<200x128xf32>
    %cst_6 = arith.constant 0.000000e+00 : f32
    %14 = vector.broadcast %cst_6 : f32 to vector<200x128xf32>
    %15 = arith.maximumf %13, %14 : vector<200x128xf32>
    %16 = arith.truncf %15 : vector<200x128xf32> to vector<200x128xbf16>
    %c0_7 = arith.constant 0 : index
    %c0_8 = arith.constant 0 : index
    %17 = vector.load %arg4[%c0_7, %c0_8] : memref<200x128xbf16, #tpu.memory_space<vmem>>, vector<200x128xbf16>
    tpu.vector_store %arg4[%c0_7, %c0_8], %16 {strides = array<i32>} : memref<200x128xbf16, #tpu.memory_space<vmem>>, vector<200x128xbf16>,
    return
  }
  func.func @transform_0(%arg0: i32) -> (i32, i32, i32) {
    %c0_i32 = arith.constant 0 : i32
    %c0_i32_0 = arith.constant 0 : i32
    %c0_i32_1 = arith.constant 0 : i32
    return %c0_i32, %arg0, %c0_i32_0 : i32, i32, i32
  }
  func.func @transform_1(%arg0: i32) -> (i32, i32) {
    %c0_i32 = arith.constant 0 : i32
    %c0_i32_0 = arith.constant 0 : i32
    %c0_i32_1 = arith.constant 0 : i32
    return %c0_i32, %c0_i32_0 : i32, i32
  }
  func.func @transform_2(%arg0: i32) -> (i32, i32) {
    %c0_i32 = arith.constant 0 : i32
    %c0_i32_0 = arith.constant 0 : i32
    %c0_i32_1 = arith.constant 0 : i32
    return %c0_i32, %c0_i32_0 : i32, i32
  }
  func.func @transform_3(%arg0: i32) -> (i32, i32) {
    %c0_i32 = arith.constant 0 : i32
    %c0_i32_0 = arith.constant 0 : i32
    return %arg0, %c0_i32 : i32, i32
  }
}

module attributes {stable_mosaic.version = 11 : i64} {
  func.func @_conv_taps_pool_kernel(%arg0: i32, %arg1: memref<1x196x128xbf16, #tpu.memory_space<vmem>>, %arg2: memref<25x128x128xbf16, #tpu.memory_space<vmem>>, %arg3: memref<1x128xf32, #tpu.memory_space<vmem>>, %arg4: memref<1x25x128xbf16, #tpu.memory_space<vmem>>) attributes {dimension_semantics = [#tpu.dimension_semantics<parallel>], iteration_bounds = array<i64: 2>, scalar_prefetch = 0 : i64, scratch_operands = 0 : i64, tpu.core_type = #tpu.core_type<tc>, window_params = [{transform_indices = @transform_0, window_bounds = array<i64: 1, 196, 128>}, {pipeline_mode = #tpu.pipeline_mode<synchronous>, transform_indices = @transform_1, window_bounds = array<i64: 25, 128, 128>}, {pipeline_mode = #tpu.pipeline_mode<synchronous>, transform_indices = @transform_2, window_bounds = array<i64: 1, 128>}, {transform_indices = @transform_3, window_bounds = array<i64: 1, 25, 128>}]} {
    %c0 = arith.constant 0 : index
    %c0_0 = arith.constant 0 : index
    %c0_1 = arith.constant 0 : index
    %0 = vector.load %arg1[%c0, %c0_0, %c0_1] : memref<1x196x128xbf16, #tpu.memory_space<vmem>>, vector<1x136x128xbf16>
    %1 = vector.shape_cast %0 : vector<1x136x128xbf16> to vector<136x128xbf16>
    %c0_2 = arith.constant 0 : index
    %c0_3 = arith.constant 0 : index
    %c0_4 = arith.constant 0 : index
    %2 = vector.load %arg2[%c0_2, %c0_3, %c0_4] : memref<25x128x128xbf16, #tpu.memory_space<vmem>>, vector<1x128x128xbf16>
    %3 = vector.shape_cast %2 : vector<1x128x128xbf16> to vector<128x128xbf16>
    %cst = arith.constant dense<0.000000e+00> : vector<136x128xf32>
    %4 = tpu.matmul %1, %3, %cst {dimension_numbers = #tpu.dot_dimension_numbers<[1], [0], [0], [1], [0, 0, 1, 1], [], []>} : vector<136x128xbf16>, vector<128x128xbf16>, vector<136x128xf32> -> vector<136x128xf32>
    %c0_5 = arith.constant 0 : index
    %c1 = arith.constant 1 : index
    %c0_6 = arith.constant 0 : index
    %5 = vector.load %arg1[%c0_5, %c1, %c0_6] : memref<1x196x128xbf16, #tpu.memory_space<vmem>>, vector<1x136x128xbf16>
    %6 = vector.shape_cast %5 : vector<1x136x128xbf16> to vector<136x128xbf16>
    %c1_7 = arith.constant 1 : index
    %c0_8 = arith.constant 0 : index
    %c0_9 = arith.constant 0 : index
    %7 = vector.load %arg2[%c1_7, %c0_8, %c0_9] : memref<25x128x128xbf16, #tpu.memory_space<vmem>>, vector<1x128x128xbf16>
    %8 = vector.shape_cast %7 : vector<1x128x128xbf16> to vector<128x128xbf16>
    %cst_10 = arith.constant dense<0.000000e+00> : vector<136x128xf32>
    %9 = tpu.matmul %6, %8, %cst_10 {dimension_numbers = #tpu.dot_dimension_numbers<[1], [0], [0], [1], [0, 0, 1, 1], [], []>} : vector<136x128xbf16>, vector<128x128xbf16>, vector<136x128xf32> -> vector<136x128xf32>
    %10 = arith.addf %4, %9 : vector<136x128xf32>
    %c0_11 = arith.constant 0 : index
    %c2 = arith.constant 2 : index
    %c0_12 = arith.constant 0 : index
    %11 = vector.load %arg1[%c0_11, %c2, %c0_12] : memref<1x196x128xbf16, #tpu.memory_space<vmem>>, vector<1x136x128xbf16>
    %12 = vector.shape_cast %11 : vector<1x136x128xbf16> to vector<136x128xbf16>
    %c2_13 = arith.constant 2 : index
    %c0_14 = arith.constant 0 : index
    %c0_15 = arith.constant 0 : index
    %13 = vector.load %arg2[%c2_13, %c0_14, %c0_15] : memref<25x128x128xbf16, #tpu.memory_space<vmem>>, vector<1x128x128xbf16>
    %14 = vector.shape_cast %13 : vector<1x128x128xbf16> to vector<128x128xbf16>
    %cst_16 = arith.constant dense<0.000000e+00> : vector<136x128xf32>
    %15 = tpu.matmul %12, %14, %cst_16 {dimension_numbers = #tpu.dot_dimension_numbers<[1], [0], [0], [1], [0, 0, 1, 1], [], []>} : vector<136x128xbf16>, vector<128x128xbf16>, vector<136x128xf32> -> vector<136x128xf32>
    %16 = arith.addf %10, %15 : vector<136x128xf32>
    %c0_17 = arith.constant 0 : index
    %c3 = arith.constant 3 : index
    %c0_18 = arith.constant 0 : index
    %17 = vector.load %arg1[%c0_17, %c3, %c0_18] : memref<1x196x128xbf16, #tpu.memory_space<vmem>>, vector<1x136x128xbf16>
    %18 = vector.shape_cast %17 : vector<1x136x128xbf16> to vector<136x128xbf16>
    %c3_19 = arith.constant 3 : index
    %c0_20 = arith.constant 0 : index
    %c0_21 = arith.constant 0 : index
    %19 = vector.load %arg2[%c3_19, %c0_20, %c0_21] : memref<25x128x128xbf16, #tpu.memory_space<vmem>>, vector<1x128x128xbf16>
    %20 = vector.shape_cast %19 : vector<1x128x128xbf16> to vector<128x128xbf16>
    %cst_22 = arith.constant dense<0.000000e+00> : vector<136x128xf32>
    %21 = tpu.matmul %18, %20, %cst_22 {dimension_numbers = #tpu.dot_dimension_numbers<[1], [0], [0], [1], [0, 0, 1, 1], [], []>} : vector<136x128xbf16>, vector<128x128xbf16>, vector<136x128xf32> -> vector<136x128xf32>
    %22 = arith.addf %16, %21 : vector<136x128xf32>
    %c0_23 = arith.constant 0 : index
    %c4 = arith.constant 4 : index
    %c0_24 = arith.constant 0 : index
    %23 = vector.load %arg1[%c0_23, %c4, %c0_24] : memref<1x196x128xbf16, #tpu.memory_space<vmem>>, vector<1x136x128xbf16>
    %24 = vector.shape_cast %23 : vector<1x136x128xbf16> to vector<136x128xbf16>
    %c4_25 = arith.constant 4 : index
    %c0_26 = arith.constant 0 : index
    %c0_27 = arith.constant 0 : index
    %25 = vector.load %arg2[%c4_25, %c0_26, %c0_27] : memref<25x128x128xbf16, #tpu.memory_space<vmem>>, vector<1x128x128xbf16>
    %26 = vector.shape_cast %25 : vector<1x128x128xbf16> to vector<128x128xbf16>
    %cst_28 = arith.constant dense<0.000000e+00> : vector<136x128xf32>
    %27 = tpu.matmul %24, %26, %cst_28 {dimension_numbers = #tpu.dot_dimension_numbers<[1], [0], [0], [1], [0, 0, 1, 1], [], []>} : vector<136x128xbf16>, vector<128x128xbf16>, vector<136x128xf32> -> vector<136x128xf32>
    %28 = arith.addf %22, %27 : vector<136x128xf32>
    %c0_29 = arith.constant 0 : index
    %c14 = arith.constant 14 : index
    %c0_30 = arith.constant 0 : index
    %29 = vector.load %arg1[%c0_29, %c14, %c0_30] : memref<1x196x128xbf16, #tpu.memory_space<vmem>>, vector<1x136x128xbf16>
    %30 = vector.shape_cast %29 : vector<1x136x128xbf16> to vector<136x128xbf16>
    %c5 = arith.constant 5 : index
    %c0_31 = arith.constant 0 : index
    %c0_32 = arith.constant 0 : index
    %31 = vector.load %arg2[%c5, %c0_31, %c0_32] : memref<25x128x128xbf16, #tpu.memory_space<vmem>>, vector<1x128x128xbf16>
    %32 = vector.shape_cast %31 : vector<1x128x128xbf16> to vector<128x128xbf16>
    %cst_33 = arith.constant dense<0.000000e+00> : vector<136x128xf32>
    %33 = tpu.matmul %30, %32, %cst_33 {dimension_numbers = #tpu.dot_dimension_numbers<[1], [0], [0], [1], [0, 0, 1, 1], [], []>} : vector<136x128xbf16>, vector<128x128xbf16>, vector<136x128xf32> -> vector<136x128xf32>
    %34 = arith.addf %28, %33 : vector<136x128xf32>
    %c0_34 = arith.constant 0 : index
    %c15 = arith.constant 15 : index
    %c0_35 = arith.constant 0 : index
    %35 = vector.load %arg1[%c0_34, %c15, %c0_35] : memref<1x196x128xbf16, #tpu.memory_space<vmem>>, vector<1x136x128xbf16>
    %36 = vector.shape_cast %35 : vector<1x136x128xbf16> to vector<136x128xbf16>
    %c6 = arith.constant 6 : index
    %c0_36 = arith.constant 0 : index
    %c0_37 = arith.constant 0 : index
    %37 = vector.load %arg2[%c6, %c0_36, %c0_37] : memref<25x128x128xbf16, #tpu.memory_space<vmem>>, vector<1x128x128xbf16>
    %38 = vector.shape_cast %37 : vector<1x128x128xbf16> to vector<128x128xbf16>
    %cst_38 = arith.constant dense<0.000000e+00> : vector<136x128xf32>
    %39 = tpu.matmul %36, %38, %cst_38 {dimension_numbers = #tpu.dot_dimension_numbers<[1], [0], [0], [1], [0, 0, 1, 1], [], []>} : vector<136x128xbf16>, vector<128x128xbf16>, vector<136x128xf32> -> vector<136x128xf32>
    %40 = arith.addf %34, %39 : vector<136x128xf32>
    %c0_39 = arith.constant 0 : index
    %c16 = arith.constant 16 : index
    %c0_40 = arith.constant 0 : index
    %41 = vector.load %arg1[%c0_39, %c16, %c0_40] : memref<1x196x128xbf16, #tpu.memory_space<vmem>>, vector<1x136x128xbf16>
    %42 = vector.shape_cast %41 : vector<1x136x128xbf16> to vector<136x128xbf16>
    %c7 = arith.constant 7 : index
    %c0_41 = arith.constant 0 : index
    %c0_42 = arith.constant 0 : index
    %43 = vector.load %arg2[%c7, %c0_41, %c0_42] : memref<25x128x128xbf16, #tpu.memory_space<vmem>>, vector<1x128x128xbf16>
    %44 = vector.shape_cast %43 : vector<1x128x128xbf16> to vector<128x128xbf16>
    %cst_43 = arith.constant dense<0.000000e+00> : vector<136x128xf32>
    %45 = tpu.matmul %42, %44, %cst_43 {dimension_numbers = #tpu.dot_dimension_numbers<[1], [0], [0], [1], [0, 0, 1, 1], [], []>} : vector<136x128xbf16>, vector<128x128xbf16>, vector<136x128xf32> -> vector<136x128xf32>
    %46 = arith.addf %40, %45 : vector<136x128xf32>
    %c0_44 = arith.constant 0 : index
    %c17 = arith.constant 17 : index
    %c0_45 = arith.constant 0 : index
    %47 = vector.load %arg1[%c0_44, %c17, %c0_45] : memref<1x196x128xbf16, #tpu.memory_space<vmem>>, vector<1x136x128xbf16>
    %48 = vector.shape_cast %47 : vector<1x136x128xbf16> to vector<136x128xbf16>
    %c8 = arith.constant 8 : index
    %c0_46 = arith.constant 0 : index
    %c0_47 = arith.constant 0 : index
    %49 = vector.load %arg2[%c8, %c0_46, %c0_47] : memref<25x128x128xbf16, #tpu.memory_space<vmem>>, vector<1x128x128xbf16>
    %50 = vector.shape_cast %49 : vector<1x128x128xbf16> to vector<128x128xbf16>
    %cst_48 = arith.constant dense<0.000000e+00> : vector<136x128xf32>
    %51 = tpu.matmul %48, %50, %cst_48 {dimension_numbers = #tpu.dot_dimension_numbers<[1], [0], [0], [1], [0, 0, 1, 1], [], []>} : vector<136x128xbf16>, vector<128x128xbf16>, vector<136x128xf32> -> vector<136x128xf32>
    %52 = arith.addf %46, %51 : vector<136x128xf32>
    %c0_49 = arith.constant 0 : index
    %c18 = arith.constant 18 : index
    %c0_50 = arith.constant 0 : index
    %53 = vector.load %arg1[%c0_49, %c18, %c0_50] : memref<1x196x128xbf16, #tpu.memory_space<vmem>>, vector<1x136x128xbf16>
    %54 = vector.shape_cast %53 : vector<1x136x128xbf16> to vector<136x128xbf16>
    %c9 = arith.constant 9 : index
    %c0_51 = arith.constant 0 : index
    %c0_52 = arith.constant 0 : index
    %55 = vector.load %arg2[%c9, %c0_51, %c0_52] : memref<25x128x128xbf16, #tpu.memory_space<vmem>>, vector<1x128x128xbf16>
    %56 = vector.shape_cast %55 : vector<1x128x128xbf16> to vector<128x128xbf16>
    %cst_53 = arith.constant dense<0.000000e+00> : vector<136x128xf32>
    %57 = tpu.matmul %54, %56, %cst_53 {dimension_numbers = #tpu.dot_dimension_numbers<[1], [0], [0], [1], [0, 0, 1, 1], [], []>} : vector<136x128xbf16>, vector<128x128xbf16>, vector<136x128xf32> -> vector<136x128xf32>
    %58 = arith.addf %52, %57 : vector<136x128xf32>
    %c0_54 = arith.constant 0 : index
    %c28 = arith.constant 28 : index
    %c0_55 = arith.constant 0 : index
    %59 = vector.load %arg1[%c0_54, %c28, %c0_55] : memref<1x196x128xbf16, #tpu.memory_space<vmem>>, vector<1x136x128xbf16>
    %60 = vector.shape_cast %59 : vector<1x136x128xbf16> to vector<136x128xbf16>
    %c10 = arith.constant 10 : index
    %c0_56 = arith.constant 0 : index
    %c0_57 = arith.constant 0 : index
    %61 = vector.load %arg2[%c10, %c0_56, %c0_57] : memref<25x128x128xbf16, #tpu.memory_space<vmem>>, vector<1x128x128xbf16>
    %62 = vector.shape_cast %61 : vector<1x128x128xbf16> to vector<128x128xbf16>
    %cst_58 = arith.constant dense<0.000000e+00> : vector<136x128xf32>
    %63 = tpu.matmul %60, %62, %cst_58 {dimension_numbers = #tpu.dot_dimension_numbers<[1], [0], [0], [1], [0, 0, 1, 1], [], []>} : vector<136x128xbf16>, vector<128x128xbf16>, vector<136x128xf32> -> vector<136x128xf32>
    %64 = arith.addf %58, %63 : vector<136x128xf32>
    %c0_59 = arith.constant 0 : index
    %c29 = arith.constant 29 : index
    %c0_60 = arith.constant 0 : index
    %65 = vector.load %arg1[%c0_59, %c29, %c0_60] : memref<1x196x128xbf16, #tpu.memory_space<vmem>>, vector<1x136x128xbf16>
    %66 = vector.shape_cast %65 : vector<1x136x128xbf16> to vector<136x128xbf16>
    %c11 = arith.constant 11 : index
    %c0_61 = arith.constant 0 : index
    %c0_62 = arith.constant 0 : index
    %67 = vector.load %arg2[%c11, %c0_61, %c0_62] : memref<25x128x128xbf16, #tpu.memory_space<vmem>>, vector<1x128x128xbf16>
    %68 = vector.shape_cast %67 : vector<1x128x128xbf16> to vector<128x128xbf16>
    %cst_63 = arith.constant dense<0.000000e+00> : vector<136x128xf32>
    %69 = tpu.matmul %66, %68, %cst_63 {dimension_numbers = #tpu.dot_dimension_numbers<[1], [0], [0], [1], [0, 0, 1, 1], [], []>} : vector<136x128xbf16>, vector<128x128xbf16>, vector<136x128xf32> -> vector<136x128xf32>
    %70 = arith.addf %64, %69 : vector<136x128xf32>
    %c0_64 = arith.constant 0 : index
    %c30 = arith.constant 30 : index
    %c0_65 = arith.constant 0 : index
    %71 = vector.load %arg1[%c0_64, %c30, %c0_65] : memref<1x196x128xbf16, #tpu.memory_space<vmem>>, vector<1x136x128xbf16>
    %72 = vector.shape_cast %71 : vector<1x136x128xbf16> to vector<136x128xbf16>
    %c12 = arith.constant 12 : index
    %c0_66 = arith.constant 0 : index
    %c0_67 = arith.constant 0 : index
    %73 = vector.load %arg2[%c12, %c0_66, %c0_67] : memref<25x128x128xbf16, #tpu.memory_space<vmem>>, vector<1x128x128xbf16>
    %74 = vector.shape_cast %73 : vector<1x128x128xbf16> to vector<128x128xbf16>
    %cst_68 = arith.constant dense<0.000000e+00> : vector<136x128xf32>
    %75 = tpu.matmul %72, %74, %cst_68 {dimension_numbers = #tpu.dot_dimension_numbers<[1], [0], [0], [1], [0, 0, 1, 1], [], []>} : vector<136x128xbf16>, vector<128x128xbf16>, vector<136x128xf32> -> vector<136x128xf32>
    %76 = arith.addf %70, %75 : vector<136x128xf32>
    %c0_69 = arith.constant 0 : index
    %c31 = arith.constant 31 : index
    %c0_70 = arith.constant 0 : index
    %77 = vector.load %arg1[%c0_69, %c31, %c0_70] : memref<1x196x128xbf16, #tpu.memory_space<vmem>>, vector<1x136x128xbf16>
    %78 = vector.shape_cast %77 : vector<1x136x128xbf16> to vector<136x128xbf16>
    %c13 = arith.constant 13 : index
    %c0_71 = arith.constant 0 : index
    %c0_72 = arith.constant 0 : index
    %79 = vector.load %arg2[%c13, %c0_71, %c0_72] : memref<25x128x128xbf16, #tpu.memory_space<vmem>>, vector<1x128x128xbf16>
    %80 = vector.shape_cast %79 : vector<1x128x128xbf16> to vector<128x128xbf16>
    %cst_73 = arith.constant dense<0.000000e+00> : vector<136x128xf32>
    %81 = tpu.matmul %78, %80, %cst_73 {dimension_numbers = #tpu.dot_dimension_numbers<[1], [0], [0], [1], [0, 0, 1, 1], [], []>} : vector<136x128xbf16>, vector<128x128xbf16>, vector<136x128xf32> -> vector<136x128xf32>
    %82 = arith.addf %76, %81 : vector<136x128xf32>
    %c0_74 = arith.constant 0 : index
    %c32 = arith.constant 32 : index
    %c0_75 = arith.constant 0 : index
    %83 = vector.load %arg1[%c0_74, %c32, %c0_75] : memref<1x196x128xbf16, #tpu.memory_space<vmem>>, vector<1x136x128xbf16>
    %84 = vector.shape_cast %83 : vector<1x136x128xbf16> to vector<136x128xbf16>
    %c14_76 = arith.constant 14 : index
    %c0_77 = arith.constant 0 : index
    %c0_78 = arith.constant 0 : index
    %85 = vector.load %arg2[%c14_76, %c0_77, %c0_78] : memref<25x128x128xbf16, #tpu.memory_space<vmem>>, vector<1x128x128xbf16>
    %86 = vector.shape_cast %85 : vector<1x128x128xbf16> to vector<128x128xbf16>
    %cst_79 = arith.constant dense<0.000000e+00> : vector<136x128xf32>
    %87 = tpu.matmul %84, %86, %cst_79 {dimension_numbers = #tpu.dot_dimension_numbers<[1], [0], [0], [1], [0, 0, 1, 1], [], []>} : vector<136x128xbf16>, vector<128x128xbf16>, vector<136x128xf32> -> vector<136x128xf32>
    %88 = arith.addf %82, %87 : vector<136x128xf32>
    %c0_80 = arith.constant 0 : index
    %c42 = arith.constant 42 : index
    %c0_81 = arith.constant 0 : index
    %89 = vector.load %arg1[%c0_80, %c42, %c0_81] : memref<1x196x128xbf16, #tpu.memory_space<vmem>>, vector<1x136x128xbf16>
    %90 = vector.shape_cast %89 : vector<1x136x128xbf16> to vector<136x128xbf16>
    %c15_82 = arith.constant 15 : index
    %c0_83 = arith.constant 0 : index
    %c0_84 = arith.constant 0 : index
    %91 = vector.load %arg2[%c15_82, %c0_83, %c0_84] : memref<25x128x128xbf16, #tpu.memory_space<vmem>>, vector<1x128x128xbf16>
    %92 = vector.shape_cast %91 : vector<1x128x128xbf16> to vector<128x128xbf16>
    %cst_85 = arith.constant dense<0.000000e+00> : vector<136x128xf32>
    %93 = tpu.matmul %90, %92, %cst_85 {dimension_numbers = #tpu.dot_dimension_numbers<[1], [0], [0], [1], [0, 0, 1, 1], [], []>} : vector<136x128xbf16>, vector<128x128xbf16>, vector<136x128xf32> -> vector<136x128xf32>
    %94 = arith.addf %88, %93 : vector<136x128xf32>
    %c0_86 = arith.constant 0 : index
    %c43 = arith.constant 43 : index
    %c0_87 = arith.constant 0 : index
    %95 = vector.load %arg1[%c0_86, %c43, %c0_87] : memref<1x196x128xbf16, #tpu.memory_space<vmem>>, vector<1x136x128xbf16>
    %96 = vector.shape_cast %95 : vector<1x136x128xbf16> to vector<136x128xbf16>
    %c16_88 = arith.constant 16 : index
    %c0_89 = arith.constant 0 : index
    %c0_90 = arith.constant 0 : index
    %97 = vector.load %arg2[%c16_88, %c0_89, %c0_90] : memref<25x128x128xbf16, #tpu.memory_space<vmem>>, vector<1x128x128xbf16>
    %98 = vector.shape_cast %97 : vector<1x128x128xbf16> to vector<128x128xbf16>
    %cst_91 = arith.constant dense<0.000000e+00> : vector<136x128xf32>
    %99 = tpu.matmul %96, %98, %cst_91 {dimension_numbers = #tpu.dot_dimension_numbers<[1], [0], [0], [1], [0, 0, 1, 1], [], []>} : vector<136x128xbf16>, vector<128x128xbf16>, vector<136x128xf32> -> vector<136x128xf32>
    %100 = arith.addf %94, %99 : vector<136x128xf32>
    %c0_92 = arith.constant 0 : index
    %c44 = arith.constant 44 : index
    %c0_93 = arith.constant 0 : index
    %101 = vector.load %arg1[%c0_92, %c44, %c0_93] : memref<1x196x128xbf16, #tpu.memory_space<vmem>>, vector<1x136x128xbf16>
    %102 = vector.shape_cast %101 : vector<1x136x128xbf16> to vector<136x128xbf16>
    %c17_94 = arith.constant 17 : index
    %c0_95 = arith.constant 0 : index
    %c0_96 = arith.constant 0 : index
    %103 = vector.load %arg2[%c17_94, %c0_95, %c0_96] : memref<25x128x128xbf16, #tpu.memory_space<vmem>>, vector<1x128x128xbf16>
    %104 = vector.shape_cast %103 : vector<1x128x128xbf16> to vector<128x128xbf16>
    %cst_97 = arith.constant dense<0.000000e+00> : vector<136x128xf32>
    %105 = tpu.matmul %102, %104, %cst_97 {dimension_numbers = #tpu.dot_dimension_numbers<[1], [0], [0], [1], [0, 0, 1, 1], [], []>} : vector<136x128xbf16>, vector<128x128xbf16>, vector<136x128xf32> -> vector<136x128xf32>
    %106 = arith.addf %100, %105 : vector<136x128xf32>
    %c0_98 = arith.constant 0 : index
    %c45 = arith.constant 45 : index
    %c0_99 = arith.constant 0 : index
    %107 = vector.load %arg1[%c0_98, %c45, %c0_99] : memref<1x196x128xbf16, #tpu.memory_space<vmem>>, vector<1x136x128xbf16>
    %108 = vector.shape_cast %107 : vector<1x136x128xbf16> to vector<136x128xbf16>
    %c18_100 = arith.constant 18 : index
    %c0_101 = arith.constant 0 : index
    %c0_102 = arith.constant 0 : index
    %109 = vector.load %arg2[%c18_100, %c0_101, %c0_102] : memref<25x128x128xbf16, #tpu.memory_space<vmem>>, vector<1x128x128xbf16>
    %110 = vector.shape_cast %109 : vector<1x128x128xbf16> to vector<128x128xbf16>
    %cst_103 = arith.constant dense<0.000000e+00> : vector<136x128xf32>
    %111 = tpu.matmul %108, %110, %cst_103 {dimension_numbers = #tpu.dot_dimension_numbers<[1], [0], [0], [1], [0, 0, 1, 1], [], []>} : vector<136x128xbf16>, vector<128x128xbf16>, vector<136x128xf32> -> vector<136x128xf32>
    %112 = arith.addf %106, %111 : vector<136x128xf32>
    %c0_104 = arith.constant 0 : index
    %c46 = arith.constant 46 : index
    %c0_105 = arith.constant 0 : index
    %113 = vector.load %arg1[%c0_104, %c46, %c0_105] : memref<1x196x128xbf16, #tpu.memory_space<vmem>>, vector<1x136x128xbf16>
    %114 = vector.shape_cast %113 : vector<1x136x128xbf16> to vector<136x128xbf16>
    %c19 = arith.constant 19 : index
    %c0_106 = arith.constant 0 : index
    %c0_107 = arith.constant 0 : index
    %115 = vector.load %arg2[%c19, %c0_106, %c0_107] : memref<25x128x128xbf16, #tpu.memory_space<vmem>>, vector<1x128x128xbf16>
    %116 = vector.shape_cast %115 : vector<1x128x128xbf16> to vector<128x128xbf16>
    %cst_108 = arith.constant dense<0.000000e+00> : vector<136x128xf32>
    %117 = tpu.matmul %114, %116, %cst_108 {dimension_numbers = #tpu.dot_dimension_numbers<[1], [0], [0], [1], [0, 0, 1, 1], [], []>} : vector<136x128xbf16>, vector<128x128xbf16>, vector<136x128xf32> -> vector<136x128xf32>
    %118 = arith.addf %112, %117 : vector<136x128xf32>
    %c0_109 = arith.constant 0 : index
    %c56 = arith.constant 56 : index
    %c0_110 = arith.constant 0 : index
    %119 = vector.load %arg1[%c0_109, %c56, %c0_110] : memref<1x196x128xbf16, #tpu.memory_space<vmem>>, vector<1x136x128xbf16>
    %120 = vector.shape_cast %119 : vector<1x136x128xbf16> to vector<136x128xbf16>
    %c20 = arith.constant 20 : index
    %c0_111 = arith.constant 0 : index
    %c0_112 = arith.constant 0 : index
    %121 = vector.load %arg2[%c20, %c0_111, %c0_112] : memref<25x128x128xbf16, #tpu.memory_space<vmem>>, vector<1x128x128xbf16>
    %122 = vector.shape_cast %121 : vector<1x128x128xbf16> to vector<128x128xbf16>
    %cst_113 = arith.constant dense<0.000000e+00> : vector<136x128xf32>
    %123 = tpu.matmul %120, %122, %cst_113 {dimension_numbers = #tpu.dot_dimension_numbers<[1], [0], [0], [1], [0, 0, 1, 1], [], []>} : vector<136x128xbf16>, vector<128x128xbf16>, vector<136x128xf32> -> vector<136x128xf32>
    %124 = arith.addf %118, %123 : vector<136x128xf32>
    %c0_114 = arith.constant 0 : index
    %c57 = arith.constant 57 : index
    %c0_115 = arith.constant 0 : index
    %125 = vector.load %arg1[%c0_114, %c57, %c0_115] : memref<1x196x128xbf16, #tpu.memory_space<vmem>>, vector<1x136x128xbf16>
    %126 = vector.shape_cast %125 : vector<1x136x128xbf16> to vector<136x128xbf16>
    %c21 = arith.constant 21 : index
    %c0_116 = arith.constant 0 : index
    %c0_117 = arith.constant 0 : index
    %127 = vector.load %arg2[%c21, %c0_116, %c0_117] : memref<25x128x128xbf16, #tpu.memory_space<vmem>>, vector<1x128x128xbf16>
    %128 = vector.shape_cast %127 : vector<1x128x128xbf16> to vector<128x128xbf16>
    %cst_118 = arith.constant dense<0.000000e+00> : vector<136x128xf32>
    %129 = tpu.matmul %126, %128, %cst_118 {dimension_numbers = #tpu.dot_dimension_numbers<[1], [0], [0], [1], [0, 0, 1, 1], [], []>} : vector<136x128xbf16>, vector<128x128xbf16>, vector<136x128xf32> -> vector<136x128xf32>
    %130 = arith.addf %124, %129 : vector<136x128xf32>
    %c0_119 = arith.constant 0 : index
    %c58 = arith.constant 58 : index
    %c0_120 = arith.constant 0 : index
    %131 = vector.load %arg1[%c0_119, %c58, %c0_120] : memref<1x196x128xbf16, #tpu.memory_space<vmem>>, vector<1x136x128xbf16>
    %132 = vector.shape_cast %131 : vector<1x136x128xbf16> to vector<136x128xbf16>
    %c22 = arith.constant 22 : index
    %c0_121 = arith.constant 0 : index
    %c0_122 = arith.constant 0 : index
    %133 = vector.load %arg2[%c22, %c0_121, %c0_122] : memref<25x128x128xbf16, #tpu.memory_space<vmem>>, vector<1x128x128xbf16>
    %134 = vector.shape_cast %133 : vector<1x128x128xbf16> to vector<128x128xbf16>
    %cst_123 = arith.constant dense<0.000000e+00> : vector<136x128xf32>
    %135 = tpu.matmul %132, %134, %cst_123 {dimension_numbers = #tpu.dot_dimension_numbers<[1], [0], [0], [1], [0, 0, 1, 1], [], []>} : vector<136x128xbf16>, vector<128x128xbf16>, vector<136x128xf32> -> vector<136x128xf32>
    %136 = arith.addf %130, %135 : vector<136x128xf32>
    %c0_124 = arith.constant 0 : index
    %c59 = arith.constant 59 : index
    %c0_125 = arith.constant 0 : index
    %137 = vector.load %arg1[%c0_124, %c59, %c0_125] : memref<1x196x128xbf16, #tpu.memory_space<vmem>>, vector<1x136x128xbf16>
    %138 = vector.shape_cast %137 : vector<1x136x128xbf16> to vector<136x128xbf16>
    %c23 = arith.constant 23 : index
    %c0_126 = arith.constant 0 : index
    %c0_127 = arith.constant 0 : index
    %139 = vector.load %arg2[%c23, %c0_126, %c0_127] : memref<25x128x128xbf16, #tpu.memory_space<vmem>>, vector<1x128x128xbf16>
    %140 = vector.shape_cast %139 : vector<1x128x128xbf16> to vector<128x128xbf16>
    %cst_128 = arith.constant dense<0.000000e+00> : vector<136x128xf32>
    %141 = tpu.matmul %138, %140, %cst_128 {dimension_numbers = #tpu.dot_dimension_numbers<[1], [0], [0], [1], [0, 0, 1, 1], [], []>} : vector<136x128xbf16>, vector<128x128xbf16>, vector<136x128xf32> -> vector<136x128xf32>
    %142 = arith.addf %136, %141 : vector<136x128xf32>
    %c0_129 = arith.constant 0 : index
    %c60 = arith.constant 60 : index
    %c0_130 = arith.constant 0 : index
    %143 = vector.load %arg1[%c0_129, %c60, %c0_130] : memref<1x196x128xbf16, #tpu.memory_space<vmem>>, vector<1x136x128xbf16>
    %144 = vector.shape_cast %143 : vector<1x136x128xbf16> to vector<136x128xbf16>
    %c24 = arith.constant 24 : index
    %c0_131 = arith.constant 0 : index
    %c0_132 = arith.constant 0 : index
    %145 = vector.load %arg2[%c24, %c0_131, %c0_132] : memref<25x128x128xbf16, #tpu.memory_space<vmem>>, vector<1x128x128xbf16>
    %146 = vector.shape_cast %145 : vector<1x128x128xbf16> to vector<128x128xbf16>
    %cst_133 = arith.constant dense<0.000000e+00> : vector<136x128xf32>
    %147 = tpu.matmul %144, %146, %cst_133 {dimension_numbers = #tpu.dot_dimension_numbers<[1], [0], [0], [1], [0, 0, 1, 1], [], []>} : vector<136x128xbf16>, vector<128x128xbf16>, vector<136x128xf32> -> vector<136x128xf32>
    %148 = arith.addf %142, %147 : vector<136x128xf32>
    %149 = vector.extract_strided_slice %148 {offsets = [0, 0], sizes = [122, 128], strides = [1, 1]} : vector<136x128xf32> to vector<122x128xf32>
    %150 = vector.extract_strided_slice %148 {offsets = [14, 0], sizes = [122, 128], strides = [1, 1]} : vector<136x128xf32> to vector<122x128xf32>
    %151 = arith.maximumf %149, %150 : vector<122x128xf32>
    %152 = vector.extract_strided_slice %151 {offsets = [0, 0], sizes = [121, 128], strides = [1, 1]} : vector<122x128xf32> to vector<121x128xf32>
    %153 = vector.extract_strided_slice %151 {offsets = [1, 0], sizes = [121, 128], strides = [1, 1]} : vector<122x128xf32> to vector<121x128xf32>
    %154 = arith.maximumf %152, %153 : vector<121x128xf32>
    %155 = vector.extract_strided_slice %154 {offsets = [0, 0], sizes = [1, 128], strides = [1, 1]} : vector<121x128xf32> to vector<1x128xf32>
    %156 = vector.extract_strided_slice %154 {offsets = [2, 0], sizes = [1, 128], strides = [1, 1]} : vector<121x128xf32> to vector<1x128xf32>
    %157 = vector.extract_strided_slice %154 {offsets = [4, 0], sizes = [1, 128], strides = [1, 1]} : vector<121x128xf32> to vector<1x128xf32>
    %158 = vector.extract_strided_slice %154 {offsets = [6, 0], sizes = [1, 128], strides = [1, 1]} : vector<121x128xf32> to vector<1x128xf32>
    %159 = vector.extract_strided_slice %154 {offsets = [8, 0], sizes = [1, 128], strides = [1, 1]} : vector<121x128xf32> to vector<1x128xf32>
    %160 = vector.extract_strided_slice %154 {offsets = [28, 0], sizes = [1, 128], strides = [1, 1]} : vector<121x128xf32> to vector<1x128xf32>
    %161 = vector.extract_strided_slice %154 {offsets = [30, 0], sizes = [1, 128], strides = [1, 1]} : vector<121x128xf32> to vector<1x128xf32>
    %162 = vector.extract_strided_slice %154 {offsets = [32, 0], sizes = [1, 128], strides = [1, 1]} : vector<121x128xf32> to vector<1x128xf32>
    %163 = vector.extract_strided_slice %154 {offsets = [34, 0], sizes = [1, 128], strides = [1, 1]} : vector<121x128xf32> to vector<1x128xf32>
    %164 = vector.extract_strided_slice %154 {offsets = [36, 0], sizes = [1, 128], strides = [1, 1]} : vector<121x128xf32> to vector<1x128xf32>
    %165 = vector.extract_strided_slice %154 {offsets = [56, 0], sizes = [1, 128], strides = [1, 1]} : vector<121x128xf32> to vector<1x128xf32>
    %166 = vector.extract_strided_slice %154 {offsets = [58, 0], sizes = [1, 128], strides = [1, 1]} : vector<121x128xf32> to vector<1x128xf32>
    %167 = vector.extract_strided_slice %154 {offsets = [60, 0], sizes = [1, 128], strides = [1, 1]} : vector<121x128xf32> to vector<1x128xf32>
    %168 = vector.extract_strided_slice %154 {offsets = [62, 0], sizes = [1, 128], strides = [1, 1]} : vector<121x128xf32> to vector<1x128xf32>
    %169 = vector.extract_strided_slice %154 {offsets = [64, 0], sizes = [1, 128], strides = [1, 1]} : vector<121x128xf32> to vector<1x128xf32>
    %170 = vector.extract_strided_slice %154 {offsets = [84, 0], sizes = [1, 128], strides = [1, 1]} : vector<121x128xf32> to vector<1x128xf32>
    %171 = vector.extract_strided_slice %154 {offsets = [86, 0], sizes = [1, 128], strides = [1, 1]} : vector<121x128xf32> to vector<1x128xf32>
    %172 = vector.extract_strided_slice %154 {offsets = [88, 0], sizes = [1, 128], strides = [1, 1]} : vector<121x128xf32> to vector<1x128xf32>
    %173 = vector.extract_strided_slice %154 {offsets = [90, 0], sizes = [1, 128], strides = [1, 1]} : vector<121x128xf32> to vector<1x128xf32>
    %174 = vector.extract_strided_slice %154 {offsets = [92, 0], sizes = [1, 128], strides = [1, 1]} : vector<121x128xf32> to vector<1x128xf32>
    %175 = vector.extract_strided_slice %154 {offsets = [112, 0], sizes = [1, 128], strides = [1, 1]} : vector<121x128xf32> to vector<1x128xf32>
    %176 = vector.extract_strided_slice %154 {offsets = [114, 0], sizes = [1, 128], strides = [1, 1]} : vector<121x128xf32> to vector<1x128xf32>
    %177 = vector.extract_strided_slice %154 {offsets = [116, 0], sizes = [1, 128], strides = [1, 1]} : vector<121x128xf32> to vector<1x128xf32>
    %178 = vector.extract_strided_slice %154 {offsets = [118, 0], sizes = [1, 128], strides = [1, 1]} : vector<121x128xf32> to vector<1x128xf32>
    %179 = vector.extract_strided_slice %154 {offsets = [120, 0], sizes = [1, 128], strides = [1, 1]} : vector<121x128xf32> to vector<1x128xf32>
    %180 = tpu.concatenate %155, %156, %157, %158, %159, %160, %161, %162, %163, %164, %165, %166, %167, %168, %169, %170 in 0 : vector<1x128xf32>, vector<1x128xf32>, vector<1x128xf32>, vector<1x128xf32>, vector<1x128xf32>, vector<1x128xf32>, vector<1x128xf32>, vector<1x128xf32>, vector<1x128xf32>, vector<1x128xf32>, vector<1x128xf32>, vector<1x128xf32>, vector<1x128xf32>, vector<1x128xf32>, vector<1x128xf32>, vector<1x128xf32> -> vector<16x128xf32>
    %181 = tpu.concatenate %171, %172, %173, %174, %175, %176, %177, %178, %179 in 0 : vector<1x128xf32>, vector<1x128xf32>, vector<1x128xf32>, vector<1x128xf32>, vector<1x128xf32>, vector<1x128xf32>, vector<1x128xf32>, vector<1x128xf32>, vector<1x128xf32> -> vector<9x128xf32>
    %182 = tpu.concatenate %180, %181 in 0 : vector<16x128xf32>, vector<9x128xf32> -> vector<25x128xf32>
    %c0_134 = arith.constant 0 : index
    %c0_135 = arith.constant 0 : index
    %183 = vector.load %arg3[%c0_134, %c0_135] : memref<1x128xf32, #tpu.memory_space<vmem>>, vector<1x128xf32>
    %184 = vector.broadcast %183 : vector<1x128xf32> to vector<25x128xf32>
    %185 = arith.addf %182, %184 : vector<25x128xf32>
    %cst_136 = arith.constant 0.000000e+00 : f32
    %186 = vector.broadcast %cst_136 : f32 to vector<25x128xf32>
    %187 = arith.maximumf %185, %186 : vector<25x128xf32>
    %188 = arith.truncf %187 : vector<25x128xf32> to vector<25x128xbf16>
    %c0_137 = arith.constant 0 : index
    %c0_138 = arith.constant 0 : index
    %c0_139 = arith.constant 0 : index
    %189 = vector.load %arg4[%c0_137, %c0_138, %c0_139] : memref<1x25x128xbf16, #tpu.memory_space<vmem>>, vector<1x25x128xbf16>
    %190 = vector.shape_cast %189 : vector<1x25x128xbf16> to vector<25x128xbf16>
    %191 = vector.shape_cast %188 : vector<25x128xbf16> to vector<1x25x128xbf16>
    tpu.vector_store %arg4[%c0_137, %c0_138, %c0_139], %191 {strides = array<i32>} : memref<1x25x128xbf16, #tpu.memory_space<vmem>>, vector<1x25x128xbf16>,
    return
  }
  func.func @transform_0(%arg0: i32) -> (i32, i32, i32) {
    %c0_i32 = arith.constant 0 : i32
    %c0_i32_0 = arith.constant 0 : i32
    %c0_i32_1 = arith.constant 0 : i32
    return %arg0, %c0_i32, %c0_i32_0 : i32, i32, i32
  }
  func.func @transform_1(%arg0: i32) -> (i32, i32, i32) {
    %c0_i32 = arith.constant 0 : i32
    %c0_i32_0 = arith.constant 0 : i32
    %c0_i32_1 = arith.constant 0 : i32
    %c0_i32_2 = arith.constant 0 : i32
    return %c0_i32, %c0_i32_0, %c0_i32_1 : i32, i32, i32
  }
  func.func @transform_2(%arg0: i32) -> (i32, i32) {
    %c0_i32 = arith.constant 0 : i32
    %c0_i32_0 = arith.constant 0 : i32
    %c0_i32_1 = arith.constant 0 : i32
    return %c0_i32, %c0_i32_0 : i32, i32
  }
  func.func @transform_3(%arg0: i32) -> (i32, i32, i32) {
    %c0_i32 = arith.constant 0 : i32
    %c0_i32_0 = arith.constant 0 : i32
    %c0_i32_1 = arith.constant 0 : i32
    return %arg0, %c0_i32, %c0_i32_0 : i32, i32, i32
  }
}

module attributes {stable_mosaic.version = 11 : i64} {
  func.func @_fc_chain_kernel(%arg0: i32, %arg1: memref<8x512xbf16, #tpu.memory_space<vmem>>, %arg2: memref<512x128xbf16, #tpu.memory_space<vmem>>, %arg3: memref<1x128xf32, #tpu.memory_space<vmem>>, %arg4: memref<128x128xbf16, #tpu.memory_space<vmem>>, %arg5: memref<1x128xf32, #tpu.memory_space<vmem>>, %arg6: memref<128x128xbf16, #tpu.memory_space<vmem>>, %arg7: memref<1x128xf32, #tpu.memory_space<vmem>>, %arg8: memref<8x128xf32, #tpu.memory_space<vmem>>) attributes {dimension_semantics = [#tpu.dimension_semantics<parallel>], iteration_bounds = array<i64: 2>, scalar_prefetch = 0 : i64, scratch_operands = 0 : i64, tpu.core_type = #tpu.core_type<tc>, window_params = [{transform_indices = @transform_0, window_bounds = array<i64: 8, 512>}, {pipeline_mode = #tpu.pipeline_mode<synchronous>, transform_indices = @transform_1, window_bounds = array<i64: 512, 128>}, {pipeline_mode = #tpu.pipeline_mode<synchronous>, transform_indices = @transform_2, window_bounds = array<i64: 1, 128>}, {pipeline_mode = #tpu.pipeline_mode<synchronous>, transform_indices = @transform_3, window_bounds = array<i64: 128, 128>}, {pipeline_mode = #tpu.pipeline_mode<synchronous>, transform_indices = @transform_4, window_bounds = array<i64: 1, 128>}, {pipeline_mode = #tpu.pipeline_mode<synchronous>, transform_indices = @transform_5, window_bounds = array<i64: 128, 128>}, {pipeline_mode = #tpu.pipeline_mode<synchronous>, transform_indices = @transform_6, window_bounds = array<i64: 1, 128>}, {transform_indices = @transform_7, window_bounds = array<i64: 8, 128>}]} {
    %c0 = arith.constant 0 : index
    %c0_0 = arith.constant 0 : index
    %0 = vector.load %arg1[%c0, %c0_0] : memref<8x512xbf16, #tpu.memory_space<vmem>>, vector<8x512xbf16>
    %c0_1 = arith.constant 0 : index
    %c0_2 = arith.constant 0 : index
    %1 = vector.load %arg2[%c0_1, %c0_2] : memref<512x128xbf16, #tpu.memory_space<vmem>>, vector<512x128xbf16>
    %cst = arith.constant dense<0.000000e+00> : vector<8x128xf32>
    %2 = tpu.matmul %0, %1, %cst {dimension_numbers = #tpu.dot_dimension_numbers<[1], [0], [0], [1], [0, 0, 1, 1], [], []>} : vector<8x512xbf16>, vector<512x128xbf16>, vector<8x128xf32> -> vector<8x128xf32>
    %c0_3 = arith.constant 0 : index
    %c0_4 = arith.constant 0 : index
    %3 = vector.load %arg3[%c0_3, %c0_4] : memref<1x128xf32, #tpu.memory_space<vmem>>, vector<1x128xf32>
    %4 = vector.broadcast %3 : vector<1x128xf32> to vector<8x128xf32>
    %5 = arith.addf %2, %4 : vector<8x128xf32>
    %cst_5 = arith.constant 0.000000e+00 : f32
    %6 = vector.broadcast %cst_5 : f32 to vector<8x128xf32>
    %7 = arith.maximumf %5, %6 : vector<8x128xf32>
    %8 = arith.truncf %7 : vector<8x128xf32> to vector<8x128xbf16>
    %c0_6 = arith.constant 0 : index
    %c0_7 = arith.constant 0 : index
    %9 = vector.load %arg4[%c0_6, %c0_7] : memref<128x128xbf16, #tpu.memory_space<vmem>>, vector<128x128xbf16>
    %cst_8 = arith.constant dense<0.000000e+00> : vector<8x128xf32>
    %10 = tpu.matmul %8, %9, %cst_8 {dimension_numbers = #tpu.dot_dimension_numbers<[1], [0], [0], [1], [0, 0, 1, 1], [], []>} : vector<8x128xbf16>, vector<128x128xbf16>, vector<8x128xf32> -> vector<8x128xf32>
    %c0_9 = arith.constant 0 : index
    %c0_10 = arith.constant 0 : index
    %11 = vector.load %arg5[%c0_9, %c0_10] : memref<1x128xf32, #tpu.memory_space<vmem>>, vector<1x128xf32>
    %12 = vector.broadcast %11 : vector<1x128xf32> to vector<8x128xf32>
    %13 = arith.addf %10, %12 : vector<8x128xf32>
    %cst_11 = arith.constant 0.000000e+00 : f32
    %14 = vector.broadcast %cst_11 : f32 to vector<8x128xf32>
    %15 = arith.maximumf %13, %14 : vector<8x128xf32>
    %16 = arith.truncf %15 : vector<8x128xf32> to vector<8x128xbf16>
    %c0_12 = arith.constant 0 : index
    %c0_13 = arith.constant 0 : index
    %17 = vector.load %arg6[%c0_12, %c0_13] : memref<128x128xbf16, #tpu.memory_space<vmem>>, vector<128x128xbf16>
    %cst_14 = arith.constant dense<0.000000e+00> : vector<8x128xf32>
    %18 = tpu.matmul %16, %17, %cst_14 {dimension_numbers = #tpu.dot_dimension_numbers<[1], [0], [0], [1], [0, 0, 1, 1], [], []>} : vector<8x128xbf16>, vector<128x128xbf16>, vector<8x128xf32> -> vector<8x128xf32>
    %c0_15 = arith.constant 0 : index
    %c0_16 = arith.constant 0 : index
    %19 = vector.load %arg7[%c0_15, %c0_16] : memref<1x128xf32, #tpu.memory_space<vmem>>, vector<1x128xf32>
    %20 = vector.broadcast %19 : vector<1x128xf32> to vector<8x128xf32>
    %21 = arith.addf %18, %20 : vector<8x128xf32>
    %c0_17 = arith.constant 0 : index
    %c0_18 = arith.constant 0 : index
    %22 = vector.load %arg8[%c0_17, %c0_18] : memref<8x128xf32, #tpu.memory_space<vmem>>, vector<8x128xf32>
    tpu.vector_store %arg8[%c0_17, %c0_18], %21 {strides = array<i32>} : memref<8x128xf32, #tpu.memory_space<vmem>>, vector<8x128xf32>,
    return
  }
  func.func @transform_0(%arg0: i32) -> (i32, i32) {
    %c0_i32 = arith.constant 0 : i32
    %c0_i32_0 = arith.constant 0 : i32
    return %arg0, %c0_i32 : i32, i32
  }
  func.func @transform_1(%arg0: i32) -> (i32, i32) {
    %c0_i32 = arith.constant 0 : i32
    %c0_i32_0 = arith.constant 0 : i32
    %c0_i32_1 = arith.constant 0 : i32
    return %c0_i32, %c0_i32_0 : i32, i32
  }
  func.func @transform_2(%arg0: i32) -> (i32, i32) {
    %c0_i32 = arith.constant 0 : i32
    %c0_i32_0 = arith.constant 0 : i32
    %c0_i32_1 = arith.constant 0 : i32
    return %c0_i32, %c0_i32_0 : i32, i32
  }
  func.func @transform_3(%arg0: i32) -> (i32, i32) {
    %c0_i32 = arith.constant 0 : i32
    %c0_i32_0 = arith.constant 0 : i32
    %c0_i32_1 = arith.constant 0 : i32
    return %c0_i32, %c0_i32_0 : i32, i32
  }
  func.func @transform_4(%arg0: i32) -> (i32, i32) {
    %c0_i32 = arith.constant 0 : i32
    %c0_i32_0 = arith.constant 0 : i32
    %c0_i32_1 = arith.constant 0 : i32
    return %c0_i32, %c0_i32_0 : i32, i32
  }
  func.func @transform_5(%arg0: i32) -> (i32, i32) {
    %c0_i32 = arith.constant 0 : i32
    %c0_i32_0 = arith.constant 0 : i32
    %c0_i32_1 = arith.constant 0 : i32
    return %c0_i32, %c0_i32_0 : i32, i32
  }
  func.func @transform_6(%arg0: i32) -> (i32, i32) {
    %c0_i32 = arith.constant 0 : i32
    %c0_i32_0 = arith.constant 0 : i32
    %c0_i32_1 = arith.constant 0 : i32
    return %c0_i32, %c0_i32_0 : i32, i32
  }
  func.func @transform_7(%arg0: i32) -> (i32, i32) {
    %c0_i32 = arith.constant 0 : i32
    %c0_i32_0 = arith.constant 0 : i32
    return %arg0, %c0_i32 : i32, i32
  }
}

</mosaic_0001>

<bundles_post_ra>
// kernel: forward.3
= control target key start
LH: loop header
LB: loop body
LE: loop exit
PB: predicated region body
PF: predicated region fallthrough
CT: control target
= control target key end

     0   :  { %s2339_s12 = smov 0   ;;  %s2341_s13 = smov 0   ;;  %s2770_s0 = inlined_call_operand.vmem [shape: bf16[4,400,128], index: 0, kind: input, shape index: {}]   ;;  %s2771_s1 = inlined_call_operand.vmem [shape: bf16[128,128], index: 1, kind: input, shape index: {}]   ;;  %s2772_s2 = inlined_call_operand.vmem [shape: f32[1,128], index: 2, kind: input, shape index: {}]   ;;  %s2773_s3 = inlined_call_operand.vmem [shape: bf16[400,128], index: 3, kind: output, shape index: {}]  }
   0x1   :  { %s2343_s14 = smov 0  }
   0x2 LB: > { %s1831_s15 = sadd.s32 4294967295, %s2317_s14   ;;  %s2356_s16 = sadd.s32 1, %s2317_s14   ;;  %s2317_s14 = sphi %s2343_s14, %s2790_s14   ;;  %s2313_s13 = sphi %s2341_s13, %s2789_s13   ;;  %s2309_s12 = sphi %s2339_s12, %s2788_s12  }
   0x3   : > { %s17_s17 = ssub.s32 %s2317_s14, %s2356_s16  ;;  %s20_s18 = sadd.s32 1, %s2313_s13 }
   0x4   : > { %p18_p0 = scmp.eq.s32.totalorder %s17_s17, 0  ;;  %p27_p1 = scmp.ne.s32.totalorder %s2313_s13, %s2309_s12 }
   0x5   : > { %p28_p2 = scmp.eq.s32.totalorder %s2317_s14, 0  ;;  %p1834_p4 = scmp.ge.s32.totalorder %s2317_s14, 2 }
   0x6   : > { %s2365_s19 = scalar_select %p18_p0, %s2313_s13, %s20_s18  }
   0x7   : > { %p29_p3 = por %p28_p2, %p27_p1  ;;  %127 = sbr.rel (%p1834_p4) target bundleno = 43 (0x2b), region = 24 }
   0xc   : > { %130 = sbr.rel (!%p29_p3) target bundleno = 43 (0x2b), region = 28  ;;  %s132_s20 = sand.u32 (%p29_p3), 1, %s2313_s13  }
   0xd   : > { %s1924_s21 = smul.u32 (%p29_p3), 100, %s2317_s14 }
   0xe   : > { %s2211_s22 = smul.u32 (%p29_p3), 400, %s132_s20 }
   0xf   : > { %s2373_s25 = scalar_lea.vmem (%p29_p3), %s2770_s0, %s1924_s21 }
  0x10   : > { %v154_v0 = vld [vmem:[%s2373_s25] sm:$0xff] (%p29_p3)   ;;  %v158_v1 = vld [vmem:[%s2373_s25 + $0x8] sm:$0xff] (%p29_p3)   ;;  %v162_v2 = vld [vmem:[%s2373_s25 + $0x10] sm:$0xff] (%p29_p3)   ;;  %s2378_s26 = scalar_lea.vmem (%p29_p3), [#allocation2], %s2211_s22 }
  0x11   : > { %155 = vst [vmem:[%s2378_s26] sm:$0xff] %v154_v0   ;;  %159 = vst [vmem:[%s2378_s26 + $0x8] sm:$0xff] %v158_v1   ;;  %v166_v3 = vld [vmem:[%s2373_s25 + $0x18] sm:$0xff]   ;;  %v170_v4 = vld [vmem:[%s2373_s25 + $0x20] sm:$0xff]  }
  0x12   : > { %163 = vst [vmem:[%s2378_s26 + $0x10] sm:$0xff] %v162_v2   ;;  %v174_v5 = vld [vmem:[%s2373_s25 + $0x28] sm:$0xff]   ;;  %167 = vst [vmem:[%s2378_s26 + $0x18] sm:$0xff] %v166_v3   ;;  %v178_v6 = vld [vmem:[%s2373_s25 + $0x30] sm:$0xff]  }
  0x13   : > { %171 = vst [vmem:[%s2378_s26 + $0x20] sm:$0xff] %v170_v4   ;;  %175 = vst [vmem:[%s2378_s26 + $0x28] sm:$0xff] %v174_v5   ;;  %v182_v7 = vld [vmem:[%s2373_s25 + $0x38] sm:$0xff]   ;;  %v186_v8 = vld [vmem:[%s2373_s25 + $0x40] sm:$0xff]  }
  0x14   : > { %179 = vst [vmem:[%s2378_s26 + $0x30] sm:$0xff] %v178_v6   ;;  %183 = vst [vmem:[%s2378_s26 + $0x38] sm:$0xff] %v182_v7   ;;  %v190_v9 = vld [vmem:[%s2373_s25 + $0x48] sm:$0xff]   ;;  %v194_v10 = vld [vmem:[%s2373_s25 + $0x50] sm:$0xff]  }
  0x15   : > { %187 = vst [vmem:[%s2378_s26 + $0x40] sm:$0xff] %v186_v8   ;;  %v198_v11 = vld [vmem:[%s2373_s25 + $0x58] sm:$0xff]   ;;  %191 = vst [vmem:[%s2378_s26 + $0x48] sm:$0xff] %v190_v9   ;;  %v202_v12 = vld [vmem:[%s2373_s25 + $0x60] sm:$0xf] }
  0x16   : > { %195 = vst [vmem:[%s2378_s26 + $0x50] sm:$0xff] %v194_v10   ;;  %199 = vst [vmem:[%s2378_s26 + $0x58] sm:$0xff] %v198_v11   ;;  %v204_v13 = vld [vmem:[%s2373_s25 + $0xc8] sm:$0xff]   ;;  %v208_v14 = vld [vmem:[%s2373_s25 + $0xd0] sm:$0xff]  }
  0x17   : > { %203 = vst [vmem:[%s2378_s26 + $0x60] sm:$0xf] %v202_v12  ;;  %205 = vst [vmem:[%s2378_s26 + $0x64] sm:$0xff] %v204_v13   ;;  %v212_v15 = vld [vmem:[%s2373_s25 + $0xd8] sm:$0xff]   ;;  %v216_v16 = vld [vmem:[%s2373_s25 + $0xe0] sm:$0xff]  }
  0x18   : > { %209 = vst [vmem:[%s2378_s26 + $0x6c] sm:$0xff] %v208_v14   ;;  %v220_v17 = vld [vmem:[%s2373_s25 + $0xe8] sm:$0xff]   ;;  %213 = vst [vmem:[%s2378_s26 + $0x74] sm:$0xff] %v212_v15   ;;  %v224_v18 = vld [vmem:[%s2373_s25 + $0xf0] sm:$0xff]  }
  0x19   : > { %217 = vst [vmem:[%s2378_s26 + $0x7c] sm:$0xff] %v216_v16   ;;  %221 = vst [vmem:[%s2378_s26 + $0x84] sm:$0xff] %v220_v17   ;;  %v228_v19 = vld [vmem:[%s2373_s25 + $0xf8] sm:$0xff]   ;;  %v232_v20 = vld [vmem:[%s2373_s25 + $0x100] sm:$0xff]  }
  0x1a   : > { %225 = vst [vmem:[%s2378_s26 + $0x8c] sm:$0xff] %v224_v18   ;;  %229 = vst [vmem:[%s2378_s26 + $0x94] sm:$0xff] %v228_v19   ;;  %v236_v21 = vld [vmem:[%s2373_s25 + $0x108] sm:$0xff]   ;;  %v240_v22 = vld [vmem:[%s2373_s25 + $0x110] sm:$0xff]  }
  0x1b   : > { %233 = vst [vmem:[%s2378_s26 + $0x9c] sm:$0xff] %v232_v20   ;;  %v244_v23 = vld [vmem:[%s2373_s25 + $0x118] sm:$0xff]   ;;  %237 = vst [vmem:[%s2378_s26 + $0xa4] sm:$0xff] %v236_v21   ;;  %v248_v24 = vld [vmem:[%s2373_s25 + $0x120] sm:$0xff]  }
  0x1c   : > { %241 = vst [vmem:[%s2378_s26 + $0xac] sm:$0xff] %v240_v22   ;;  %245 = vst [vmem:[%s2378_s26 + $0xb4] sm:$0xff] %v244_v23   ;;  %v252_v25 = vld [vmem:[%s2373_s25 + $0x128] sm:$0xf]  ;;  %v254_v26 = vld [vmem:[%s2373_s25 + $0x190] sm:$0xff]  }
  0x1d   : > { %249 = vst [vmem:[%s2378_s26 + $0xbc] sm:$0xff] %v248_v24   ;;  %253 = vst [vmem:[%s2378_s26 + $0xc4] sm:$0xf] %v252_v25  ;;  %v258_v27 = vld [vmem:[%s2373_s25 + $0x198] sm:$0xff]   ;;  %v262_v28 = vld [vmem:[%s2373_s25 + $0x1a0] sm:$0xff]  }
  0x1e   : > { %255 = vst [vmem:[%s2378_s26 + $0xc8] sm:$0xff] %v254_v26   ;;  %v266_v29 = vld [vmem:[%s2373_s25 + $0x1a8] sm:$0xff]   ;;  %259 = vst [vmem:[%s2378_s26 + $0xd0] sm:$0xff] %v258_v27   ;;  %v270_v30 = vld [vmem:[%s2373_s25 + $0x1b0] sm:$0xff]  }
  0x1f   : > { %263 = vst [vmem:[%s2378_s26 + $0xd8] sm:$0xff] %v262_v28   ;;  %267 = vst [vmem:[%s2378_s26 + $0xe0] sm:$0xff] %v266_v29   ;;  %v274_v31 = vld [vmem:[%s2373_s25 + $0x1b8] sm:$0xff]   ;;  %v278_v32 = vld [vmem:[%s2373_s25 + $0x1c0] sm:$0xff]  }
  0x20   : > { %271 = vst [vmem:[%s2378_s26 + $0xe8] sm:$0xff] %v270_v30   ;;  %275 = vst [vmem:[%s2378_s26 + $0xf0] sm:$0xff] %v274_v31   ;;  %v282_v33 = vld [vmem:[%s2373_s25 + $0x1c8] sm:$0xff]   ;;  %v286_v34 = vld [vmem:[%s2373_s25 + $0x1d0] sm:$0xff]  }
  0x21   : > { %279 = vst [vmem:[%s2378_s26 + $0xf8] sm:$0xff] %v278_v32   ;;  %v290_v35 = vld [vmem:[%s2373_s25 + $0x1d8] sm:$0xff]   ;;  %283 = vst [vmem:[%s2378_s26 + $0x100] sm:$0xff] %v282_v33   ;;  %v294_v36 = vld [vmem:[%s2373_s25 + $0x1e0] sm:$0xff]  }
  0x22   : > { %287 = vst [vmem:[%s2378_s26 + $0x108] sm:$0xff] %v286_v34   ;;  %291 = vst [vmem:[%s2378_s26 + $0x110] sm:$0xff] %v290_v35   ;;  %v298_v37 = vld [vmem:[%s2373_s25 + $0x1e8] sm:$0xff]   ;;  %v302_v38 = vld [vmem:[%s2373_s25 + $0x1f0] sm:$0xf] }
  0x23   : > { %295 = vst [vmem:[%s2378_s26 + $0x118] sm:$0xff] %v294_v36   ;;  %299 = vst [vmem:[%s2378_s26 + $0x120] sm:$0xff] %v298_v37   ;;  %v304_v39 = vld [vmem:[%s2373_s25 + $0x258] sm:$0xff]   ;;  %v308_v40 = vld [vmem:[%s2373_s25 + $0x260] sm:$0xff]  }
  0x24   : > { %303 = vst [vmem:[%s2378_s26 + $0x128] sm:$0xf] %v302_v38  ;;  %v312_v41 = vld [vmem:[%s2373_s25 + $0x268] sm:$0xff]   ;;  %305 = vst [vmem:[%s2378_s26 + $0x12c] sm:$0xff] %v304_v39   ;;  %v316_v42 = vld [vmem:[%s2373_s25 + $0x270] sm:$0xff]  }
  0x25   : > { %309 = vst [vmem:[%s2378_s26 + $0x134] sm:$0xff] %v308_v40   ;;  %313 = vst [vmem:[%s2378_s26 + $0x13c] sm:$0xff] %v312_v41   ;;  %v320_v43 = vld [vmem:[%s2373_s25 + $0x278] sm:$0xff]   ;;  %v324_v44 = vld [vmem:[%s2373_s25 + $0x280] sm:$0xff]  }
  0x26   : > { %317 = vst [vmem:[%s2378_s26 + $0x144] sm:$0xff] %v316_v42   ;;  %321 = vst [vmem:[%s2378_s26 + $0x14c] sm:$0xff] %v320_v43   ;;  %v328_v45 = vld [vmem:[%s2373_s25 + $0x288] sm:$0xff]   ;;  %v332_v46 = vld [vmem:[%s2373_s25 + $0x290] sm:$0xff]  }
  0x27   : > { %325 = vst [vmem:[%s2378_s26 + $0x154] sm:$0xff] %v324_v44   ;;  %v336_v47 = vld [vmem:[%s2373_s25 + $0x298] sm:$0xff]   ;;  %329 = vst [vmem:[%s2378_s26 + $0x15c] sm:$0xff] %v328_v45   ;;  %v340_v48 = vld [vmem:[%s2373_s25 + $0x2a0] sm:$0xff]  }
  0x28   : > { %333 = vst [vmem:[%s2378_s26 + $0x164] sm:$0xff] %v332_v46   ;;  %337 = vst [vmem:[%s2378_s26 + $0x16c] sm:$0xff] %v336_v47   ;;  %v344_v49 = vld [vmem:[%s2373_s25 + $0x2a8] sm:$0xff]   ;;  %v348_v50 = vld [vmem:[%s2373_s25 + $0x2b0] sm:$0xff]  }
  0x29   : > { %341 = vst [vmem:[%s2378_s26 + $0x174] sm:$0xff] %v340_v48   ;;  %345 = vst [vmem:[%s2378_s26 + $0x17c] sm:$0xff] %v344_v49   ;;  %v352_v51 = vld [vmem:[%s2373_s25 + $0x2b8] sm:$0xf] }
  0x2a   : > { %349 = vst [vmem:[%s2378_s26 + $0x184] sm:$0xff] %v348_v50   ;;  %353 = vst [vmem:[%s2378_s26 + $0x18c] sm:$0xf] %v352_v51 }
  0x2b PF: > { %p1836_p5 = scmp.ge.s32.totalorder %s2317_s14, 1  ;;  %p576_p6 = scmp.lt.s32.totalorder %s2317_s14, 3 }
  0x2d   : > { %p577_p7 = pnand %p1836_p5, %p576_p6 }
  0x2f   : > { %580 = sbr.rel (%p577_p7) target bundleno = 391 (0x187), region = 69 }
  0x34   : > { %v2237_v52 = vld [vmem:[%s2771_s1 + $0x38] sm:$0xff]   ;;  %s583_s29 = sand.u32 1, %s2309_s12   ;;  %v2238_v53 = vld [vmem:[%s2771_s1 + $0x30] sm:$0xff]   ;;  %v2239_v54 = vld [vmem:[%s2771_s1 + $0x28] sm:$0xff]   ;;  %s607_s24 = smul.u32 25, %s1831_s15 }
  0x35   : > { %s2212_s5 = smul.u32 400, %s583_s29  ;;  %2079 = vmatprep.subr.bf16.mxu0 %v2237_v52  ;;  %2195 = vmatprep.subr.bf16.mxu1 %v2237_v52  ;;  %v2240_v55 = vld [vmem:[%s2771_s1 + $0x20] sm:$0xff]   ;;  %v2241_v58 = vld [vmem:[%s2771_s1 + $0x18] sm:$0xff]   ;;  %v2242_v59 = vld [vmem:[%s2771_s1 + $0x10] sm:$0xff]  }
  0x36   : > { %2080 = vmatpush3.bf16.msra.mxu0 %v2237_v52  ;;  %2203 = vmatpush3.bf16.msra.mxu1 %v2237_v52  ;;  %v2243_v60 = vld [vmem:[%s2771_s1 + $0x8] sm:$0xff]   ;;  %v2244_v61 = vld [vmem:[%s2771_s1] sm:$0xff]   ;;  %p608_p8 = scmp.lt.s32.totalorder %s607_s24, 49 }
  0x37   : > { %2081 = vmatprep.subr.bf16.mxu0 %v2238_v53  ;;  %2196 = vmatprep.subr.bf16.mxu1 %v2238_v53  ;;  %s2496_s10 = scalar_lea.vmem [#allocation2], %s2212_s5 }
  0x38   : > { %v2245_v56 = vld [vmem:[%s2496_s10] sm:$0xff]   ;;  %v2246_v57 = vld [vmem:[%s2496_s10 + $0xd0] sm:$0xff]   ;;  %v2247_v62 = vld [vmem:[%s2496_s10 + $0x8] sm:$0xff]   ;;  %s2792_s24 = smov (!%p608_p8, %s607_s24), 49 }
  0x39   : > { %2095 = vmatprep.mubr.bf16.mxu0 %v2245_v56  ;;  %2147 = vmatprep.mubr.bf16.mxu1 %v2246_v57  ;;  %v2248_v63 = vld [vmem:[%s2496_s10 + $0xd8] sm:$0xff]   ;;  %v2249_v0 = vld [vmem:[%s2496_s10 + $0x10] sm:$0xff]   ;;  %v2250_v1 = vld [vmem:[%s2496_s10 + $0xe0] sm:$0xff]   ;;  %s1837_s14 = sshll.u32 %s2792_s24, 2 }
  0x3a   : > { %2082 = vmatpush3.bf16.msra.mxu0 %v2238_v53  ;;  %2204 = vmatpush3.bf16.msra.mxu1 %v2238_v53  ;;  %v2251_v2 = vld [vmem:[%s2496_s10 + $0x18] sm:$0xff]   ;;  %v2252_v3 = vld [vmem:[%s2496_s10 + $0xe8] sm:$0xff]   ;;  %v2253_v4 = vld [vmem:[%s2496_s10 + $0x20] sm:$0xff]   ;;  %s2681_s28 = scalar_lea.vmem %s2773_s3, %s1837_s14 }
  0x3b   : > { %2083 = vmatprep.subr.bf16.mxu0 %v2239_v54  ;;  %2197 = vmatprep.subr.bf16.mxu1 %v2239_v54  ;;  %v2254_v5 = vld [vmem:[%s2496_s10 + $0xf0] sm:$0xff]   ;;  %v2255_v6 = vld [vmem:[%s2496_s10 + $0x28] sm:$0xff]   ;;  %v2256_v7 = vld [vmem:[%s2496_s10 + $0xf8] sm:$0xff]  }
  0x3c   : > { %v2257_v8 = vld [vmem:[%s2496_s10 + $0x30] sm:$0xff]   ;;  %v2258_v9 = vld [vmem:[%s2496_s10 + $0x100] sm:$0xff]   ;;  %v2259_v10 = vld [vmem:[%s2496_s10 + $0x38] sm:$0xff]  }
  0x3d   : > { %v2260_v11 = vld [vmem:[%s2496_s10 + $0x108] sm:$0xff]   ;;  %v2261_v12 = vld [vmem:[%s2496_s10 + $0x40] sm:$0xff]   ;;  %v2262_v13 = vld [vmem:[%s2496_s10 + $0x110] sm:$0xff]  }
  0x3e   : > { %2084 = vmatpush3.bf16.msra.mxu0 %v2239_v54  ;;  %2205 = vmatpush3.bf16.msra.mxu1 %v2239_v54  ;;  %v2263_v14 = vld [vmem:[%s2496_s10 + $0x48] sm:$0xff]   ;;  %v2264_v15 = vld [vmem:[%s2496_s10 + $0x118] sm:$0xff]   ;;  %v2265_v16 = vld [vmem:[%s2496_s10 + $0x50] sm:$0xff]  }
  0x3f   : > { %2085 = vmatprep.subr.bf16.mxu0 %v2240_v55  ;;  %2198 = vmatprep.subr.bf16.mxu1 %v2240_v55  ;;  %v2266_v17 = vld [vmem:[%s2496_s10 + $0x120] sm:$0xff]   ;;  %v2267_v18 = vld [vmem:[%s2496_s10 + $0x58] sm:$0xff]   ;;  %v2268_v19 = vld [vmem:[%s2496_s10 + $0x128] sm:$0xff]  }
  0x40   : > { %v2269_v20 = vld [vmem:[%s2496_s10 + $0x60] sm:$0xff]   ;;  %v2270_v21 = vld [vmem:[%s2496_s10 + $0x130] sm:$0xff]   ;;  %v2271_v22 = vld [vmem:[%s2496_s10 + $0x68] sm:$0xff]  }
  0x41   : > { %v2272_v23 = vld [vmem:[%s2496_s10 + $0x138] sm:$0xff]   ;;  %v2273_v24 = vld [vmem:[%s2496_s10 + $0x70] sm:$0xff]   ;;  %v2274_v25 = vld [vmem:[%s2496_s10 + $0x140] sm:$0xff]  }
  0x42   : > { %2086 = vmatpush3.bf16.msra.mxu0 %v2240_v55  ;;  %2206 = vmatpush3.bf16.msra.mxu1 %v2240_v55  ;;  %v2275_v26 = vld [vmem:[%s2496_s10 + $0x78] sm:$0xff]   ;;  %v2276_v27 = vld [vmem:[%s2496_s10 + $0x148] sm:$0xff]   ;;  %v2277_v28 = vld [vmem:[%s2496_s10 + $0x80] sm:$0xff]  }
  0x43   : > { %2087 = vmatprep.subr.bf16.mxu0 %v2241_v58  ;;  %2199 = vmatprep.subr.bf16.mxu1 %v2241_v58  ;;  %v2278_v29 = vld [vmem:[%s2496_s10 + $0x150] sm:$0xff]   ;;  %v2279_v30 = vld [vmem:[%s2496_s10 + $0x88] sm:$0xff]   ;;  %v2280_v31 = vld [vmem:[%s2496_s10 + $0x158] sm:$0xff]  }
  0x44   : > { %v2281_v32 = vld [vmem:[%s2496_s10 + $0x90] sm:$0xff]   ;;  %v2282_v33 = vld [vmem:[%s2496_s10 + $0x160] sm:$0xff]   ;;  %v2283_v34 = vld [vmem:[%s2496_s10 + $0x98] sm:$0xff]  }
  0x45   : > { %v2284_v35 = vld [vmem:[%s2496_s10 + $0x168] sm:$0xff]   ;;  %v2285_v36 = vld [vmem:[%s2496_s10 + $0xa0] sm:$0xff]   ;;  %v2286_v37 = vld [vmem:[%s2496_s10 + $0x170] sm:$0xff]  }
  0x46   : > { %2088 = vmatpush3.bf16.msra.mxu0 %v2241_v58  ;;  %2207 = vmatpush3.bf16.msra.mxu1 %v2241_v58  ;;  %v2287_v38 = vld [vmem:[%s2496_s10 + $0xa8] sm:$0xff]   ;;  %v2288_v39 = vld [vmem:[%s2496_s10 + $0x178] sm:$0xff]   ;;  %v2289_v40 = vld [vmem:[%s2496_s10 + $0xb0] sm:$0xff]  }
  0x47   : > { %2089 = vmatprep.subr.bf16.mxu0 %v2242_v59  ;;  %2200 = vmatprep.subr.bf16.mxu1 %v2242_v59  ;;  %v2290_v41 = vld [vmem:[%s2496_s10 + $0x180] sm:$0xff]   ;;  %v2291_v42 = vld [vmem:[%s2496_s10 + $0xb8] sm:$0xff]   ;;  %v2292_v43 = vld [vmem:[%s2496_s10 + $0x188] sm:$0xff]  }
  0x48   : > { %v2293_v44 = vld [vmem:[%s2496_s10 + $0xc0] sm:$0xff]   ;;  %v2294_v45 = vld [vmem:[%s2496_s10 + $0xc8] sm:$0xff]  }
  0x4a   : > { %2090 = vmatpush3.bf16.msra.mxu0 %v2242_v59  ;;  %2208 = vmatpush3.bf16.msra.mxu1 %v2242_v59 }
  0x4b   : > { %2091 = vmatprep.subr.bf16.mxu0 %v2243_v60  ;;  %2201 = vmatprep.subr.bf16.mxu1 %v2243_v60 }
  0x4e   : > { %2092 = vmatpush3.bf16.msra.mxu0 %v2243_v60  ;;  %2209 = vmatpush3.bf16.msra.mxu1 %v2243_v60 }
  0x4f   : > { %2093 = vmatprep.subr.bf16.mxu0 %v2244_v61  ;;  %2202 = vmatprep.subr.bf16.mxu1 %v2244_v61 }
  0x52   : > { %2094 = vmatpush3.bf16.msra.mxu0 %v2244_v61  ;;  %2210 = vmatpush3.bf16.msra.mxu1 %v2244_v61 }
  0x55   : > { %2096 = vmatmul.mubr.bf16.vlgmr.msra.gmra.mxu0 %v2247_v62  ;;  %2148 = vmatmul.mubr.bf16.vlgmr.msra.gmra.mxu1 %v2248_v63 }
  0x56   : > { %2099 = vmatprep.mubr.bf16.mxu0 %v2249_v0  ;;  %2151 = vmatprep.mubr.bf16.mxu1 %v2250_v1 }
  0x5d   : > { %2100 = vmatmul.mubr.bf16.gmra.mxu0 %v2251_v2  ;;  %2152 = vmatmul.mubr.bf16.gmra.mxu1 %v2252_v3 }
  0x5e   : > { %2103 = vmatprep.mubr.bf16.mxu0 %v2253_v4  ;;  %2155 = vmatprep.mubr.bf16.mxu1 %v2254_v5 }
  0x65   : > { %2104 = vmatmul.mubr.bf16.gmra.mxu0 %v2255_v6  ;;  %2156 = vmatmul.mubr.bf16.gmra.mxu1 %v2256_v7 }
  0x66   : > { %2107 = vmatprep.mubr.bf16.mxu0 %v2257_v8  ;;  %2159 = vmatprep.mubr.bf16.mxu1 %v2258_v9 }
  0x6d   : > { %2108 = vmatmul.mubr.bf16.gmra.mxu0 %v2259_v10  ;;  %2160 = vmatmul.mubr.bf16.gmra.mxu1 %v2260_v11 }
  0x6e   : > { %2111 = vmatprep.mubr.bf16.mxu0 %v2261_v12  ;;  %2163 = vmatprep.mubr.bf16.mxu1 %v2262_v13 }
  0x75   : > { %2112 = vmatmul.mubr.bf16.gmra.mxu0 %v2263_v14  ;;  %2164 = vmatmul.mubr.bf16.gmra.mxu1 %v2264_v15 }
  0x76   : > { %2115 = vmatprep.mubr.bf16.mxu0 %v2265_v16  ;;  %2167 = vmatprep.mubr.bf16.mxu1 %v2266_v17 }
  0x7d   : > { %2116 = vmatmul.mubr.bf16.gmra.mxu0 %v2267_v18  ;;  %2168 = vmatmul.mubr.bf16.gmra.mxu1 %v2268_v19 }
  0x7e   : > { %2119 = vmatprep.mubr.bf16.mxu0 %v2269_v20  ;;  %2171 = vmatprep.mubr.bf16.mxu1 %v2270_v21 }
  0x85   : > { %2120 = vmatmul.mubr.bf16.gmra.mxu0 %v2271_v22  ;;  %2172 = vmatmul.mubr.bf16.gmra.mxu1 %v2272_v23 }
  0x86   : > { %2123 = vmatprep.mubr.bf16.mxu0 %v2273_v24  ;;  %2175 = vmatprep.mubr.bf16.mxu1 %v2274_v25 }
  0x8d   : > { %2124 = vmatmul.mubr.bf16.gmra.mxu0 %v2275_v26  ;;  %2176 = vmatmul.mubr.bf16.gmra.mxu1 %v2276_v27 }
  0x8e   : > { %2127 = vmatprep.mubr.bf16.mxu0 %v2277_v28  ;;  %2179 = vmatprep.mubr.bf16.mxu1 %v2278_v29 }
  0x95   : > { %2128 = vmatmul.mubr.bf16.gmra.mxu0 %v2279_v30  ;;  %2180 = vmatmul.mubr.bf16.gmra.mxu1 %v2280_v31 }
  0x96   : > { %2131 = vmatprep.mubr.bf16.mxu0 %v2281_v32  ;;  %2183 = vmatprep.mubr.bf16.mxu1 %v2282_v33 }
  0x9d   : > { %2132 = vmatmul.mubr.bf16.gmra.mxu0 %v2283_v34  ;;  %2184 = vmatmul.mubr.bf16.gmra.mxu1 %v2284_v35 }
  0x9e   : > { %2135 = vmatprep.mubr.bf16.mxu0 %v2285_v36  ;;  %2187 = vmatprep.mubr.bf16.mxu1 %v2286_v37 }
  0xa5   : > { %2136 = vmatmul.mubr.bf16.gmra.mxu0 %v2287_v38  ;;  %2188 = vmatmul.mubr.bf16.gmra.mxu1 %v2288_v39 }
  0xa6   : > { %2139 = vmatprep.mubr.bf16.mxu0 %v2289_v40  ;;  %2191 = vmatprep.mubr.bf16.mxu1 %v2290_v41 }
  0xad   : > { %2140 = vmatmul.mubr.bf16.gmra.mxu0 %v2291_v42  ;;  %2192 = vmatmul.mubr.bf16.gmra.mxu1 %v2292_v43  ;;  %v2666_v43 = vld [vmem:[%s2772_s2] ss:$0 sm:$0xff] }
  0xae   : > { %2143 = vmatprep.mubr.bf16.mxu0 %v2293_v44 }
  0xb5   : > { %2144 = vmatmul.mubr.bf16.gmra.mxu0 %v2294_v45 }
 0x115   : > { %v2560_v46 = vpop.f32.mrf.mxu0  ;;  %v2562_v47 = vpop.f32.mrf.mxu1 }
 0x117   : > { %v2564_v48 = vpop.f32.mrf.mxu0  ;;  %v1320_v49 = vpop.f32.mrf.mxu1 }
 0x119   : > { %v2566_v50 = vpop.f32.mrf.mxu0  ;;  %v2568_v51 = vpop.f32.mrf.mxu1 }
 0x11b   : > { %v2570_v52 = vpop.f32.mrf.mxu0  ;;  %v2572_v53 = vpop.f32.mrf.mxu1 }
 0x11c   : > { %2774 = vst [vmem:[#allocation3_spill] sm:$0xff] %v2570_v52 }
 0x11d   : > { %v2574_v54 = vpop.f32.mrf.mxu0  ;;  %v2576_v55 = vpop.f32.mrf.mxu1 }
 0x11f   : > { %v2578_v56 = vpop.f32.mrf.mxu0  ;;  %v2580_v57 = vpop.f32.mrf.mxu1 }
 0x121   : > { %v2582_v58 = vpop.f32.mrf.mxu0  ;;  %v2584_v59 = vpop.f32.mrf.mxu1 }
 0x123   : > { %v1131_v60 = vpop.f32.mrf.mxu0  ;;  %v2586_v61 = vpop.f32.mrf.mxu1 }
 0x125   : > { %v2588_v62 = vpop.f32.mrf.mxu0  ;;  %v2590_v63 = vpop.f32.mrf.mxu1 }
 0x127   : > { %v2592_v0 = vpop.f32.mrf.mxu0  ;;  %v2594_v1 = vpop.f32.mrf.mxu1 }
 0x129   : > { %v2596_v2 = vpop.f32.mrf.mxu0  ;;  %v2598_v3 = vpop.f32.mrf.mxu1 }
 0x12b   : > { %v2600_v4 = vpop.f32.mrf.mxu0  ;;  %v2602_v5 = vpop.f32.mrf.mxu1 }
 0x12d   : > { %v2604_v6 = vpop.f32.mrf.mxu0  ;;  %v2606_v7 = vpop.f32.mrf.mxu1 }
 0x12f   : > { %v2608_v8 = vpop.f32.mrf.mxu0  ;;  %v2610_v9 = vpop.f32.mrf.mxu1 }
 0x131   : > { %v2612_v10 = vpop.f32.mrf.mxu0  ;;  %v2614_v11 = vpop.f32.mrf.mxu1 }
 0x133   : > { %v2616_v12 = vpop.f32.mrf.mxu0  ;;  %v2618_v13 = vpop.f32.mrf.mxu1 }
 0x135   : > { %v2620_v14 = vpop.f32.mrf.mxu0  ;;  %v2622_v15 = vpop.f32.mrf.mxu1 }
 0x137   : > { %v2624_v16 = vpop.f32.mrf.mxu0  ;;  %v2626_v17 = vpop.f32.mrf.mxu1 }
 0x139   : > { %v2628_v18 = vpop.f32.mrf.mxu0  ;;  %v2630_v19 = vpop.f32.mrf.mxu1 }
 0x13b   : > { %v2632_v20 = vpop.f32.mrf.mxu0  ;;  %v2634_v21 = vpop.f32.mrf.mxu1 }
 0x13d   : > { %v2636_v22 = vpop.f32.mrf.mxu0  ;;  %v2638_v23 = vpop.f32.mrf.mxu1 }
 0x13e   : > { %2775 = vst [vmem:[#allocation4_spill] sm:$0xff] %v2638_v23 }
 0x13f   : > { %v2640_v24 = vpop.f32.mrf.mxu0  ;;  %v2642_v25 = vpop.f32.mrf.mxu1 }
 0x141   : > { %v2644_v26 = vpop.f32.mrf.mxu0  ;;  %v2646_v27 = vpop.f32.mrf.mxu1 }
 0x142   : > { %2776 = vst [vmem:[#allocation5_spill] sm:$0xff] %v2644_v26 }
 0x143   : > { %v2648_v28 = vpop.f32.mrf.mxu0  ;;  %v2650_v29 = vpop.f32.mrf.mxu1 }
 0x144   : > { %2777 = vst [vmem:[#allocation6_spill] sm:$0xff] %v2650_v29 }
 0x145   : > { %v2652_v30 = vpop.f32.mrf.mxu0  ;;  %v2173_v31 = vpop.f32.mrf.mxu1 }
 0x146   : > { %2778 = vst [vmem:[#allocation7_spill] sm:$0xff] %v2652_v30 }
 0x147   : > { %v2654_v32 = vpop.f32.mrf.mxu0  ;;  %v2656_v33 = vpop.f32.mrf.mxu1 }
 0x148   : > { %2779 = vst [vmem:[#allocation8_spill] sm:$0xff] %v2654_v32  ;;  %2780 = vst [vmem:[#allocation9_spill] sm:$0xff] %v2656_v33  ;;  %v1539_v32 = vmax.f32 %v2572_v53, %v2173_v31 }
 0x149   : > { %v2122_v34 = vpop.f32.mrf.mxu0  ;;  %v2174_v35 = vpop.f32.mrf.mxu1 }
 0x14a   : > { %v1513_v38 = vmax.f32 %v2560_v46, %v2122_v34  ;;  %v1540_v52 = vmax.f32 %v2562_v47, %v2174_v35 }
 0x14b   : > { %v2660_v36 = vpop.f32.mrf.mxu0  ;;  %v1419_v37 = vpop.f32.mrf.mxu1 }
 0x14c   : > { %v1538_v39 = vmax.f32 %v1320_v49, %v1419_v37 }
 0x14d   : > { %v2125_v40 = vpop.f32.mrf.mxu0  ;;  %v2177_v41 = vpop.f32.mrf.mxu1 }
 0x14e   : > { %v1563_v42 = vmax.f32 %v1513_v38, %v1538_v39  ;;  %v1516_v23 = vmax.f32 %v1131_v60, %v2125_v40 }
 0x14f   : > { %v1224_v44 = vpop.f32.mrf.mxu0  ;;  %v1432_v45 = vpop.f32.mrf.mxu1 }
 0x150   : > { %v1514_v33 = vmax.f32 %v2566_v50, %v1224_v44  ;;  %v1541_v46 = vmax.f32 %v2568_v51, %v1432_v45  ;;  %v1595_v49 = vadd.f32 %v2666_v43, %v1563_v42 }
 0x151   : > { %v2126_v34 = vpop.f32.mrf.mxu0  ;;  %v2178_v37 = vpop.f32.mrf.mxu1 }
 0x152   : > { %v1564_v38 = vmax.f32 %v1514_v33, %v1539_v32  ;;  %v1566_v39 = vmax.f32 %v1516_v23, %v1541_v46  ;;  %v1517_v53 = vmax.f32 %v2574_v54, %v2126_v34  ;;  %v1620_v51 = vmax.f32 %v1595_v49, 0.0 }
 0x153   : > { %v1227_v30 = vpop.f32.mrf.mxu0  ;;  %v1435_v26 = vpop.f32.mrf.mxu1 }
 0x154   : > { %v1596_v29 = vadd.f32 %v2666_v43, %v1564_v38  ;;  %v1515_v60 = vmax.f32 %v2578_v56, %v1227_v30  ;;  %v1542_v50 = vmax.f32 %v2580_v57, %v1435_v26  ;;  %v1598_v32 = vadd.f32 %v2666_v43, %v1566_v39 }
 0x155   : > { %v2129_v31 = vpop.f32.mrf.mxu0  ;;  %v2181_v40 = vpop.f32.mrf.mxu1  ;;  %v1543_v56 = vmax.f32 %v2586_v61, %v2177_v41  ;;  %v1544_v61 = vmax.f32 %v2576_v55, %v2178_v37 }
 0x156   : > { %v1621_v42 = vmax.f32 %v1596_v29, 0.0  ;;  %v1565_v23 = vmax.f32 %v1515_v60, %v1540_v52  ;;  %v1567_v33 = vmax.f32 %v1517_v53, %v1542_v50  ;;  %v1520_v52 = vmax.f32 %v2600_v4, %v2129_v31 }
 0x157   : > { %v1240_v47 = vpop.f32.mrf.mxu0  ;;  %v1448_v54 = vpop.f32.mrf.mxu1  ;;  %v1623_v46 = vmax.f32 %v1598_v32, 0.0 }
 0x158   : > { %v1958_v30 = vpack.c.bf16 %v1621_v42, %v1620_v51  ;;  %v1597_v57 = vadd.f32 %v2666_v43, %v1565_v23  ;;  %v1518_v26 = vmax.f32 %v2582_v58, %v1240_v47  ;;  %v1599_v29 = vadd.f32 %v2666_v43, %v1567_v33 }
 0x159   : > { %v1545_v35 = vmax.f32 %v2584_v59, %v1448_v54  ;;  %v2130_v44 = vpop.f32.mrf.mxu0  ;;  %v2182_v45 = vpop.f32.mrf.mxu1  ;;  %v1547_v33 = vmax.f32 %v2602_v5, %v2181_v40 }
 0x15a   : > { %2010 = vst [vmem:[%s2681_s28 + $0x8] sm:$0xff] %v1958_v30   ;;  %v1622_v49 = vmax.f32 %v1597_v57, 0.0  ;;  %v1568_v34 = vmax.f32 %v1518_v26, %v1543_v56  ;;  %v1521_v38 = vmax.f32 %v2588_v62, %v2130_v44  ;;  %v1624_v50 = vmax.f32 %v1599_v29, 0.0 }
 0x15b   : > { %v1570_v41 = vmax.f32 %v1520_v52, %v1545_v35  ;;  %v1243_v39 = vpop.f32.mrf.mxu0  ;;  %v1451_v58 = vpop.f32.mrf.mxu1  ;;  %v1548_v5 = vmax.f32 %v2590_v63, %v2182_v45 }
 0x15c   : > { %v1963_v53 = vpack.c.bf16 %v1623_v46, %v1622_v49  ;;  %v1600_v60 = vadd.f32 %v2666_v43, %v1568_v34  ;;  %v1519_v4 = vmax.f32 %v2592_v0, %v1243_v39  ;;  %v1546_v59 = vmax.f32 %v2594_v1, %v1451_v58 }
 0x15d   : > { %v2133_v51 = vpop.f32.mrf.mxu0  ;;  %v2185_v31 = vpop.f32.mrf.mxu1  ;;  %v1602_v55 = vadd.f32 %v2666_v43, %v1570_v41 }
 0x15e   : > { %2011 = vst [vmem:[%s2681_s28 + $0x10] sm:$0xff] %v1963_v53   ;;  %v1625_v42 = vmax.f32 %v1600_v60, 0.0  ;;  %v1569_v37 = vmax.f32 %v1519_v4, %v1544_v61  ;;  %v1571_v32 = vmax.f32 %v1521_v38, %v1546_v59  ;;  %v1524_v56 = vmax.f32 %v2616_v12, %v2133_v51 }
 0x15f   : > { %v1256_v62 = vpop.f32.mrf.mxu0  ;;  %v1464_v23 = vpop.f32.mrf.mxu1  ;;  %v1627_v29 = vmax.f32 %v1602_v55, 0.0  ;;  %v1551_v60 = vmax.f32 %v2618_v13, %v2185_v31 }
 0x160   : > { %v1968_v47 = vpack.c.bf16 %v1625_v42, %v1624_v50  ;;  %v1601_v54 = vadd.f32 %v2666_v43, %v1569_v37  ;;  %v1522_v0 = vmax.f32 %v2596_v2, %v1256_v62  ;;  %v1603_v1 = vadd.f32 %v2666_v43, %v1571_v32 }
 0x161   : > { %v1549_v30 = vmax.f32 %v2598_v3, %v1464_v23  ;;  %v2134_v57 = vpop.f32.mrf.mxu0  ;;  %v2186_v26 = vpop.f32.mrf.mxu1 }
 0x162   : > { %2012 = vst [vmem:[%s2681_s28 + $0x18] sm:$0xff] %v1968_v47   ;;  %v1626_v52 = vmax.f32 %v1601_v54, 0.0  ;;  %v1572_v35 = vmax.f32 %v1522_v0, %v1547_v33  ;;  %v1525_v44 = vmax.f32 %v2604_v6, %v2134_v57  ;;  %v1628_v61 = vmax.f32 %v1603_v1, 0.0 }
 0x163   : > { %v1574_v40 = vmax.f32 %v1524_v56, %v1549_v30  ;;  %v1259_v46 = vpop.f32.mrf.mxu0  ;;  %v1467_v2 = vpop.f32.mrf.mxu1  ;;  %v1552_v13 = vmax.f32 %v2606_v7, %v2186_v26 }
 0x164   : > { %v1973_v49 = vpack.c.bf16 %v1627_v29, %v1626_v52  ;;  %v1604_v34 = vadd.f32 %v2666_v43, %v1572_v35  ;;  %v1523_v12 = vmax.f32 %v2608_v8, %v1259_v46  ;;  %v1550_v3 = vmax.f32 %v2610_v9, %v1467_v2 }
 0x165   : > { %v2137_v41 = vpop.f32.mrf.mxu0  ;;  %v2189_v38 = vpop.f32.mrf.mxu1  ;;  %v1606_v63 = vadd.f32 %v2666_v43, %v1574_v40 }
 0x166   : > { %2013 = vst [vmem:[%s2681_s28 + $0x20] sm:$0xff] %v1973_v49   ;;  %v1629_v39 = vmax.f32 %v1604_v34, 0.0  ;;  %v1573_v45 = vmax.f32 %v1523_v12, %v1548_v5  ;;  %v1575_v58 = vmax.f32 %v1525_v44, %v1550_v3  ;;  %v1528_v50 = vmax.f32 %v2632_v20, %v2137_v41 }
 0x167   : > { %v1272_v6 = vpop.f32.mrf.mxu0  ;;  %v1480_v53 = vpop.f32.mrf.mxu1  ;;  %v1631_v37 = vmax.f32 %v1606_v63, 0.0  ;;  %v1555_v52 = vmax.f32 %v2634_v21, %v2189_v38 }
 0x168   : > { %v1978_v4 = vpack.c.bf16 %v1629_v39, %v1628_v61  ;;  %v1605_v59 = vadd.f32 %v2666_v43, %v1573_v45  ;;  %v1526_v8 = vmax.f32 %v2612_v10, %v1272_v6  ;;  %v1607_v9 = vadd.f32 %v2666_v43, %v1575_v58 }
 0x169   : > { %v1553_v51 = vmax.f32 %v2614_v11, %v1480_v53  ;;  %v2138_v42 = vpop.f32.mrf.mxu0  ;;  %v2190_v55 = vpop.f32.mrf.mxu1 }
 0x16a   : > { %2014 = vst [vmem:[%s2681_s28 + $0x28] sm:$0xff] %v1978_v4   ;;  %v1630_v32 = vmax.f32 %v1605_v59, 0.0  ;;  %v1576_v62 = vmax.f32 %v1526_v8, %v1551_v60  ;;  %v1529_v23 = vmax.f32 %v2620_v14, %v2138_v42  ;;  %v1632_v0 = vmax.f32 %v1607_v9, 0.0  ;;  %v2781_v9 = vld [vmem:[#allocation6_spill] sm:$0xff]  ;;  %v2784_v42 = vld [vmem:[#allocation3_spill] sm:$0xff] }
 0x16b   : > { %v1578_v31 = vmax.f32 %v1528_v50, %v1553_v51  ;;  %v1275_v33 = vpop.f32.mrf.mxu0  ;;  %v1483_v10 = vpop.f32.mrf.mxu1  ;;  %v1556_v21 = vmax.f32 %v2622_v15, %v2190_v55  ;;  %v2783_v51 = vld [vmem:[#allocation7_spill] sm:$0xff] }
 0x16c   : > { %v1983_v47 = vpack.c.bf16 %v1631_v37, %v1630_v32  ;;  %v1608_v54 = vadd.f32 %v2666_v43, %v1576_v62  ;;  %v1527_v20 = vmax.f32 %v2624_v16, %v1275_v33  ;;  %v1554_v11 = vmax.f32 %v2626_v17, %v1483_v10  ;;  %v2785_v62 = vld [vmem:[#allocation9_spill] sm:$0xff] }
 0x16d   : > { %v2141_v1 = vpop.f32.mrf.mxu0  ;;  %v2193_v56 = vpop.f32.mrf.mxu1  ;;  %v1610_v7 = vadd.f32 %v2666_v43, %v1578_v31  ;;  %v1512_v55 = vmax.f32 %v2784_v42, %v2783_v51 }
 0x16e   : > { %2015 = vst [vmem:[%s2681_s28 + $0x30] sm:$0xff] %v1983_v47   ;;  %v1633_v30 = vmax.f32 %v1608_v54, 0.0  ;;  %v1577_v57 = vmax.f32 %v1527_v20, %v1552_v13  ;;  %v1579_v26 = vmax.f32 %v1529_v23, %v1554_v11  ;;  %v1532_v40 = vmax.f32 %v2648_v28, %v2141_v1  ;;  %v2786_v13 = vld [vmem:[#allocation4_spill] sm:$0xff] }
 0x16f   : > { %v1288_v14 = vpop.f32.mrf.mxu0  ;;  %v1496_v29 = vpop.f32.mrf.mxu1  ;;  %v1635_v49 = vmax.f32 %v1610_v7, 0.0  ;;  %v2787_v11 = vld [vmem:[#allocation8_spill] sm:$0xff] }
 0x170   : > { %v1988_v35 = vpack.c.bf16 %v1633_v30, %v1632_v0  ;;  %v1609_v5 = vadd.f32 %v2666_v43, %v1577_v57  ;;  %v1530_v16 = vmax.f32 %v2628_v18, %v1288_v14  ;;  %v1611_v17 = vadd.f32 %v2666_v43, %v1579_v26 }
 0x171   : > { %v1557_v44 = vmax.f32 %v2630_v19, %v1496_v29  ;;  %v2142_v46 = vpop.f32.mrf.mxu0  ;;  %v2194_v2 = vpop.f32.mrf.mxu1  ;;  %v1511_v19 = vmax.f32 %v2564_v48, %v2660_v36  ;;  %v1559_v48 = vmax.f32 %v2781_v9, %v2193_v56  ;;  %v2782_v36 = vld [vmem:[#allocation5_spill] sm:$0xff] }
 0x172   : > { %2016 = vst [vmem:[%s2681_s28 + $0x38] sm:$0xff] %v1988_v35   ;;  %v1634_v34 = vmax.f32 %v1609_v5, 0.0  ;;  %v1580_v12 = vmax.f32 %v1530_v16, %v1555_v52  ;;  %v1636_v63 = vmax.f32 %v1611_v17, 0.0  ;;  %v1533_v45 = vmax.f32 %v2636_v22, %v2142_v46 }
 0x173   : > { %v1582_v3 = vmax.f32 %v1532_v40, %v1557_v44  ;;  %v1291_v61 = vpop.f32.mrf.mxu0  ;;  %v1499_v41 = vpop.f32.mrf.mxu1  ;;  %v1560_v31 = vmax.f32 %v2786_v13, %v2194_v2 }
 0x174   : > { %v1993_v38 = vpack.c.bf16 %v1635_v49, %v1634_v34  ;;  %v1612_v18 = vadd.f32 %v2666_v43, %v1580_v12  ;;  %v1531_v39 = vmax.f32 %v2640_v24, %v1291_v61  ;;  %v1558_v28 = vmax.f32 %v2642_v25, %v1499_v41 }
 0x175   : > { %v2145_v58 = vpop.f32.mrf.mxu0  ;;  %v1614_v6 = vadd.f32 %v2666_v43, %v1582_v3 }
 0x176   : > { %2017 = vst [vmem:[%s2681_s28 + $0x40] sm:$0xff] %v1993_v38   ;;  %v1637_v15 = vmax.f32 %v1612_v18, 0.0  ;;  %v1581_v53 = vmax.f32 %v1531_v39, %v1556_v21  ;;  %v1536_v60 = vmax.f32 %v2145_v58, %v2646_v27  ;;  %v1583_v4 = vmax.f32 %v1533_v45, %v1558_v28 }
 0x177   : > { %v1304_v59 = vpop.f32.mrf.mxu0  ;;  %v1639_v37 = vmax.f32 %v1614_v6, 0.0 }
 0x178   : > { %v1998_v24 = vpack.c.bf16 %v1637_v15, %v1636_v63  ;;  %v1613_v25 = vadd.f32 %v2666_v43, %v1581_v53  ;;  %v1561_v8 = vmax.f32 %v1511_v19, %v1536_v60  ;;  %v1534_v50 = vmax.f32 %v2782_v36, %v1304_v59 }
 0x179   : > { %v2146_v22 = vpop.f32.mrf.mxu0  ;;  %v1615_v23 = vadd.f32 %v2666_v43, %v1583_v4 }
 0x17a   : > { %2018 = vst [vmem:[%s2681_s28 + $0x48] sm:$0xff] %v1998_v24   ;;  %v1638_v32 = vmax.f32 %v1613_v25, 0.0  ;;  %v1537_v27 = vmax.f32 %v2146_v22, %v2785_v62  ;;  %v1584_v33 = vmax.f32 %v1534_v50, %v1559_v48  ;;  %v1593_v54 = vadd.f32 %v2666_v43, %v1561_v8 }
 0x17b   : > { %v1307_v10 = vpop.f32.mrf.mxu0  ;;  %v1640_v7 = vmax.f32 %v1615_v23, 0.0 }
 0x17c   : > { %v2003_v47 = vpack.c.bf16 %v1639_v37, %v1638_v32  ;;  %v1562_v20 = vmax.f32 %v1512_v55, %v1537_v27  ;;  %v1535_v0 = vmax.f32 %v2787_v11, %v1307_v10  ;;  %v1616_v1 = vadd.f32 %v2666_v43, %v1584_v33 }
 0x17d   : > { %v1618_v26 = vmax.f32 %v1593_v54, 0.0 }
 0x17e   : > { %2019 = vst [vmem:[%s2681_s28 + $0x50] sm:$0xff] %v2003_v47   ;;  %v1594_v56 = vadd.f32 %v2666_v43, %v1562_v20  ;;  %v1585_v30 = vmax.f32 %v1535_v0, %v1560_v31  ;;  %v1641_v57 = vmax.f32 %v1616_v1, 0.0 }
 0x180   : > { %v1619_v14 = vmax.f32 %v1594_v56, 0.0  ;;  %v1617_v29 = vadd.f32 %v2666_v43, %v1585_v30  ;;  %v2008_v52 = vpack.c.bf16 %v1641_v57, %v1640_v7 }
 0x182   : > { %v1953_v35 = vpack.c.bf16 %v1619_v14, %v1618_v26  ;;  %v1642_v5 = vmax.f32 %v1617_v29, 0.0  ;;  %2020 = vst [vmem:[%s2681_s28 + $0x58] sm:$0xff] %v2008_v52  }
 0x184   : > { %1954 = vst [vmem:[%s2681_s28] sm:$0xff] %v1953_v35   ;;  %v1949_v16 = vpack.c.bf16 %v1642_v5, %v1642_v5 }
 0x186   : > { %1768 = vst [vmem:[%s2681_s28 + $0x60] sm:$0xf] %v1949_v16 }
 0x187 PF: > { %p10_p9 = scmp.ge.s32.totalorder %s2356_s16, 4   ;;  %s2788_s12 = smov %s2313_s13 }
 0x188   : > { %s2789_s13 = smov %s2365_s19  ;;  %s2790_s14 = smov %s2356_s16 }
 0x189   :  { %12 = sbr.rel (!%p10_p9) target bundleno = 2 (0x2), region = 108 }

// kernel: forward.5
= control target key start
LH: loop header
LB: loop body
LE: loop exit
PB: predicated region body
PF: predicated region fallthrough
CT: control target
= control target key end

     0   :  { %s1197_s24 = smov 0   ;;  %s1393_s0 = inlined_call_operand.vmem [shape: bf16[16,512], index: 0, kind: input, shape index: {}]   ;;  %s1394_s1 = inlined_call_operand.vmem [shape: bf16[512,128], index: 1, kind: input, shape index: {}]   ;;  %s1395_s2 = inlined_call_operand.vmem [shape: f32[1,128], index: 2, kind: input, shape index: {}]   ;;  %s1396_s3 = inlined_call_operand.vmem [shape: bf16[128,128], index: 3, kind: input, shape index: {}]   ;;  %s1397_s4 = inlined_call_operand.vmem [shape: f32[1,128], index: 4, kind: input, shape index: {}]   ;;  %s1398_s5 = inlined_call_operand.vmem [shape: bf16[128,128], index: 5, kind: input, shape index: {}]   ;;  %s1399_s6 = inlined_call_operand.vmem [shape: f32[1,128], index: 6, kind: input, shape index: {}]   ;;  %s1400_s7 = inlined_call_operand.vmem [shape: f32[16,128], index: 7, kind: output, shape index: {}]  }
   0x1 LB: > { %s917_s25 = sadd.s32 4294967295, %s1153_s24   ;;  %p921_p0 = scmp.ge.s32.totalorder %s1153_s24, 1  ;;  %s1153_s24 = sphi %s1197_s24, %s17_s24  }
   0x2   : > { %p237_p1 = scmp.lt.s32.totalorder %s1153_s24, 3 }
   0x4   : > { %p238_p2 = pnand %p921_p0, %p237_p1 }
   0x5   : > { %p268_p3 = scmp.lt.s32.totalorder (!%p238_p2), %s917_s25, 1 }
   0x6   : > { %241 = sbr.rel (%p238_p2) target bundleno = 648 (0x288), region = 48 }
   0xb   : > { %v1095_v0 = vld [vmem:[%s1394_s1 + $0x78] sm:$0xff]   ;;  %v1099_v4 = vld [vmem:[%s1394_s1 + $0x70] sm:$0xff]   ;;  %v1103_v8 = vld [vmem:[%s1394_s1 + $0x68] sm:$0xff]   ;;  %s1402_s25 = smov (!%p268_p3, %s917_s25), 1  ;;  %v1155_v39 = vmov 0.0   ;;  %vm1156_vm0 = vmmov 0  }
   0xc   : > { %v1096_v1 = vld [vmem:[%s1394_s1 + $0xf8] sm:$0xff]   ;;  %983 = vmatprep.subr.bf16.mxu0 %v1095_v0  ;;  %v1100_v5 = vld [vmem:[%s1394_s1 + $0xf0] sm:$0xff]   ;;  %v1104_v9 = vld [vmem:[%s1394_s1 + $0xe8] sm:$0xff]   ;;  %s982_s15 = sshll.u32 %s1402_s25, 4  ;;  %s924_s23 = sshll.u32 %s1402_s25, 3 }
   0xd   : > { %v1097_v2 = vld [vmem:[%s1394_s1 + $0x38] sm:$0xff]   ;;  %1005 = vmatprep.subr.bf16.mxu1 %v1096_v1  ;;  %v1101_v6 = vld [vmem:[%s1394_s1 + $0x30] sm:$0xff]   ;;  %v1105_v10 = vld [vmem:[%s1394_s1 + $0x28] sm:$0xff]   ;;  %s272_s26 = scalar_lea.vmem %s1393_s0, %s982_s15  ;;  %s276_s30 = scalar_lea.vmem %s1400_s7, %s924_s23 }
   0xe   : > { %v1098_v3 = vld [vmem:[%s1394_s1 + $0xb8] sm:$0xff]   ;;  %984 = vmatpush3.bf16.msra.mxu0 %v1097_v2  ;;  %v1102_v7 = vld [vmem:[%s1394_s1 + $0xb0] sm:$0xff]   ;;  %v1106_v11 = vld [vmem:[%s1394_s1 + $0xa8] sm:$0xff]  }
   0xf   : > { %1006 = vmatpush3.bf16.msra.mxu1 %v1098_v3  ;;  %985 = vmatprep.subr.bf16.mxu0 %v1099_v4  ;;  %v1107_v12 = vld [vmem:[%s1394_s1 + $0x60] sm:$0xff]   ;;  %v1111_v16 = vld [vmem:[%s1394_s1 + $0x58] sm:$0xff]   ;;  %v1115_v20 = vld [vmem:[%s1394_s1 + $0x50] sm:$0xff]  }
  0x10   : > { %1007 = vmatprep.subr.bf16.mxu1 %v1100_v5  ;;  %v1108_v13 = vld [vmem:[%s1394_s1 + $0xe0] sm:$0xff]   ;;  %v1112_v17 = vld [vmem:[%s1394_s1 + $0xd8] sm:$0xff]   ;;  %v1116_v21 = vld [vmem:[%s1394_s1 + $0xd0] sm:$0xff]  }
  0x11   : > { %v1109_v14 = vld [vmem:[%s1394_s1 + $0x20] sm:$0xff]   ;;  %v1113_v18 = vld [vmem:[%s1394_s1 + $0x18] sm:$0xff]   ;;  %v1117_v22 = vld [vmem:[%s1394_s1 + $0x10] sm:$0xff]  }
  0x12   : > { %986 = vmatpush3.bf16.msra.mxu0 %v1101_v6  ;;  %v1110_v15 = vld [vmem:[%s1394_s1 + $0xa0] sm:$0xff]   ;;  %v1114_v19 = vld [vmem:[%s1394_s1 + $0x98] sm:$0xff]   ;;  %v1118_v23 = vld [vmem:[%s1394_s1 + $0x90] sm:$0xff]  }
  0x13   : > { %1008 = vmatpush3.bf16.msra.mxu1 %v1102_v7  ;;  %987 = vmatprep.subr.bf16.mxu0 %v1103_v8  ;;  %v1119_v24 = vld [vmem:[%s1394_s1 + $0x48] sm:$0xff]   ;;  %v1123_v28 = vld [vmem:[%s1394_s1 + $0x40] sm:$0xff]   ;;  %v1131_v38 = vld [vmem:[%s1396_s3 + $0x38] sm:$0xff]  }
  0x14   : > { %1009 = vmatprep.subr.bf16.mxu1 %v1104_v9  ;;  %v1120_v25 = vld [vmem:[%s1394_s1 + $0xc8] sm:$0xff]   ;;  %v1124_v29 = vld [vmem:[%s1394_s1 + $0xc0] sm:$0xff]   ;;  %v1132_v40 = vld [vmem:[%s1396_s3 + $0x30] sm:$0xff]  }
  0x15   : > { %v1121_v26 = vld [vmem:[%s1394_s1 + $0x8] sm:$0xff]   ;;  %v1125_v30 = vld [vmem:[%s1394_s1] sm:$0xff]   ;;  %v1135_v43 = vld [vmem:[%s1396_s3 + $0x18] sm:$0xff]  }
  0x16   : > { %988 = vmatpush3.bf16.msra.mxu0 %v1105_v10  ;;  %v1122_v27 = vld [vmem:[%s1394_s1 + $0x88] sm:$0xff]   ;;  %v1126_v31 = vld [vmem:[%s1394_s1 + $0x80] sm:$0xff]   ;;  %v1136_v44 = vld [vmem:[%s1396_s3 + $0x10] sm:$0xff]  }
  0x17   : > { %1010 = vmatpush3.bf16.msra.mxu1 %v1106_v11  ;;  %989 = vmatprep.subr.bf16.mxu0 %v1107_v12  ;;  %v278_v32 = vld [vmem:[%s272_s26] sm:$0xff]  ;;  %v279_v33 = vld [vmem:[%s272_s26 + $0x8] sm:$0xff]  ;;  %v1139_v47 = vld [vmem:[%s1398_s5 + $0x38] sm:$0xff]  }
  0x18   : > { %1011 = vmatprep.subr.bf16.mxu1 %v1108_v13  ;;  %v926_v34 = vcombine.low %v278_v32, %v278_v32  ;;  %v927_v35 = vcombine.high %v278_v32, %v278_v32  ;;  %v928_v36 = vcombine.low %v279_v33, %v279_v33  ;;  %v929_v37 = vcombine.high %v279_v33, %v279_v33  ;;  %v1133_v41 = vld [vmem:[%s1396_s3 + $0x28] sm:$0xff]   ;;  %v1134_v42 = vld [vmem:[%s1396_s3 + $0x20] sm:$0xff]   ;;  %v1140_v48 = vld [vmem:[%s1398_s5 + $0x30] sm:$0xff]  }
  0x19   : > { %v1137_v45 = vld [vmem:[%s1396_s3 + $0x8] sm:$0xff]   ;;  %v1138_v46 = vld [vmem:[%s1396_s3] sm:$0xff]   ;;  %v1143_v51 = vld [vmem:[%s1398_s5 + $0x18] sm:$0xff]  }
  0x1a   : > { %990 = vmatpush3.bf16.msra.mxu0 %v1109_v14  ;;  %589 = vmatprep.mubr.bf16.mxu0 %v927_v35  ;;  %v1141_v49 = vld [vmem:[%s1398_s5 + $0x28] sm:$0xff]   ;;  %v1142_v50 = vld [vmem:[%s1398_s5 + $0x20] sm:$0xff]   ;;  %v1144_v52 = vld [vmem:[%s1398_s5 + $0x10] sm:$0xff]  }
  0x1b   : > { %1012 = vmatpush3.bf16.msra.mxu1 %v1110_v15  ;;  %991 = vmatprep.subr.bf16.mxu0 %v1111_v16  ;;  %v925_v55 = vld [vmem:[%s1395_s2] ss:$0 sm:$0xff]  ;;  %v1145_v4 = vld [vmem:[%s1398_s5 + $0x8] sm:$0xff]  }
  0x1c   : > { %1013 = vmatprep.subr.bf16.mxu1 %v1112_v17  ;;  %629 = vmatprep.mubr.bf16.mxu1 %v929_v37  ;;  %v1146_v5 = vld [vmem:[%s1398_s5] sm:$0xff]  }
  0x1d   : > { %v962_v6 = vld [vmem:[%s1397_s4] ss:$0 sm:$0xff] }
  0x1e   : > { %992 = vmatpush3.bf16.msra.mxu0 %v1113_v18  ;;  %v971_v14 = vld [vmem:[%s1399_s6] ss:$0 sm:$0xff] }
  0x1f   : > { %1014 = vmatpush3.bf16.msra.mxu1 %v1114_v19  ;;  %993 = vmatprep.subr.bf16.mxu0 %v1115_v20 }
  0x20   : > { %1015 = vmatprep.subr.bf16.mxu1 %v1116_v21 }
  0x22   : > { %994 = vmatpush3.bf16.msra.mxu0 %v1117_v22 }
  0x23   : > { %1016 = vmatpush3.bf16.msra.mxu1 %v1118_v23  ;;  %995 = vmatprep.subr.bf16.mxu0 %v1119_v24 }
  0x24   : > { %1017 = vmatprep.subr.bf16.mxu1 %v1120_v25 }
  0x26   : > { %996 = vmatpush3.bf16.msra.mxu0 %v1121_v26 }
  0x27   : > { %1018 = vmatpush3.bf16.msra.mxu1 %v1122_v27  ;;  %997 = vmatprep.subr.bf16.mxu0 %v1123_v28 }
  0x28   : > { %1019 = vmatprep.subr.bf16.mxu1 %v1124_v29 }
  0x2a   : > { %998 = vmatpush3.bf16.msra.mxu0 %v1125_v30 }
  0x2b   : > { %1020 = vmatpush3.bf16.msra.mxu1 %v1126_v31  ;;  %1045 = vmatprep.subr.bf16.mxu0 %v1155_v39 }
  0x2c   : > { %1065 = vmatprep.subr.bf16.mxu1 %v1155_v39 }
  0x2d   : > { %590 = vmatmul.mubr.bf16.vlgmr.msra.gmra.mxu0 %v926_v34 }
  0x2e   : > { %630 = vmatmul.mubr.bf16.vlgmr.msra.gmra.mxu1 %v928_v36  ;;  %1046 = vmatpush3.bf16.msra.mxu0 %v1131_v38 }
  0x2f   : > { %1047 = vmatprep.subr.bf16.mxu0 %v1155_v39  ;;  %1061 = vmatprep.mubr.msk.bf16.mxu0 %vm1156_vm0, %v1155_v39 }
  0x30   : > { %1081 = vmatprep.mubr.msk.bf16.mxu1 %vm1156_vm0, %v1155_v39  ;;  %1066 = vmatpush3.bf16.msra.mxu1 %v1139_v47 }
  0x31   : > { %1067 = vmatprep.subr.bf16.mxu1 %v1155_v39 }
  0x32   : > { %1048 = vmatpush3.bf16.msra.mxu0 %v1132_v40 }
  0x33   : > { %1049 = vmatprep.subr.bf16.mxu0 %v1155_v39 }
  0x34   : > { %1068 = vmatpush3.bf16.msra.mxu1 %v1140_v48 }
  0x35   : > { %1069 = vmatprep.subr.bf16.mxu1 %v1155_v39 }
  0x36   : > { %1050 = vmatpush3.bf16.msra.mxu0 %v1133_v41 }
  0x37   : > { %1051 = vmatprep.subr.bf16.mxu0 %v1155_v39 }
  0x38   : > { %1070 = vmatpush3.bf16.msra.mxu1 %v1141_v49 }
  0x39   : > { %1071 = vmatprep.subr.bf16.mxu1 %v1155_v39 }
  0x3a   : > { %1052 = vmatpush3.bf16.msra.mxu0 %v1134_v42 }
  0x3b   : > { %1053 = vmatprep.subr.bf16.mxu0 %v1155_v39 }
  0x3c   : > { %1072 = vmatpush3.bf16.msra.mxu1 %v1142_v50 }
  0x3d   : > { %1073 = vmatprep.subr.bf16.mxu1 %v1155_v39 }
  0x3e   : > { %1054 = vmatpush3.bf16.msra.mxu0 %v1135_v43 }
  0x3f   : > { %1055 = vmatprep.subr.bf16.mxu0 %v1155_v39 }
  0x40   : > { %1074 = vmatpush3.bf16.msra.mxu1 %v1143_v51 }
  0x41   : > { %1075 = vmatprep.subr.bf16.mxu1 %v1155_v39 }
  0x42   : > { %1056 = vmatpush3.bf16.msra.mxu0 %v1136_v44 }
  0x43   : > { %1057 = vmatprep.subr.bf16.mxu0 %v1155_v39 }
  0x44   : > { %1076 = vmatpush3.bf16.msra.mxu1 %v1144_v52 }
  0x45   : > { %1077 = vmatprep.subr.bf16.mxu1 %v1155_v39 }
  0x46   : > { %1058 = vmatpush3.bf16.msra.mxu0 %v1137_v45 }
  0x47   : > { %1059 = vmatprep.subr.bf16.mxu0 %v1155_v39 }
  0x48   : > { %1078 = vmatpush3.bf16.msra.mxu1 %v1145_v4 }
  0x49   : > { %1079 = vmatprep.subr.bf16.mxu1 %v1155_v39 }
  0x4a   : > { %1060 = vmatpush3.bf16.msra.mxu0 %v1138_v46 }
  0x4c   : > { %1080 = vmatpush3.bf16.msra.mxu1 %v1146_v5 }
  0xed   : > { %v999_v53 = vpop.f32.mrf.mxu0 }
  0xee   : > { %v1021_v54 = vpop.f32.mrf.mxu1 }
  0xef   : > { %v1000_v56 = vpop.f32.mrf.mxu0 }
  0xf0   : > { %v1022_v57 = vpop.f32.mrf.mxu1  ;;  %v1001_v58 = vadd.f32 %v1000_v56, %v999_v53 }
  0xf1   : > { %v1002_v59 = vpop.f32.mrf.mxu0  ;;  %v1023_v62 = vadd.f32 %v1022_v57, %v1021_v54 }
  0xf2   : > { %v1024_v60 = vpop.f32.mrf.mxu1  ;;  %v592_v61 = vadd.f32 %v1001_v58, %v925_v55 }
  0xf3   : > { %v1003_v63 = vpop.f32.mrf.mxu0 }
  0xf4   : > { %v1025_v0 = vpop.f32.mrf.mxu1  ;;  %v632_v1 = vadd.f32 %v1023_v62, %v592_v61 }
  0xf6   : > { %v637_v2 = vmax.f32 %v632_v1, 0.0 }
  0xf8   : > { %v638_v3 = vpack.c.bf16 %v637_v2, %v637_v2 }
  0xfa   : > { %1062 = vmatmul.mubr.bf16.vlgmr.msra.gmra.mxu0 %v638_v3 }
 0x1ba   : > { %v744_v7 = vpop.f32.mrf.mxu0 }
 0x1bb   : > { %v745_v8 = vadd.f32 %v962_v6, %v744_v7 }
 0x1bc   : > { %v1063_v9 = vpop.f32.mrf.mxu0 }
 0x1bd   : > { %v750_v10 = vmax.f32 %v745_v8, 0.0 }
 0x1be   : > { %v747_v11 = vpop.f32.mrf.mxu0 }
 0x1bf   : > { %v751_v12 = vpack.c.bf16 %v750_v10, %v750_v10 }
 0x1c0   : > { %v1064_v13 = vpop.f32.mrf.mxu0 }
 0x1c1   : > { %1082 = vmatmul.mubr.bf16.vlgmr.msra.gmra.mxu1 %v751_v12 }
 0x281   : > { %v857_v15 = vpop.f32.mrf.mxu1 }
 0x282   : > { %v858_v16 = vadd.f32 %v971_v14, %v857_v15 }
 0x283   : > { %v1083_v17 = vpop.f32.mrf.mxu1 }
 0x284   : > { %863 = vst [vmem:[%s276_s30] sm:$0xff] %v858_v16 }
 0x285   : > { %v860_v18 = vpop.f32.mrf.mxu1 }
 0x287   : > { %v1084_v19 = vpop.f32.mrf.mxu1 }
 0x288 PF: > { %s17_s24 = sadd.s32 1, %s1153_s24  }
 0x289   : > { %p14_p4 = scmp.ge.s32.totalorder %s17_s24, 4  }
 0x28b   :  { %16 = sbr.rel (!%p14_p4) target bundleno = 1 (0x1), region = 78 }

// kernel: forward.4
= control target key start
LH: loop header
LB: loop body
LE: loop exit
PB: predicated region body
PF: predicated region fallthrough
CT: control target
= control target key end

     0   :  { %s9472_s12 = smov 0   ;;  %s12381_s0 = inlined_call_operand.vmem [shape: bf16[2,196,128], index: 0, kind: input, shape index: {}]   ;;  %s12382_s1 = inlined_call_operand.vmem [shape: bf16[25,128,128], index: 1, kind: input, shape index: {}]   ;;  %s12383_s2 = inlined_call_operand.vmem [shape: f32[1,128], index: 2, kind: input, shape index: {}]   ;;  %s12384_s3 = inlined_call_operand.vmem [shape: bf16[2,25,128], index: 3, kind: output, shape index: {}]  }
   0x1 LB: > { %s6658_s13 = sadd.s32 4294967295, %s9448_s12   ;;  %p6662_p0 = scmp.ge.s32.totalorder %s9448_s12, 1  ;;  %s9448_s12 = sphi %s9472_s12, %s13_s12  }
   0x2   : > { %p137_p1 = scmp.lt.s32.totalorder %s9448_s12, 3 }
   0x4   : > { %p138_p2 = pnand %p6662_p0, %p137_p1 }
   0x5   : > { %p161_p3 = scmp.lt.s32.totalorder (!%p138_p2), %s6658_s13, 1 }
   0x6   : > { %141 = sbr.rel (%p138_p2) target bundleno = 1160 (0x488), region = 32 }
   0xb   : > { %v9116_v0 = vld [vmem:[%s12382_s1 + $0x78] sm:$0xff]   ;;  %v9450_v1 = vmov 0.0   ;;  %v9117_v2 = vld [vmem:[%s12382_s1 + $0x70] sm:$0xff]   ;;  %vm9451_vm0 = vmmov 0   ;;  %s12386_s13 = smov (!%p161_p3, %s6658_s13), 1  ;;  %v9118_v3 = vld [vmem:[%s12382_s1 + $0x68] sm:$0xff]  }
   0xc   : > { %9089 = vmatprep.subr.bf16.mxu1 %v9450_v1  ;;  %7789 = vmatprep.subr.bf16.mxu0 %v9450_v1  ;;  %s9105_s20 = smul.u32 100, %s12386_s13  ;;  %v9119_v4 = vld [vmem:[%s12382_s1 + $0x60] sm:$0xff]   ;;  %v9120_v10 = vld [vmem:[%s12382_s1 + $0x58] sm:$0xff]   ;;  %v9121_v11 = vld [vmem:[%s12382_s1 + $0x50] sm:$0xff]   ;;  %vm268_vm1 = vsmask.f32 7424 }
   0xd   : > { %9097 = vmatpush3.bf16.msra.mxu1 %v9116_v0  ;;  %7790 = vmatpush3.bf16.msra.mxu0 %v9116_v0  ;;  %v9122_v16 = vld [vmem:[%s12382_s1 + $0x48] sm:$0xff]   ;;  %v9123_v25 = vld [vmem:[%s12382_s1 + $0x40] sm:$0xff]   ;;  %v9126_v33 = vld [vmem:[%s12382_s1 + $0x38] sm:$0xff]   ;;  %vm901_vm2 = vsmask.f32 6400  ;;  %vm684_vm3 = vcmask 1046528  }
   0xe   : > { %9090 = vmatprep.subr.bf16.mxu1 %v9450_v1  ;;  %7791 = vmatprep.subr.bf16.mxu0 %v9450_v1  ;;  %s9505_s23 = scalar_lea.vmem %s12381_s0, %s9105_s20  ;;  %v9130_v34 = vld [vmem:[%s12382_s1 + $0xb8] sm:$0xff]   ;;  %v9129_v42 = vld [vmem:[%s12382_s1 + $0x30] sm:$0xff]   ;;  %v9133_v50 = vld [vmem:[%s12382_s1 + $0x28] sm:$0xff]   ;;  %vm1146_vm4 = vcmask 1045504   ;;  %vm1639_vm5 = vsmask.f32 4352 }
   0xf   : > { %7821 = vmatprep.mubr.msk.bf16.mxu1 %vm9451_vm0, %v9450_v1  ;;  %7805 = vmatprep.mubr.msk.bf16.mxu0 %vm9451_vm0, %v9450_v1  ;;  %v172_v5 = vld [vmem:[%s9505_s23] sm:$0xf]  ;;  %v9514_v6 = vld [vmem:[%s9505_s23 + $0x4] sm:$0xf]  ;;  %v9520_v8 = vld [vmem:[%s9505_s23 + $0x8] sm:$0xff]   ;;  %vm1422_vm6 = vcmask 1044480  }
  0x10   : > { %v9517_v7 = vld [vmem:[%s9505_s23 + $0x20] sm:$0xff]   ;;  %v9523_v9 = vcombine.low %v172_v5, %v9514_v6  ;;  %v9534_v12 = vld [vmem:[%s9505_s23 + $0x28] sm:$0xff]   ;;  %v277_v15 = vshll.u32 %v9520_v8, 16  ;;  %v281_v18 = vshrl.u32 %v9520_v8, 16  ;;  %v9562_v28 = vld [vmem:[%s9505_s23 + $0x30] sm:$0xff]   ;;  %vm6372_vm8 = vcmask 1041408  }
  0x11   : > { %9098 = vmatpush3.bf16.msra.mxu1 %v9117_v2  ;;  %7792 = vmatpush3.bf16.msra.mxu0 %v9117_v2  ;;  %v301_v13 = vshll.u32 %v9517_v7, 16  ;;  %v305_v19 = vshrl.u32 %v9517_v7, 16  ;;  %v309_v20 = vshll.u32 %v9534_v12, 16  ;;  %v9568_v32 = vld [vmem:[%s9505_s23 + $0x10] sm:$0xff]   ;;  %v313_v35 = vshrl.u32 %v9534_v12, 16  ;;  %v9586_v40 = vld [vmem:[%s9505_s23 + $0x38] sm:$0xff]  }
  0x12   : > { %9091 = vmatprep.subr.bf16.mxu1 %v9450_v1  ;;  %7793 = vmatprep.subr.bf16.mxu0 %v9450_v1  ;;  %v272_v14 = vshll.u32 %v9523_v9, 16  ;;  %v911_v17 = vrot.slane %v277_v15, 2  ;;  %v270_v22 = vshrl.u32 %v9523_v9, 16  ;;  %v910_v24 = vrot.slane %v281_v18, 1  ;;  %v9589_v41 = vld [vmem:[%s9505_s23 + $0x18] sm:$0xff]   ;;  %v9132_v45 = vld [vmem:[%s12382_s1 + $0xb0] sm:$0xff]  }
  0x13   : > { %v9549_v21 = vrot.slane %v301_v13, 1  ;;  %v311_v27 = vrot.slane %v309_v20, 1  ;;  %v279_v31 = vrot.slane %v277_v15, 1  ;;  %v317_v38 = vshll.u32 %v9562_v28, 16  ;;  %v9135_v51 = vld [vmem:[%s12382_s1 + $0xa8] sm:$0xff]   ;;  %v9137_v61 = vld [vmem:[%s12382_s1 + $0x20] sm:$0xff]  }
  0x14   : > { %v274_v23 = vrot.slane %v272_v14, 1  ;;  %v9557_v26 = vor.u32 %v911_v17, %v910_v24  ;;  %v285_v39 = vshll.u32 %v9568_v32, 16  ;;  %v321_v48 = vshrl.u32 %v9562_v28, 16  ;;  %v9620_v54 = vld [vmem:[%s9505_s23 + $0x40] sm:$0xf]  ;;  %v9141_v5 = vld [vmem:[%s12382_s1 + $0x98] sm:$0xff]  }
  0x15   : > { %9099 = vmatpush3.bf16.msra.mxu1 %v9118_v3  ;;  %7794 = vmatpush3.bf16.msra.mxu0 %v9118_v3  ;;  %v307_v29 = vor.u32 %v305_v19, %v9549_v21  ;;  %v315_v43 = vor.u32 %v313_v35, %v311_v27  ;;  %v319_v44 = vrot.slane %v317_v38, 1  ;;  %v283_v46 = vor.u32 %v281_v18, %v279_v31  ;;  %v205_v57 = vld [vmem:[%s9505_s23 + $0x44] sm:$0x1]  ;;  %v663_v58 = vld [vmem:[%s9505_s23] sm:$0xe]  ;;  %s7354_s8 = sshll.u32 %s12386_s13, 4 }
  0x16   : > { %9092 = vmatprep.subr.bf16.mxu1 %v9450_v1  ;;  %7795 = vmatprep.subr.bf16.mxu0 %v9450_v1  ;;  %v275_v30 = vor.u32 %v274_v23, %v270_v22  ;;  %v287_v47 = vrot.slane %v285_v39, 1  ;;  %v325_v49 = vshll.u32 %v9586_v40, 16  ;;  %v289_v52 = vshrl.u32 %v9568_v32, 16  ;;  %v9138_v62 = vld [vmem:[%s12382_s1 + $0xa0] sm:$0xff]   ;;  %s170_s11 = scalar_lea.vmem %s12384_s3, %s7354_s8 }
  0x17   : > { %v312_v36 = vsel %vm268_vm1, %v307_v29, %v311_v27  ;;  %v293_v53 = vshll.u32 %v9589_v41, 16  ;;  %v320_v55 = vsel %vm268_vm1, %v315_v43, %v319_v44  ;;  %v323_v59 = vor.u32 %v321_v48, %v319_v44  ;;  %v9145_v43 = vld [vmem:[%s12382_s1 + $0x88] sm:$0xff]  }
  0x18   : > { %v280_v37 = vsel %vm268_vm1, %v275_v30, %v279_v31  ;;  %v288_v56 = vsel %vm268_vm1, %v283_v46, %v287_v47  ;;  %v327_v60 = vrot.slane %v325_v49, 1  ;;  %v291_v63 = vor.u32 %v289_v52, %v287_v47  ;;  %v9143_v30 = vld [vmem:[%s12382_s1 + $0x10] sm:$0xff]   ;;  %v9146_v46 = vld [vmem:[%s12382_s1 + $0x8] sm:$0xff]  }
  0x19   : > { %9100 = vmatpush3.bf16.msra.mxu1 %v9119_v4  ;;  %7796 = vmatpush3.bf16.msra.mxu0 %v9119_v4  ;;  %v295_v0 = vrot.slane %v293_v53, 1  ;;  %v9641_v2 = vcombine.low %v9620_v54, %v205_v57  ;;  %v9644_v3 = vcombine.low %v663_v58, %v9514_v6  ;;  %v9140_v4 = vld [vmem:[%s12382_s1 + $0x18] sm:$0xff]   ;;  %v297_v14 = vshrl.u32 %v9589_v41, 16  ;;  %v9144_v31 = vld [vmem:[%s12382_s1 + $0x90] sm:$0xff]  }
  0x1a   : > { %9093 = vmatprep.subr.bf16.mxu1 %v9450_v1  ;;  %7797 = vmatprep.subr.bf16.mxu0 %v9450_v1  ;;  %vm2943_vm7 = vsmask.f32 5376  ;;  %vm6521_vm9 = vcmask 1040384   ;;  %vm6524_vm10 = vcmask 1042432   ;;  %vm6526_vm11 = vcmask 1043456  }
  0x1b   : > { %v906_v15 = vshll.u32 %v9644_v3, 16  ;;  %v296_v17 = vsel %vm268_vm1, %v291_v63, %v295_v0  ;;  %v333_v18 = vshll.u32 %v9641_v2, 16  ;;  %v337_v47 = vshrl.u32 %v9641_v2, 16  ;;  %v9151_v63 = vld [vmem:[%s12382_s1 + $0x138] sm:$0xff]  }
  0x1c   : > { %vm6598_vm12 = vsmask.f32 256 }
  0x1d   : > { %9101 = vmatpush3.bf16.msra.mxu1 %v9120_v10  ;;  %7798 = vmatpush3.bf16.msra.mxu0 %v9120_v10  ;;  %v329_v10 = vshrl.u32 %v9586_v40, 16  ;;  %v908_v23 = vrot.slane %v906_v15, 2  ;;  %v335_v29 = vrot.slane %v333_v18, 1  ;;  %v9150_v18 = vld [vmem:[%s12382_s1 + $0xf8] sm:$0xff]   ;;  %vm6599_vm13 = vmand %vm6521_vm9, %vm6598_vm12 }
  0x1e   : > { %9094 = vmatprep.subr.bf16.mxu1 %v9450_v1  ;;  %7799 = vmatprep.subr.bf16.mxu0 %v9450_v1 }
  0x1f   : > { %v331_v27 = vor.u32 %v329_v10, %v327_v60 }
  0x21   : > { %9102 = vmatpush3.bf16.msra.mxu1 %v9121_v11  ;;  %7800 = vmatpush3.bf16.msra.mxu0 %v9121_v11  ;;  %v903_v11 = vshrl.u32 %v9644_v3, 16 }
  0x22   : > { %9095 = vmatprep.subr.bf16.mxu1 %v9450_v1  ;;  %7801 = vmatprep.subr.bf16.mxu0 %v9450_v1 }
  0x23   : > { %v905_v22 = vrot.slane %v903_v11, 1 }
  0x25   : > { %9103 = vmatpush3.bf16.msra.mxu1 %v9122_v16  ;;  %7802 = vmatpush3.bf16.msra.mxu0 %v9122_v16  ;;  %v328_v16 = vsel %vm268_vm1, %v323_v59, %v327_v60  ;;  %v909_v24 = vor.u32 %v908_v23, %v905_v22  ;;  %v339_v59 = vor.u32 %v337_v47, %v335_v29  ;;  %v9163_v47 = vld [vmem:[%s12382_s1 + $0x108] sm:$0xff]  }
  0x26   : > { %9096 = vmatprep.subr.bf16.mxu1 %v9450_v1  ;;  %7803 = vmatprep.subr.bf16.mxu0 %v9450_v1 }
  0x29   : > { %9104 = vmatpush3.bf16.msra.mxu1 %v9123_v25  ;;  %7804 = vmatpush3.bf16.msra.mxu0 %v9123_v25  ;;  %v914_v25 = vrot.slane %v289_v52, 1  ;;  %v922_v52 = vrot.slane %v305_v19, 1  ;;  %v926_v19 = vrot.slane %v313_v35, 1  ;;  %v931_v35 = vrot.slane %v317_v38, 2 }
  0x2a   : > { %7841 = vmatprep.subr.bf16.mxu1 %v9450_v1  ;;  %7893 = vmatprep.subr.bf16.mxu0 %v9450_v1  ;;  %v935_v38 = vrot.slane %v325_v49, 2  ;;  %v9153_v49 = vld [vmem:[%s12382_s1 + $0x130] sm:$0xff]  }
  0x2c   : > { %7822 = vmatmul.mubr.bf16.vlgmr.msra.gmra.mxu1 %v312_v36  ;;  %7806 = vmatmul.mubr.bf16.vlgmr.msra.gmra.mxu0 %v280_v37  ;;  %v9685_v36 = vsel %vm901_vm2, %v909_v24, %v9557_v26 }
  0x2d   : > { %7842 = vmatpush3.bf16.msra.mxu1 %v9126_v33  ;;  %7894 = vmatpush3.bf16.msra.mxu0 %v9130_v34  ;;  %v299_v33 = vor.u32 %v297_v14, %v295_v0  ;;  %v915_v34 = vrot.slane %v285_v39, 2  ;;  %v934_v0 = vrot.slane %v329_v10, 1 }
  0x2e   : > { %7843 = vmatprep.subr.bf16.mxu1 %v9450_v1  ;;  %7825 = vmatprep.mubr.msk.bf16.mxu1 %vm9451_vm0, %v9450_v1 }
  0x2f   : > { %7895 = vmatprep.subr.bf16.mxu0 %v9450_v1  ;;  %7809 = vmatprep.mubr.msk.bf16.mxu0 %vm9451_vm0, %v9450_v1  ;;  %v916_v37 = vor.u32 %v915_v34, %v914_v25  ;;  %v304_v39 = vsel %vm268_vm1, %v299_v33, %v9549_v21  ;;  %v919_v21 = vrot.slane %v293_v53, 2  ;;  %v923_v53 = vrot.slane %v301_v13, 2  ;;  %v9155_v25 = vld [vmem:[%s12382_s1 + $0x128] sm:$0xff]  }
  0x30   : > { %v927_v13 = vrot.slane %v309_v20, 2  ;;  %v936_v11 = vor.u32 %v935_v38, %v934_v0  ;;  %v9154_v34 = vld [vmem:[%s12382_s1 + $0xe8] sm:$0xff]   ;;  %v1152_v0 = vrot.slane %v9589_v41, 2  ;;  %v9177_v38 = vld [vmem:[%s12382_s1 + $0x198] sm:$0xff]  }
  0x31   : > { %7844 = vmatpush3.bf16.msra.mxu1 %v9129_v42  ;;  %7896 = vmatpush3.bf16.msra.mxu0 %v9132_v45  ;;  %v336_v42 = vsel %vm268_vm1, %v331_v27, %v335_v29  ;;  %v9695_v44 = vsel %vm901_vm2, %v9557_v26, %v916_v37  ;;  %v918_v45 = vrot.slane %v297_v14, 1  ;;  %v9147_v26 = vld [vmem:[%s12382_s1 + $0x80] sm:$0xff]   ;;  %v924_v58 = vor.u32 %v923_v53, %v922_v52  ;;  %v9152_v29 = vld [vmem:[%s12382_s1 + $0xf0] sm:$0xff]  }
  0x32   : > { %7845 = vmatprep.subr.bf16.mxu1 %v9450_v1  ;;  %7897 = vmatprep.subr.bf16.mxu0 %v9450_v1  ;;  %v688_v14 = vrot.slane %v9568_v32, 1  ;;  %v696_v52 = vrot.slane %v9562_v28, 1  ;;  %v9165_v53 = vld [vmem:[%s12382_s1 + $0xc0] sm:$0xff]  }
  0x34   : > { %7826 = vmatmul.mubr.bf16.gmra.mxu1 %v320_v55  ;;  %7810 = vmatmul.mubr.bf16.gmra.mxu0 %v288_v56  ;;  %v685_v55 = vrot.slane %v9644_v3, 1  ;;  %v686_v56 = vrot.slane %v9520_v8, 1 }
  0x35   : > { %7846 = vmatpush3.bf16.msra.mxu1 %v9133_v50  ;;  %7898 = vmatpush3.bf16.msra.mxu0 %v9135_v51  ;;  %v9148_v50 = vld [vmem:[%s12382_s1] sm:$0xff]   ;;  %v920_v51 = vor.u32 %v919_v21, %v918_v45  ;;  %v9161_v45 = vld [vmem:[%s12382_s1 + $0x110] sm:$0xff]  }
  0x36   : > { %7829 = vmatprep.mubr.msk.bf16.mxu1 %vm9451_vm0, %v9450_v1  ;;  %7847 = vmatprep.subr.bf16.mxu1 %v9450_v1  ;;  %v687_v20 = vsel %vm684_vm3, %v685_v55, %v686_v56  ;;  %v689_v24 = vsel %vm684_vm3, %v686_v56, %v688_v14  ;;  %v9160_v21 = vld [vmem:[%s12382_s1 + $0xd0] sm:$0xff]   ;;  %v698_v56 = vrot.slane %v9586_v40, 1 }
  0x37   : > { %7899 = vmatprep.subr.bf16.mxu0 %v9450_v1  ;;  %7813 = vmatprep.mubr.msk.bf16.mxu0 %vm9451_vm0, %v9450_v1  ;;  %v9721_v57 = vsel %vm901_vm2, %v916_v37, %v920_v51  ;;  %v9731_v60 = vsel %vm901_vm2, %v920_v51, %v924_v58  ;;  %v9159_v37 = vld [vmem:[%s12382_s1 + $0x118] sm:$0xff]   ;;  %v9166_v51 = vld [vmem:[%s12382_s1 + $0x100] sm:$0xff]  }
  0x39   : > { %7848 = vmatpush3.bf16.msra.mxu1 %v9137_v61  ;;  %7900 = vmatpush3.bf16.msra.mxu0 %v9138_v62  ;;  %v928_v61 = vor.u32 %v927_v13, %v926_v19  ;;  %v930_v62 = vrot.slane %v321_v48, 1  ;;  %v700_v19 = vrot.slane %v9641_v2, 1  ;;  %v1125_v13 = vld [vmem:[%s9505_s23] sm:$0xc] }
  0x3a   : > { %7849 = vmatprep.subr.bf16.mxu1 %v9450_v1  ;;  %7901 = vmatprep.subr.bf16.mxu0 %v9450_v1 }
  0x3b   : > { %v9745_v3 = vsel %vm901_vm2, %v924_v58, %v928_v61  ;;  %v932_v48 = vor.u32 %v931_v35, %v930_v62  ;;  %v699_v58 = vsel %vm684_vm3, %v696_v52, %v698_v56  ;;  %v9171_v35 = vld [vmem:[%s12382_s1 + $0x1b0] sm:$0xff]  }
  0x3c   : > { %7830 = vmatmul.mubr.bf16.gmra.mxu1 %v328_v16  ;;  %7814 = vmatmul.mubr.bf16.gmra.mxu0 %v296_v17 }
  0x3d   : > { %7850 = vmatpush3.bf16.msra.mxu1 %v9140_v4  ;;  %7902 = vmatpush3.bf16.msra.mxu0 %v9141_v5  ;;  %v880_v4 = vld [vmem:[%s9505_s23 + $0x44] sm:$0x3]  ;;  %v9752_v5 = vsel %vm901_vm2, %v928_v61, %v932_v48  ;;  %v9767_v15 = vsel %vm901_vm2, %v932_v48, %v936_v11 }
  0x3e   : > { %7833 = vmatprep.mubr.msk.bf16.mxu1 %vm9451_vm0, %v9450_v1  ;;  %7851 = vmatprep.subr.bf16.mxu1 %v9450_v1  ;;  %v9755_v10 = vcombine.low %v9620_v54, %v880_v4  ;;  %v9414_v4 = vld [vmem:[%s9505_s23 + $0x20] sm:$0xff]  }
  0x3f   : > { %7903 = vmatprep.subr.bf16.mxu0 %v9450_v1  ;;  %7817 = vmatprep.mubr.msk.bf16.mxu0 %vm9451_vm0, %v9450_v1 }
  0x40   : > { %v939_v16 = vshrl.u32 %v9755_v10, 16  ;;  %v942_v17 = vshll.u32 %v9755_v10, 16 }
  0x41   : > { %7852 = vmatpush3.bf16.msra.mxu1 %v9143_v30  ;;  %7904 = vmatpush3.bf16.msra.mxu0 %v9144_v31  ;;  %v690_v30 = vrot.slane %v9589_v41, 1 }
  0x42   : > { %7905 = vmatprep.subr.bf16.mxu0 %v9450_v1  ;;  %7853 = vmatprep.subr.bf16.mxu1 %v9450_v1  ;;  %v941_v22 = vrot.slane %v939_v16, 1  ;;  %v944_v23 = vrot.slane %v942_v17, 2  ;;  %v9179_v16 = vld [vmem:[%s12382_s1 + $0x190] sm:$0xff]   ;;  %v9415_v17 = vld [vmem:[%s9505_s23 + $0x28] sm:$0xff]  }
  0x43   : > { %v691_v33 = vsel %vm684_vm3, %v688_v14, %v690_v30  ;;  %v9174_v14 = vld [vmem:[%s12382_s1 + $0x160] sm:$0xff]  }
  0x44   : > { %7834 = vmatmul.mubr.bf16.gmra.mxu1 %v336_v42  ;;  %7818 = vmatmul.mubr.bf16.gmra.mxu0 %v304_v39  ;;  %v9779_v27 = vor.u32 %v944_v23, %v941_v22  ;;  %v692_v42 = vrot.slane %v9517_v7, 1  ;;  %v9156_v39 = vld [vmem:[%s12382_s1 + $0xe0] sm:$0xff]   ;;  %v9178_v22 = vld [vmem:[%s12382_s1 + $0x150] sm:$0xff]   ;;  %v9181_v23 = vld [vmem:[%s12382_s1 + $0x148] sm:$0xff]  }
  0x45   : > { %7906 = vmatpush3.bf16.msra.mxu0 %v9145_v43  ;;  %7837 = vmatprep.mubr.msk.bf16.mxu1 %vm9451_vm0, %v9450_v1 }
  0x46   : > { %7854 = vmatpush3.bf16.msra.mxu1 %v9146_v46  ;;  %7907 = vmatprep.subr.bf16.mxu0 %v9450_v1  ;;  %v9788_v31 = vsel %vm901_vm2, %v936_v11, %v9779_v27  ;;  %v693_v43 = vsel %vm684_vm3, %v690_v30, %v692_v42  ;;  %v694_v46 = vrot.slane %v9534_v12, 1  ;;  %v1154_v11 = vrot.slane %v9414_v4, 2 }
  0x47   : > { %7855 = vmatprep.subr.bf16.mxu1 %v9450_v1  ;;  %7909 = vmatprep.mubr.msk.bf16.mxu0 %vm9451_vm0, %v9450_v1 }
  0x48   : > { %v697_v55 = vsel %vm684_vm3, %v694_v46, %v696_v52 }
  0x49   : > { %7908 = vmatpush3.bf16.msra.mxu0 %v9147_v26  ;;  %v695_v26 = vsel %vm684_vm3, %v692_v42, %v694_v46  ;;  %v1342_v42 = vld [vmem:[%s9505_s23 + $0x4] sm:$0x8]  ;;  %v10011_v46 = vld [vmem:[%s9505_s23 + $0x14] sm:$0xf] }
  0x4a   : > { %7856 = vmatpush3.bf16.msra.mxu1 %v9148_v50  ;;  %7997 = vmatprep.subr.bf16.mxu0 %v9450_v1  ;;  %v9162_v50 = vld [vmem:[%s12382_s1 + $0xc8] sm:$0xff]  }
  0x4b   : > { %7945 = vmatprep.subr.bf16.mxu1 %v9450_v1 }
  0x4c   : > { %7838 = vmatmul.mubr.bf16.gmra.mxu1 %v339_v59  ;;  %7910 = vmatmul.mubr.bf16.vlgmr.msra.gmra.mxu0 %v687_v20  ;;  %v9413_v59 = vld [vmem:[%s9505_s23 + $0x8] sm:$0xff]  }
  0x4d   : > { %7857 = vmatprep.mubr.msk.bf16.mxu1 %vm9451_vm0, %v9450_v1  ;;  %7998 = vmatpush3.bf16.msra.mxu0 %v9151_v63  ;;  %v1148_v61 = vrot.slane %v9413_v59, 2  ;;  %v9170_v63 = vld [vmem:[%s12382_s1 + $0x170] sm:$0xff]  }
  0x4e   : > { %7913 = vmatprep.mubr.msk.bf16.mxu0 %vm9451_vm0, %v9450_v1  ;;  %7999 = vmatprep.subr.bf16.mxu0 %v9450_v1 }
  0x51   : > { %8000 = vmatpush3.bf16.msra.mxu0 %v9153_v49  ;;  %v1155_v49 = vsel %vm1146_vm4, %v1152_v0, %v1154_v11 }
  0x52   : > { %8001 = vmatprep.subr.bf16.mxu0 %v9450_v1 }
  0x54   : > { %7858 = vmatmul.mubr.bf16.vlgmr.msra.gmra.mxu1 %v9523_v9  ;;  %7914 = vmatmul.mubr.bf16.gmra.mxu0 %v689_v24  ;;  %v9157_v9 = vld [vmem:[%s12382_s1 + $0x120] sm:$0xff]  }
  0x55   : > { %7946 = vmatpush3.bf16.msra.mxu1 %v9150_v18  ;;  %7861 = vmatprep.mubr.msk.bf16.mxu1 %vm9451_vm0, %v9450_v1  ;;  %v1156_v18 = vrot.slane %v9415_v17, 2 }
  0x56   : > { %7947 = vmatprep.subr.bf16.mxu1 %v9450_v1  ;;  %7917 = vmatprep.mubr.msk.bf16.mxu0 %vm9451_vm0, %v9450_v1 }
  0x57   : > { %8002 = vmatpush3.bf16.msra.mxu0 %v9155_v25  ;;  %v1157_v24 = vsel %vm1146_vm4, %v1154_v11, %v1156_v18  ;;  %v9184_v25 = vld [vmem:[%s12382_s1 + $0x180] sm:$0xff]  }
  0x58   : > { %8003 = vmatprep.subr.bf16.mxu0 %v9450_v1 }
  0x59   : > { %7948 = vmatpush3.bf16.msra.mxu1 %v9152_v29  ;;  %v9416_v29 = vld [vmem:[%s9505_s23 + $0x30] sm:$0xff]  }
  0x5a   : > { %7949 = vmatprep.subr.bf16.mxu1 %v9450_v1  ;;  %v1158_v30 = vrot.slane %v9416_v29, 2 }
  0x5b   : > { %8004 = vmatpush3.bf16.msra.mxu0 %v9157_v9  ;;  %v9183_v9 = vld [vmem:[%s12382_s1 + $0x140] sm:$0xff]  }
  0x5c   : > { %7862 = vmatmul.mubr.bf16.gmra.mxu1 %v9520_v8  ;;  %7918 = vmatmul.mubr.bf16.gmra.mxu0 %v691_v33  ;;  %v9158_v8 = vld [vmem:[%s12382_s1 + $0xd8] sm:$0xff]  }
  0x5d   : > { %7865 = vmatprep.mubr.msk.bf16.mxu1 %vm9451_vm0, %v9450_v1  ;;  %7950 = vmatpush3.bf16.msra.mxu1 %v9154_v34  ;;  %v9417_v33 = vld [vmem:[%s9505_s23 + $0x38] sm:$0xff]  }
  0x5e   : > { %7921 = vmatprep.mubr.msk.bf16.mxu0 %vm9451_vm0, %v9450_v1  ;;  %7951 = vmatprep.subr.bf16.mxu1 %v9450_v1  ;;  %v1160_v34 = vrot.slane %v9417_v33, 2 }
  0x5f   : > { %8005 = vmatprep.subr.bf16.mxu0 %v9450_v1 }
  0x60   : > { %8006 = vmatpush3.bf16.msra.mxu0 %v9159_v37  ;;  %v1162_v37 = vrot.slane %v9755_v10, 2 }
  0x61   : > { %7952 = vmatpush3.bf16.msra.mxu1 %v9156_v39  ;;  %8007 = vmatprep.subr.bf16.mxu0 %v9450_v1  ;;  %v10000_v39 = vld [vmem:[%s9505_s23 + $0x8] sm:$0xf] }
  0x62   : > { %7953 = vmatprep.subr.bf16.mxu1 %v9450_v1  ;;  %v6799_v10 = vcombine.low %v1342_v42, %v10000_v39 }
  0x64   : > { %7866 = vmatmul.mubr.bf16.gmra.mxu1 %v9568_v32  ;;  %7922 = vmatmul.mubr.bf16.gmra.mxu0 %v693_v43  ;;  %v10004_v43 = vld [vmem:[%s9505_s23 + $0xc] sm:$0xf] }
  0x65   : > { %7869 = vmatprep.mubr.msk.bf16.mxu1 %vm9451_vm0, %v9450_v1  ;;  %7925 = vmatprep.mubr.msk.bf16.mxu0 %vm9451_vm0, %v9450_v1 }
  0x66   : > { %7954 = vmatpush3.bf16.msra.mxu1 %v9158_v8  ;;  %8008 = vmatpush3.bf16.msra.mxu0 %v9161_v45  ;;  %v1161_v8 = vsel %vm1146_vm4, %v1158_v30, %v1160_v34  ;;  %v10007_v45 = vld [vmem:[%s9505_s23 + $0x10] sm:$0xf] }
  0x67   : > { %7955 = vmatprep.subr.bf16.mxu1 %v9450_v1  ;;  %8009 = vmatprep.subr.bf16.mxu0 %v9450_v1 }
  0x6a   : > { %7956 = vmatpush3.bf16.msra.mxu1 %v9160_v21  ;;  %8010 = vmatpush3.bf16.msra.mxu0 %v9163_v47  ;;  %v10023_v21 = vcombine.low %v10004_v43, %v10007_v45  ;;  %v1641_v47 = vshrl.u32 %v6799_v10, 16 }
  0x6b   : > { %7957 = vmatprep.subr.bf16.mxu1 %v9450_v1  ;;  %8011 = vmatprep.subr.bf16.mxu0 %v9450_v1 }
  0x6c   : > { %7870 = vmatmul.mubr.bf16.gmra.mxu1 %v9589_v41  ;;  %7926 = vmatmul.mubr.bf16.gmra.mxu0 %v695_v26  ;;  %v9172_v41 = vld [vmem:[%s12382_s1 + $0x168] sm:$0xff]   ;;  %v1644_v26 = vshll.u32 %v6799_v10, 16  ;;  %v1643_v52 = vrot.slane %v1641_v47, 3 }
  0x6d   : > { %7873 = vmatprep.mubr.msk.bf16.mxu1 %vm9451_vm0, %v9450_v1  ;;  %7929 = vmatprep.mubr.msk.bf16.mxu0 %vm9451_vm0, %v9450_v1 }
  0x6e   : > { %7958 = vmatpush3.bf16.msra.mxu1 %v9162_v50  ;;  %8012 = vmatpush3.bf16.msra.mxu0 %v9166_v51  ;;  %v1649_v51 = vshrl.u32 %v10023_v21, 16 }
  0x6f   : > { %7959 = vmatprep.subr.bf16.mxu1 %v9450_v1  ;;  %8101 = vmatprep.subr.bf16.mxu0 %v9450_v1 }
  0x72   : > { %7960 = vmatpush3.bf16.msra.mxu1 %v9165_v53  ;;  %v1652_v53 = vshll.u32 %v10023_v21, 16 }
  0x73   : > { %8049 = vmatprep.subr.bf16.mxu1 %v9450_v1 }
  0x74   : > { %7874 = vmatmul.mubr.bf16.gmra.mxu1 %v9517_v7  ;;  %7930 = vmatmul.mubr.bf16.gmra.mxu0 %v697_v55  ;;  %v701_v7 = vsel %vm684_vm3, %v698_v56, %v700_v19  ;;  %v1646_v55 = vrot.slane %v1644_v26, 4 }
  0x75   : > { %7877 = vmatprep.mubr.msk.bf16.mxu1 %vm9451_vm0, %v9450_v1  ;;  %7933 = vmatprep.mubr.msk.bf16.mxu0 %vm9451_vm0, %v9450_v1 }
  0x7c   : > { %7878 = vmatmul.mubr.bf16.gmra.mxu1 %v9534_v12  ;;  %7934 = vmatmul.mubr.bf16.gmra.mxu0 %v699_v58  ;;  %v6774_v12 = vcombine.low %v1125_v13, %v9514_v6  ;;  %v9169_v6 = vld [vmem:[%s12382_s1 + $0x1b8] sm:$0xff]   ;;  %v1654_v13 = vrot.slane %v1652_v53, 4 }
  0x7d   : > { %7881 = vmatprep.mubr.msk.bf16.mxu1 %vm9451_vm0, %v9450_v1  ;;  %7937 = vmatprep.mubr.msk.bf16.mxu0 %vm9451_vm0, %v9450_v1  ;;  %v10035_v58 = vld [vmem:[%s9505_s23 + $0x1c] sm:$0xf] }
  0x7e   : > { %v1147_v2 = vrot.slane %v6774_v12, 2 }
  0x80   : > { %v1149_v62 = vsel %vm1146_vm4, %v1147_v2, %v1148_v61 }
  0x84   : > { %7882 = vmatmul.mubr.bf16.gmra.mxu1 %v9562_v28  ;;  %7938 = vmatmul.mubr.bf16.gmra.mxu0 %v701_v7  ;;  %v6699_v28 = vcombine.low %v9620_v54, %v9620_v54  ;;  %v9168_v54 = vld [vmem:[%s12382_s1 + $0x178] sm:$0xff]   ;;  %v1651_v7 = vrot.slane %v1649_v51, 3 }
  0x85   : > { %7885 = vmatprep.mubr.msk.bf16.mxu1 %vm9451_vm0, %v9450_v1  ;;  %7941 = vmatprep.mubr.msk.bf16.mxu0 %vm9451_vm0, %v9450_v1 }
  0x8c   : > { %7886 = vmatmul.mubr.bf16.gmra.mxu1 %v9586_v40  ;;  %7942 = vmatmul.mubr.bf16.gmra.mxu0 %v700_v19  ;;  %v1150_v40 = vrot.slane %v9568_v32, 2  ;;  %v9173_v32 = vld [vmem:[%s12382_s1 + $0x1a8] sm:$0xff]   ;;  %v10042_v19 = vld [vmem:[%s9505_s23 + $0x20] sm:$0xf] }
  0x8d   : > { %7889 = vmatprep.mubr.msk.bf16.mxu1 %vm9451_vm0, %v9450_v1  ;;  %8013 = vmatprep.mubr.msk.bf16.mxu0 %vm9451_vm0, %v9450_v1  ;;  %v10047_v2 = vcombine.low %v10035_v58, %v10042_v19 }
  0x8e   : > { %v1151_v20 = vsel %vm1146_vm4, %v1148_v61, %v1150_v40  ;;  %v1153_v48 = vsel %vm1146_vm4, %v1150_v40, %v1152_v0  ;;  %v1647_v61 = vor.u32 %v1646_v55, %v1643_v52 }
  0x94   : > { %7890 = vmatmul.mubr.bf16.gmra.mxu1 %v6699_v28  ;;  %8014 = vmatmul.mubr.bf16.vlgmr.msra.gmra.mxu0 %v1149_v62  ;;  %v1655_v28 = vor.u32 %v1654_v13, %v1651_v7 }
  0x95   : > { %7961 = vmatprep.mubr.msk.bf16.mxu1 %vm9451_vm0, %v9450_v1  ;;  %8102 = vmatpush3.bf16.msra.mxu0 %v9169_v6  ;;  %v1667_v6 = vshrl.u32 %v10047_v2, 16 }
  0x96   : > { %8017 = vmatprep.mubr.msk.bf16.mxu0 %vm9451_vm0, %v9450_v1  ;;  %8103 = vmatprep.subr.bf16.mxu0 %v9450_v1  ;;  %v1656_v40 = vsel %vm1639_vm5, %v1647_v61, %v1655_v28 }
  0x99   : > { %8104 = vmatpush3.bf16.msra.mxu0 %v9171_v35  ;;  %v9188_v35 = vld [vmem:[%s12382_s1 + $0x238] sm:$0xff]  }
  0x9a   : > { %8105 = vmatprep.subr.bf16.mxu0 %v9450_v1 }
  0x9c   : > { %7962 = vmatmul.mubr.bf16.vlgmr.msra.gmra.mxu1 %v9685_v36  ;;  %8018 = vmatmul.mubr.bf16.gmra.mxu0 %v1151_v20  ;;  %v9175_v36 = vld [vmem:[%s12382_s1 + $0x1a0] sm:$0xff]   ;;  %v1669_v20 = vrot.slane %v1667_v6, 3 }
  0x9d   : > { %8050 = vmatpush3.bf16.msra.mxu1 %v9168_v54  ;;  %7965 = vmatprep.mubr.msk.bf16.mxu1 %vm9451_vm0, %v9450_v1  ;;  %v1424_v54 = vrot.slane %v10023_v21, 3 }
  0x9e   : > { %8051 = vmatprep.subr.bf16.mxu1 %v9450_v1  ;;  %8021 = vmatprep.mubr.msk.bf16.mxu0 %vm9451_vm0, %v9450_v1 }
  0x9f   : > { %8106 = vmatpush3.bf16.msra.mxu0 %v9173_v32  ;;  %v10062_v32 = vld [vmem:[%s9505_s23 + $0x24] sm:$0xf] }
  0xa0   : > { %8107 = vmatprep.subr.bf16.mxu0 %v9450_v1 }
  0xa1   : > { %8052 = vmatpush3.bf16.msra.mxu1 %v9170_v63  ;;  %v10065_v63 = vld [vmem:[%s9505_s23 + $0x28] sm:$0xf] }
  0xa2   : > { %8053 = vmatprep.subr.bf16.mxu1 %v9450_v1 }
  0xa3   : > { %8108 = vmatpush3.bf16.msra.mxu0 %v9175_v36  ;;  %v9191_v36 = vld [vmem:[%s12382_s1 + $0x230] sm:$0xff]  }
  0xa4   : > { %7966 = vmatmul.mubr.bf16.gmra.mxu1 %v9695_v44  ;;  %8022 = vmatmul.mubr.bf16.gmra.mxu0 %v1153_v48  ;;  %v9176_v44 = vld [vmem:[%s12382_s1 + $0x158] sm:$0xff]  }
  0xa5   : > { %7969 = vmatprep.mubr.msk.bf16.mxu1 %vm9451_vm0, %v9450_v1  ;;  %8054 = vmatpush3.bf16.msra.mxu1 %v9172_v41  ;;  %v10081_v41 = vcombine.low %v10062_v32, %v10065_v63 }
  0xa6   : > { %8025 = vmatprep.mubr.msk.bf16.mxu0 %vm9451_vm0, %v9450_v1  ;;  %8055 = vmatprep.subr.bf16.mxu1 %v9450_v1 }
  0xa7   : > { %8109 = vmatprep.subr.bf16.mxu0 %v9450_v1 }
  0xa8   : > { %8110 = vmatpush3.bf16.msra.mxu0 %v9177_v38 }
  0xa9   : > { %8056 = vmatpush3.bf16.msra.mxu1 %v9174_v14  ;;  %8111 = vmatprep.subr.bf16.mxu0 %v9450_v1  ;;  %v9195_v14 = vld [vmem:[%s12382_s1 + $0x228] sm:$0xff]  }
  0xaa   : > { %8057 = vmatprep.subr.bf16.mxu1 %v9450_v1 }
  0xac   : > { %7970 = vmatmul.mubr.bf16.gmra.mxu1 %v9721_v57  ;;  %8026 = vmatmul.mubr.bf16.gmra.mxu0 %v1155_v49  ;;  %v9182_v57 = vld [vmem:[%s12382_s1 + $0x188] sm:$0xff]   ;;  %v1676_v49 = vshrl.u32 %v10081_v41, 16 }
  0xad   : > { %7973 = vmatprep.mubr.msk.bf16.mxu1 %vm9451_vm0, %v9450_v1  ;;  %8029 = vmatprep.mubr.msk.bf16.mxu0 %vm9451_vm0, %v9450_v1 }
  0xae   : > { %8058 = vmatpush3.bf16.msra.mxu1 %v9176_v44  ;;  %8112 = vmatpush3.bf16.msra.mxu0 %v9179_v16  ;;  %v9190_v44 = vld [vmem:[%s12382_s1 + $0x1f0] sm:$0xff]   ;;  %v1679_v16 = vshll.u32 %v10081_v41, 16  ;;  %v1678_v29 = vrot.slane %v1676_v49, 3 }
  0xaf   : > { %8059 = vmatprep.subr.bf16.mxu1 %v9450_v1  ;;  %8113 = vmatprep.subr.bf16.mxu0 %v9450_v1 }
  0xb2   : > { %8060 = vmatpush3.bf16.msra.mxu1 %v9178_v22  ;;  %8114 = vmatpush3.bf16.msra.mxu0 %v9182_v57  ;;  %v10104_v22 = vld [vmem:[%s9505_s23 + $0x30] sm:$0xf]  ;;  %v9198_v57 = vld [vmem:[%s12382_s1 + $0x220] sm:$0xff]  }
  0xb3   : > { %8061 = vmatprep.subr.bf16.mxu1 %v9450_v1  ;;  %8115 = vmatprep.subr.bf16.mxu0 %v9450_v1 }
  0xb4   : > { %7974 = vmatmul.mubr.bf16.gmra.mxu1 %v9731_v60  ;;  %8030 = vmatmul.mubr.bf16.gmra.mxu0 %v1157_v24  ;;  %v1159_v60 = vsel %vm1146_vm4, %v1156_v18, %v1158_v30  ;;  %v10098_v18 = vld [vmem:[%s9505_s23 + $0x2c] sm:$0xf]  ;;  %v1681_v30 = vrot.slane %v1679_v16, 4 }
  0xb5   : > { %7977 = vmatprep.mubr.msk.bf16.mxu1 %vm9451_vm0, %v9450_v1  ;;  %8033 = vmatprep.mubr.msk.bf16.mxu0 %vm9451_vm0, %v9450_v1 }
  0xb6   : > { %8062 = vmatpush3.bf16.msra.mxu1 %v9181_v23  ;;  %8116 = vmatpush3.bf16.msra.mxu0 %v9184_v25  ;;  %v9193_v25 = vld [vmem:[%s12382_s1 + $0x1e8] sm:$0xff]   ;;  %v1682_v42 = vor.u32 %v1681_v30, %v1678_v29 }
  0xb7   : > { %8063 = vmatprep.subr.bf16.mxu1 %v9450_v1  ;;  %8205 = vmatprep.subr.bf16.mxu0 %v9450_v1 }
  0xba   : > { %8064 = vmatpush3.bf16.msra.mxu1 %v9183_v9  ;;  %v10117_v9 = vcombine.low %v10098_v18, %v10104_v22 }
  0xbb   : > { %8153 = vmatprep.subr.bf16.mxu1 %v9450_v1 }
  0xbc   : > { %7978 = vmatmul.mubr.bf16.gmra.mxu1 %v9745_v3  ;;  %8034 = vmatmul.mubr.bf16.gmra.mxu0 %v1159_v60  ;;  %v10014_v3 = vld [vmem:[%s9505_s23 + $0x18] sm:$0xf]  ;;  %v1688_v21 = vshll.u32 %v10117_v9, 16 }
  0xbd   : > { %7981 = vmatprep.mubr.msk.bf16.mxu1 %vm9451_vm0, %v9450_v1  ;;  %8037 = vmatprep.mubr.msk.bf16.mxu0 %vm9451_vm0, %v9450_v1  ;;  %v10027_v50 = vcombine.low %v10011_v46, %v10014_v3 }
  0xbe   : > { %v1690_v7 = vrot.slane %v1688_v21, 4 }
  0xbf   : > { %v1658_v56 = vshrl.u32 %v10027_v50, 16  ;;  %v1661_v12 = vshll.u32 %v10027_v50, 16  ;;  %v1426_v11 = vrot.slane %v10027_v50, 3  ;;  %v10139_v50 = vld [vmem:[%s9505_s23 + $0x34] sm:$0xf] }
  0xc1   : > { %v1660_v59 = vrot.slane %v1658_v56, 3  ;;  %v1663_v62 = vrot.slane %v1661_v12, 4  ;;  %v1427_v23 = vsel %vm1422_vm6, %v1424_v54, %v1426_v11 }
  0xc3   : > { %v1664_v0 = vor.u32 %v1663_v62, %v1660_v59  ;;  %v9204_v59 = vld [vmem:[%s12382_s1 + $0x210] sm:$0xff]   ;;  %v1430_v62 = vrot.slane %v10081_v41, 3 }
  0xc4   : > { %7982 = vmatmul.mubr.bf16.gmra.mxu1 %v9752_v5  ;;  %8038 = vmatmul.mubr.bf16.gmra.mxu0 %v1161_v8  ;;  %v1163_v5 = vsel %vm1146_vm4, %v1160_v34, %v1162_v37  ;;  %v1428_v34 = vrot.slane %v10047_v2, 3  ;;  %v9196_v8 = vld [vmem:[%s12382_s1 + $0x1e0] sm:$0xff]  }
  0xc5   : > { %7985 = vmatprep.mubr.msk.bf16.mxu1 %vm9451_vm0, %v9450_v1  ;;  %8041 = vmatprep.mubr.msk.bf16.mxu0 %vm9451_vm0, %v9450_v1  ;;  %v1665_v4 = vsel %vm1639_vm5, %v1655_v28, %v1664_v0 }
  0xc6   : > { %v1429_v52 = vsel %vm1422_vm6, %v1426_v11, %v1428_v34  ;;  %v1431_v41 = vsel %vm1422_vm6, %v1428_v34, %v1430_v62 }
  0xcc   : > { %7986 = vmatmul.mubr.bf16.gmra.mxu1 %v9767_v15  ;;  %8042 = vmatmul.mubr.bf16.gmra.mxu0 %v1163_v5  ;;  %v1423_v15 = vrot.slane %v6799_v10, 3  ;;  %v1685_v10 = vshrl.u32 %v10117_v9, 16  ;;  %v10142_v5 = vld [vmem:[%s9505_s23 + $0x38] sm:$0xf] }
  0xcd   : > { %7989 = vmatprep.mubr.msk.bf16.mxu1 %vm9451_vm0, %v9450_v1  ;;  %8045 = vmatprep.mubr.msk.bf16.mxu0 %vm9451_vm0, %v9450_v1  ;;  %v10153_v13 = vcombine.low %v10139_v50, %v10142_v5 }
  0xce   : > { %v1425_v38 = vsel %vm1422_vm6, %v1423_v15, %v1424_v54  ;;  %v1687_v56 = vrot.slane %v1685_v10, 3  ;;  %v9200_v15 = vld [vmem:[%s12382_s1 + $0x1d8] sm:$0xff]   ;;  %v10221_v10 = vld [vmem:[%s9505_s23 + $0x48] sm:$0xf] }
  0xd0   : > { %v1691_v6 = vor.u32 %v1690_v7, %v1687_v56 }
  0xd4   : > { %7990 = vmatmul.mubr.bf16.gmra.mxu1 %v9788_v31  ;;  %8046 = vmatmul.mubr.bf16.gmra.mxu0 %v1162_v37  ;;  %v1670_v31 = vshll.u32 %v10047_v2, 16  ;;  %v9201_v37 = vld [vmem:[%s12382_s1 + $0x218] sm:$0xff]  }
  0xd5   : > { %7993 = vmatprep.mubr.msk.bf16.mxu1 %vm9451_vm0, %v9450_v1  ;;  %8117 = vmatprep.mubr.msk.bf16.mxu0 %vm9451_vm0, %v9450_v1 }
  0xd6   : > { %v1672_v48 = vrot.slane %v1670_v31, 4  ;;  %v10175_v31 = vld [vmem:[%s9505_s23 + $0x3c] sm:$0xf] }
  0xd8   : > { %v1673_v17 = vor.u32 %v1672_v48, %v1669_v20  ;;  %v9208_v48 = vld [vmem:[%s12382_s1 + $0x208] sm:$0xff]  }
  0xda   : > { %v1674_v24 = vsel %vm1639_vm5, %v1664_v0, %v1673_v17  ;;  %v1683_v55 = vsel %vm1639_vm5, %v1673_v17, %v1682_v42  ;;  %v10178_v0 = vld [vmem:[%s9505_s23 + $0x40] sm:$0xf]  ;;  %v9206_v17 = vld [vmem:[%s12382_s1 + $0x1c8] sm:$0xff]  }
  0xdc   : > { %7994 = vmatmul.mubr.bf16.gmra.mxu1 %v9779_v27  ;;  %8118 = vmatmul.mubr.bf16.vlgmr.msra.gmra.mxu0 %v1656_v40  ;;  %v9187_v27 = vld [vmem:[%s12382_s1 + $0x1f8] sm:$0xff]   ;;  %v1694_v40 = vshrl.u32 %v10153_v13, 16 }
  0xdd   : > { %8065 = vmatprep.mubr.msk.bf16.mxu1 %vm9451_vm0, %v9450_v1  ;;  %8206 = vmatpush3.bf16.msra.mxu0 %v9188_v35  ;;  %v1697_v35 = vshll.u32 %v10153_v13, 16 }
  0xde   : > { %8121 = vmatprep.mubr.msk.bf16.mxu0 %vm9451_vm0, %v9450_v1  ;;  %8207 = vmatprep.subr.bf16.mxu0 %v9450_v1  ;;  %v1696_v11 = vrot.slane %v1694_v40, 3 }
  0xe1   : > { %8208 = vmatpush3.bf16.msra.mxu0 %v9191_v36  ;;  %v9203_v36 = vld [vmem:[%s12382_s1 + $0x1d0] sm:$0xff]  }
  0xe2   : > { %8209 = vmatprep.subr.bf16.mxu0 %v9450_v1 }
  0xe4   : > { %8066 = vmatmul.mubr.bf16.vlgmr.msra.gmra.mxu1 %v1425_v38  ;;  %8122 = vmatmul.mubr.bf16.gmra.mxu0 %v1665_v4  ;;  %v1692_v4 = vsel %vm1639_vm5, %v1682_v42, %v1691_v6 }
  0xe5   : > { %8154 = vmatpush3.bf16.msra.mxu1 %v9187_v27  ;;  %8069 = vmatprep.mubr.msk.bf16.mxu1 %vm9451_vm0, %v9450_v1 }
  0xe6   : > { %8155 = vmatprep.subr.bf16.mxu1 %v9450_v1  ;;  %8125 = vmatprep.mubr.msk.bf16.mxu0 %vm9451_vm0, %v9450_v1 }
  0xe7   : > { %8210 = vmatpush3.bf16.msra.mxu0 %v9195_v14  ;;  %v1699_v14 = vrot.slane %v1697_v35, 4 }
  0xe8   : > { %8211 = vmatprep.subr.bf16.mxu0 %v9450_v1 }
  0xe9   : > { %8156 = vmatpush3.bf16.msra.mxu1 %v9190_v44  ;;  %v10196_v44 = vcombine.low %v10175_v31, %v10178_v0  ;;  %v1700_v29 = vor.u32 %v1699_v14, %v1696_v11 }
  0xea   : > { %8157 = vmatprep.subr.bf16.mxu1 %v9450_v1 }
  0xeb   : > { %8212 = vmatpush3.bf16.msra.mxu0 %v9198_v57  ;;  %v9210_v57 = vld [vmem:[%s12382_s1 + $0x200] sm:$0xff]   ;;  %v1703_v30 = vshrl.u32 %v10196_v44, 16  ;;  %v1706_v34 = vshll.u32 %v10196_v44, 16 }
  0xec   : > { %v10120_v60 = vpop.f32.mrf.mxu1  ;;  %8070 = vmatmul.mubr.bf16.gmra.mxu1 %v1427_v23  ;;  %v10122_v33 = vpop.f32.mrf.mxu0  ;;  %8126 = vmatmul.mubr.bf16.gmra.mxu0 %v1674_v24 }
  0xed   : > { %8073 = vmatprep.mubr.msk.bf16.mxu1 %vm9451_vm0, %v9450_v1  ;;  %8158 = vmatpush3.bf16.msra.mxu1 %v9193_v25  ;;  %v1432_v25 = vrot.slane %v10117_v9, 3  ;;  %v9209_v9 = vld [vmem:[%s12382_s1 + $0x1c0] sm:$0xff]   ;;  %v1708_v56 = vrot.slane %v1706_v34, 4 }
  0xee   : > { %v7823_v47 = vpop.f32.mrf.mxu1  ;;  %v7807_v26 = vpop.f32.mrf.mxu0  ;;  %8129 = vmatprep.mubr.msk.bf16.mxu0 %vm9451_vm0, %v9450_v1  ;;  %8159 = vmatprep.subr.bf16.mxu1 %v9450_v1 }
  0xef   : > { %8213 = vmatprep.subr.bf16.mxu0 %v9450_v1  ;;  %v1433_v47 = vsel %vm1422_vm6, %v1430_v62, %v1432_v25  ;;  %v1434_v62 = vrot.slane %v10153_v13, 3 }
  0xf0   : > { %v10145_v51 = vpop.f32.mrf.mxu1  ;;  %v10148_v53 = vpop.f32.mrf.mxu0  ;;  %8214 = vmatpush3.bf16.msra.mxu0 %v9201_v37 }
  0xf1   : > { %8160 = vmatpush3.bf16.msra.mxu1 %v9196_v8  ;;  %8215 = vmatprep.subr.bf16.mxu0 %v9450_v1  ;;  %v10218_v8 = vld [vmem:[%s9505_s23 + $0x44] sm:$0xf] }
  0xf2   : > { %v7824_v12 = vpop.f32.mrf.mxu1  ;;  %v7808_v2 = vpop.f32.mrf.mxu0  ;;  %8161 = vmatprep.subr.bf16.mxu1 %v9450_v1  ;;  %v6832_v7 = vcombine.low %v10218_v8, %v10221_v10 }
  0xf4   : > { %v10163_v61 = vpop.f32.mrf.mxu1  ;;  %8074 = vmatmul.mubr.bf16.gmra.mxu1 %v1429_v52  ;;  %v10165_v28 = vpop.f32.mrf.mxu0  ;;  %8130 = vmatmul.mubr.bf16.gmra.mxu0 %v1683_v55  ;;  %v1701_v52 = vsel %vm1639_vm5, %v1691_v6, %v1700_v29  ;;  %v1705_v55 = vrot.slane %v1703_v30, 3  ;;  %v1712_v40 = vshrl.u32 %v6832_v7, 16  ;;  %v1715_v35 = vshll.u32 %v6832_v7, 16 }
  0xf5   : > { %8077 = vmatprep.mubr.msk.bf16.mxu1 %vm9451_vm0, %v9450_v1  ;;  %8133 = vmatprep.mubr.msk.bf16.mxu0 %vm9451_vm0, %v9450_v1 }
  0xf6   : > { %v7827_v54 = vpop.f32.mrf.mxu1  ;;  %v7811_v20 = vpop.f32.mrf.mxu0  ;;  %8162 = vmatpush3.bf16.msra.mxu1 %v9200_v15  ;;  %8216 = vmatpush3.bf16.msra.mxu0 %v9204_v59  ;;  %v1709_v6 = vor.u32 %v1708_v56, %v1705_v55  ;;  %v1714_v11 = vrot.slane %v1712_v40, 3  ;;  %v1717_v13 = vrot.slane %v1715_v35, 4 }
  0xf7   : > { %8163 = vmatprep.subr.bf16.mxu1 %v9450_v1  ;;  %8217 = vmatprep.subr.bf16.mxu0 %v9450_v1 }
  0xf8   : > { %v10188_v27 = vpop.f32.mrf.mxu1  ;;  %v10191_v38 = vpop.f32.mrf.mxu0 }
  0xfa   : > { %v7828_v49 = vpop.f32.mrf.mxu1  ;;  %v7812_v16 = vpop.f32.mrf.mxu0  ;;  %8164 = vmatpush3.bf16.msra.mxu1 %v9203_v36  ;;  %8218 = vmatpush3.bf16.msra.mxu0 %v9208_v48 }
  0xfb   : > { %8165 = vmatprep.subr.bf16.mxu1 %v9450_v1  ;;  %8219 = vmatprep.subr.bf16.mxu0 %v9450_v1 }
  0xfc   : > { %v10206_v23 = vpop.f32.mrf.mxu1  ;;  %8078 = vmatmul.mubr.bf16.gmra.mxu1 %v1431_v41  ;;  %v10208_v24 = vpop.f32.mrf.mxu0  ;;  %8134 = vmatmul.mubr.bf16.gmra.mxu0 %v1692_v4  ;;  %v1435_v41 = vsel %vm1422_vm6, %v1432_v25, %v1434_v62  ;;  %v1710_v4 = vsel %vm1639_vm5, %v1700_v29, %v1709_v6  ;;  %v1718_v25 = vor.u32 %v1717_v13, %v1714_v11  ;;  %v1359_v29 = vld [vmem:[%s9505_s23 + $0x48] sm:$0x7] }
  0xfd   : > { %8081 = vmatprep.mubr.msk.bf16.mxu1 %vm9451_vm0, %v9450_v1  ;;  %8137 = vmatprep.mubr.msk.bf16.mxu0 %vm9451_vm0, %v9450_v1 }
  0xfe   : > { %v7831_v37 = vpop.f32.mrf.mxu1  ;;  %v7815_v42 = vpop.f32.mrf.mxu0  ;;  %8166 = vmatpush3.bf16.msra.mxu1 %v9206_v17  ;;  %8220 = vmatpush3.bf16.msra.mxu0 %v9210_v57  ;;  %v1436_v57 = vrot.slane %v10196_v44, 3  ;;  %v1719_v56 = vsel %vm1639_vm5, %v1709_v6, %v1718_v25 }
  0xff   : > { %8167 = vmatprep.subr.bf16.mxu1 %v9450_v1  ;;  %8309 = vmatprep.subr.bf16.mxu0 %v9450_v1  ;;  %v2102_v37 = vld [vmem:[%s9505_s23 + $0x8] sm:$0xf]  ;;  %v10262_v42 = vld [vmem:[%s9505_s23 + $0xc] sm:$0xf] }
 0x100   : > { %v10228_v21 = vpop.f32.mrf.mxu1  ;;  %v10231_v26 = vpop.f32.mrf.mxu0  ;;  %v1437_v55 = vsel %vm1422_vm6, %v1434_v62, %v1436_v57  ;;  %v6890_v44 = vcombine.low %v2102_v37, %v10262_v42  ;;  %v10274_v62 = vld [vmem:[%s9505_s23 + $0x10] sm:$0xff]  }
 0x102   : > { %v7832_v12 = vpop.f32.mrf.mxu1  ;;  %v7816_v2 = vpop.f32.mrf.mxu0  ;;  %8168 = vmatpush3.bf16.msra.mxu1 %v9209_v9  ;;  %v2185_v6 = vshll.u32 %v6890_v44, 16 }
 0x103   : > { %8257 = vmatprep.subr.bf16.mxu1 %v9450_v1 }
 0x104   : > { %v10237_v15 = vpop.f32.mrf.mxu1  ;;  %8082 = vmatmul.mubr.bf16.gmra.mxu1 %v1433_v47  ;;  %v10239_v59 = vpop.f32.mrf.mxu0  ;;  %8138 = vmatmul.mubr.bf16.gmra.mxu0 %v1701_v52  ;;  %v6807_v52 = vcombine.low %v10218_v8, %v1359_v29  ;;  %v2187_v29 = vrot.slane %v2185_v6, 1  ;;  %v2194_v6 = vshrl.u32 %v10274_v62, 16 }
 0x105   : > { %8085 = vmatprep.mubr.msk.bf16.mxu1 %vm9451_vm0, %v9450_v1  ;;  %8141 = vmatprep.mubr.msk.bf16.mxu0 %vm9451_vm0, %v9450_v1 }
 0x106   : > { %v7835_v54 = vpop.f32.mrf.mxu1  ;;  %v7819_v20 = vpop.f32.mrf.mxu0  ;;  %v1438_v35 = vrot.slane %v6807_v52, 3 }
 0x108   : > { %v10246_v36 = vpop.f32.mrf.mxu1  ;;  %v10248_v48 = vpop.f32.mrf.mxu0  ;;  %v1439_v13 = vsel %vm1422_vm6, %v1436_v57, %v1438_v35 }
 0x10a   : > { %v7836_v14 = vpop.f32.mrf.mxu1  ;;  %v7820_v49 = vpop.f32.mrf.mxu0 }
 0x10c   : > { %v10252_v16 = vpop.f32.mrf.mxu1  ;;  %8086 = vmatmul.mubr.bf16.gmra.mxu1 %v1435_v41  ;;  %v793_v17 = vpop.f32.mrf.mxu0  ;;  %8142 = vmatmul.mubr.bf16.gmra.mxu0 %v1710_v4 }
 0x10d   : > { %8089 = vmatprep.mubr.msk.bf16.mxu1 %vm9451_vm0, %v9450_v1  ;;  %8145 = vmatprep.mubr.msk.bf16.mxu0 %vm9451_vm0, %v9450_v1 }
 0x10e   : > { %v7839_v30 = vpop.f32.mrf.mxu1  ;;  %v7911_v34 = vpop.f32.mrf.mxu0 }
 0x10f   : > { %v2190_v30 = vshll.u32 %v10274_v62, 16 }
 0x110   : > { %v498_v9 = vpop.f32.mrf.mxu1  ;;  %v796_v47 = vpop.f32.mrf.mxu0 }
 0x111   : > { %v2192_v57 = vrot.slane %v2190_v30, 1  ;;  %v9219_v30 = vld [vmem:[%s12382_s1 + $0x2b0] sm:$0xff]  }
 0x112   : > { %v7840_v7 = vpop.f32.mrf.mxu1  ;;  %v7912_v12 = vpop.f32.mrf.mxu0 }
 0x114   : > { %v593_v2 = vpop.f32.mrf.mxu1  ;;  %8090 = vmatmul.mubr.bf16.gmra.mxu1 %v1437_v55  ;;  %v801_v40 = vpop.f32.mrf.mxu0  ;;  %8146 = vmatmul.mubr.bf16.gmra.mxu0 %v1719_v56  ;;  %v10289_v56 = vld [vmem:[%s9505_s23 + $0x18] sm:$0xff]  }
 0x115   : > { %v594_v54 = vadd.f32 %v593_v2, %v10122_v33  ;;  %8093 = vmatprep.mubr.msk.bf16.mxu1 %vm9451_vm0, %v9450_v1  ;;  %8149 = vmatprep.mubr.msk.bf16.mxu0 %vm9451_vm0, %v9450_v1  ;;  %v2183_v33 = vshrl.u32 %v6890_v44, 16 }
 0x116   : > { %v7859_v20 = vpop.f32.mrf.mxu1  ;;  %v7915_v41 = vpop.f32.mrf.mxu0 }
 0x117   : > { %v10276_v4 = vadd.f32 %v793_v17, %v594_v54  ;;  %v9215_v54 = vld [vmem:[%s12382_s1 + $0x2b8] sm:$0xff]   ;;  %v2198_v20 = vshll.u32 %v10289_v56, 16 }
 0x118   : > { %v596_v11 = vpop.f32.mrf.mxu1  ;;  %v804_v14 = vpop.f32.mrf.mxu0 }
 0x119   : > { %v597_v49 = vadd.f32 %v596_v11, %v10148_v53  ;;  %v2188_v53 = vor.u32 %v2187_v29, %v2183_v33  ;;  %v2196_v33 = vor.u32 %v2194_v6, %v2192_v57  ;;  %v2200_v29 = vrot.slane %v2198_v20, 1  ;;  %v9218_v6 = vld [vmem:[%s12382_s1 + $0x270] sm:$0xff]  }
 0x11a   : > { %v7860_v34 = vpop.f32.mrf.mxu1  ;;  %v7916_v37 = vpop.f32.mrf.mxu0 }
 0x11b   : > { %v10281_v9 = vadd.f32 %v796_v47, %v597_v49  ;;  %v10309_v34 = vld [vmem:[%s9505_s23 + $0x20] sm:$0xff]  }
 0x11c   : > { %v601_v52 = vpop.f32.mrf.mxu1  ;;  %8094 = vmatmul.mubr.bf16.gmra.mxu1 %v1439_v13  ;;  %v809_v55 = vpop.f32.mrf.mxu0  ;;  %8150 = vmatmul.mubr.bf16.gmra.mxu0 %v1718_v25 }
 0x11d   : > { %v602_v17 = vadd.f32 %v601_v52, %v10165_v28  ;;  %8097 = vmatprep.mubr.msk.bf16.mxu1 %vm9451_vm0, %v9450_v1  ;;  %8221 = vmatprep.mubr.msk.bf16.mxu0 %vm9451_vm0, %v9450_v1  ;;  %v2193_v28 = vsel %vm268_vm1, %v2188_v53, %v2192_v57  ;;  %v6857_v52 = vcombine.low %v10000_v39, %v10004_v43  ;;  %v9214_v57 = vld [vmem:[%s12382_s1 + $0x278] sm:$0xff]   ;;  %v9224_v39 = vld [vmem:[%s12382_s1 + $0x2a8] sm:$0xff]  }
 0x11e   : > { %v7863_v44 = vpop.f32.mrf.mxu1  ;;  %v7919_v7 = vpop.f32.mrf.mxu0 }
 0x11f   : > { %v10291_v47 = vadd.f32 %v801_v40, %v602_v17  ;;  %v2201_v44 = vsel %vm268_vm1, %v2196_v33, %v2200_v29  ;;  %v2202_v7 = vshrl.u32 %v10289_v56, 16 }
 0x120   : > { %v604_v12 = vpop.f32.mrf.mxu1  ;;  %v812_v2 = vpop.f32.mrf.mxu0 }
 0x121   : > { %v605_v25 = vadd.f32 %v604_v12, %v10191_v38  ;;  %v2206_v12 = vshll.u32 %v10309_v34, 16  ;;  %v2204_v20 = vor.u32 %v2202_v7, %v2200_v29  ;;  %v6858_v29 = vcombine.low %v10007_v45, %v10011_v46 }
 0x122   : > { %v7864_v41 = vpop.f32.mrf.mxu1  ;;  %v7920_v11 = vpop.f32.mrf.mxu0 }
 0x123   : > { %v10300_v13 = vadd.f32 %v804_v14, %v605_v25  ;;  %v2208_v41 = vrot.slane %v2206_v12, 1  ;;  %v10338_v11 = vld [vmem:[%s9505_s23 + $0x28] sm:$0xff]  }
 0x124   : > { %v609_v40 = vpop.f32.mrf.mxu1  ;;  %8098 = vmatmul.mubr.bf16.gmra.mxu1 %v1438_v35  ;;  %v817_v49 = vpop.f32.mrf.mxu0  ;;  %8222 = vmatmul.mubr.bf16.vlgmr.msra.gmra.mxu0 %v2193_v28 }
 0x125   : > { %v610_v38 = vadd.f32 %v609_v40, %v10208_v24  ;;  %8169 = vmatprep.mubr.msk.bf16.mxu1 %vm9451_vm0, %v9450_v1  ;;  %8310 = vmatpush3.bf16.msra.mxu0 %v9215_v54 }
 0x126   : > { %v7867_v14 = vpop.f32.mrf.mxu1  ;;  %v7923_v37 = vpop.f32.mrf.mxu0  ;;  %8225 = vmatprep.mubr.msk.bf16.mxu0 %vm9451_vm0, %v9450_v1  ;;  %8311 = vmatprep.subr.bf16.mxu0 %v9450_v1 }
 0x127   : > { %v10314_v24 = vadd.f32 %v809_v55, %v610_v38  ;;  %v2209_v37 = vsel %vm268_vm1, %v2204_v20, %v2208_v41 }
 0x128   : > { %v612_v35 = vpop.f32.mrf.mxu1  ;;  %v820_v17 = vpop.f32.mrf.mxu0 }
 0x129   : > { %v613_v53 = vadd.f32 %v612_v35, %v10231_v26  ;;  %8312 = vmatpush3.bf16.msra.mxu0 %v9219_v30  ;;  %v9222_v35 = vld [vmem:[%s12382_s1 + $0x268] sm:$0xff]  }
 0x12a   : > { %v7868_v55 = vpop.f32.mrf.mxu1  ;;  %v7924_v25 = vpop.f32.mrf.mxu0  ;;  %8313 = vmatprep.subr.bf16.mxu0 %v9450_v1 }
 0x12b   : > { %v10329_v43 = vadd.f32 %v812_v2, %v613_v53  ;;  %v10371_v25 = vld [vmem:[%s9505_s23 + $0x30] sm:$0xff]  }
 0x12c   : > { %v617_v26 = vpop.f32.mrf.mxu1  ;;  %8170 = vmatmul.mubr.bf16.vlgmr.msra.gmra.mxu1 %v6857_v52  ;;  %v825_v28 = vpop.f32.mrf.mxu0  ;;  %8226 = vmatmul.mubr.bf16.gmra.mxu0 %v2201_v44  ;;  %v2210_v52 = vshrl.u32 %v10309_v34, 16  ;;  %v9232_v44 = vld [vmem:[%s12382_s1 + $0x298] sm:$0xff]  }
 0x12d   : > { %v618_v54 = vadd.f32 %v617_v26, %v10239_v59  ;;  %8258 = vmatpush3.bf16.msra.mxu1 %v9214_v57  ;;  %8173 = vmatprep.mubr.msk.bf16.mxu1 %vm9451_vm0, %v9450_v1  ;;  %v9228_v59 = vld [vmem:[%s12382_s1 + $0x2a0] sm:$0xff]  }
 0x12e   : > { %v7871_v2 = vpop.f32.mrf.mxu1  ;;  %v7927_v40 = vpop.f32.mrf.mxu0  ;;  %8259 = vmatprep.subr.bf16.mxu1 %v9450_v1  ;;  %8229 = vmatprep.mubr.msk.bf16.mxu0 %vm9451_vm0, %v9450_v1  ;;  %v2212_v12 = vor.u32 %v2210_v52, %v2208_v41 }
 0x12f   : > { %8314 = vmatpush3.bf16.msra.mxu0 %v9224_v39  ;;  %v10346_v38 = vadd.f32 %v817_v49, %v618_v54  ;;  %v2214_v49 = vshll.u32 %v10338_v11, 16  ;;  %v2218_v40 = vshrl.u32 %v10338_v11, 16 }
 0x130   : > { %v620_v33 = vpop.f32.mrf.mxu1  ;;  %v828_v30 = vpop.f32.mrf.mxu0  ;;  %8315 = vmatprep.subr.bf16.mxu0 %v9450_v1 }
 0x131   : > { %v621_v14 = vadd.f32 %v620_v33, %v10248_v48  ;;  %8260 = vmatpush3.bf16.msra.mxu1 %v9218_v6  ;;  %v2216_v55 = vrot.slane %v2214_v49, 1  ;;  %v6859_v6 = vcombine.low %v10014_v3, %v10035_v58  ;;  %v9231_v3 = vld [vmem:[%s12382_s1 + $0x258] sm:$0xff]   ;;  %v9237_v58 = vld [vmem:[%s12382_s1 + $0x290] sm:$0xff]  }
 0x132   : > { %v7872_v53 = vpop.f32.mrf.mxu1  ;;  %v7928_v57 = vpop.f32.mrf.mxu0  ;;  %8261 = vmatprep.subr.bf16.mxu1 %v9450_v1  ;;  %v10401_v49 = vld [vmem:[%s9505_s23 + $0x38] sm:$0xff]  }
 0x133   : > { %8316 = vmatpush3.bf16.msra.mxu0 %v9228_v59  ;;  %v10359_v45 = vadd.f32 %v820_v17, %v621_v14  ;;  %v9226_v17 = vld [vmem:[%s12382_s1 + $0x260] sm:$0xff]   ;;  %v2217_v2 = vsel %vm268_vm1, %v2212_v12, %v2216_v55  ;;  %v2222_v59 = vshll.u32 %v10371_v25, 16 }
 0x134   : > { %v625_v46 = vpop.f32.mrf.mxu1  ;;  %8174 = vmatmul.mubr.bf16.gmra.mxu1 %v6858_v29  ;;  %v833_v48 = vpop.f32.mrf.mxu0  ;;  %8230 = vmatmul.mubr.bf16.gmra.mxu0 %v2209_v37 }
 0x135   : > { %v626_v7 = vadd.f32 %v625_v46, %v10120_v60  ;;  %8177 = vmatprep.mubr.msk.bf16.mxu1 %vm9451_vm0, %v9450_v1  ;;  %8262 = vmatpush3.bf16.msra.mxu1 %v9222_v35  ;;  %v2220_v35 = vor.u32 %v2218_v40, %v2216_v55  ;;  %v2224_v52 = vrot.slane %v2222_v59, 1 }
 0x136   : > { %v7875_v39 = vpop.f32.mrf.mxu1  ;;  %v7931_v26 = vpop.f32.mrf.mxu0  ;;  %8233 = vmatprep.mubr.msk.bf16.mxu0 %vm9451_vm0, %v9450_v1  ;;  %8263 = vmatprep.subr.bf16.mxu1 %v9450_v1 }
 0x137   : > { %8317 = vmatprep.subr.bf16.mxu0 %v9450_v1  ;;  %v10377_v60 = vadd.f32 %v825_v28, %v626_v7  ;;  %v6860_v7 = vcombine.low %v10042_v19, %v10062_v32  ;;  %v2226_v39 = vshrl.u32 %v10371_v25, 16  ;;  %v2230_v26 = vshll.u32 %v10401_v49, 16  ;;  %v9244_v19 = vld [vmem:[%s12382_s1 + $0x280] sm:$0xff]  }
 0x138   : > { %v628_v54 = vpop.f32.mrf.mxu1  ;;  %v836_v20 = vpop.f32.mrf.mxu0  ;;  %8318 = vmatpush3.bf16.msra.mxu0 %v9232_v44 }
 0x139   : > { %v629_v41 = vadd.f32 %v628_v54, %v10145_v51  ;;  %8264 = vmatpush3.bf16.msra.mxu1 %v9226_v17  ;;  %8319 = vmatprep.subr.bf16.mxu0 %v9450_v1  ;;  %v2225_v17 = vsel %vm268_vm1, %v2220_v35, %v2224_v52  ;;  %v2228_v40 = vor.u32 %v2226_v39, %v2224_v52  ;;  %v2232_v59 = vrot.slane %v2230_v26, 1 }
 0x13a   : > { %v7876_v28 = vpop.f32.mrf.mxu1  ;;  %v7932_v33 = vpop.f32.mrf.mxu0  ;;  %8265 = vmatprep.subr.bf16.mxu1 %v9450_v1 }
 0x13b   : > { %v10393_v51 = vadd.f32 %v828_v30, %v629_v41  ;;  %v9235_v30 = vld [vmem:[%s12382_s1 + $0x250] sm:$0xff]   ;;  %v10435_v28 = vld [vmem:[%s9505_s23 + $0x40] sm:$0xff]   ;;  %v2233_v52 = vsel %vm268_vm1, %v2228_v40, %v2232_v59 }
 0x13c   : > { %v633_v29 = vpop.f32.mrf.mxu1  ;;  %8178 = vmatmul.mubr.bf16.gmra.mxu1 %v6859_v6  ;;  %v841_v14 = vpop.f32.mrf.mxu0  ;;  %8234 = vmatmul.mubr.bf16.gmra.mxu0 %v2217_v2 }
 0x13d   : > { %v634_v37 = vadd.f32 %v633_v29, %v10163_v61  ;;  %8181 = vmatprep.mubr.msk.bf16.mxu1 %vm9451_vm0, %v9450_v1  ;;  %8237 = vmatprep.mubr.msk.bf16.mxu0 %vm9451_vm0, %v9450_v1  ;;  %v9241_v61 = vld [vmem:[%s12382_s1 + $0x288] sm:$0xff]   ;;  %v6861_v29 = vcombine.low %v10065_v63, %v10098_v18 }
 0x13e   : > { %v7879_v53 = vpop.f32.mrf.mxu1  ;;  %v7935_v57 = vpop.f32.mrf.mxu0  ;;  %8266 = vmatpush3.bf16.msra.mxu1 %v9231_v3  ;;  %8320 = vmatpush3.bf16.msra.mxu0 %v9237_v58 }
 0x13f   : > { %8267 = vmatprep.subr.bf16.mxu1 %v9450_v1  ;;  %8321 = vmatprep.subr.bf16.mxu0 %v9450_v1  ;;  %v10411_v46 = vadd.f32 %v833_v48, %v634_v37  ;;  %v9239_v48 = vld [vmem:[%s12382_s1 + $0x248] sm:$0xff]   ;;  %v2234_v53 = vshrl.u32 %v10401_v49, 16  ;;  %v2238_v57 = vshll.u32 %v10435_v28, 16 }
 0x140   : > { %v636_v44 = vpop.f32.mrf.mxu1  ;;  %v844_v12 = vpop.f32.mrf.mxu0 }
 0x141   : > { %v637_v55 = vadd.f32 %v636_v44, %v10188_v27 }
 0x142   : > { %v7880_v54 = vpop.f32.mrf.mxu1  ;;  %v7936_v6 = vpop.f32.mrf.mxu0  ;;  %8268 = vmatpush3.bf16.msra.mxu1 %v9235_v30  ;;  %8322 = vmatpush3.bf16.msra.mxu0 %v9241_v61 }
 0x143   : > { %8269 = vmatprep.subr.bf16.mxu1 %v9450_v1  ;;  %8323 = vmatprep.subr.bf16.mxu0 %v9450_v1  ;;  %v10427_v32 = vadd.f32 %v836_v20, %v637_v55  ;;  %v9243_v20 = vld [vmem:[%s12382_s1 + $0x240] sm:$0xff]   ;;  %v10459_v55 = vld [vmem:[%s9505_s23 + $0x48] sm:$0x1f]   ;;  %v6862_v54 = vcombine.low %v10104_v22, %v10139_v50 }
 0x144   : > { %v641_v27 = vpop.f32.mrf.mxu1  ;;  %8182 = vmatmul.mubr.bf16.gmra.mxu1 %v6860_v7  ;;  %v849_v41 = vpop.f32.mrf.mxu0  ;;  %8238 = vmatmul.mubr.bf16.gmra.mxu0 %v2225_v17  ;;  %v2240_v7 = vrot.slane %v2238_v57, 1 }
 0x145   : > { %v642_v2 = vadd.f32 %v641_v27, %v10206_v23  ;;  %8185 = vmatprep.mubr.msk.bf16.mxu1 %vm9451_vm0, %v9450_v1  ;;  %8241 = vmatprep.mubr.msk.bf16.mxu0 %vm9451_vm0, %v9450_v1  ;;  %v2246_v27 = vshll.u32 %v10459_v55, 16 }
 0x146   : > { %v7883_v33 = vpop.f32.mrf.mxu1  ;;  %v7939_v3 = vpop.f32.mrf.mxu0  ;;  %8270 = vmatpush3.bf16.msra.mxu1 %v9239_v48  ;;  %8324 = vmatpush3.bf16.msra.mxu0 %v9244_v19  ;;  %v2242_v19 = vshrl.u32 %v10435_v28, 16 }
 0x147   : > { %8271 = vmatprep.subr.bf16.mxu1 %v9450_v1  ;;  %8413 = vmatprep.subr.bf16.mxu0 %v9450_v1  ;;  %v10442_v23 = vadd.f32 %v841_v14, %v642_v2  ;;  %v2248_v50 = vrot.slane %v2246_v27, 1 }
 0x148   : > { %v644_v58 = vpop.f32.mrf.mxu1  ;;  %v852_v37 = vpop.f32.mrf.mxu0  ;;  %v2244_v22 = vor.u32 %v2242_v19, %v2240_v7 }
 0x149   : > { %v645_v35 = vadd.f32 %v644_v58, %v10228_v21  ;;  %v2236_v21 = vor.u32 %v2234_v53, %v2232_v59 }
 0x14a   : > { %v7884_v30 = vpop.f32.mrf.mxu1  ;;  %v7940_v61 = vpop.f32.mrf.mxu0  ;;  %8272 = vmatpush3.bf16.msra.mxu1 %v9243_v20 }
 0x14b   : > { %8361 = vmatprep.subr.bf16.mxu1 %v9450_v1  ;;  %v10451_v14 = vadd.f32 %v844_v12, %v645_v35  ;;  %v2241_v48 = vsel %vm268_vm1, %v2236_v21, %v2240_v7  ;;  %v2250_v61 = vshrl.u32 %v10459_v55, 16  ;;  %v2649_v21 = vld [vmem:[%s9505_s23 + $0x14] sm:$0xf]  ;;  %v2650_v7 = vld [vmem:[%s9505_s23 + $0x18] sm:$0xf] }
 0x14c   : > { %v649_v44 = vpop.f32.mrf.mxu1  ;;  %8186 = vmatmul.mubr.bf16.gmra.mxu1 %v6861_v29  ;;  %v857_v63 = vpop.f32.mrf.mxu0  ;;  %8242 = vmatmul.mubr.bf16.gmra.mxu0 %v2233_v52 }
 0x14d   : > { %v650_v18 = vadd.f32 %v649_v44, %v10237_v15  ;;  %8189 = vmatprep.mubr.msk.bf16.mxu1 %vm9451_vm0, %v9450_v1  ;;  %8245 = vmatprep.mubr.msk.bf16.mxu0 %vm9451_vm0, %v9450_v1 }
 0x14e   : > { %v7887_v17 = vpop.f32.mrf.mxu1  ;;  %v7943_v39 = vpop.f32.mrf.mxu0 }
 0x14f   : > { %v10461_v12 = vadd.f32 %v849_v41, %v650_v18  ;;  %v10489_v18 = vld [vmem:[%s9505_s23 + $0x10] sm:$0xf] }
 0x150   : > { %v652_v26 = vpop.f32.mrf.mxu1  ;;  %v860_v6 = vpop.f32.mrf.mxu0 }
 0x151   : > { %v653_v15 = vadd.f32 %v652_v26, %v10246_v36  ;;  %v6864_v26 = vcombine.low %v10178_v0, %v10218_v8 }
 0x152   : > { %v7888_v2 = vpop.f32.mrf.mxu1  ;;  %v7944_v40 = vpop.f32.mrf.mxu0 }
 0x153   : > { %v10469_v59 = vadd.f32 %v852_v37, %v653_v15  ;;  %v6863_v37 = vcombine.low %v10142_v5, %v10175_v31  ;;  %v2647_v5 = vld [vmem:[%s9505_s23 + $0xc] sm:$0xc] }
 0x154   : > { %v657_v33 = vpop.f32.mrf.mxu1  ;;  %8190 = vmatmul.mubr.bf16.gmra.mxu1 %v6862_v54  ;;  %v1255_v41 = vpop.f32.mrf.mxu0  ;;  %8246 = vmatmul.mubr.bf16.gmra.mxu0 %v2241_v48  ;;  %v2252_v54 = vor.u32 %v2250_v61, %v2248_v50  ;;  %v10499_v15 = vcombine.low %v2647_v5, %v10489_v18  ;;  %v10501_v48 = vcombine.low %v2649_v21, %v2650_v7  ;;  %v9252_v21 = vld [vmem:[%s12382_s1 + $0x330] sm:$0xff]  }
 0x155   : > { %v658_v3 = vadd.f32 %v657_v33, %v10252_v16  ;;  %8193 = vmatprep.mubr.msk.bf16.mxu1 %vm9451_vm0, %v9450_v1  ;;  %8249 = vmatprep.mubr.msk.bf16.mxu0 %vm9451_vm0, %v9450_v1  ;;  %v2249_v16 = vsel %vm268_vm1, %v2244_v22, %v2248_v50  ;;  %v2431_v22 = vld [vmem:[%s9505_s23 + $0x8] sm:$0xe]  ;;  %v2651_v50 = vld [vmem:[%s9505_s23 + $0x1c] sm:$0xf] }
 0x156   : > { %v7891_v36 = vpop.f32.mrf.mxu1  ;;  %v8015_v20 = vpop.f32.mrf.mxu0  ;;  %v2727_v8 = vrot.slane %v10499_v15, 2 }
 0x157   : > { %v10476_v58 = vadd.f32 %v857_v63, %v658_v3  ;;  %v2652_v36 = vld [vmem:[%s9505_s23 + $0x20] sm:$0xf] }
 0x158   : > { %v660_v29 = vpop.f32.mrf.mxu1  ;;  %v1258_v35 = vpop.f32.mrf.mxu0 }
 0x15a   : > { %v7892_v52 = vpop.f32.mrf.mxu1  ;;  %v8016_v53 = vpop.f32.mrf.mxu0 }
 0x15b   : > { %v6923_v52 = vcombine.low %v2431_v22, %v10262_v42  ;;  %v9249_v53 = vld [vmem:[%s12382_s1 + $0x338] sm:$0xff]  }
 0x15c   : > { %v1038_v57 = vpop.f32.mrf.mxu1  ;;  %8194 = vmatmul.mubr.bf16.gmra.mxu1 %v6863_v37  ;;  %v1263_v30 = vpop.f32.mrf.mxu0  ;;  %8250 = vmatmul.mubr.bf16.gmra.mxu0 %v2249_v16 }
 0x15d   : > { %v1108_v44 = vadd.f32 %v1038_v57, %v10276_v4  ;;  %8197 = vmatprep.mubr.msk.bf16.mxu1 %vm9451_vm0, %v9450_v1  ;;  %8253 = vmatprep.mubr.msk.bf16.mxu0 %vm9451_vm0, %v9450_v1  ;;  %v10525_v57 = vcombine.low %v2651_v50, %v2652_v36  ;;  %v2452_v42 = vrot.slane %v6923_v52, 1  ;;  %v2455_v50 = vrot.slane %v10289_v56, 1  ;;  %v9251_v36 = vld [vmem:[%s12382_s1 + $0x2f0] sm:$0xff]   ;;  %v9259_v56 = vld [vmem:[%s12382_s1 + $0x320] sm:$0xff]  }
 0x15e   : > { %v7963_v31 = vpop.f32.mrf.mxu1  ;;  %v8019_v63 = vpop.f32.mrf.mxu0 }
 0x15f   : > { %v10493_v17 = vadd.f32 %v1255_v41, %v1108_v44  ;;  %v2453_v31 = vrot.slane %v10274_v62, 1  ;;  %v2730_v63 = vrot.slane %v10525_v57, 2 }
 0x160   : > { %v1041_v39 = vpop.f32.mrf.mxu1  ;;  %v1266_v4 = vpop.f32.mrf.mxu0 }
 0x161   : > { %v1109_v6 = vadd.f32 %v1041_v39, %v10281_v9  ;;  %v2728_v9 = vrot.slane %v10501_v48, 2 }
 0x162   : > { %v7964_v19 = vpop.f32.mrf.mxu1  ;;  %v8020_v27 = vpop.f32.mrf.mxu0 }
 0x163   : > { %v10503_v2 = vadd.f32 %v1258_v35, %v1109_v6  ;;  %v2729_v16 = vsel %vm1146_vm4, %v2727_v8, %v2728_v9  ;;  %v2454_v19 = vsel %vm684_vm3, %v2452_v42, %v2453_v31  ;;  %v9248_v27 = vld [vmem:[%s12382_s1 + $0x2f8] sm:$0xff]  }
 0x164   : > { %v1046_v40 = vpop.f32.mrf.mxu1  ;;  %8198 = vmatmul.mubr.bf16.gmra.mxu1 %v6864_v26  ;;  %v1271_v33 = vpop.f32.mrf.mxu0  ;;  %8254 = vmatmul.mubr.bf16.gmra.mxu0 %v2252_v54  ;;  %v2654_v26 = vld [vmem:[%s9505_s23 + $0x28] sm:$0xf] }
 0x165   : > { %v1110_v0 = vadd.f32 %v1046_v40, %v10291_v47  ;;  %8201 = vmatprep.mubr.msk.bf16.mxu1 %vm9451_vm0, %v9450_v1  ;;  %8325 = vmatprep.mubr.msk.bf16.mxu0 %vm9451_vm0, %v9450_v1  ;;  %v6865_v47 = vcombine.low %v10221_v10, %v10221_v10  ;;  %v2731_v40 = vsel %vm1146_vm4, %v2728_v9, %v2730_v63 }
 0x166   : > { %v7967_v41 = vpop.f32.mrf.mxu1  ;;  %v8023_v3 = vpop.f32.mrf.mxu0 }
 0x167   : > { %v10515_v20 = vadd.f32 %v1263_v30, %v1110_v0 }
 0x168   : > { %v1049_v29 = vpop.f32.mrf.mxu1  ;;  %v1274_v37 = vpop.f32.mrf.mxu0 }
 0x169   : > { %v1111_v35 = vadd.f32 %v1049_v29, %v10300_v13 }
 0x16a   : > { %v7968_v61 = vpop.f32.mrf.mxu1  ;;  %v8024_v30 = vpop.f32.mrf.mxu0 }
 0x16b   : > { %v10527_v44 = vadd.f32 %v1266_v4, %v1111_v35  ;;  %v2656_v35 = vld [vmem:[%s9505_s23 + $0x30] sm:$0xf]  ;;  %v2456_v30 = vsel %vm684_vm3, %v2453_v31, %v2455_v50 }
 0x16c   : > { %v1054_v5 = vpop.f32.mrf.mxu1  ;;  %8202 = vmatmul.mubr.bf16.gmra.mxu1 %v6865_v47  ;;  %v1279_v10 = vpop.f32.mrf.mxu0  ;;  %8326 = vmatmul.mubr.bf16.vlgmr.msra.gmra.mxu0 %v2729_v16 }
 0x16d   : > { %v1112_v13 = vadd.f32 %v1054_v5, %v10314_v24  ;;  %8273 = vmatprep.mubr.msk.bf16.mxu1 %vm9451_vm0, %v9450_v1  ;;  %8414 = vmatpush3.bf16.msra.mxu0 %v9249_v53  ;;  %v2653_v24 = vld [vmem:[%s9505_s23 + $0x24] sm:$0xf] }
 0x16e   : > { %v7971_v7 = vpop.f32.mrf.mxu1  ;;  %v8027_v39 = vpop.f32.mrf.mxu0  ;;  %8329 = vmatprep.mubr.msk.bf16.mxu0 %vm9451_vm0, %v9450_v1  ;;  %8415 = vmatprep.subr.bf16.mxu0 %v9450_v1  ;;  %v10550_v0 = vcombine.low %v2653_v24, %v2654_v26 }
 0x16f   : > { %v10542_v4 = vadd.f32 %v1271_v33, %v1112_v13  ;;  %v9256_v33 = vld [vmem:[%s12382_s1 + $0x328] sm:$0xff]   ;;  %v9262_v39 = vld [vmem:[%s12382_s1 + $0x318] sm:$0xff]  }
 0x170   : > { %v1057_v54 = vpop.f32.mrf.mxu1  ;;  %v1282_v62 = vpop.f32.mrf.mxu0  ;;  %v2732_v29 = vrot.slane %v10550_v0, 2  ;;  %v9254_v13 = vld [vmem:[%s12382_s1 + $0x2e8] sm:$0xff]  }
 0x171   : > { %v1113_v6 = vadd.f32 %v1057_v54, %v10329_v43  ;;  %8416 = vmatpush3.bf16.msra.mxu0 %v9252_v21  ;;  %v9257_v54 = vld [vmem:[%s12382_s1 + $0x2e0] sm:$0xff]  }
 0x172   : > { %v7972_v8 = vpop.f32.mrf.mxu1  ;;  %v8028_v41 = vpop.f32.mrf.mxu0  ;;  %8417 = vmatprep.subr.bf16.mxu0 %v9450_v1  ;;  %v2733_v5 = vsel %vm1146_vm4, %v2730_v63, %v2732_v29  ;;  %v2457_v63 = vrot.slane %v10309_v34, 1  ;;  %v2657_v34 = vld [vmem:[%s9505_s23 + $0x34] sm:$0xf] }
 0x173   : > { %v10556_v43 = vadd.f32 %v1274_v37, %v1113_v6 }
 0x174   : > { %v1062_v3 = vpop.f32.mrf.mxu1  ;;  %8274 = vmatmul.mubr.bf16.vlgmr.msra.gmra.mxu1 %v2454_v19  ;;  %v1287_v22 = vpop.f32.mrf.mxu0  ;;  %8330 = vmatmul.mubr.bf16.gmra.mxu0 %v2731_v40  ;;  %v2658_v19 = vld [vmem:[%s9505_s23 + $0x38] sm:$0xf]  ;;  %v2458_v40 = vsel %vm684_vm3, %v2455_v50, %v2457_v63 }
 0x175   : > { %v1114_v9 = vadd.f32 %v1062_v3, %v10346_v38  ;;  %8362 = vmatpush3.bf16.msra.mxu1 %v9248_v27  ;;  %8277 = vmatprep.mubr.msk.bf16.mxu1 %vm9451_vm0, %v9450_v1  ;;  %v2655_v38 = vld [vmem:[%s9505_s23 + $0x2c] sm:$0xf]  ;;  %v10610_v3 = vcombine.low %v2657_v34, %v2658_v19  ;;  %v2461_v34 = vrot.slane %v10371_v25, 1 }
 0x176   : > { %v7975_v47 = vpop.f32.mrf.mxu1  ;;  %v8031_v37 = vpop.f32.mrf.mxu0  ;;  %8363 = vmatprep.subr.bf16.mxu1 %v9450_v1  ;;  %8333 = vmatprep.mubr.msk.bf16.mxu0 %vm9451_vm0, %v9450_v1  ;;  %v10583_v42 = vcombine.low %v2655_v38, %v2656_v35  ;;  %v2459_v38 = vrot.slane %v10338_v11, 1 }
 0x177   : > { %8418 = vmatpush3.bf16.msra.mxu0 %v9256_v33  ;;  %v10574_v16 = vadd.f32 %v1279_v10, %v1114_v9  ;;  %v2736_v35 = vrot.slane %v10610_v3, 2 }
 0x178   : > { %v1065_v52 = vpop.f32.mrf.mxu1  ;;  %v1290_v53 = vpop.f32.mrf.mxu0  ;;  %8419 = vmatprep.subr.bf16.mxu0 %v9450_v1  ;;  %v2734_v26 = vrot.slane %v10583_v42, 2 }
 0x179   : > { %v1115_v61 = vadd.f32 %v1065_v52, %v10359_v45  ;;  %8364 = vmatpush3.bf16.msra.mxu1 %v9251_v36 }
 0x17a   : > { %v7976_v21 = vpop.f32.mrf.mxu1  ;;  %v8032_v10 = vpop.f32.mrf.mxu0  ;;  %8365 = vmatprep.subr.bf16.mxu1 %v9450_v1  ;;  %v2735_v33 = vsel %vm1146_vm4, %v2732_v29, %v2734_v26 }
 0x17b   : > { %8420 = vmatpush3.bf16.msra.mxu0 %v9259_v56  ;;  %v10586_v7 = vadd.f32 %v1282_v62, %v1115_v61  ;;  %v2659_v56 = vld [vmem:[%s9505_s23 + $0x3c] sm:$0xf]  ;;  %v2660_v61 = vld [vmem:[%s9505_s23 + $0x40] sm:$0xf]  ;;  %v2460_v10 = vsel %vm684_vm3, %v2457_v63, %v2459_v38 }
 0x17c   : > { %v1070_v45 = vpop.f32.mrf.mxu1  ;;  %8278 = vmatmul.mubr.bf16.gmra.mxu1 %v2456_v30  ;;  %v1295_v31 = vpop.f32.mrf.mxu0  ;;  %8334 = vmatmul.mubr.bf16.gmra.mxu0 %v2733_v5  ;;  %v9264_v30 = vld [vmem:[%s12382_s1 + $0x2d0] sm:$0xff]  }
 0x17d   : > { %v1116_v24 = vadd.f32 %v1070_v45, %v10377_v60  ;;  %8281 = vmatprep.mubr.msk.bf16.mxu1 %vm9451_vm0, %v9450_v1  ;;  %8366 = vmatpush3.bf16.msra.mxu1 %v9254_v13  ;;  %v2737_v45 = vsel %vm1146_vm4, %v2734_v26, %v2736_v35 }
 0x17e   : > { %v7979_v62 = vpop.f32.mrf.mxu1  ;;  %v8035_v6 = vpop.f32.mrf.mxu0  ;;  %8337 = vmatprep.mubr.msk.bf16.mxu0 %vm9451_vm0, %v9450_v1  ;;  %8367 = vmatprep.subr.bf16.mxu1 %v9450_v1 }
 0x17f   : > { %8421 = vmatprep.subr.bf16.mxu0 %v9450_v1  ;;  %v10605_v60 = vadd.f32 %v1287_v22, %v1116_v24  ;;  %v9261_v22 = vld [vmem:[%s12382_s1 + $0x2d8] sm:$0xff]   ;;  %v9267_v62 = vld [vmem:[%s12382_s1 + $0x2c8] sm:$0xff]  }
 0x180   : > { %v1073_v27 = vpop.f32.mrf.mxu1  ;;  %v1298_v8 = vpop.f32.mrf.mxu0  ;;  %8422 = vmatpush3.bf16.msra.mxu0 %v9262_v39  ;;  %v10644_v39 = vcombine.low %v2659_v56, %v2660_v61 }
 0x181   : > { %v1117_v41 = vadd.f32 %v1073_v27, %v10393_v51  ;;  %8368 = vmatpush3.bf16.msra.mxu1 %v9257_v54  ;;  %8423 = vmatprep.subr.bf16.mxu0 %v9450_v1  ;;  %v9265_v51 = vld [vmem:[%s12382_s1 + $0x310] sm:$0xff]  }
 0x182   : > { %v7980_v9 = vpop.f32.mrf.mxu1  ;;  %v8036_v36 = vpop.f32.mrf.mxu0  ;;  %8369 = vmatprep.subr.bf16.mxu1 %v9450_v1  ;;  %v2738_v19 = vrot.slane %v10644_v39, 2 }
 0x183   : > { %v10620_v50 = vadd.f32 %v1290_v53, %v1117_v41  ;;  %v2662_v41 = vld [vmem:[%s9505_s23 + $0x48] sm:$0xf] }
 0x184   : > { %v1078_v29 = vpop.f32.mrf.mxu1  ;;  %8282 = vmatmul.mubr.bf16.gmra.mxu1 %v2458_v40  ;;  %v1303_v47 = vpop.f32.mrf.mxu0  ;;  %8338 = vmatmul.mubr.bf16.gmra.mxu0 %v2735_v33  ;;  %v9269_v33 = vld [vmem:[%s12382_s1 + $0x2c0] sm:$0xff]  }
 0x185   : > { %v1118_v37 = vadd.f32 %v1078_v29, %v10411_v46  ;;  %8285 = vmatprep.mubr.msk.bf16.mxu1 %vm9451_vm0, %v9450_v1  ;;  %8341 = vmatprep.mubr.msk.bf16.mxu0 %vm9451_vm0, %v9450_v1  ;;  %v9268_v46 = vld [vmem:[%s12382_s1 + $0x308] sm:$0xff]  }
 0x186   : > { %v7983_v52 = vpop.f32.mrf.mxu1  ;;  %v8039_v53 = vpop.f32.mrf.mxu0  ;;  %8370 = vmatpush3.bf16.msra.mxu1 %v9261_v22  ;;  %8424 = vmatpush3.bf16.msra.mxu0 %v9265_v51  ;;  %v2462_v22 = vsel %vm684_vm3, %v2459_v38, %v2461_v34  ;;  %v2739_v51 = vsel %vm1146_vm4, %v2736_v35, %v2738_v19  ;;  %v2463_v38 = vrot.slane %v10401_v49, 1 }
 0x187   : > { %8371 = vmatprep.subr.bf16.mxu1 %v9450_v1  ;;  %8425 = vmatprep.subr.bf16.mxu0 %v9450_v1  ;;  %v10639_v11 = vadd.f32 %v1295_v31, %v1118_v37  ;;  %v9270_v31 = vld [vmem:[%s12382_s1 + $0x300] sm:$0xff]  }
 0x188   : > { %v1081_v5 = vpop.f32.mrf.mxu1  ;;  %v1306_v13 = vpop.f32.mrf.mxu0 }
 0x189   : > { %v1119_v21 = vadd.f32 %v1081_v5, %v10427_v32  ;;  %v2664_v5 = vld [vmem:[%s9505_s23 + $0x50] sm:$0x3] }
 0x18a   : > { %v7984_v24 = vpop.f32.mrf.mxu1  ;;  %v8040_v54 = vpop.f32.mrf.mxu0  ;;  %8372 = vmatpush3.bf16.msra.mxu1 %v9264_v30  ;;  %8426 = vmatpush3.bf16.msra.mxu0 %v9268_v46  ;;  %v10688_v46 = vld [vmem:[%s9505_s23 + $0x4c] sm:$0xf] }
 0x18b   : > { %8373 = vmatprep.subr.bf16.mxu1 %v9450_v1  ;;  %8427 = vmatprep.subr.bf16.mxu0 %v9450_v1  ;;  %v10654_v32 = vadd.f32 %v1298_v8, %v1119_v21  ;;  %v2661_v8 = vld [vmem:[%s9505_s23 + $0x44] sm:$0xf]  ;;  %v6956_v24 = vcombine.low %v10688_v46, %v2664_v5 }
 0x18c   : > { %v1086_v63 = vpop.f32.mrf.mxu1  ;;  %8286 = vmatmul.mubr.bf16.gmra.mxu1 %v2460_v10  ;;  %v1311_v26 = vpop.f32.mrf.mxu0  ;;  %8342 = vmatmul.mubr.bf16.gmra.mxu0 %v2737_v45  ;;  %v10675_v29 = vcombine.low %v2661_v8, %v2662_v41  ;;  %v2464_v45 = vsel %vm684_vm3, %v2461_v34, %v2463_v38 }
 0x18d   : > { %v1120_v6 = vadd.f32 %v1086_v63, %v10442_v23  ;;  %8289 = vmatprep.mubr.msk.bf16.mxu1 %vm9451_vm0, %v9450_v1  ;;  %8345 = vmatprep.mubr.msk.bf16.mxu0 %vm9451_vm0, %v9450_v1  ;;  %v2742_v34 = vrot.slane %v6956_v24, 2 }
 0x18e   : > { %v7987_v27 = vpop.f32.mrf.mxu1  ;;  %v8043_v40 = vpop.f32.mrf.mxu0  ;;  %8374 = vmatpush3.bf16.msra.mxu1 %v9267_v62  ;;  %8428 = vmatpush3.bf16.msra.mxu0 %v9270_v31  ;;  %v2740_v35 = vrot.slane %v10675_v29, 2 }
 0x18f   : > { %8375 = vmatprep.subr.bf16.mxu1 %v9450_v1  ;;  %8517 = vmatprep.subr.bf16.mxu0 %v9450_v1  ;;  %v10670_v25 = vadd.f32 %v1303_v47, %v1120_v6 }
 0x190   : > { %v1089_v23 = vpop.f32.mrf.mxu1  ;;  %v1314_v9 = vpop.f32.mrf.mxu0  ;;  %v2741_v49 = vsel %vm1146_vm4, %v2738_v19, %v2740_v35 }
 0x191   : > { %v1121_v36 = vadd.f32 %v1089_v23, %v10451_v14 }
 0x192   : > { %v7988_v37 = vpop.f32.mrf.mxu1  ;;  %v8044_v56 = vpop.f32.mrf.mxu0  ;;  %8376 = vmatpush3.bf16.msra.mxu1 %v9269_v33 }
 0x193   : > { %8465 = vmatprep.subr.bf16.mxu1 %v9450_v1  ;;  %v10678_v52 = vadd.f32 %v1306_v13, %v1121_v36 }
 0x194   : > { %v1094_v47 = vpop.f32.mrf.mxu1  ;;  %8290 = vmatmul.mubr.bf16.gmra.mxu1 %v2462_v22  ;;  %v1319_v53 = vpop.f32.mrf.mxu0  ;;  %8346 = vmatmul.mubr.bf16.gmra.mxu0 %v2739_v51  ;;  %v2467_v51 = vrot.slane %v10459_v55, 1 }
 0x195   : > { %v1122_v14 = vadd.f32 %v1094_v47, %v10461_v12  ;;  %8293 = vmatprep.mubr.msk.bf16.mxu1 %vm9451_vm0, %v9450_v1  ;;  %8349 = vmatprep.mubr.msk.bf16.mxu0 %vm9451_vm0, %v9450_v1  ;;  %v3202_v47 = vld [vmem:[%s9505_s23 + $0xc] sm:$0x8] }
 0x196   : > { %v7991_v61 = vpop.f32.mrf.mxu1  ;;  %v8047_v30 = vpop.f32.mrf.mxu0 }
 0x197   : > { %v10691_v13 = vadd.f32 %v1311_v26, %v1122_v14 }
 0x198   : > { %v1097_v21 = vpop.f32.mrf.mxu1  ;;  %v1322_v10 = vpop.f32.mrf.mxu0 }
 0x199   : > { %v1123_v12 = vadd.f32 %v1097_v21, %v10469_v59  ;;  %v2465_v59 = vrot.slane %v10435_v28, 1 }
 0x19a   : > { %v7992_v54 = vpop.f32.mrf.mxu1  ;;  %v8048_v62 = vpop.f32.mrf.mxu0 }
 0x19b   : > { %v10697_v31 = vadd.f32 %v1314_v9, %v1123_v12  ;;  %v2466_v33 = vsel %vm684_vm3, %v2463_v38, %v2465_v59  ;;  %v2468_v61 = vsel %vm684_vm3, %v2465_v59, %v2467_v51  ;;  %v2945_v12 = vshrl.u32 %v10499_v15, 16 }
 0x19c   : > { %v1102_v63 = vpop.f32.mrf.mxu1  ;;  %8294 = vmatmul.mubr.bf16.gmra.mxu1 %v2464_v45  ;;  %v1811_v6 = vpop.f32.mrf.mxu0  ;;  %8350 = vmatmul.mubr.bf16.gmra.mxu0 %v2741_v49  ;;  %v2948_v45 = vshll.u32 %v10499_v15, 16  ;;  %v2953_v49 = vshrl.u32 %v10501_v48, 16  ;;  %v3224_v54 = vrot.slane %v10501_v48, 3 }
 0x19d   : > { %v1124_v26 = vadd.f32 %v1102_v63, %v10476_v58  ;;  %8297 = vmatprep.mubr.msk.bf16.mxu1 %vm9451_vm0, %v9450_v1  ;;  %8353 = vmatprep.mubr.msk.bf16.mxu0 %vm9451_vm0, %v9450_v1  ;;  %v2743_v58 = vsel %vm1146_vm4, %v2740_v35, %v2742_v34  ;;  %v2947_v59 = vrot.slane %v2945_v12, 2 }
 0x19e   : > { %v7995_v19 = vpop.f32.mrf.mxu1  ;;  %v8119_v27 = vpop.f32.mrf.mxu0 }
 0x19f   : > { %v10705_v40 = vadd.f32 %v1319_v53, %v1124_v26 }
 0x1a0   : > { %v1105_v8 = vpop.f32.mrf.mxu1  ;;  %v1814_v41 = vpop.f32.mrf.mxu0 }
 0x1a2   : > { %v7996_v23 = vpop.f32.mrf.mxu1  ;;  %v8120_v9 = vpop.f32.mrf.mxu0 }
 0x1a4   : > { %v1531_v36 = vpop.f32.mrf.mxu1  ;;  %8298 = vmatmul.mubr.bf16.gmra.mxu1 %v2466_v33  ;;  %v1819_v28 = vpop.f32.mrf.mxu0  ;;  %8354 = vmatmul.mubr.bf16.gmra.mxu0 %v2743_v58 }
 0x1a5   : > { %v1601_v22 = vadd.f32 %v1531_v36, %v10493_v17  ;;  %8301 = vmatprep.mubr.msk.bf16.mxu1 %vm9451_vm0, %v9450_v1  ;;  %8357 = vmatprep.mubr.msk.bf16.mxu0 %vm9451_vm0, %v9450_v1  ;;  %v10721_v17 = vcombine.low %v3202_v47, %v10489_v18  ;;  %v2965_v47 = vshll.u32 %v10525_v57, 16 }
 0x1a6   : > { %v8067_v37 = vpop.f32.mrf.mxu1  ;;  %v8123_v56 = vpop.f32.mrf.mxu0 }
 0x1a7   : > { %v10716_v53 = vadd.f32 %v1811_v6, %v1601_v22  ;;  %v3223_v18 = vrot.slane %v10721_v17, 3  ;;  %v2962_v56 = vshrl.u32 %v10525_v57, 16 }
 0x1a8   : > { %v1534_v14 = vpop.f32.mrf.mxu1  ;;  %v1822_v38 = vpop.f32.mrf.mxu0 }
 0x1a9   : > { %v1602_v35 = vadd.f32 %v1534_v14, %v10503_v2  ;;  %v2956_v2 = vshll.u32 %v10501_v48, 16  ;;  %v3225_v8 = vsel %vm1422_vm6, %v3223_v18, %v3224_v54 }
 0x1aa   : > { %v8068_v30 = vpop.f32.mrf.mxu1  ;;  %v8124_v5 = vpop.f32.mrf.mxu0 }
 0x1ab   : > { %v10723_v55 = vadd.f32 %v1814_v41, %v1602_v35  ;;  %v2958_v19 = vrot.slane %v2956_v2, 3  ;;  %v9273_v41 = vld [vmem:[%s12382_s1 + $0x3b8] sm:$0xff]  }
 0x1ac   : > { %v1539_v21 = vpop.f32.mrf.mxu1  ;;  %8302 = vmatmul.mubr.bf16.gmra.mxu1 %v2468_v61  ;;  %v1827_v10 = vpop.f32.mrf.mxu0  ;;  %8358 = vmatmul.mubr.bf16.gmra.mxu0 %v2742_v34  ;;  %v2950_v34 = vrot.slane %v2948_v45, 3  ;;  %v2964_v45 = vrot.slane %v2962_v56, 2 }
 0x1ad   : > { %v1603_v24 = vadd.f32 %v1539_v21, %v10515_v20  ;;  %8305 = vmatprep.mubr.msk.bf16.mxu1 %vm9451_vm0, %v9450_v1  ;;  %8429 = vmatprep.mubr.msk.bf16.mxu0 %vm9451_vm0, %v9450_v1  ;;  %v2955_v20 = vrot.slane %v2953_v49, 2  ;;  %v9272_v21 = vld [vmem:[%s12382_s1 + $0x378] sm:$0xff]  }
 0x1ae   : > { %v8071_v62 = vpop.f32.mrf.mxu1  ;;  %v8127_v63 = vpop.f32.mrf.mxu0 }
 0x1af   : > { %v10736_v6 = vadd.f32 %v1819_v28, %v1603_v24  ;;  %v2951_v28 = vor.u32 %v2950_v34, %v2947_v59  ;;  %v2959_v22 = vor.u32 %v2958_v19, %v2955_v20  ;;  %v2967_v24 = vrot.slane %v2965_v47, 3 }
 0x1b0   : > { %v1542_v15 = vpop.f32.mrf.mxu1  ;;  %v1830_v26 = vpop.f32.mrf.mxu0  ;;  %v2974_v59 = vshll.u32 %v10550_v0, 16  ;;  %v3228_v19 = vrot.slane %v10550_v0, 3 }
 0x1b1   : > { %v1604_v27 = vadd.f32 %v1542_v15, %v10527_v44  ;;  %v3226_v44 = vrot.slane %v10525_v57, 3  ;;  %v2960_v61 = vsel %vm2943_vm7, %v2951_v28, %v2959_v22  ;;  %v2971_v15 = vshrl.u32 %v10550_v0, 16  ;;  %v9304_v0 = vld [vmem:[%s12382_s1 + $0x418] sm:$0xff]  }
 0x1b2   : > { %v8072_v33 = vpop.f32.mrf.mxu1  ;;  %v8128_v58 = vpop.f32.mrf.mxu0  ;;  %v2968_v20 = vor.u32 %v2967_v24, %v2964_v45  ;;  %v2976_v28 = vrot.slane %v2974_v59, 3  ;;  %v2983_v45 = vshll.u32 %v10583_v42, 16  ;;  %v9278_v24 = vld [vmem:[%s12382_s1 + $0x360] sm:$0xff]  }
 0x1b3   : > { %v10747_v23 = vadd.f32 %v1822_v38, %v1604_v27  ;;  %v3227_v12 = vsel %vm1422_vm6, %v3224_v54, %v3226_v44 }
 0x1b4   : > { %v1547_v9 = vpop.f32.mrf.mxu1  ;;  %8306 = vmatmul.mubr.bf16.gmra.mxu1 %v2467_v51  ;;  %v1835_v36 = vpop.f32.mrf.mxu0  ;;  %8430 = vmatmul.mubr.bf16.vlgmr.msra.gmra.mxu0 %v3225_v8  ;;  %v9275_v51 = vld [vmem:[%s12382_s1 + $0x3b0] sm:$0xff]  }
 0x1b5   : > { %v1605_v37 = vadd.f32 %v1547_v9, %v10542_v4  ;;  %8377 = vmatprep.mubr.msk.bf16.mxu1 %vm9451_vm0, %v9450_v1  ;;  %8518 = vmatpush3.bf16.msra.mxu0 %v9273_v41  ;;  %v2973_v9 = vrot.slane %v2971_v15, 2 }
 0x1b6   : > { %v8075_v14 = vpop.f32.mrf.mxu1  ;;  %v8131_v38 = vpop.f32.mrf.mxu0  ;;  %8433 = vmatprep.mubr.msk.bf16.mxu0 %vm9451_vm0, %v9450_v1  ;;  %8519 = vmatprep.subr.bf16.mxu0 %v9450_v1 }
 0x1b7   : > { %v10761_v4 = vadd.f32 %v1827_v10, %v1605_v37  ;;  %v3229_v14 = vsel %vm1422_vm6, %v3226_v44, %v3228_v19 }
 0x1b8   : > { %v1550_v35 = vpop.f32.mrf.mxu1  ;;  %v1838_v30 = vpop.f32.mrf.mxu0 }
 0x1b9   : > { %v1606_v5 = vadd.f32 %v1550_v35, %v10556_v43  ;;  %8520 = vmatpush3.bf16.msra.mxu0 %v9275_v51  ;;  %v9277_v43 = vld [vmem:[%s12382_s1 + $0x3a8] sm:$0xff]   ;;  %v2969_v51 = vsel %vm2943_vm7, %v2959_v22, %v2968_v20  ;;  %v9281_v22 = vld [vmem:[%s12382_s1 + $0x398] sm:$0xff]  }
 0x1ba   : > { %v8076_v10 = vpop.f32.mrf.mxu1  ;;  %v8132_v18 = vpop.f32.mrf.mxu0  ;;  %8521 = vmatprep.subr.bf16.mxu0 %v9450_v1 }
 0x1bb   : > { %v10777_v62 = vadd.f32 %v1830_v26, %v1606_v5  ;;  %v9274_v26 = vld [vmem:[%s12382_s1 + $0x370] sm:$0xff]  }
 0x1bc   : > { %v1555_v63 = vpop.f32.mrf.mxu1  ;;  %8378 = vmatmul.mubr.bf16.vlgmr.msra.gmra.mxu1 %v2960_v61  ;;  %v1843_v54 = vpop.f32.mrf.mxu0  ;;  %8434 = vmatmul.mubr.bf16.gmra.mxu0 %v3227_v12  ;;  %v3230_v12 = vrot.slane %v10583_v42, 3 }
 0x1bd   : > { %v1607_v34 = vadd.f32 %v1555_v63, %v10574_v16  ;;  %8466 = vmatpush3.bf16.msra.mxu1 %v9272_v21  ;;  %8381 = vmatprep.mubr.msk.bf16.mxu1 %vm9451_vm0, %v9450_v1  ;;  %v9279_v16 = vld [vmem:[%s12382_s1 + $0x3a0] sm:$0xff]  }
 0x1be   : > { %v8079_v27 = vpop.f32.mrf.mxu1  ;;  %v8135_v8 = vpop.f32.mrf.mxu0  ;;  %8467 = vmatprep.subr.bf16.mxu1 %v9450_v1  ;;  %8437 = vmatprep.mubr.msk.bf16.mxu0 %vm9451_vm0, %v9450_v1 }
 0x1bf   : > { %8522 = vmatpush3.bf16.msra.mxu0 %v9277_v43  ;;  %v10794_v41 = vadd.f32 %v1835_v36, %v1607_v34  ;;  %v9276_v36 = vld [vmem:[%s12382_s1 + $0x368] sm:$0xff]   ;;  %v3231_v27 = vsel %vm1422_vm6, %v3228_v19, %v3230_v12 }
 0x1c0   : > { %v1558_v33 = vpop.f32.mrf.mxu1  ;;  %v1846_v58 = vpop.f32.mrf.mxu0  ;;  %8523 = vmatprep.subr.bf16.mxu0 %v9450_v1 }
 0x1c1   : > { %v1608_v37 = vadd.f32 %v1558_v33, %v10586_v7  ;;  %8468 = vmatpush3.bf16.msra.mxu1 %v9274_v26  ;;  %v2977_v7 = vor.u32 %v2976_v28, %v2973_v9 }
 0x1c2   : > { %v8080_v38 = vpop.f32.mrf.mxu1  ;;  %v8136_v35 = vpop.f32.mrf.mxu0  ;;  %8469 = vmatprep.subr.bf16.mxu1 %v9450_v1 }
 0x1c3   : > { %8524 = vmatpush3.bf16.msra.mxu0 %v9279_v16  ;;  %v10808_v61 = vadd.f32 %v1838_v30, %v1608_v37  ;;  %v2980_v30 = vshrl.u32 %v10583_v42, 16  ;;  %v2978_v63 = vsel %vm2943_vm7, %v2968_v20, %v2977_v7  ;;  %v2985_v16 = vrot.slane %v2983_v45, 3  ;;  %v9280_v20 = vld [vmem:[%s12382_s1 + $0x358] sm:$0xff]  }
 0x1c4   : > { %v1563_v5 = vpop.f32.mrf.mxu1  ;;  %8382 = vmatmul.mubr.bf16.gmra.mxu1 %v2969_v51  ;;  %v1851_v21 = vpop.f32.mrf.mxu0  ;;  %8438 = vmatmul.mubr.bf16.gmra.mxu0 %v3229_v14  ;;  %v2989_v37 = vshrl.u32 %v10610_v3, 16  ;;  %v2992_v51 = vshll.u32 %v10610_v3, 16 }
 0x1c5   : > { %v1609_v44 = vadd.f32 %v1563_v5, %v10605_v60  ;;  %8385 = vmatprep.mubr.msk.bf16.mxu1 %vm9451_vm0, %v9450_v1  ;;  %8470 = vmatpush3.bf16.msra.mxu1 %v9276_v36  ;;  %v2982_v8 = vrot.slane %v2980_v30, 2  ;;  %v9282_v5 = vld [vmem:[%s12382_s1 + $0x350] sm:$0xff]  }
 0x1c6   : > { %v8083_v10 = vpop.f32.mrf.mxu1  ;;  %v8139_v18 = vpop.f32.mrf.mxu0  ;;  %8441 = vmatprep.mubr.msk.bf16.mxu0 %vm9451_vm0, %v9450_v1  ;;  %8471 = vmatprep.subr.bf16.mxu1 %v9450_v1 }
 0x1c7   : > { %8525 = vmatprep.subr.bf16.mxu0 %v9450_v1  ;;  %v10826_v60 = vadd.f32 %v1843_v54, %v1609_v44  ;;  %v2986_v36 = vor.u32 %v2985_v16, %v2982_v8  ;;  %v2991_v10 = vrot.slane %v2989_v37, 2  ;;  %v2994_v18 = vrot.slane %v2992_v51, 3  ;;  %v9288_v16 = vld [vmem:[%s12382_s1 + $0x380] sm:$0xff]  }
 0x1c8   : > { %v1566_v43 = vpop.f32.mrf.mxu1  ;;  %v1854_v34 = vpop.f32.mrf.mxu0  ;;  %8526 = vmatpush3.bf16.msra.mxu0 %v9281_v22 }
 0x1c9   : > { %v1610_v26 = vadd.f32 %v1566_v43, %v10620_v50  ;;  %8472 = vmatpush3.bf16.msra.mxu1 %v9278_v24  ;;  %8527 = vmatprep.subr.bf16.mxu0 %v9450_v1  ;;  %v9283_v50 = vld [vmem:[%s12382_s1 + $0x390] sm:$0xff]  }
 0x1ca   : > { %v8084_v54 = vpop.f32.mrf.mxu1  ;;  %v8140_v33 = vpop.f32.mrf.mxu0  ;;  %8473 = vmatprep.subr.bf16.mxu1 %v9450_v1 }
 0x1cb   : > { %v10843_v19 = vadd.f32 %v1846_v58, %v1610_v26  ;;  %v3232_v58 = vrot.slane %v10610_v3, 3  ;;  %v2995_v54 = vor.u32 %v2994_v18, %v2991_v10 }
 0x1cc   : > { %v1571_v9 = vpop.f32.mrf.mxu1  ;;  %8386 = vmatmul.mubr.bf16.gmra.mxu1 %v2978_v63  ;;  %v1859_v28 = vpop.f32.mrf.mxu0  ;;  %8442 = vmatmul.mubr.bf16.gmra.mxu0 %v3231_v27  ;;  %v2987_v63 = vsel %vm2943_vm7, %v2977_v7, %v2986_v36 }
 0x1cd   : > { %v1611_v14 = vadd.f32 %v1571_v9, %v10639_v11  ;;  %8389 = vmatprep.mubr.msk.bf16.mxu1 %vm9451_vm0, %v9450_v1  ;;  %8445 = vmatprep.mubr.msk.bf16.mxu0 %vm9451_vm0, %v9450_v1  ;;  %v9286_v11 = vld [vmem:[%s12382_s1 + $0x388] sm:$0xff]   ;;  %v3233_v26 = vsel %vm1422_vm6, %v3230_v12, %v3232_v58 }
 0x1ce   : > { %v8087_v38 = vpop.f32.mrf.mxu1  ;;  %v8143_v35 = vpop.f32.mrf.mxu0  ;;  %8474 = vmatpush3.bf16.msra.mxu1 %v9280_v20  ;;  %8528 = vmatpush3.bf16.msra.mxu0 %v9283_v50  ;;  %v3234_v20 = vrot.slane %v10644_v39, 3  ;;  %v2998_v50 = vshrl.u32 %v10644_v39, 16 }
 0x1cf   : > { %8475 = vmatprep.subr.bf16.mxu1 %v9450_v1  ;;  %8529 = vmatprep.subr.bf16.mxu0 %v9450_v1  ;;  %v10861_v22 = vadd.f32 %v1851_v21, %v1611_v14  ;;  %v9285_v21 = vld [vmem:[%s12382_s1 + $0x348] sm:$0xff]   ;;  %v9287_v38 = vld [vmem:[%s12382_s1 + $0x340] sm:$0xff]  }
 0x1d0   : > { %v1574_v44 = vpop.f32.mrf.mxu1  ;;  %v1862_v24 = vpop.f32.mrf.mxu0  ;;  %v3235_v10 = vsel %vm1422_vm6, %v3232_v58, %v3234_v20  ;;  %v3000_v18 = vrot.slane %v2998_v50, 2  ;;  %v3010_v58 = vshll.u32 %v10675_v29, 16 }
 0x1d1   : > { %v1612_v43 = vadd.f32 %v1574_v44, %v10654_v32 }
 0x1d2   : > { %v8088_v27 = vpop.f32.mrf.mxu1  ;;  %v8144_v8 = vpop.f32.mrf.mxu0  ;;  %8476 = vmatpush3.bf16.msra.mxu1 %v9282_v5  ;;  %8530 = vmatpush3.bf16.msra.mxu0 %v9286_v11  ;;  %v2996_v5 = vsel %vm2943_vm7, %v2986_v36, %v2995_v54 }
 0x1d3   : > { %8477 = vmatprep.subr.bf16.mxu1 %v9450_v1  ;;  %8531 = vmatprep.subr.bf16.mxu0 %v9450_v1  ;;  %v10878_v32 = vadd.f32 %v1854_v34, %v1612_v43  ;;  %v3001_v34 = vshll.u32 %v10644_v39, 16 }
 0x1d4   : > { %v1579_v7 = vpop.f32.mrf.mxu1  ;;  %8390 = vmatmul.mubr.bf16.gmra.mxu1 %v2987_v63  ;;  %v1867_v12 = vpop.f32.mrf.mxu0  ;;  %8446 = vmatmul.mubr.bf16.gmra.mxu0 %v3233_v26 }
 0x1d5   : > { %v1613_v33 = vadd.f32 %v1579_v7, %v10670_v25  ;;  %8393 = vmatprep.mubr.msk.bf16.mxu1 %vm9451_vm0, %v9450_v1  ;;  %8449 = vmatprep.mubr.msk.bf16.mxu0 %vm9451_vm0, %v9450_v1  ;;  %v3003_v43 = vrot.slane %v3001_v34, 3 }
 0x1d6   : > { %v8091_v9 = vpop.f32.mrf.mxu1  ;;  %v8147_v14 = vpop.f32.mrf.mxu0  ;;  %8478 = vmatpush3.bf16.msra.mxu1 %v9285_v21  ;;  %8532 = vmatpush3.bf16.msra.mxu0 %v9288_v16 }
 0x1d7   : > { %8479 = vmatprep.subr.bf16.mxu1 %v9450_v1  ;;  %8621 = vmatprep.subr.bf16.mxu0 %v9450_v1  ;;  %v10893_v25 = vadd.f32 %v1859_v28, %v1613_v33  ;;  %v3004_v21 = vor.u32 %v3003_v43, %v3000_v18  ;;  %v2922_v33 = vld [vmem:[%s9505_s23 + $0x50] sm:$0x7] }
 0x1d8   : > { %v1582_v35 = vpop.f32.mrf.mxu1  ;;  %v1870_v11 = vpop.f32.mrf.mxu0  ;;  %v6981_v18 = vcombine.low %v10688_v46, %v2922_v33 }
 0x1d9   : > { %v1614_v44 = vadd.f32 %v1582_v35, %v10678_v52  ;;  %v3007_v52 = vshrl.u32 %v10675_v29, 16 }
 0x1da   : > { %v8092_v63 = vpop.f32.mrf.mxu1  ;;  %v8148_v26 = vpop.f32.mrf.mxu0  ;;  %8480 = vmatpush3.bf16.msra.mxu1 %v9287_v38 }
 0x1db   : > { %8569 = vmatprep.subr.bf16.mxu1 %v9450_v1  ;;  %v10903_v28 = vadd.f32 %v1862_v24, %v1614_v44  ;;  %v3236_v24 = vrot.slane %v10675_v29, 3  ;;  %v3009_v35 = vrot.slane %v3007_v52, 2  ;;  %v3005_v44 = vsel %vm2943_vm7, %v2995_v54, %v3004_v21 }
 0x1dc   : > { %v1587_v36 = vpop.f32.mrf.mxu1  ;;  %8394 = vmatmul.mubr.bf16.gmra.mxu1 %v2996_v5  ;;  %v1875_v27 = vpop.f32.mrf.mxu0  ;;  %8450 = vmatmul.mubr.bf16.gmra.mxu0 %v3235_v10  ;;  %v3016_v54 = vshrl.u32 %v6981_v18, 16 }
 0x1dd   : > { %v1615_v8 = vadd.f32 %v1587_v36, %v10691_v13  ;;  %8397 = vmatprep.mubr.msk.bf16.mxu1 %vm9451_vm0, %v9450_v1  ;;  %8453 = vmatprep.mubr.msk.bf16.mxu0 %vm9451_vm0, %v9450_v1  ;;  %v3012_v13 = vrot.slane %v3010_v58, 3  ;;  %v3237_v10 = vsel %vm1422_vm6, %v3234_v20, %v3236_v24  ;;  %v3019_v20 = vshll.u32 %v6981_v18, 16 }
 0x1de   : > { %v8095_v16 = vpop.f32.mrf.mxu1  ;;  %v8151_v7 = vpop.f32.mrf.mxu0 }
 0x1df   : > { %v10914_v9 = vadd.f32 %v1867_v12, %v1615_v8  ;;  %v3013_v8 = vor.u32 %v3012_v13, %v3009_v35  ;;  %v3021_v13 = vrot.slane %v3019_v20, 3 }
 0x1e0   : > { %v1590_v14 = vpop.f32.mrf.mxu1  ;;  %v1878_v38 = vpop.f32.mrf.mxu0 }
 0x1e1   : > { %v1616_v5 = vadd.f32 %v1590_v14, %v10697_v31  ;;  %v3238_v31 = vrot.slane %v6981_v18, 3 }
 0x1e2   : > { %v8096_v43 = vpop.f32.mrf.mxu1  ;;  %v8152_v63 = vpop.f32.mrf.mxu0 }
 0x1e3   : > { %v10924_v12 = vadd.f32 %v1870_v11, %v1616_v5  ;;  %v3014_v5 = vsel %vm2943_vm7, %v3004_v21, %v3013_v8  ;;  %v3239_v35 = vsel %vm1422_vm6, %v3236_v24, %v3238_v31 }
 0x1e4   : > { %v1595_v26 = vpop.f32.mrf.mxu1  ;;  %8398 = vmatmul.mubr.bf16.gmra.mxu1 %v3005_v44  ;;  %v2344_v36 = vpop.f32.mrf.mxu0  ;;  %8454 = vmatmul.mubr.bf16.gmra.mxu0 %v3237_v10 }
 0x1e5   : > { %v1617_v16 = vadd.f32 %v1595_v26, %v10705_v40  ;;  %8401 = vmatprep.mubr.msk.bf16.mxu1 %vm9451_vm0, %v9450_v1  ;;  %8457 = vmatprep.mubr.msk.bf16.mxu0 %vm9451_vm0, %v9450_v1  ;;  %v3018_v40 = vrot.slane %v3016_v54, 2 }
 0x1e6   : > { %v8099_v7 = vpop.f32.mrf.mxu1  ;;  %v8223_v33 = vpop.f32.mrf.mxu0 }
 0x1e7   : > { %v10931_v11 = vadd.f32 %v1875_v27, %v1617_v16  ;;  %v3022_v27 = vor.u32 %v3021_v13, %v3018_v40  ;;  %v3440_v40 = vshrl.u32 %v10721_v17, 16 }
 0x1e8   : > { %v1598_v14 = vpop.f32.mrf.mxu1  ;;  %v2347_v38 = vpop.f32.mrf.mxu0 }
 0x1e9   : > { %v3023_v7 = vsel %vm2943_vm7, %v3013_v8, %v3022_v27 }
 0x1ea   : > { %v8100_v44 = vpop.f32.mrf.mxu1  ;;  %v8224_v10 = vpop.f32.mrf.mxu0 }
 0x1ec   : > { %v2015_v43 = vpop.f32.mrf.mxu1  ;;  %8402 = vmatmul.mubr.bf16.gmra.mxu1 %v3014_v5  ;;  %v2352_v63 = vpop.f32.mrf.mxu0  ;;  %8458 = vmatmul.mubr.bf16.gmra.mxu0 %v3239_v35 }
 0x1ed   : > { %v2085_v18 = vadd.f32 %v2015_v43, %v10716_v53  ;;  %8405 = vmatprep.mubr.msk.bf16.mxu1 %vm9451_vm0, %v9450_v1  ;;  %8461 = vmatprep.mubr.msk.bf16.mxu0 %vm9451_vm0, %v9450_v1  ;;  %v9418_v43 = vld [vmem:[%s9505_s23 + $0x10] sm:$0xf] }
 0x1ee   : > { %v8171_v21 = vpop.f32.mrf.mxu1  ;;  %v8227_v26 = vpop.f32.mrf.mxu0 }
 0x1ef   : > { %v10940_v24 = vadd.f32 %v2344_v36, %v2085_v18  ;;  %v3442_v21 = vrot.slane %v3440_v40, 3 }
 0x1f0   : > { %v2018_v16 = vpop.f32.mrf.mxu1  ;;  %v2355_v54 = vpop.f32.mrf.mxu0 }
 0x1f1   : > { %v2086_v20 = vadd.f32 %v2018_v16, %v10723_v55  ;;  %v3443_v55 = vshll.u32 %v10721_v17, 16  ;;  %v3447_v16 = vrot.slane %v2953_v49, 3  ;;  %v9291_v17 = vld [vmem:[%s12382_s1 + $0x438] sm:$0xff]  }
 0x1f2   : > { %v8172_v33 = vpop.f32.mrf.mxu1  ;;  %v8228_v14 = vpop.f32.mrf.mxu0 }
 0x1f3   : > { %v10944_v53 = vadd.f32 %v2347_v38, %v2086_v20  ;;  %v3445_v26 = vrot.slane %v3443_v55, 4  ;;  %v3448_v20 = vrot.slane %v2956_v2, 4  ;;  %v9294_v2 = vld [vmem:[%s12382_s1 + $0x430] sm:$0xff]   ;;  %v9420_v55 = vld [vmem:[%s9505_s23 + $0x18] sm:$0xf] }
 0x1f4   : > { %v2023_v5 = vpop.f32.mrf.mxu1  ;;  %8406 = vmatmul.mubr.bf16.gmra.mxu1 %v3023_v7  ;;  %v2360_v35 = vpop.f32.mrf.mxu0  ;;  %8462 = vmatmul.mubr.bf16.gmra.mxu0 %v3238_v31  ;;  %v9419_v31 = vld [vmem:[%s9505_s23 + $0x14] sm:$0xf] }
 0x1f5   : > { %v2087_v36 = vadd.f32 %v2023_v5, %v10736_v6  ;;  %8409 = vmatprep.mubr.msk.bf16.mxu1 %vm9451_vm0, %v9450_v1  ;;  %8533 = vmatprep.mubr.msk.bf16.mxu0 %vm9451_vm0, %v9450_v1  ;;  %v7056_v18 = vcombine.low %v9418_v43, %v9419_v31  ;;  %v3446_v48 = vor.u32 %v3445_v26, %v3442_v21  ;;  %v9290_v31 = vld [vmem:[%s12382_s1 + $0x3f8] sm:$0xff]  }
 0x1f6   : > { %v8175_v8 = vpop.f32.mrf.mxu1  ;;  %v8231_v38 = vpop.f32.mrf.mxu0  ;;  %v3449_v49 = vor.u32 %v3448_v20, %v3447_v16 }
 0x1f7   : > { %v10953_v13 = vadd.f32 %v2352_v63, %v2087_v36  ;;  %v9421_v8 = vld [vmem:[%s9505_s23 + $0x1c] sm:$0xf] }
 0x1f8   : > { %v2026_v44 = vpop.f32.mrf.mxu1  ;;  %v2363_v10 = vpop.f32.mrf.mxu0  ;;  %v7057_v38 = vcombine.low %v9420_v55, %v9421_v8  ;;  %v3450_v43 = vsel %vm1639_vm5, %v3446_v48, %v3449_v49  ;;  %v9423_v48 = vld [vmem:[%s9505_s23 + $0x24] sm:$0xf]  ;;  %v3456_v55 = vrot.slane %v2974_v59, 4 }
 0x1f9   : > { %v2088_v6 = vadd.f32 %v2026_v44, %v10747_v23 }
 0x1fa   : > { %v8176_v63 = vpop.f32.mrf.mxu1  ;;  %v8232_v7 = vpop.f32.mrf.mxu0 }
 0x1fb   : > { %v10965_v33 = vadd.f32 %v2355_v54, %v2088_v6 }
 0x1fc   : > { %v2031_v14 = vpop.f32.mrf.mxu1  ;;  %8410 = vmatmul.mubr.bf16.gmra.mxu1 %v3022_v27  ;;  %v2368_v5 = vpop.f32.mrf.mxu0  ;;  %8534 = vmatmul.mubr.bf16.vlgmr.msra.gmra.mxu0 %v7056_v18  ;;  %v3451_v18 = vrot.slane %v2962_v56, 3 }
 0x1fd   : > { %v2089_v23 = vadd.f32 %v2031_v14, %v10761_v4  ;;  %8481 = vmatprep.mubr.msk.bf16.mxu1 %vm9451_vm0, %v9450_v1  ;;  %8622 = vmatpush3.bf16.msra.mxu0 %v9291_v17 }
 0x1fe   : > { %v8179_v54 = vpop.f32.mrf.mxu1  ;;  %v8235_v40 = vpop.f32.mrf.mxu0  ;;  %8537 = vmatprep.mubr.msk.bf16.mxu0 %vm9451_vm0, %v9450_v1  ;;  %8623 = vmatprep.subr.bf16.mxu0 %v9450_v1 }
 0x1ff   : > { %v10976_v27 = vadd.f32 %v2360_v35, %v2089_v23  ;;  %v3452_v35 = vrot.slane %v2965_v47, 4  ;;  %v9293_v47 = vld [vmem:[%s12382_s1 + $0x3f0] sm:$0xff]   ;;  %v9422_v23 = vld [vmem:[%s9505_s23 + $0x20] sm:$0xf] }
 0x200   : > { %v2034_v4 = vpop.f32.mrf.mxu1  ;;  %v2371_v36 = vpop.f32.mrf.mxu0 }
 0x201   : > { %v2090_v44 = vadd.f32 %v2034_v4, %v10777_v62  ;;  %8624 = vmatpush3.bf16.msra.mxu0 %v9294_v2  ;;  %v9298_v62 = vld [vmem:[%s12382_s1 + $0x428] sm:$0xff]   ;;  %v3453_v56 = vor.u32 %v3452_v35, %v3451_v18  ;;  %v7058_v2 = vcombine.low %v9422_v23, %v9423_v48  ;;  %v3455_v4 = vrot.slane %v2971_v15, 3 }
 0x202   : > { %v8180_v21 = vpop.f32.mrf.mxu1  ;;  %v8236_v6 = vpop.f32.mrf.mxu0  ;;  %8625 = vmatprep.subr.bf16.mxu0 %v9450_v1 }
 0x203   : > { %v10993_v26 = vadd.f32 %v2363_v10, %v2090_v44  ;;  %v3454_v40 = vsel %vm1639_vm5, %v3449_v49, %v3453_v56  ;;  %v3457_v59 = vor.u32 %v3456_v55, %v3455_v4  ;;  %v9424_v21 = vld [vmem:[%s9505_s23 + $0x28] sm:$0xf]  ;;  %v9425_v6 = vld [vmem:[%s9505_s23 + $0x2c] sm:$0xf]  ;;  %v9426_v4 = vld [vmem:[%s9505_s23 + $0x30] sm:$0xf] }
 0x204   : > { %v2039_v16 = vpop.f32.mrf.mxu1  ;;  %8482 = vmatmul.mubr.bf16.vlgmr.msra.gmra.mxu1 %v3450_v43  ;;  %v2376_v20 = vpop.f32.mrf.mxu0  ;;  %8538 = vmatmul.mubr.bf16.gmra.mxu0 %v7057_v38  ;;  %v9427_v55 = vld [vmem:[%s9505_s23 + $0x34] sm:$0xf] }
 0x205   : > { %v2091_v57 = vadd.f32 %v2039_v16, %v10794_v41  ;;  %8570 = vmatpush3.bf16.msra.mxu1 %v9290_v31  ;;  %8485 = vmatprep.mubr.msk.bf16.mxu1 %vm9451_vm0, %v9450_v1  ;;  %v9301_v41 = vld [vmem:[%s12382_s1 + $0x420] sm:$0xff]  }
 0x206   : > { %v8183_v17 = vpop.f32.mrf.mxu1  ;;  %v8239_v10 = vpop.f32.mrf.mxu0  ;;  %8571 = vmatprep.subr.bf16.mxu1 %v9450_v1  ;;  %8541 = vmatprep.mubr.msk.bf16.mxu0 %vm9451_vm0, %v9450_v1 }
 0x207   : > { %8626 = vmatpush3.bf16.msra.mxu0 %v9298_v62  ;;  %v11007_v63 = vadd.f32 %v2368_v5, %v2091_v57  ;;  %v9296_v5 = vld [vmem:[%s12382_s1 + $0x3e8] sm:$0xff]   ;;  %v7059_v62 = vcombine.low %v9424_v21, %v9425_v6  ;;  %v3458_v57 = vsel %vm1639_vm5, %v3453_v56, %v3457_v59  ;;  %v3460_v17 = vrot.slane %v2983_v45, 4 }
 0x208   : > { %v2042_v7 = vpop.f32.mrf.mxu1  ;;  %v2379_v14 = vpop.f32.mrf.mxu0  ;;  %8627 = vmatprep.subr.bf16.mxu0 %v9450_v1 }
 0x209   : > { %v2092_v54 = vadd.f32 %v2042_v7, %v10808_v61  ;;  %8572 = vmatpush3.bf16.msra.mxu1 %v9293_v47  ;;  %v3459_v47 = vrot.slane %v2980_v30, 3 }
 0x20a   : > { %v8184_v8 = vpop.f32.mrf.mxu1  ;;  %v8240_v38 = vpop.f32.mrf.mxu0  ;;  %8573 = vmatprep.subr.bf16.mxu1 %v9450_v1 }
 0x20b   : > { %8628 = vmatpush3.bf16.msra.mxu0 %v9301_v41  ;;  %v11022_v44 = vadd.f32 %v2371_v36, %v2092_v54  ;;  %v9299_v36 = vld [vmem:[%s12382_s1 + $0x3e0] sm:$0xff]   ;;  %v9303_v41 = vld [vmem:[%s12382_s1 + $0x3d8] sm:$0xff]   ;;  %v3461_v7 = vor.u32 %v3460_v17, %v3459_v47  ;;  %v3467_v47 = vrot.slane %v2998_v50, 3  ;;  %v3468_v17 = vrot.slane %v3001_v34, 4 }
 0x20c   : > { %v2047_v61 = vpop.f32.mrf.mxu1  ;;  %8486 = vmatmul.mubr.bf16.gmra.mxu1 %v3454_v40  ;;  %v2384_v49 = vpop.f32.mrf.mxu0  ;;  %8542 = vmatmul.mubr.bf16.gmra.mxu0 %v7058_v2 }
 0x20d   : > { %v2093_v15 = vadd.f32 %v2047_v61, %v10826_v60  ;;  %8489 = vmatprep.mubr.msk.bf16.mxu1 %vm9451_vm0, %v9450_v1  ;;  %8574 = vmatpush3.bf16.msra.mxu1 %v9296_v5  ;;  %v7060_v5 = vcombine.low %v9426_v4, %v9427_v55  ;;  %v3462_v38 = vsel %vm1639_vm5, %v3457_v59, %v3461_v7  ;;  %v3463_v61 = vrot.slane %v2989_v37, 3 }
 0x20e   : > { %v8187_v43 = vpop.f32.mrf.mxu1  ;;  %v8243_v31 = vpop.f32.mrf.mxu0  ;;  %8545 = vmatprep.mubr.msk.bf16.mxu0 %vm9451_vm0, %v9450_v1  ;;  %8575 = vmatprep.subr.bf16.mxu1 %v9450_v1  ;;  %v3469_v39 = vor.u32 %v3468_v17, %v3467_v47  ;;  %v3471_v55 = vrot.slane %v3007_v52, 3 }
 0x20f   : > { %8629 = vmatprep.subr.bf16.mxu0 %v9450_v1  ;;  %v11037_v18 = vadd.f32 %v2376_v20, %v2093_v15 }
 0x210   : > { %v2050_v60 = vpop.f32.mrf.mxu1  ;;  %v2387_v35 = vpop.f32.mrf.mxu0  ;;  %8630 = vmatpush3.bf16.msra.mxu0 %v9304_v0  ;;  %v3464_v0 = vrot.slane %v2992_v51, 4 }
 0x211   : > { %v2094_v16 = vadd.f32 %v2050_v60, %v10843_v19  ;;  %8576 = vmatpush3.bf16.msra.mxu1 %v9299_v36  ;;  %8631 = vmatprep.subr.bf16.mxu0 %v9450_v1  ;;  %v9307_v19 = vld [vmem:[%s12382_s1 + $0x410] sm:$0xff]  }
 0x212   : > { %v8188_v20 = vpop.f32.mrf.mxu1  ;;  %v8244_v10 = vpop.f32.mrf.mxu0  ;;  %8577 = vmatprep.subr.bf16.mxu1 %v9450_v1  ;;  %v3465_v43 = vor.u32 %v3464_v0, %v3463_v61 }
 0x213   : > { %v11055_v56 = vadd.f32 %v2379_v14, %v2094_v16  ;;  %v9306_v14 = vld [vmem:[%s12382_s1 + $0x3d0] sm:$0xff]   ;;  %v9429_v16 = vld [vmem:[%s9505_s23 + $0x3c] sm:$0xf] }
 0x214   : > { %v2055_v30 = vpop.f32.mrf.mxu1  ;;  %8490 = vmatmul.mubr.bf16.gmra.mxu1 %v3458_v57  ;;  %v2392_v42 = vpop.f32.mrf.mxu0  ;;  %8546 = vmatmul.mubr.bf16.gmra.mxu0 %v7059_v62  ;;  %v9428_v62 = vld [vmem:[%s9505_s23 + $0x38] sm:$0xf]  ;;  %v3466_v10 = vsel %vm1639_vm5, %v3461_v7, %v3465_v43  ;;  %v11119_v7 = vld [vmem:[%s9505_s23 + $0x50] sm:$0xf] }
 0x215   : > { %v2095_v45 = vadd.f32 %v2055_v30, %v10861_v22  ;;  %8493 = vmatprep.mubr.msk.bf16.mxu1 %vm9451_vm0, %v9450_v1  ;;  %8549 = vmatprep.mubr.msk.bf16.mxu0 %vm9451_vm0, %v9450_v1  ;;  %v9311_v22 = vld [vmem:[%s12382_s1 + $0x408] sm:$0xff]   ;;  %v7061_v57 = vcombine.low %v9428_v62, %v9429_v16  ;;  %v11153_v16 = vld [vmem:[%s9505_s23 + $0x1c] sm:$0xff]  }
 0x216   : > { %v8191_v23 = vpop.f32.mrf.mxu1  ;;  %v8247_v48 = vpop.f32.mrf.mxu0  ;;  %8578 = vmatpush3.bf16.msra.mxu1 %v9303_v41  ;;  %8632 = vmatpush3.bf16.msra.mxu0 %v9307_v19 }
 0x217   : > { %8579 = vmatprep.subr.bf16.mxu1 %v9450_v1  ;;  %8633 = vmatprep.subr.bf16.mxu0 %v9450_v1  ;;  %v11070_v2 = vadd.f32 %v2384_v49, %v2095_v45  ;;  %v9309_v49 = vld [vmem:[%s12382_s1 + $0x3c8] sm:$0xff]  }
 0x218   : > { %v2058_v54 = vpop.f32.mrf.mxu1  ;;  %v2395_v40 = vpop.f32.mrf.mxu0 }
 0x219   : > { %v2096_v8 = vadd.f32 %v2058_v54, %v10878_v32  ;;  %v9314_v32 = vld [vmem:[%s12382_s1 + $0x400] sm:$0xff]  }
 0x21a   : > { %v8192_v15 = vpop.f32.mrf.mxu1  ;;  %v8248_v36 = vpop.f32.mrf.mxu0  ;;  %8580 = vmatpush3.bf16.msra.mxu1 %v9306_v14  ;;  %8634 = vmatpush3.bf16.msra.mxu0 %v9311_v22  ;;  %v3470_v14 = vsel %vm1639_vm5, %v3465_v43, %v3469_v39  ;;  %v9430_v54 = vld [vmem:[%s9505_s23 + $0x40] sm:$0xf] }
 0x21b   : > { %8581 = vmatprep.subr.bf16.mxu1 %v9450_v1  ;;  %8635 = vmatprep.subr.bf16.mxu0 %v9450_v1  ;;  %v11088_v37 = vadd.f32 %v2387_v35, %v2096_v8  ;;  %v9313_v35 = vld [vmem:[%s12382_s1 + $0x3c0] sm:$0xff]   ;;  %v7031_v8 = vcombine.low %v10688_v46, %v11119_v7 }
 0x21c   : > { %v2063_v3 = vpop.f32.mrf.mxu1  ;;  %8494 = vmatmul.mubr.bf16.gmra.mxu1 %v3462_v38  ;;  %v2400_v51 = vpop.f32.mrf.mxu0  ;;  %8550 = vmatmul.mubr.bf16.gmra.mxu0 %v7060_v5  ;;  %v3472_v5 = vrot.slane %v3010_v58, 4 }
 0x21d   : > { %v2097_v59 = vadd.f32 %v2063_v3, %v10893_v25  ;;  %8497 = vmatprep.mubr.msk.bf16.mxu1 %vm9451_vm0, %v9450_v1  ;;  %8553 = vmatprep.mubr.msk.bf16.mxu0 %vm9451_vm0, %v9450_v1  ;;  %v3476_v46 = vshrl.u32 %v7031_v8, 16  ;;  %v3479_v58 = vshll.u32 %v7031_v8, 16 }
 0x21e   : > { %v8195_v31 = vpop.f32.mrf.mxu1  ;;  %v8251_v60 = vpop.f32.mrf.mxu0  ;;  %8582 = vmatpush3.bf16.msra.mxu1 %v9309_v49  ;;  %8636 = vmatpush3.bf16.msra.mxu0 %v9314_v32  ;;  %v3473_v29 = vor.u32 %v3472_v5, %v3471_v55  ;;  %v11142_v49 = vld [vmem:[%s9505_s23 + $0x18] sm:$0xf]  ;;  %v11175_v5 = vld [vmem:[%s9505_s23 + $0x24] sm:$0xff]  }
 0x21f   : > { %8583 = vmatprep.subr.bf16.mxu1 %v9450_v1  ;;  %8725 = vmatprep.subr.bf16.mxu0 %v9450_v1  ;;  %v11100_v25 = vadd.f32 %v2392_v42, %v2097_v59  ;;  %v9433_v31 = vld [vmem:[%s9505_s23 + $0x4c] sm:$0xf]  ;;  %v3481_v62 = vrot.slane %v3479_v58, 4 }
 0x220   : > { %v2066_v21 = vpop.f32.mrf.mxu1  ;;  %v2403_v6 = vpop.f32.mrf.mxu0 }
 0x221   : > { %v2098_v20 = vadd.f32 %v2066_v21, %v10903_v28  ;;  %v3474_v21 = vsel %vm1639_vm5, %v3469_v39, %v3473_v29  ;;  %v4174_v39 = vshll.u32 %v11153_v16, 16 }
 0x222   : > { %v8196_v41 = vpop.f32.mrf.mxu1  ;;  %v8252_v19 = vpop.f32.mrf.mxu0  ;;  %8584 = vmatpush3.bf16.msra.mxu1 %v9313_v35 }
 0x223   : > { %8673 = vmatprep.subr.bf16.mxu1 %v9450_v1  ;;  %v11111_v30 = vadd.f32 %v2395_v40, %v2098_v20  ;;  %v9431_v40 = vld [vmem:[%s9505_s23 + $0x44] sm:$0xf]  ;;  %v4176_v55 = vrot.slane %v4174_v39, 2 }
 0x224   : > { %v2071_v42 = vpop.f32.mrf.mxu1  ;;  %8498 = vmatmul.mubr.bf16.gmra.mxu1 %v3466_v10  ;;  %v2408_v50 = vpop.f32.mrf.mxu0  ;;  %8554 = vmatmul.mubr.bf16.gmra.mxu0 %v7061_v57  ;;  %v7062_v4 = vcombine.low %v9430_v54, %v9431_v40 }
 0x225   : > { %v2099_v34 = vadd.f32 %v2071_v42, %v10914_v9  ;;  %8501 = vmatprep.mubr.msk.bf16.mxu1 %vm9451_vm0, %v9450_v1  ;;  %8557 = vmatprep.mubr.msk.bf16.mxu0 %vm9451_vm0, %v9450_v1 }
 0x226   : > { %v8199_v28 = vpop.f32.mrf.mxu1  ;;  %v8255_v45 = vpop.f32.mrf.mxu0 }
 0x227   : > { %v11121_v23 = vadd.f32 %v2400_v51, %v2099_v34 }
 0x228   : > { %v2074_v48 = vpop.f32.mrf.mxu1  ;;  %v2411_v22 = vpop.f32.mrf.mxu0 }
 0x229   : > { %v2100_v9 = vadd.f32 %v2074_v48, %v10924_v12  ;;  %v3866_v12 = vld [vmem:[%s9505_s23 + $0x14] sm:$0xe] }
 0x22a   : > { %v8200_v38 = vpop.f32.mrf.mxu1  ;;  %v8256_v61 = vpop.f32.mrf.mxu0  ;;  %v11149_v35 = vcombine.low %v3866_v12, %v11142_v49 }
 0x22b   : > { %v11133_v0 = vadd.f32 %v2403_v6, %v2100_v9  ;;  %v3478_v6 = vrot.slane %v3476_v46, 3  ;;  %v4183_v46 = vshll.u32 %v11175_v5, 16 }
 0x22c   : > { %v2079_v15 = vpop.f32.mrf.mxu1  ;;  %8502 = vmatmul.mubr.bf16.gmra.mxu1 %v3470_v14  ;;  %v2835_v36 = vpop.f32.mrf.mxu0  ;;  %8558 = vmatmul.mubr.bf16.gmra.mxu0 %v7062_v4  ;;  %v4163_v10 = vshrl.u32 %v11149_v35, 16  ;;  %v4166_v41 = vshll.u32 %v11149_v35, 16 }
 0x22d   : > { %v2101_v52 = vadd.f32 %v2079_v15, %v10931_v11  ;;  %8505 = vmatprep.mubr.msk.bf16.mxu1 %vm9451_vm0, %v9450_v1  ;;  %8561 = vmatprep.mubr.msk.bf16.mxu0 %vm9451_vm0, %v9450_v1  ;;  %v9432_v11 = vld [vmem:[%s9505_s23 + $0x48] sm:$0xf]  ;;  %v3482_v42 = vor.u32 %v3481_v62, %v3478_v6 }
 0x22e   : > { %v8203_v32 = vpop.f32.mrf.mxu1  ;;  %v8327_v3 = vpop.f32.mrf.mxu0  ;;  %v7063_v60 = vcombine.low %v9432_v11, %v9433_v31  ;;  %v4165_v22 = vrot.slane %v4163_v10, 1  ;;  %v4168_v54 = vrot.slane %v4166_v41, 2  ;;  %v9318_v11 = vld [vmem:[%s12382_s1 + $0x4b8] sm:$0xff]  }
 0x22f   : > { %v11144_v51 = vadd.f32 %v2408_v50, %v2101_v52  ;;  %v4171_v50 = vshrl.u32 %v11153_v16, 16  ;;  %v3483_v4 = vsel %vm1639_vm5, %v3473_v29, %v3482_v42  ;;  %v4180_v29 = vshrl.u32 %v11175_v5, 16 }
 0x230   : > { %v2082_v59 = vpop.f32.mrf.mxu1  ;;  %v2838_v43 = vpop.f32.mrf.mxu0 }
 0x231   : > { %v4173_v9 = vrot.slane %v4171_v50, 1  ;;  %v4182_v31 = vrot.slane %v4180_v29, 1 }
 0x232   : > { %v8204_v57 = vpop.f32.mrf.mxu1  ;;  %v8328_v47 = vpop.f32.mrf.mxu0 }
 0x233   : > { %v4177_v52 = vor.u32 %v4176_v55, %v4173_v9  ;;  %v11228_v55 = vld [vmem:[%s9505_s23 + $0x34] sm:$0xff]  }
 0x234   : > { %v2560_v17 = vpop.f32.mrf.mxu1  ;;  %8506 = vmatmul.mubr.bf16.gmra.mxu1 %v3474_v21  ;;  %v2843_v20 = vpop.f32.mrf.mxu0  ;;  %8562 = vmatmul.mubr.bf16.gmra.mxu0 %v7063_v60  ;;  %v4185_v60 = vrot.slane %v4183_v46, 2  ;;  %v11198_v21 = vld [vmem:[%s9505_s23 + $0x2c] sm:$0xff]  }
 0x235   : > { %v2630_v19 = vadd.f32 %v2560_v17, %v10940_v24  ;;  %8509 = vmatprep.mubr.msk.bf16.mxu1 %vm9451_vm0, %v9450_v1  ;;  %8565 = vmatprep.mubr.msk.bf16.mxu0 %vm9451_vm0, %v9450_v1  ;;  %v7064_v24 = vcombine.low %v11119_v7, %v11119_v7  ;;  %v3946_v17 = vrot.slane %v11149_v35, 1 }
 0x236   : > { %v8275_v34 = vpop.f32.mrf.mxu1  ;;  %v8331_v28 = vpop.f32.mrf.mxu0  ;;  %v4186_v41 = vor.u32 %v4185_v60, %v4182_v31 }
 0x237   : > { %v11164_v45 = vadd.f32 %v2835_v36, %v2630_v19  ;;  %v4169_v36 = vor.u32 %v4168_v54, %v4165_v22  ;;  %v9321_v19 = vld [vmem:[%s12382_s1 + $0x4b0] sm:$0xff]   ;;  %v4189_v34 = vshrl.u32 %v11198_v21, 16  ;;  %v9317_v54 = vld [vmem:[%s12382_s1 + $0x478] sm:$0xff]  }
 0x238   : > { %v2563_v48 = vpop.f32.mrf.mxu1  ;;  %v2846_v14 = vpop.f32.mrf.mxu0 }
 0x239   : > { %v2631_v40 = vadd.f32 %v2563_v48, %v10944_v53 }
 0x23a   : > { %v8276_v8 = vpop.f32.mrf.mxu1  ;;  %v8332_v38 = vpop.f32.mrf.mxu0 }
 0x23b   : > { %v11177_v61 = vadd.f32 %v2838_v43, %v2631_v40  ;;  %v4178_v43 = vsel %vm901_vm2, %v4169_v36, %v4177_v52  ;;  %v4187_v40 = vsel %vm901_vm2, %v4177_v52, %v4186_v41 }
 0x23c   : > { %v2568_v15 = vpop.f32.mrf.mxu1  ;;  %8510 = vmatmul.mubr.bf16.gmra.mxu1 %v3483_v4  ;;  %v2851_v7 = vpop.f32.mrf.mxu0  ;;  %8566 = vmatmul.mubr.bf16.gmra.mxu0 %v7064_v24  ;;  %v4191_v4 = vrot.slane %v4189_v34, 1 }
 0x23d   : > { %v2632_v53 = vadd.f32 %v2568_v15, %v10953_v13  ;;  %8513 = vmatprep.mubr.msk.bf16.mxu1 %vm9451_vm0, %v9450_v1  ;;  %8637 = vmatprep.mubr.msk.bf16.mxu0 %vm9451_vm0, %v9450_v1 }
 0x23e   : > { %v8279_v58 = vpop.f32.mrf.mxu1  ;;  %v8335_v12 = vpop.f32.mrf.mxu0 }
 0x23f   : > { %v11186_v32 = vadd.f32 %v2843_v20, %v2632_v53  ;;  %v3947_v20 = vrot.slane %v11153_v16, 1  ;;  %v3949_v53 = vrot.slane %v11175_v5, 1  ;;  %v9320_v58 = vld [vmem:[%s12382_s1 + $0x470] sm:$0xff]  }
 0x240   : > { %v2571_v3 = vpop.f32.mrf.mxu1  ;;  %v2854_v59 = vpop.f32.mrf.mxu0 }
 0x241   : > { %v2633_v13 = vadd.f32 %v2571_v3, %v10965_v33  ;;  %v4198_v3 = vshrl.u32 %v11228_v55, 16  ;;  %v3950_v60 = vsel %vm684_vm3, %v3947_v20, %v3949_v53 }
 0x242   : > { %v8280_v6 = vpop.f32.mrf.mxu1  ;;  %v8336_v62 = vpop.f32.mrf.mxu0 }
 0x243   : > { %v11200_v57 = vadd.f32 %v2846_v14, %v2633_v13  ;;  %v3948_v14 = vsel %vm684_vm3, %v3946_v17, %v3947_v20  ;;  %v9323_v17 = vld [vmem:[%s12382_s1 + $0x468] sm:$0xff]  }
 0x244   : > { %v2576_v47 = vpop.f32.mrf.mxu1  ;;  %8514 = vmatmul.mubr.bf16.gmra.mxu1 %v3482_v42  ;;  %v2859_v33 = vpop.f32.mrf.mxu0  ;;  %8638 = vmatmul.mubr.bf16.vlgmr.msra.gmra.mxu0 %v4178_v43  ;;  %v4192_v42 = vshll.u32 %v11198_v21, 16 }
 0x245   : > { %v2634_v10 = vadd.f32 %v2576_v47, %v10976_v27  ;;  %8585 = vmatprep.mubr.msk.bf16.mxu1 %vm9451_vm0, %v9450_v1  ;;  %8726 = vmatpush3.bf16.msra.mxu0 %v9318_v11 }
 0x246   : > { %v8283_v28 = vpop.f32.mrf.mxu1  ;;  %v8339_v35 = vpop.f32.mrf.mxu0  ;;  %8641 = vmatprep.mubr.msk.bf16.mxu0 %vm9451_vm0, %v9450_v1  ;;  %8727 = vmatprep.subr.bf16.mxu0 %v9450_v1  ;;  %v4194_v9 = vrot.slane %v4192_v42, 2 }
 0x247   : > { %v11215_v27 = vadd.f32 %v2851_v7, %v2634_v10  ;;  %v4200_v10 = vrot.slane %v4198_v3, 1 }
 0x248   : > { %v2579_v48 = vpop.f32.mrf.mxu1  ;;  %v2862_v24 = vpop.f32.mrf.mxu0  ;;  %v4195_v12 = vor.u32 %v4194_v9, %v4191_v4 }
 0x249   : > { %v2635_v22 = vadd.f32 %v2579_v48, %v10993_v26  ;;  %8728 = vmatpush3.bf16.msra.mxu0 %v9321_v19  ;;  %v9325_v26 = vld [vmem:[%s12382_s1 + $0x4a8] sm:$0xff]   ;;  %v11265_v19 = vld [vmem:[%s9505_s23 + $0x3c] sm:$0xff]   ;;  %v3951_v48 = vrot.slane %v11198_v21, 1 }
 0x24a   : > { %v8284_v8 = vpop.f32.mrf.mxu1  ;;  %v8340_v38 = vpop.f32.mrf.mxu0  ;;  %8729 = vmatprep.subr.bf16.mxu0 %v9450_v1  ;;  %v4196_v47 = vsel %vm901_vm2, %v4186_v41, %v4195_v12  ;;  %v4210_v4 = vshll.u32 %v11265_v19, 16 }
 0x24b   : > { %v11234_v15 = vadd.f32 %v2854_v59, %v2635_v22  ;;  %v4201_v59 = vshll.u32 %v11228_v55, 16 }
 0x24c   : > { %v2584_v7 = vpop.f32.mrf.mxu1  ;;  %8586 = vmatmul.mubr.bf16.vlgmr.msra.gmra.mxu1 %v3948_v14  ;;  %v2867_v36 = vpop.f32.mrf.mxu0  ;;  %8642 = vmatmul.mubr.bf16.gmra.mxu0 %v4187_v40  ;;  %v9331_v14 = vld [vmem:[%s12382_s1 + $0x498] sm:$0xff]   ;;  %v4207_v40 = vshrl.u32 %v11265_v19, 16 }
 0x24d   : > { %v2636_v52 = vadd.f32 %v2584_v7, %v11007_v63  ;;  %8674 = vmatpush3.bf16.msra.mxu1 %v9317_v54  ;;  %8589 = vmatprep.mubr.msk.bf16.mxu1 %vm9451_vm0, %v9450_v1  ;;  %v9328_v63 = vld [vmem:[%s12382_s1 + $0x4a0] sm:$0xff]  }
 0x24e   : > { %v8287_v13 = vpop.f32.mrf.mxu1  ;;  %v8343_v43 = vpop.f32.mrf.mxu0  ;;  %8675 = vmatprep.subr.bf16.mxu1 %v9450_v1  ;;  %8645 = vmatprep.mubr.msk.bf16.mxu0 %vm9451_vm0, %v9450_v1 }
 0x24f   : > { %8730 = vmatpush3.bf16.msra.mxu0 %v9325_v26  ;;  %v11251_v11 = vadd.f32 %v2859_v33, %v2636_v52  ;;  %v4203_v33 = vrot.slane %v4201_v59, 2  ;;  %v3952_v26 = vsel %vm684_vm3, %v3949_v53, %v3951_v48  ;;  %v11290_v52 = vld [vmem:[%s9505_s23 + $0x44] sm:$0xff]   ;;  %v4209_v43 = vrot.slane %v4207_v40, 1  ;;  %v9330_v53 = vld [vmem:[%s12382_s1 + $0x458] sm:$0xff]  }
 0x250   : > { %v2587_v31 = vpop.f32.mrf.mxu1  ;;  %v2870_v6 = vpop.f32.mrf.mxu0  ;;  %8731 = vmatprep.subr.bf16.mxu0 %v9450_v1 }
 0x251   : > { %v2637_v62 = vadd.f32 %v2587_v31, %v11022_v44  ;;  %8676 = vmatpush3.bf16.msra.mxu1 %v9320_v58  ;;  %v4204_v54 = vor.u32 %v4203_v33, %v4200_v10  ;;  %v3953_v33 = vrot.slane %v11228_v55, 1 }
 0x252   : > { %v8288_v20 = vpop.f32.mrf.mxu1  ;;  %v8344_v28 = vpop.f32.mrf.mxu0  ;;  %8677 = vmatprep.subr.bf16.mxu1 %v9450_v1 }
 0x253   : > { %8732 = vmatpush3.bf16.msra.mxu0 %v9328_v63  ;;  %v11268_v44 = vadd.f32 %v2862_v24, %v2637_v62  ;;  %v9326_v24 = vld [vmem:[%s12382_s1 + $0x460] sm:$0xff]   ;;  %v4205_v13 = vsel %vm901_vm2, %v4195_v12, %v4204_v54  ;;  %v4212_v63 = vrot.slane %v4210_v4, 2 }
 0x254   : > { %v2592_v41 = vpop.f32.mrf.mxu1  ;;  %8590 = vmatmul.mubr.bf16.gmra.mxu1 %v3950_v60  ;;  %v2875_v35 = vpop.f32.mrf.mxu0  ;;  %8646 = vmatmul.mubr.bf16.gmra.mxu0 %v4196_v47  ;;  %v4216_v47 = vshrl.u32 %v11290_v52, 16 }
 0x255   : > { %v2638_v22 = vadd.f32 %v2592_v41, %v11037_v18  ;;  %8593 = vmatprep.mubr.msk.bf16.mxu1 %vm9451_vm0, %v9450_v1  ;;  %8678 = vmatpush3.bf16.msra.mxu1 %v9323_v17  ;;  %v4219_v17 = vshll.u32 %v11290_v52, 16  ;;  %v9333_v41 = vld [vmem:[%s12382_s1 + $0x450] sm:$0xff]  }
 0x256   : > { %v8291_v9 = vpop.f32.mrf.mxu1  ;;  %v8347_v8 = vpop.f32.mrf.mxu0  ;;  %8649 = vmatprep.mubr.msk.bf16.mxu0 %vm9451_vm0, %v9450_v1  ;;  %8679 = vmatprep.subr.bf16.mxu1 %v9450_v1 }
 0x257   : > { %8733 = vmatprep.subr.bf16.mxu0 %v9450_v1  ;;  %v11286_v18 = vadd.f32 %v2867_v36, %v2638_v22  ;;  %v4218_v9 = vrot.slane %v4216_v47, 1  ;;  %v4221_v8 = vrot.slane %v4219_v17, 2 }
 0x258   : > { %v2595_v38 = vpop.f32.mrf.mxu1  ;;  %v2878_v7 = vpop.f32.mrf.mxu0  ;;  %8734 = vmatpush3.bf16.msra.mxu0 %v9331_v14 }
 0x259   : > { %v2639_v58 = vadd.f32 %v2595_v38, %v11055_v56  ;;  %8680 = vmatpush3.bf16.msra.mxu1 %v9326_v24  ;;  %8735 = vmatprep.subr.bf16.mxu0 %v9450_v1  ;;  %v9334_v56 = vld [vmem:[%s12382_s1 + $0x490] sm:$0xff]  }
 0x25a   : > { %v8292_v36 = vpop.f32.mrf.mxu1  ;;  %v8348_v31 = vpop.f32.mrf.mxu0  ;;  %8681 = vmatprep.subr.bf16.mxu1 %v9450_v1 }
 0x25b   : > { %v11306_v12 = vadd.f32 %v2870_v6, %v2639_v58  ;;  %v4213_v6 = vor.u32 %v4212_v63, %v4209_v43  ;;  %v9340_v36 = vld [vmem:[%s12382_s1 + $0x480] sm:$0xff]   ;;  %v3955_v31 = vrot.slane %v11265_v19, 1 }
 0x25c   : > { %v2600_v60 = vpop.f32.mrf.mxu1  ;;  %8594 = vmatmul.mubr.bf16.gmra.mxu1 %v3952_v26  ;;  %v2883_v62 = vpop.f32.mrf.mxu0  ;;  %8650 = vmatmul.mubr.bf16.gmra.mxu0 %v4205_v13  ;;  %v3954_v26 = vsel %vm684_vm3, %v3951_v48, %v3953_v33  ;;  %v11334_v13 = vld [vmem:[%s9505_s23 + $0x4c] sm:$0xff]  }
 0x25d   : > { %v2640_v10 = vadd.f32 %v2600_v60, %v11070_v2  ;;  %8597 = vmatprep.mubr.msk.bf16.mxu1 %vm9451_vm0, %v9450_v1  ;;  %8653 = vmatprep.mubr.msk.bf16.mxu0 %vm9451_vm0, %v9450_v1  ;;  %v9338_v2 = vld [vmem:[%s12382_s1 + $0x488] sm:$0xff]   ;;  %v4214_v58 = vsel %vm901_vm2, %v4204_v54, %v4213_v6  ;;  %v4225_v60 = vshrl.u32 %v11334_v13, 16 }
 0x25e   : > { %v8295_v20 = vpop.f32.mrf.mxu1  ;;  %v8351_v28 = vpop.f32.mrf.mxu0  ;;  %8682 = vmatpush3.bf16.msra.mxu1 %v9330_v53  ;;  %8736 = vmatpush3.bf16.msra.mxu0 %v9334_v56  ;;  %v4222_v53 = vor.u32 %v4221_v8, %v4218_v9  ;;  %v3956_v9 = vsel %vm684_vm3, %v3953_v33, %v3955_v31 }
 0x25f   : > { %8683 = vmatprep.subr.bf16.mxu1 %v9450_v1  ;;  %8737 = vmatprep.subr.bf16.mxu0 %v9450_v1  ;;  %v11324_v14 = vadd.f32 %v2875_v35, %v2640_v10  ;;  %v9336_v35 = vld [vmem:[%s12382_s1 + $0x448] sm:$0xff]   ;;  %v11355_v28 = vld [vmem:[%s9505_s23 + $0x54] sm:$0xf] }
 0x260   : > { %v2603_v22 = vpop.f32.mrf.mxu1  ;;  %v2886_v24 = vpop.f32.mrf.mxu0 }
 0x261   : > { %v2641_v38 = vadd.f32 %v2603_v22, %v11088_v37 }
 0x262   : > { %v8296_v43 = vpop.f32.mrf.mxu1  ;;  %v8352_v63 = vpop.f32.mrf.mxu0  ;;  %8684 = vmatpush3.bf16.msra.mxu1 %v9333_v41  ;;  %8738 = vmatpush3.bf16.msra.mxu0 %v9338_v2  ;;  %v4141_v41 = vld [vmem:[%s9505_s23 + $0x58] sm:$0x3] }
 0x263   : > { %8685 = vmatprep.subr.bf16.mxu1 %v9450_v1  ;;  %8739 = vmatprep.subr.bf16.mxu0 %v9450_v1  ;;  %v11344_v37 = vadd.f32 %v2878_v7, %v2641_v38  ;;  %v4228_v7 = vshll.u32 %v11334_v13, 16  ;;  %v4223_v38 = vsel %vm901_vm2, %v4213_v6, %v4222_v53  ;;  %v11373_v63 = vcombine.low %v11355_v28, %v4141_v41 }
 0x264   : > { %v2608_v48 = vpop.f32.mrf.mxu1  ;;  %8598 = vmatmul.mubr.bf16.gmra.mxu1 %v3954_v26  ;;  %v2891_v54 = vpop.f32.mrf.mxu0  ;;  %8654 = vmatmul.mubr.bf16.gmra.mxu0 %v4214_v58  ;;  %v4227_v58 = vrot.slane %v4225_v60, 1 }
 0x265   : > { %v2642_v56 = vadd.f32 %v2608_v48, %v11100_v25  ;;  %8601 = vmatprep.mubr.msk.bf16.mxu1 %vm9451_vm0, %v9450_v1  ;;  %8657 = vmatprep.mubr.msk.bf16.mxu0 %vm9451_vm0, %v9450_v1  ;;  %v9339_v25 = vld [vmem:[%s12382_s1 + $0x440] sm:$0xff]   ;;  %v4230_v43 = vrot.slane %v4228_v7, 2 }
 0x266   : > { %v8299_v10 = vpop.f32.mrf.mxu1  ;;  %v8355_v20 = vpop.f32.mrf.mxu0  ;;  %8686 = vmatpush3.bf16.msra.mxu1 %v9336_v35  ;;  %8740 = vmatpush3.bf16.msra.mxu0 %v9340_v36 }
 0x267   : > { %8687 = vmatprep.subr.bf16.mxu1 %v9450_v1  ;;  %8829 = vmatprep.subr.bf16.mxu0 %v9450_v1  ;;  %v11363_v2 = vadd.f32 %v2883_v62, %v2642_v56  ;;  %v4231_v56 = vor.u32 %v4230_v43, %v4227_v58  ;;  %v4234_v10 = vshrl.u32 %v11373_v63, 16 }
 0x268   : > { %v2611_v22 = vpop.f32.mrf.mxu1  ;;  %v2894_v8 = vpop.f32.mrf.mxu0 }
 0x269   : > { %v2643_v26 = vadd.f32 %v2611_v22, %v11111_v30  ;;  %v3957_v30 = vrot.slane %v11290_v52, 1 }
 0x26a   : > { %v8300_v35 = vpop.f32.mrf.mxu1  ;;  %v8356_v62 = vpop.f32.mrf.mxu0  ;;  %8688 = vmatpush3.bf16.msra.mxu1 %v9339_v25 }
 0x26b   : > { %8777 = vmatprep.subr.bf16.mxu1 %v9450_v1  ;;  %v11376_v33 = vadd.f32 %v2886_v24, %v2643_v26  ;;  %v4237_v24 = vshll.u32 %v11373_v63, 16  ;;  %v4232_v26 = vsel %vm901_vm2, %v4222_v53, %v4231_v56  ;;  %v4236_v35 = vrot.slane %v4234_v10, 1  ;;  %v3883_v53 = vld [vmem:[%s9505_s23 + $0x58] sm:$0x1]  ;;  %v4420_v10 = vld [vmem:[%s9505_s23 + $0x14] sm:$0xc] }
 0x26c   : > { %v2616_v36 = vpop.f32.mrf.mxu1  ;;  %8602 = vmatmul.mubr.bf16.gmra.mxu1 %v3956_v9  ;;  %v2899_v6 = vpop.f32.mrf.mxu0  ;;  %8658 = vmatmul.mubr.bf16.gmra.mxu0 %v4223_v38  ;;  %v3958_v9 = vsel %vm684_vm3, %v3955_v31, %v3957_v30 }
 0x26d   : > { %v2644_v48 = vadd.f32 %v2616_v36, %v11121_v23  ;;  %8605 = vmatprep.mubr.msk.bf16.mxu1 %vm9451_vm0, %v9450_v1  ;;  %8661 = vmatprep.mubr.msk.bf16.mxu0 %vm9451_vm0, %v9450_v1  ;;  %v4239_v58 = vrot.slane %v4237_v24, 2 }
 0x26e   : > { %v8303_v20 = vpop.f32.mrf.mxu1  ;;  %v8359_v41 = vpop.f32.mrf.mxu0 }
 0x26f   : > { %v11386_v25 = vadd.f32 %v2891_v54, %v2644_v48  ;;  %v4240_v31 = vor.u32 %v4239_v58, %v4236_v35 }
 0x270   : > { %v2619_v22 = vpop.f32.mrf.mxu1  ;;  %v2902_v38 = vpop.f32.mrf.mxu0 }
 0x271   : > { %v2645_v23 = vadd.f32 %v2619_v22, %v11133_v0  ;;  %v3959_v0 = vrot.slane %v11334_v13, 1  ;;  %v7097_v38 = vcombine.low %v11355_v28, %v3883_v53 }
 0x272   : > { %v8304_v43 = vpop.f32.mrf.mxu1  ;;  %v8360_v62 = vpop.f32.mrf.mxu0 }
 0x273   : > { %v11391_v36 = vadd.f32 %v2894_v8, %v2645_v23  ;;  %v3960_v23 = vsel %vm684_vm3, %v3957_v30, %v3959_v0 }
 0x274   : > { %v2624_v20 = vpop.f32.mrf.mxu1  ;;  %8606 = vmatmul.mubr.bf16.gmra.mxu1 %v3958_v9  ;;  %v3331_v54 = vpop.f32.mrf.mxu0  ;;  %8662 = vmatmul.mubr.bf16.gmra.mxu0 %v4232_v26  ;;  %v4241_v26 = vsel %vm901_vm2, %v4231_v56, %v4240_v31 }
 0x275   : > { %v2646_v48 = vadd.f32 %v2624_v20, %v11144_v51  ;;  %8609 = vmatprep.mubr.msk.bf16.mxu1 %vm9451_vm0, %v9450_v1  ;;  %8665 = vmatprep.mubr.msk.bf16.mxu0 %vm9451_vm0, %v9450_v1  ;;  %v11405_v51 = vcombine.low %v4420_v10, %v11142_v49  ;;  %v3961_v20 = vrot.slane %v7097_v38, 1 }
 0x276   : > { %v8307_v24 = vpop.f32.mrf.mxu1  ;;  %v8431_v8 = vpop.f32.mrf.mxu0 }
 0x277   : > { %v11401_v41 = vadd.f32 %v2899_v6, %v2646_v48  ;;  %v4658_v6 = vshrl.u32 %v11405_v51, 16  ;;  %v4661_v49 = vshll.u32 %v11405_v51, 16  ;;  %v3962_v24 = vsel %vm684_vm3, %v3959_v0, %v3961_v20 }
 0x278   : > { %v2627_v22 = vpop.f32.mrf.mxu1  ;;  %v3334_v9 = vpop.f32.mrf.mxu0 }
 0x279   : > { %v4660_v22 = vrot.slane %v4658_v6, 2 }
 0x27a   : > { %v8308_v43 = vpop.f32.mrf.mxu1  ;;  %v8432_v62 = vpop.f32.mrf.mxu0 }
 0x27c   : > { %v3115_v35 = vpop.f32.mrf.mxu1  ;;  %8610 = vmatmul.mubr.bf16.gmra.mxu1 %v3960_v23  ;;  %v3339_v58 = vpop.f32.mrf.mxu0  ;;  %8666 = vmatmul.mubr.bf16.gmra.mxu0 %v4241_v26  ;;  %v4665_v23 = vrot.slane %v4171_v50, 2  ;;  %v4666_v26 = vrot.slane %v4174_v39, 3 }
 0x27d   : > { %v3185_v48 = vadd.f32 %v3115_v35, %v11164_v45  ;;  %8613 = vmatprep.mubr.msk.bf16.mxu1 %vm9451_vm0, %v9450_v1  ;;  %8669 = vmatprep.mubr.msk.bf16.mxu0 %vm9451_vm0, %v9450_v1  ;;  %v4663_v45 = vrot.slane %v4661_v49, 3 }
 0x27e   : > { %v8379_v30 = vpop.f32.mrf.mxu1  ;;  %v8435_v56 = vpop.f32.mrf.mxu0 }
 0x27f   : > { %v11416_v53 = vadd.f32 %v3331_v54, %v3185_v48  ;;  %v4664_v50 = vor.u32 %v4663_v45, %v4660_v22 }
 0x280   : > { %v3118_v10 = vpop.f32.mrf.mxu1  ;;  %v3342_v8 = vpop.f32.mrf.mxu0 }
 0x281   : > { %v3186_v38 = vadd.f32 %v3118_v10, %v11177_v61  ;;  %v4667_v61 = vor.u32 %v4666_v26, %v4665_v23  ;;  %v4669_v10 = vrot.slane %v4180_v29, 2  ;;  %v4442_v26 = vrot.slane %v11153_v16, 2 }
 0x282   : > { %v8380_v43 = vpop.f32.mrf.mxu1  ;;  %v8436_v62 = vpop.f32.mrf.mxu0 }
 0x283   : > { %v11424_v35 = vadd.f32 %v3334_v9, %v3186_v38 }
 0x284   : > { %v3123_v54 = vpop.f32.mrf.mxu1  ;;  %8614 = vmatmul.mubr.bf16.gmra.mxu1 %v3962_v24  ;;  %v3347_v48 = vpop.f32.mrf.mxu0  ;;  %8670 = vmatmul.mubr.bf16.gmra.mxu0 %v4240_v31  ;;  %v4668_v31 = vsel %vm2943_vm7, %v4664_v50, %v4667_v61  ;;  %v4670_v24 = vrot.slane %v4183_v46, 3  ;;  %v9345_v46 = vld [vmem:[%s12382_s1 + $0x530] sm:$0xff]  }
 0x285   : > { %v3187_v0 = vadd.f32 %v3123_v54, %v11186_v32  ;;  %8617 = vmatprep.mubr.msk.bf16.mxu1 %vm9451_vm0, %v9450_v1  ;;  %8741 = vmatprep.mubr.msk.bf16.mxu0 %vm9451_vm0, %v9450_v1  ;;  %v9343_v32 = vld [vmem:[%s12382_s1 + $0x538] sm:$0xff]  }
 0x286   : > { %v8383_v6 = vpop.f32.mrf.mxu1  ;;  %v8439_v39 = vpop.f32.mrf.mxu0  ;;  %v4671_v29 = vor.u32 %v4670_v24, %v4669_v10 }
 0x287   : > { %v11431_v49 = vadd.f32 %v3339_v58, %v3187_v0  ;;  %v9342_v0 = vld [vmem:[%s12382_s1 + $0x4f8] sm:$0xff]   ;;  %v4673_v6 = vrot.slane %v4189_v34, 2 }
 0x288   : > { %v3126_v9 = vpop.f32.mrf.mxu1  ;;  %v3350_v30 = vpop.f32.mrf.mxu0  ;;  %v4672_v50 = vsel %vm2943_vm7, %v4667_v61, %v4671_v29 }
 0x289   : > { %v3188_v56 = vadd.f32 %v3126_v9, %v11200_v57  ;;  %v4441_v57 = vrot.slane %v11405_v51, 2 }
 0x28a   : > { %v8384_v22 = vpop.f32.mrf.mxu1  ;;  %v8440_v38 = vpop.f32.mrf.mxu0 }
 0x28b   : > { %v11442_v58 = vadd.f32 %v3342_v8, %v3188_v56 }
 0x28c   : > { %v3131_v45 = vpop.f32.mrf.mxu1  ;;  %8618 = vmatmul.mubr.bf16.gmra.mxu1 %v3961_v20  ;;  %v3355_v23 = vpop.f32.mrf.mxu0  ;;  %8742 = vmatmul.mubr.bf16.vlgmr.msra.gmra.mxu0 %v4668_v31 }
 0x28d   : > { %v3189_v43 = vadd.f32 %v3131_v45, %v11215_v27  ;;  %8689 = vmatprep.mubr.msk.bf16.mxu1 %vm9451_vm0, %v9450_v1  ;;  %8830 = vmatpush3.bf16.msra.mxu0 %v9343_v32  ;;  %v4443_v27 = vsel %vm1146_vm4, %v4441_v57, %v4442_v26  ;;  %v4444_v32 = vrot.slane %v11175_v5, 2  ;;  %v9349_v5 = vld [vmem:[%s12382_s1 + $0x520] sm:$0xff]  }
 0x28e   : > { %v8387_v8 = vpop.f32.mrf.mxu1  ;;  %v8443_v62 = vpop.f32.mrf.mxu0  ;;  %8745 = vmatprep.mubr.msk.bf16.mxu0 %vm9451_vm0, %v9450_v1  ;;  %8831 = vmatprep.subr.bf16.mxu0 %v9450_v1 }
 0x28f   : > { %v11455_v51 = vadd.f32 %v3347_v48, %v3189_v43  ;;  %v4674_v48 = vrot.slane %v4192_v42, 3  ;;  %v9344_v42 = vld [vmem:[%s12382_s1 + $0x4f0] sm:$0xff]   ;;  %v4445_v38 = vsel %vm1146_vm4, %v4442_v26, %v4444_v32  ;;  %v4677_v8 = vrot.slane %v4198_v3, 2  ;;  %v9351_v3 = vld [vmem:[%s12382_s1 + $0x518] sm:$0xff]  }
 0x290   : > { %v3134_v16 = vpop.f32.mrf.mxu1  ;;  %v3358_v20 = vpop.f32.mrf.mxu0 }
 0x291   : > { %v3190_v54 = vadd.f32 %v3134_v16, %v11234_v15  ;;  %8832 = vmatpush3.bf16.msra.mxu0 %v9345_v46  ;;  %v9347_v15 = vld [vmem:[%s12382_s1 + $0x528] sm:$0xff]   ;;  %v4675_v10 = vor.u32 %v4674_v48, %v4673_v6 }
 0x292   : > { %v8388_v39 = vpop.f32.mrf.mxu1  ;;  %v8444_v9 = vpop.f32.mrf.mxu0  ;;  %8833 = vmatprep.subr.bf16.mxu0 %v9450_v1  ;;  %v9346_v46 = vld [vmem:[%s12382_s1 + $0x4e8] sm:$0xff]  }
 0x293   : > { %v11471_v56 = vadd.f32 %v3350_v30, %v3190_v54  ;;  %v4676_v43 = vsel %vm2943_vm7, %v4671_v29, %v4675_v10 }
 0x294   : > { %v3139_v31 = vpop.f32.mrf.mxu1  ;;  %8690 = vmatmul.mubr.bf16.vlgmr.msra.gmra.mxu1 %v4443_v27  ;;  %v3363_v61 = vpop.f32.mrf.mxu0  ;;  %8746 = vmatmul.mubr.bf16.gmra.mxu0 %v4672_v50  ;;  %v4446_v27 = vrot.slane %v11198_v21, 2 }
 0x295   : > { %v3191_v34 = vadd.f32 %v3139_v31, %v11251_v11  ;;  %8778 = vmatpush3.bf16.msra.mxu1 %v9342_v0  ;;  %8693 = vmatprep.mubr.msk.bf16.mxu1 %vm9451_vm0, %v9450_v1  ;;  %v4682_v31 = vrot.slane %v4210_v4, 3 }
 0x296   : > { %v8391_v24 = vpop.f32.mrf.mxu1  ;;  %v8447_v30 = vpop.f32.mrf.mxu0  ;;  %8779 = vmatprep.subr.bf16.mxu1 %v9450_v1  ;;  %8749 = vmatprep.mubr.msk.bf16.mxu0 %vm9451_vm0, %v9450_v1  ;;  %v4447_v6 = vsel %vm1146_vm4, %v4444_v32, %v4446_v27  ;;  %v9350_v32 = vld [vmem:[%s12382_s1 + $0x4d8] sm:$0xff]  }
 0x297   : > { %8834 = vmatpush3.bf16.msra.mxu0 %v9347_v15  ;;  %v11486_v11 = vadd.f32 %v3355_v23, %v3191_v34  ;;  %v4678_v23 = vrot.slane %v4201_v59, 3  ;;  %v4681_v15 = vrot.slane %v4207_v40, 2  ;;  %v4448_v24 = vrot.slane %v11228_v55, 2 }
 0x298   : > { %v3142_v22 = vpop.f32.mrf.mxu1  ;;  %v3366_v45 = vpop.f32.mrf.mxu0  ;;  %8835 = vmatprep.subr.bf16.mxu0 %v9450_v1 }
 0x299   : > { %v3192_v57 = vadd.f32 %v3142_v22, %v11268_v44  ;;  %8780 = vmatpush3.bf16.msra.mxu1 %v9344_v42  ;;  %v4679_v59 = vor.u32 %v4678_v23, %v4677_v8  ;;  %v4683_v30 = vor.u32 %v4682_v31, %v4681_v15  ;;  %v4449_v23 = vsel %vm1146_vm4, %v4446_v27, %v4448_v24 }
 0x29a   : > { %v8392_v62 = vpop.f32.mrf.mxu1  ;;  %v8448_v26 = vpop.f32.mrf.mxu0  ;;  %8781 = vmatprep.subr.bf16.mxu1 %v9450_v1  ;;  %v4689_v15 = vrot.slane %v4225_v60, 2  ;;  %v4690_v31 = vrot.slane %v4228_v7, 3 }
 0x29b   : > { %8836 = vmatpush3.bf16.msra.mxu0 %v9349_v5  ;;  %v11500_v16 = vadd.f32 %v3358_v20, %v3192_v57  ;;  %v9348_v20 = vld [vmem:[%s12382_s1 + $0x4e0] sm:$0xff]   ;;  %v4680_v9 = vsel %vm2943_vm7, %v4675_v10, %v4679_v59  ;;  %v4684_v62 = vsel %vm2943_vm7, %v4679_v59, %v4683_v30 }
 0x29c   : > { %v3147_v44 = vpop.f32.mrf.mxu1  ;;  %8694 = vmatmul.mubr.bf16.gmra.mxu1 %v4445_v38  ;;  %v3371_v29 = vpop.f32.mrf.mxu0  ;;  %8750 = vmatmul.mubr.bf16.gmra.mxu0 %v4676_v43  ;;  %v9352_v38 = vld [vmem:[%s12382_s1 + $0x4d0] sm:$0xff]   ;;  %v4685_v43 = vrot.slane %v4216_v47, 2  ;;  %v9358_v47 = vld [vmem:[%s12382_s1 + $0x500] sm:$0xff]   ;;  %v4691_v7 = vor.u32 %v4690_v31, %v4689_v15 }
 0x29d   : > { %v3193_v54 = vadd.f32 %v3147_v44, %v11286_v18  ;;  %8697 = vmatprep.mubr.msk.bf16.mxu1 %vm9451_vm0, %v9450_v1  ;;  %8782 = vmatpush3.bf16.msra.mxu1 %v9346_v46  ;;  %v4686_v46 = vrot.slane %v4219_v17, 3 }
 0x29e   : > { %v8395_v0 = vpop.f32.mrf.mxu1  ;;  %v8451_v50 = vpop.f32.mrf.mxu0  ;;  %8753 = vmatprep.mubr.msk.bf16.mxu0 %vm9451_vm0, %v9450_v1  ;;  %8783 = vmatprep.subr.bf16.mxu1 %v9450_v1 }
 0x29f   : > { %8837 = vmatprep.subr.bf16.mxu0 %v9450_v1  ;;  %v11516_v21 = vadd.f32 %v3363_v61, %v3193_v54  ;;  %v4687_v54 = vor.u32 %v4686_v46, %v4685_v43  ;;  %v4636_v50 = vld [vmem:[%s9505_s23 + $0x58] sm:$0x7] }
 0x2a0   : > { %v3150_v18 = vpop.f32.mrf.mxu1  ;;  %v3374_v48 = vpop.f32.mrf.mxu0  ;;  %8838 = vmatpush3.bf16.msra.mxu0 %v9351_v3  ;;  %v4450_v3 = vrot.slane %v11265_v19, 2 }
 0x2a1   : > { %v3194_v39 = vadd.f32 %v3150_v18, %v11306_v12  ;;  %8784 = vmatpush3.bf16.msra.mxu1 %v9348_v20  ;;  %8839 = vmatprep.subr.bf16.mxu0 %v9450_v1  ;;  %v9353_v12 = vld [vmem:[%s12382_s1 + $0x510] sm:$0xff]   ;;  %v9357_v18 = vld [vmem:[%s12382_s1 + $0x4c0] sm:$0xff]  }
 0x2a2   : > { %v8396_v61 = vpop.f32.mrf.mxu1  ;;  %v8452_v34 = vpop.f32.mrf.mxu0  ;;  %8785 = vmatprep.subr.bf16.mxu1 %v9450_v1 }
 0x2a3   : > { %v11533_v42 = vadd.f32 %v3366_v45, %v3194_v39  ;;  %v4688_v39 = vsel %vm2943_vm7, %v4683_v30, %v4687_v54  ;;  %v11590_v61 = vcombine.low %v11355_v28, %v4636_v50 }
 0x2a4   : > { %v3155_v40 = vpop.f32.mrf.mxu1  ;;  %8698 = vmatmul.mubr.bf16.gmra.mxu1 %v4447_v6  ;;  %v3379_v10 = vpop.f32.mrf.mxu0  ;;  %8754 = vmatmul.mubr.bf16.gmra.mxu0 %v4680_v9  ;;  %v4451_v6 = vsel %vm1146_vm4, %v4448_v24, %v4450_v3 }
 0x2a5   : > { %v3195_v4 = vadd.f32 %v3155_v40, %v11324_v14  ;;  %8701 = vmatprep.mubr.msk.bf16.mxu1 %vm9451_vm0, %v9450_v1  ;;  %8757 = vmatprep.mubr.msk.bf16.mxu0 %vm9451_vm0, %v9450_v1  ;;  %v9356_v14 = vld [vmem:[%s12382_s1 + $0x508] sm:$0xff]   ;;  %v4694_v28 = vshrl.u32 %v11590_v61, 16 }
 0x2a6   : > { %v8399_v5 = vpop.f32.mrf.mxu1  ;;  %v8455_v22 = vpop.f32.mrf.mxu0  ;;  %8786 = vmatpush3.bf16.msra.mxu1 %v9350_v32  ;;  %8840 = vmatpush3.bf16.msra.mxu0 %v9353_v12 }
 0x2a7   : > { %8787 = vmatprep.subr.bf16.mxu1 %v9450_v1  ;;  %8841 = vmatprep.subr.bf16.mxu0 %v9450_v1  ;;  %v11549_v55 = vadd.f32 %v3371_v29, %v3195_v4  ;;  %v9355_v29 = vld [vmem:[%s12382_s1 + $0x4c8] sm:$0xff]   ;;  %v4697_v4 = vshll.u32 %v11590_v61, 16 }
 0x2a8   : > { %v3158_v45 = vpop.f32.mrf.mxu1  ;;  %v3382_v57 = vpop.f32.mrf.mxu0 }
 0x2a9   : > { %v3196_v8 = vadd.f32 %v3158_v45, %v11344_v37  ;;  %v4696_v45 = vrot.slane %v4694_v28, 2 }
 0x2aa   : > { %v8400_v26 = vpop.f32.mrf.mxu1  ;;  %v8456_v44 = vpop.f32.mrf.mxu0  ;;  %8788 = vmatpush3.bf16.msra.mxu1 %v9352_v38  ;;  %8842 = vmatpush3.bf16.msra.mxu0 %v9356_v14  ;;  %v4692_v14 = vsel %vm2943_vm7, %v4687_v54, %v4691_v7 }
 0x2ab   : > { %8789 = vmatprep.subr.bf16.mxu1 %v9450_v1  ;;  %8843 = vmatprep.subr.bf16.mxu0 %v9450_v1  ;;  %v11566_v17 = vadd.f32 %v3374_v48, %v3196_v8  ;;  %v4454_v44 = vrot.slane %v11334_v13, 2 }
 0x2ac   : > { %v3163_v37 = vpop.f32.mrf.mxu1  ;;  %8702 = vmatmul.mubr.bf16.gmra.mxu1 %v4449_v23  ;;  %v3387_v27 = vpop.f32.mrf.mxu0  ;;  %8758 = vmatmul.mubr.bf16.gmra.mxu0 %v4684_v62 }
 0x2ad   : > { %v3197_v59 = vadd.f32 %v3163_v37, %v11363_v2  ;;  %8705 = vmatprep.mubr.msk.bf16.mxu1 %vm9451_vm0, %v9450_v1  ;;  %8761 = vmatprep.mubr.msk.bf16.mxu0 %vm9451_vm0, %v9450_v1 }
 0x2ae   : > { %v8403_v20 = vpop.f32.mrf.mxu1  ;;  %v8459_v0 = vpop.f32.mrf.mxu0  ;;  %8790 = vmatpush3.bf16.msra.mxu1 %v9355_v29  ;;  %8844 = vmatpush3.bf16.msra.mxu0 %v9358_v47 }
 0x2af   : > { %8791 = vmatprep.subr.bf16.mxu1 %v9450_v1  ;;  %8933 = vmatprep.subr.bf16.mxu0 %v9450_v1  ;;  %v11580_v19 = vadd.f32 %v3379_v10, %v3197_v59 }
 0x2b0   : > { %v3166_v2 = vpop.f32.mrf.mxu1  ;;  %v3390_v48 = vpop.f32.mrf.mxu0 }
 0x2b1   : > { %v3198_v9 = vadd.f32 %v3166_v2, %v11376_v33  ;;  %v4452_v33 = vrot.slane %v11290_v52, 2 }
 0x2b2   : > { %v8404_v34 = vpop.f32.mrf.mxu1  ;;  %v8460_v32 = vpop.f32.mrf.mxu0  ;;  %8792 = vmatpush3.bf16.msra.mxu1 %v9357_v18  ;;  %v4456_v18 = vrot.slane %v11373_v63, 2 }
 0x2b3   : > { %8881 = vmatprep.subr.bf16.mxu1 %v9450_v1  ;;  %v11593_v12 = vadd.f32 %v3382_v57, %v3198_v9  ;;  %v4453_v52 = vsel %vm1146_vm4, %v4450_v3, %v4452_v33  ;;  %v4699_v57 = vrot.slane %v4697_v4, 3  ;;  %v4455_v54 = vsel %vm1146_vm4, %v4452_v33, %v4454_v44 }
 0x2b4   : > { %v3171_v40 = vpop.f32.mrf.mxu1  ;;  %8706 = vmatmul.mubr.bf16.gmra.mxu1 %v4451_v6  ;;  %v3395_v10 = vpop.f32.mrf.mxu0  ;;  %8762 = vmatmul.mubr.bf16.gmra.mxu0 %v4688_v39  ;;  %v4457_v31 = vsel %vm1146_vm4, %v4454_v44, %v4456_v18 }
 0x2b5   : > { %v3199_v60 = vadd.f32 %v3171_v40, %v11386_v25  ;;  %8709 = vmatprep.mubr.msk.bf16.mxu1 %vm9451_vm0, %v9450_v1  ;;  %8765 = vmatprep.mubr.msk.bf16.mxu0 %vm9451_vm0, %v9450_v1 }
 0x2b6   : > { %v8407_v24 = vpop.f32.mrf.mxu1  ;;  %v8463_v30 = vpop.f32.mrf.mxu0 }
 0x2b7   : > { %v11603_v5 = vadd.f32 %v3387_v27, %v3199_v60  ;;  %v4880_v60 = vld [vmem:[%s9505_s23 + $0x14] sm:$0x8]  ;;  %v9359_v24 = vld [vmem:[%s9505_s23 + $0x1c] sm:$0xff]  }
 0x2b8   : > { %v3174_v22 = vpop.f32.mrf.mxu1  ;;  %v3398_v38 = vpop.f32.mrf.mxu0 }
 0x2b9   : > { %v3200_v25 = vadd.f32 %v3174_v22, %v11391_v36  ;;  %v4700_v36 = vor.u32 %v4699_v57, %v4696_v45  ;;  %v9434_v22 = vld [vmem:[%s9505_s23 + $0x18] sm:$0xf] }
 0x2ba   : > { %v8408_v43 = vpop.f32.mrf.mxu1  ;;  %v8464_v46 = vpop.f32.mrf.mxu0 }
 0x2bb   : > { %v11608_v8 = vadd.f32 %v3390_v48, %v3200_v25  ;;  %v4701_v59 = vsel %vm2943_vm7, %v4691_v7, %v4700_v36  ;;  %v9435_v46 = vld [vmem:[%s9505_s23 + $0x1c] sm:$0xff]  }
 0x2bc   : > { %v3179_v23 = vpop.f32.mrf.mxu1  ;;  %8710 = vmatmul.mubr.bf16.gmra.mxu1 %v4453_v52  ;;  %v3779_v62 = vpop.f32.mrf.mxu0  ;;  %8766 = vmatmul.mubr.bf16.gmra.mxu0 %v4692_v14  ;;  %v7197_v52 = vcombine.low %v4880_v60, %v9434_v22 }
 0x2bd   : > { %v3201_v26 = vadd.f32 %v3179_v23, %v11401_v41  ;;  %8713 = vmatprep.mubr.msk.bf16.mxu1 %vm9451_vm0, %v9450_v1  ;;  %8769 = vmatprep.mubr.msk.bf16.mxu0 %vm9451_vm0, %v9450_v1  ;;  %v4902_v23 = vrot.slane %v9435_v46, 3 }
 0x2be   : > { %v8411_v29 = vpop.f32.mrf.mxu1  ;;  %v8535_v47 = vpop.f32.mrf.mxu0 }
 0x2bf   : > { %v11616_v37 = vadd.f32 %v3395_v10, %v3201_v26  ;;  %v9363_v47 = vld [vmem:[%s9505_s23 + $0x24] sm:$0xff]  }
 0x2c0   : > { %v3182_v27 = vpop.f32.mrf.mxu1  ;;  %v3782_v3 = vpop.f32.mrf.mxu0 }
 0x2c2   : > { %v8412_v41 = vpop.f32.mrf.mxu1  ;;  %v8536_v20 = vpop.f32.mrf.mxu0 }
 0x2c3   : > { %v9369_v20 = vld [vmem:[%s12382_s1 + $0x5a8] sm:$0xff]  }
 0x2c4   : > { %v3575_v0 = vpop.f32.mrf.mxu1  ;;  %8714 = vmatmul.mubr.bf16.gmra.mxu1 %v4455_v54  ;;  %v3787_v50 = vpop.f32.mrf.mxu0  ;;  %8770 = vmatmul.mubr.bf16.gmra.mxu0 %v4701_v59  ;;  %v9361_v54 = vld [vmem:[%s12382_s1 + $0x578] sm:$0xff]  }
 0x2c5   : > { %v3645_v13 = vadd.f32 %v3575_v0, %v11416_v53  ;;  %8717 = vmatprep.mubr.msk.bf16.mxu1 %vm9451_vm0, %v9450_v1  ;;  %8773 = vmatprep.mubr.msk.bf16.mxu0 %vm9451_vm0, %v9450_v1 }
 0x2c6   : > { %v8483_v2 = vpop.f32.mrf.mxu1  ;;  %v8539_v6 = vpop.f32.mrf.mxu0 }
 0x2c7   : > { %v11626_v48 = vadd.f32 %v3779_v62, %v3645_v13  ;;  %v9365_v62 = vld [vmem:[%s12382_s1 + $0x5b0] sm:$0xff]  }
 0x2c8   : > { %v3578_v39 = vpop.f32.mrf.mxu1  ;;  %v3790_v9 = vpop.f32.mrf.mxu0  ;;  %v9364_v6 = vld [vmem:[%s12382_s1 + $0x570] sm:$0xff]  }
 0x2c9   : > { %v3646_v15 = vadd.f32 %v3578_v39, %v11424_v35 }
 0x2ca   : > { %v8484_v53 = vpop.f32.mrf.mxu1  ;;  %v8540_v34 = vpop.f32.mrf.mxu0 }
 0x2cb   : > { %v11630_v32 = vadd.f32 %v3782_v3, %v3646_v15  ;;  %v9366_v34 = vld [vmem:[%s9505_s23 + $0x2c] sm:$0xff]  }
 0x2cc   : > { %v3583_v63 = vpop.f32.mrf.mxu1  ;;  %8718 = vmatmul.mubr.bf16.gmra.mxu1 %v4457_v31  ;;  %v3795_v40 = vpop.f32.mrf.mxu0  ;;  %8774 = vmatmul.mubr.bf16.gmra.mxu0 %v4700_v36 }
 0x2cd   : > { %v3647_v10 = vadd.f32 %v3583_v63, %v11431_v49  ;;  %8721 = vmatprep.mubr.msk.bf16.mxu1 %vm9451_vm0, %v9450_v1  ;;  %8845 = vmatprep.mubr.msk.bf16.mxu0 %vm9451_vm0, %v9450_v1  ;;  %v9362_v49 = vld [vmem:[%s12382_s1 + $0x5b8] sm:$0xff]  }
 0x2ce   : > { %v8487_v35 = vpop.f32.mrf.mxu1  ;;  %v8543_v33 = vpop.f32.mrf.mxu0 }
 0x2cf   : > { %v11638_v7 = vadd.f32 %v3787_v50, %v3647_v10  ;;  %v9367_v10 = vld [vmem:[%s12382_s1 + $0x568] sm:$0xff]  }
 0x2d0   : > { %v3586_v28 = vpop.f32.mrf.mxu1  ;;  %v3798_v4 = vpop.f32.mrf.mxu0 }
 0x2d1   : > { %v3648_v30 = vadd.f32 %v3586_v28, %v11442_v58  ;;  %v4901_v58 = vrot.slane %v7197_v52, 3  ;;  %v9370_v52 = vld [vmem:[%s12382_s1 + $0x560] sm:$0xff]  }
 0x2d2   : > { %v8488_v38 = vpop.f32.mrf.mxu1  ;;  %v8544_v25 = vpop.f32.mrf.mxu0 }
 0x2d3   : > { %v11646_v14 = vadd.f32 %v3790_v9, %v3648_v30  ;;  %v4903_v3 = vsel %vm1422_vm6, %v4901_v58, %v4902_v23  ;;  %v9437_v30 = vld [vmem:[%s9505_s23 + $0x2c] sm:$0xff]  }
 0x2d4   : > { %v3591_v45 = vpop.f32.mrf.mxu1  ;;  %8722 = vmatmul.mubr.bf16.gmra.mxu1 %v4456_v18  ;;  %v3803_v57 = vpop.f32.mrf.mxu0  ;;  %8846 = vmatmul.mubr.bf16.vlgmr.msra.gmra.mxu0 %v9359_v24  ;;  %v9436_v18 = vld [vmem:[%s9505_s23 + $0x24] sm:$0xff]   ;;  %v4906_v22 = vrot.slane %v9437_v30, 3 }
 0x2d5   : > { %v3649_v43 = vadd.f32 %v3591_v45, %v11455_v51  ;;  %8793 = vmatprep.mubr.msk.bf16.mxu1 %vm9451_vm0, %v9450_v1  ;;  %8934 = vmatpush3.bf16.msra.mxu0 %v9362_v49  ;;  %v4904_v2 = vrot.slane %v9436_v18, 3 }
 0x2d6   : > { %v8491_v26 = vpop.f32.mrf.mxu1  ;;  %v8547_v44 = vpop.f32.mrf.mxu0  ;;  %8849 = vmatprep.mubr.msk.bf16.mxu0 %vm9451_vm0, %v9450_v1  ;;  %8935 = vmatprep.subr.bf16.mxu0 %v9450_v1 }
 0x2d7   : > { %v11658_v36 = vadd.f32 %v3795_v40, %v3649_v43  ;;  %v4905_v40 = vsel %vm1422_vm6, %v4902_v23, %v4904_v2  ;;  %v4907_v58 = vsel %vm1422_vm6, %v4904_v2, %v4906_v22  ;;  %v9378_v26 = vld [vmem:[%s12382_s1 + $0x590] sm:$0xff]  }
 0x2d8   : > { %v3594_v51 = vpop.f32.mrf.mxu1  ;;  %v3806_v29 = vpop.f32.mrf.mxu0 }
 0x2d9   : > { %v3650_v27 = vadd.f32 %v3594_v51, %v11471_v56  ;;  %8936 = vmatpush3.bf16.msra.mxu0 %v9365_v62  ;;  %v9374_v62 = vld [vmem:[%s12382_s1 + $0x558] sm:$0xff]  }
 0x2da   : > { %v8492_v59 = vpop.f32.mrf.mxu1  ;;  %v8548_v41 = vpop.f32.mrf.mxu0  ;;  %8937 = vmatprep.subr.bf16.mxu0 %v9450_v1 }
 0x2db   : > { %v11670_v0 = vadd.f32 %v3798_v4, %v3650_v27  ;;  %v9377_v59 = vld [vmem:[%s12382_s1 + $0x550] sm:$0xff]  }
 0x2dc   : > { %v3599_v50 = vpop.f32.mrf.mxu1  ;;  %8794 = vmatmul.mubr.bf16.vlgmr.msra.gmra.mxu1 %v4903_v3  ;;  %v3811_v56 = vpop.f32.mrf.mxu0  ;;  %8850 = vmatmul.mubr.bf16.gmra.mxu0 %v9363_v47  ;;  %v9438_v47 = vld [vmem:[%s9505_s23 + $0x34] sm:$0xff]  }
 0x2dd   : > { %v3651_v13 = vadd.f32 %v3599_v50, %v11486_v11  ;;  %8882 = vmatpush3.bf16.msra.mxu1 %v9361_v54  ;;  %8797 = vmatprep.mubr.msk.bf16.mxu1 %vm9451_vm0, %v9450_v1  ;;  %v9372_v11 = vld [vmem:[%s12382_s1 + $0x5a0] sm:$0xff]   ;;  %v4908_v27 = vrot.slane %v9438_v47, 3 }
 0x2de   : > { %v8495_v39 = vpop.f32.mrf.mxu1  ;;  %v8551_v9 = vpop.f32.mrf.mxu0  ;;  %8883 = vmatprep.subr.bf16.mxu1 %v9450_v1  ;;  %8853 = vmatprep.mubr.msk.bf16.mxu0 %vm9451_vm0, %v9450_v1 }
 0x2df   : > { %8938 = vmatpush3.bf16.msra.mxu0 %v9369_v20  ;;  %v11685_v15 = vadd.f32 %v3803_v57, %v3651_v13  ;;  %v9368_v57 = vld [vmem:[%s9505_s23 + $0x34] sm:$0xff]   ;;  %v4909_v18 = vsel %vm1422_vm6, %v4906_v22, %v4908_v27  ;;  %v9380_v39 = vld [vmem:[%s12382_s1 + $0x548] sm:$0xff]   ;;  %v9384_v9 = vld [vmem:[%s12382_s1 + $0x580] sm:$0xff]  }
 0x2e0   : > { %v3602_v31 = vpop.f32.mrf.mxu1  ;;  %v3814_v53 = vpop.f32.mrf.mxu0  ;;  %8939 = vmatprep.subr.bf16.mxu0 %v9450_v1 }
 0x2e1   : > { %v3652_v63 = vadd.f32 %v3602_v31, %v11500_v16  ;;  %8884 = vmatpush3.bf16.msra.mxu1 %v9364_v6  ;;  %v9375_v16 = vld [vmem:[%s12382_s1 + $0x598] sm:$0xff]  }
 0x2e2   : > { %v8496_v35 = vpop.f32.mrf.mxu1  ;;  %v8552_v33 = vpop.f32.mrf.mxu0  ;;  %8885 = vmatprep.subr.bf16.mxu1 %v9450_v1 }
 0x2e3   : > { %8940 = vmatpush3.bf16.msra.mxu0 %v9372_v11  ;;  %v11695_v60 = vadd.f32 %v3806_v29, %v3652_v63  ;;  %v9383_v35 = vld [vmem:[%s12382_s1 + $0x540] sm:$0xff]  }
 0x2e4   : > { %v3607_v28 = vpop.f32.mrf.mxu1  ;;  %8798 = vmatmul.mubr.bf16.gmra.mxu1 %v4905_v40  ;;  %v3819_v4 = vpop.f32.mrf.mxu0  ;;  %8854 = vmatmul.mubr.bf16.gmra.mxu0 %v9366_v34  ;;  %v9439_v34 = vld [vmem:[%s9505_s23 + $0x3c] sm:$0xff]  }
 0x2e5   : > { %v3653_v24 = vadd.f32 %v3607_v28, %v11516_v21  ;;  %8801 = vmatprep.mubr.msk.bf16.mxu1 %vm9451_vm0, %v9450_v1  ;;  %8886 = vmatpush3.bf16.msra.mxu1 %v9367_v10  ;;  %v4910_v63 = vrot.slane %v9439_v34, 3 }
 0x2e6   : > { %v8499_v49 = vpop.f32.mrf.mxu1  ;;  %v8555_v38 = vpop.f32.mrf.mxu0  ;;  %8857 = vmatprep.mubr.msk.bf16.mxu0 %vm9451_vm0, %v9450_v1  ;;  %8887 = vmatprep.subr.bf16.mxu1 %v9450_v1 }
 0x2e7   : > { %8941 = vmatprep.subr.bf16.mxu0 %v9450_v1  ;;  %v11711_v21 = vadd.f32 %v3811_v56, %v3653_v24  ;;  %v9371_v56 = vld [vmem:[%s9505_s23 + $0x3c] sm:$0xff]   ;;  %v4911_v24 = vsel %vm1422_vm6, %v4908_v27, %v4910_v63 }
 0x2e8   : > { %v3610_v25 = vpop.f32.mrf.mxu1  ;;  %v3822_v45 = vpop.f32.mrf.mxu0  ;;  %8942 = vmatpush3.bf16.msra.mxu0 %v9375_v16 }
 0x2e9   : > { %v3654_v43 = vadd.f32 %v3610_v25, %v11533_v42  ;;  %8888 = vmatpush3.bf16.msra.mxu1 %v9370_v52  ;;  %8943 = vmatprep.subr.bf16.mxu0 %v9450_v1 }
 0x2ea   : > { %v8500_v46 = vpop.f32.mrf.mxu1  ;;  %v8556_v23 = vpop.f32.mrf.mxu0  ;;  %8889 = vmatprep.subr.bf16.mxu1 %v9450_v1 }
 0x2eb   : > { %v11724_v44 = vadd.f32 %v3814_v53, %v3654_v43 }
 0x2ec   : > { %v3615_v42 = vpop.f32.mrf.mxu1  ;;  %8802 = vmatmul.mubr.bf16.gmra.mxu1 %v4907_v58  ;;  %v3827_v51 = vpop.f32.mrf.mxu0  ;;  %8858 = vmatmul.mubr.bf16.gmra.mxu0 %v9368_v57 }
 0x2ed   : > { %v3655_v29 = vadd.f32 %v3615_v42, %v11549_v55  ;;  %8805 = vmatprep.mubr.msk.bf16.mxu1 %vm9451_vm0, %v9450_v1  ;;  %8861 = vmatprep.mubr.msk.bf16.mxu0 %vm9451_vm0, %v9450_v1  ;;  %v9381_v55 = vld [vmem:[%s12382_s1 + $0x588] sm:$0xff]  }
 0x2ee   : > { %v8503_v3 = vpop.f32.mrf.mxu1  ;;  %v8559_v54 = vpop.f32.mrf.mxu0  ;;  %8890 = vmatpush3.bf16.msra.mxu1 %v9374_v62  ;;  %8944 = vmatpush3.bf16.msra.mxu0 %v9378_v26  ;;  %v9376_v62 = vld [vmem:[%s9505_s23 + $0x4c] sm:$0xff]  }
 0x2ef   : > { %8891 = vmatprep.subr.bf16.mxu1 %v9450_v1  ;;  %8945 = vmatprep.subr.bf16.mxu0 %v9450_v1  ;;  %v11740_v41 = vadd.f32 %v3819_v4, %v3655_v29  ;;  %v9373_v4 = vld [vmem:[%s9505_s23 + $0x44] sm:$0xff]   ;;  %v9441_v54 = vld [vmem:[%s9505_s23 + $0x4c] sm:$0xff]  }
 0x2f0   : > { %v3618_v20 = vpop.f32.mrf.mxu1  ;;  %v3830_v50 = vpop.f32.mrf.mxu0 }
 0x2f1   : > { %v3656_v13 = vadd.f32 %v3618_v20, %v11566_v17 }
 0x2f2   : > { %v8504_v2 = vpop.f32.mrf.mxu1  ;;  %v8560_v6 = vpop.f32.mrf.mxu0  ;;  %8892 = vmatpush3.bf16.msra.mxu1 %v9377_v59  ;;  %8946 = vmatpush3.bf16.msra.mxu0 %v9381_v55  ;;  %v4914_v59 = vrot.slane %v9441_v54, 3 }
 0x2f3   : > { %8893 = vmatprep.subr.bf16.mxu1 %v9450_v1  ;;  %8947 = vmatprep.subr.bf16.mxu0 %v9450_v1  ;;  %v11753_v17 = vadd.f32 %v3822_v45, %v3656_v13  ;;  %v9379_v13 = vld [vmem:[%s9505_s23 + $0x54] sm:$0xff]  }
 0x2f4   : > { %v3623_v11 = vpop.f32.mrf.mxu1  ;;  %8806 = vmatmul.mubr.bf16.gmra.mxu1 %v4909_v18  ;;  %v3835_v31 = vpop.f32.mrf.mxu0  ;;  %8862 = vmatmul.mubr.bf16.gmra.mxu0 %v9371_v56 }
 0x2f5   : > { %v3657_v53 = vadd.f32 %v3623_v11, %v11580_v19  ;;  %8809 = vmatprep.mubr.msk.bf16.mxu1 %vm9451_vm0, %v9450_v1  ;;  %8865 = vmatprep.mubr.msk.bf16.mxu0 %vm9451_vm0, %v9450_v1  ;;  %v4916_v11 = vrot.slane %v11590_v61, 3 }
 0x2f6   : > { %v8507_v40 = vpop.f32.mrf.mxu1  ;;  %v8563_v10 = vpop.f32.mrf.mxu0  ;;  %8894 = vmatpush3.bf16.msra.mxu1 %v9380_v39  ;;  %8948 = vmatpush3.bf16.msra.mxu0 %v9384_v9 }
 0x2f7   : > { %8895 = vmatprep.subr.bf16.mxu1 %v9450_v1  ;;  %9037 = vmatprep.subr.bf16.mxu0 %v9450_v1  ;;  %v11766_v19 = vadd.f32 %v3827_v51, %v3657_v53  ;;  %v5680_v53 = vld [vmem:[%s9505_s23 + $0x1c] sm:$0xe] }
 0x2f8   : > { %v3626_v33 = vpop.f32.mrf.mxu1  ;;  %v3838_v28 = vpop.f32.mrf.mxu0  ;;  %v5351_v40 = vld [vmem:[%s9505_s23 + $0x1c] sm:$0xf] }
 0x2f9   : > { %v3658_v16 = vadd.f32 %v3626_v33, %v11593_v12  ;;  %v9440_v12 = vld [vmem:[%s9505_s23 + $0x44] sm:$0xff]  }
 0x2fa   : > { %v8508_v30 = vpop.f32.mrf.mxu1  ;;  %v8564_v22 = vpop.f32.mrf.mxu0  ;;  %8896 = vmatpush3.bf16.msra.mxu1 %v9383_v35  ;;  %v4912_v45 = vrot.slane %v9440_v12, 3 }
 0x2fb   : > { %8985 = vmatprep.subr.bf16.mxu1 %v9450_v1  ;;  %v11772_v52 = vadd.f32 %v3830_v50, %v3658_v16  ;;  %v4917_v16 = vsel %vm1422_vm6, %v4914_v59, %v4916_v11 }
 0x2fc   : > { %v3631_v49 = vpop.f32.mrf.mxu1  ;;  %8810 = vmatmul.mubr.bf16.gmra.mxu1 %v4911_v24  ;;  %v3843_v38 = vpop.f32.mrf.mxu0  ;;  %8866 = vmatmul.mubr.bf16.gmra.mxu0 %v9373_v4 }
 0x2fd   : > { %v3659_v25 = vadd.f32 %v3631_v49, %v11603_v5  ;;  %8813 = vmatprep.mubr.msk.bf16.mxu1 %vm9451_vm0, %v9450_v1  ;;  %8869 = vmatprep.mubr.msk.bf16.mxu0 %vm9451_vm0, %v9450_v1  ;;  %v4913_v5 = vsel %vm1422_vm6, %v4910_v63, %v4912_v45 }
 0x2fe   : > { %v8511_v57 = vpop.f32.mrf.mxu1  ;;  %v8567_v43 = vpop.f32.mrf.mxu0 }
 0x2ff   : > { %v11780_v58 = vadd.f32 %v3835_v31, %v3659_v25  ;;  %v11804_v31 = vld [vmem:[%s9505_s23 + $0x20] sm:$0xf] }
 0x300   : > { %v3634_v46 = vpop.f32.mrf.mxu1  ;;  %v3846_v23 = vpop.f32.mrf.mxu0  ;;  %v11815_v4 = vcombine.low %v5680_v53, %v11804_v31  ;;  %v7255_v24 = vcombine.low %v5351_v40, %v11804_v31  ;;  %v9388_v40 = vld [vmem:[%s12382_s1 + $0x5f8] sm:$0xff]  }
 0x301   : > { %v3660_v26 = vadd.f32 %v3634_v46, %v11608_v8 }
 0x302   : > { %v8512_v42 = vpop.f32.mrf.mxu1  ;;  %v8568_v51 = vpop.f32.mrf.mxu0  ;;  %v5701_v12 = vrot.slane %v11815_v4, 1 }
 0x303   : > { %v11785_v29 = vadd.f32 %v3838_v28, %v3660_v26  ;;  %v9382_v28 = vld [vmem:[%s9505_s23 + $0x5c] ss:$0 sps:$4 sm:$0xff]   ;;  %v5432_v51 = vshrl.u32 %v7255_v24, 16 }
 0x304   : > { %v3639_v47 = vpop.f32.mrf.mxu1  ;;  %8814 = vmatmul.mubr.bf16.gmra.mxu1 %v4913_v5  ;;  %v4333_v27 = vpop.f32.mrf.mxu0  ;;  %8870 = vmatmul.mubr.bf16.gmra.mxu0 %v9376_v62 }
 0x305   : > { %v3661_v3 = vadd.f32 %v3639_v47, %v11616_v37  ;;  %8817 = vmatprep.mubr.msk.bf16.mxu1 %vm9451_vm0, %v9450_v1  ;;  %8873 = vmatprep.mubr.msk.bf16.mxu0 %vm9451_vm0, %v9450_v1  ;;  %v4915_v37 = vsel %vm1422_vm6, %v4912_v45, %v4914_v59 }
 0x306   : > { %v8515_v8 = vpop.f32.mrf.mxu1  ;;  %v8639_v55 = vpop.f32.mrf.mxu0 }
 0x307   : > { %v11793_v20 = vadd.f32 %v3843_v38, %v3661_v3  ;;  %v11838_v3 = vld [vmem:[%s9505_s23 + $0x2c] sm:$0xff]  }
 0x308   : > { %v3642_v50 = vpop.f32.mrf.mxu1  ;;  %v4336_v56 = vpop.f32.mrf.mxu0  ;;  %v5447_v53 = vshll.u32 %v11838_v3, 16 }
 0x30a   : > { %v8516_v18 = vpop.f32.mrf.mxu1  ;;  %v8640_v2 = vpop.f32.mrf.mxu0 }
 0x30b   : > { %v9392_v18 = vld [vmem:[%s12382_s1 + $0x630] sm:$0xff]  }
 0x30c   : > { %v4054_v6 = vpop.f32.mrf.mxu1  ;;  %8818 = vmatmul.mubr.bf16.gmra.mxu1 %v4915_v37  ;;  %v4341_v39 = vpop.f32.mrf.mxu0  ;;  %8874 = vmatmul.mubr.bf16.gmra.mxu0 %v9379_v13  ;;  %v5704_v37 = vrot.slane %v11838_v3, 1 }
 0x30d   : > { %v4124_v9 = vadd.f32 %v4054_v6, %v11626_v48  ;;  %8821 = vmatprep.mubr.msk.bf16.mxu1 %vm9451_vm0, %v9450_v1  ;;  %8877 = vmatprep.mubr.msk.bf16.mxu0 %vm9451_vm0, %v9450_v1  ;;  %v11812_v48 = vld [vmem:[%s9505_s23 + $0x24] sm:$0xff]  }
 0x30e   : > { %v8587_v34 = vpop.f32.mrf.mxu1  ;;  %v8643_v63 = vpop.f32.mrf.mxu0  ;;  %v5702_v45 = vrot.slane %v11812_v48, 1 }
 0x30f   : > { %v11808_v10 = vadd.f32 %v4333_v27, %v4124_v9  ;;  %v9389_v27 = vld [vmem:[%s12382_s1 + $0x638] sm:$0xff]  }
 0x310   : > { %v4057_v35 = vpop.f32.mrf.mxu1  ;;  %v4344_v33 = vpop.f32.mrf.mxu0  ;;  %v5703_v5 = vsel %vm684_vm3, %v5701_v12, %v5702_v45  ;;  %v9391_v12 = vld [vmem:[%s12382_s1 + $0x5f0] sm:$0xff]  }
 0x311   : > { %v4125_v61 = vadd.f32 %v4057_v35, %v11630_v32  ;;  %v5434_v32 = vshll.u32 %v7255_v24, 16  ;;  %v5705_v35 = vsel %vm684_vm3, %v5702_v45, %v5704_v37 }
 0x312   : > { %v8588_v30 = vpop.f32.mrf.mxu1  ;;  %v8644_v22 = vpop.f32.mrf.mxu0 }
 0x313   : > { %v11820_v49 = vadd.f32 %v4336_v56, %v4125_v61  ;;  %v5436_v47 = vrot.slane %v5434_v32, 1 }
 0x314   : > { %v4062_v38 = vpop.f32.mrf.mxu1  ;;  %8822 = vmatmul.mubr.bf16.gmra.mxu1 %v4917_v16  ;;  %v4349_v25 = vpop.f32.mrf.mxu0  ;;  %8878 = vmatmul.mubr.bf16.gmra.mxu0 %v9382_v28  ;;  %v9396_v16 = vld [vmem:[%s12382_s1 + $0x628] sm:$0xff]  }
 0x315   : > { %v4126_v57 = vadd.f32 %v4062_v38, %v11638_v7  ;;  %8825 = vmatprep.mubr.msk.bf16.mxu1 %vm9451_vm0, %v9450_v1  ;;  %8949 = vmatprep.mubr.msk.bf16.mxu0 %vm9451_vm0, %v9450_v1  ;;  %v5439_v7 = vshll.u32 %v11812_v48, 16  ;;  %v5437_v56 = vor.u32 %v5436_v47, %v5432_v51  ;;  %v5449_v38 = vrot.slane %v5447_v53, 1 }
 0x316   : > { %v8591_v43 = vpop.f32.mrf.mxu1  ;;  %v8647_v46 = vpop.f32.mrf.mxu0  ;;  %v5451_v51 = vshrl.u32 %v11838_v3, 16 }
 0x317   : > { %v11829_v23 = vadd.f32 %v4341_v39, %v4126_v57  ;;  %v5441_v13 = vrot.slane %v5439_v7, 1 }
 0x318   : > { %v4065_v62 = vpop.f32.mrf.mxu1  ;;  %v4352_v26 = vpop.f32.mrf.mxu0 }
 0x319   : > { %v4127_v42 = vadd.f32 %v4065_v62, %v11646_v14  ;;  %v5442_v63 = vsel %vm268_vm1, %v5437_v56, %v5441_v13  ;;  %v9402_v56 = vld [vmem:[%s12382_s1 + $0x618] sm:$0xff]  }
 0x31a   : > { %v8592_v54 = vpop.f32.mrf.mxu1  ;;  %v8648_v59 = vpop.f32.mrf.mxu0 }
 0x31b   : > { %v11840_v8 = vadd.f32 %v4344_v33, %v4127_v42  ;;  %v11865_v33 = vld [vmem:[%s9505_s23 + $0x34] sm:$0xff]   ;;  %v11902_v54 = vld [vmem:[%s9505_s23 + $0x3c] sm:$0xff]  }
 0x31c   : > { %v4070_v55 = vpop.f32.mrf.mxu1  ;;  %8826 = vmatmul.mubr.bf16.gmra.mxu1 %v4916_v11  ;;  %v4357_v50 = vpop.f32.mrf.mxu0  ;;  %8950 = vmatmul.mubr.bf16.vlgmr.msra.gmra.mxu0 %v5703_v5  ;;  %v5443_v11 = vshrl.u32 %v11812_v48, 16  ;;  %v5706_v45 = vrot.slane %v11865_v33, 1  ;;  %v5455_v47 = vshll.u32 %v11865_v33, 16 }
 0x31d   : > { %v4128_v14 = vadd.f32 %v4070_v55, %v11658_v36  ;;  %8897 = vmatprep.mubr.msk.bf16.mxu1 %vm9451_vm0, %v9450_v1  ;;  %9038 = vmatpush3.bf16.msra.mxu0 %v9389_v27  ;;  %v9394_v27 = vld [vmem:[%s12382_s1 + $0x5e8] sm:$0xff]  }
 0x31e   : > { %v8595_v2 = vpop.f32.mrf.mxu1  ;;  %v8651_v6 = vpop.f32.mrf.mxu0  ;;  %8953 = vmatprep.mubr.msk.bf16.mxu0 %vm9451_vm0, %v9450_v1  ;;  %9039 = vmatprep.subr.bf16.mxu0 %v9450_v1  ;;  %v5445_v22 = vor.u32 %v5443_v11, %v5441_v13  ;;  %v5707_v42 = vsel %vm684_vm3, %v5704_v37, %v5706_v45  ;;  %v5453_v37 = vor.u32 %v5451_v51, %v5449_v38 }
 0x31f   : > { %v11854_v36 = vadd.f32 %v4349_v25, %v4128_v14  ;;  %v5708_v2 = vrot.slane %v11902_v54, 1  ;;  %v9397_v6 = vld [vmem:[%s12382_s1 + $0x5e0] sm:$0xff]  }
 0x320   : > { %v4073_v39 = vpop.f32.mrf.mxu1  ;;  %v4360_v9 = vpop.f32.mrf.mxu0  ;;  %v5450_v62 = vsel %vm268_vm1, %v5445_v22, %v5449_v38  ;;  %v9401_v38 = vld [vmem:[%s12382_s1 + $0x5d8] sm:$0xff]  }
 0x321   : > { %v4129_v34 = vadd.f32 %v4073_v39, %v11670_v0  ;;  %9040 = vmatpush3.bf16.msra.mxu0 %v9392_v18  ;;  %v5457_v18 = vrot.slane %v5455_v47, 1 }
 0x322   : > { %v8596_v28 = vpop.f32.mrf.mxu1  ;;  %v8652_v61 = vpop.f32.mrf.mxu0  ;;  %9041 = vmatprep.subr.bf16.mxu0 %v9450_v1 }
 0x323   : > { %v11871_v0 = vadd.f32 %v4352_v26, %v4129_v34  ;;  %v5458_v61 = vsel %vm268_vm1, %v5453_v37, %v5457_v18 }
 0x324   : > { %v4078_v24 = vpop.f32.mrf.mxu1  ;;  %8898 = vmatmul.mubr.bf16.vlgmr.msra.gmra.mxu1 %v5442_v63  ;;  %v4365_v30 = vpop.f32.mrf.mxu0  ;;  %8954 = vmatmul.mubr.bf16.gmra.mxu0 %v5705_v35  ;;  %v5463_v35 = vshll.u32 %v11902_v54, 16 }
 0x325   : > { %v4130_v25 = vadd.f32 %v4078_v24, %v11685_v15  ;;  %8986 = vmatpush3.bf16.msra.mxu1 %v9388_v40  ;;  %8901 = vmatprep.mubr.msk.bf16.mxu1 %vm9451_vm0, %v9450_v1  ;;  %v9399_v15 = vld [vmem:[%s12382_s1 + $0x620] sm:$0xff]   ;;  %v5459_v40 = vshrl.u32 %v11865_v33, 16 }
 0x326   : > { %v8599_v57 = vpop.f32.mrf.mxu1  ;;  %v8655_v32 = vpop.f32.mrf.mxu0  ;;  %8987 = vmatprep.subr.bf16.mxu1 %v9450_v1  ;;  %8957 = vmatprep.mubr.msk.bf16.mxu0 %vm9451_vm0, %v9450_v1  ;;  %v11933_v24 = vld [vmem:[%s9505_s23 + $0x44] sm:$0xff]  }
 0x327   : > { %9042 = vmatpush3.bf16.msra.mxu0 %v9396_v16  ;;  %v11890_v43 = vadd.f32 %v4357_v50, %v4130_v25  ;;  %v5709_v16 = vsel %vm684_vm3, %v5706_v45, %v5708_v2  ;;  %v5461_v57 = vor.u32 %v5459_v40, %v5457_v18  ;;  %v5465_v32 = vrot.slane %v5463_v35, 1  ;;  %v11971_v18 = vld [vmem:[%s9505_s23 + $0x4c] sm:$0xff]  }
 0x328   : > { %v4081_v46 = vpop.f32.mrf.mxu1  ;;  %v4368_v26 = vpop.f32.mrf.mxu0  ;;  %9043 = vmatprep.subr.bf16.mxu0 %v9450_v1  ;;  %v5471_v37 = vshll.u32 %v11933_v24, 16 }
 0x329   : > { %v4131_v5 = vadd.f32 %v4081_v46, %v11695_v60  ;;  %8988 = vmatpush3.bf16.msra.mxu1 %v9391_v12  ;;  %v5710_v46 = vrot.slane %v11933_v24, 1 }
 0x32a   : > { %v8600_v59 = vpop.f32.mrf.mxu1  ;;  %v8656_v55 = vpop.f32.mrf.mxu0  ;;  %8989 = vmatprep.subr.bf16.mxu1 %v9450_v1 }
 0x32b   : > { %9044 = vmatpush3.bf16.msra.mxu0 %v9399_v15  ;;  %v11905_v50 = vadd.f32 %v4360_v9, %v4131_v5  ;;  %v9404_v5 = vld [vmem:[%s12382_s1 + $0x5d0] sm:$0xff]   ;;  %v5466_v59 = vsel %vm268_vm1, %v5461_v57, %v5465_v32  ;;  %v5475_v57 = vshrl.u32 %v11933_v24, 16 }
 0x32c   : > { %v4086_v60 = vpop.f32.mrf.mxu1  ;;  %8902 = vmatmul.mubr.bf16.gmra.mxu1 %v5450_v62  ;;  %v4373_v14 = vpop.f32.mrf.mxu0  ;;  %8958 = vmatmul.mubr.bf16.gmra.mxu0 %v5707_v42 }
 0x32d   : > { %v4132_v13 = vadd.f32 %v4086_v60, %v11711_v21  ;;  %8905 = vmatprep.mubr.msk.bf16.mxu1 %vm9451_vm0, %v9450_v1  ;;  %8990 = vmatpush3.bf16.msra.mxu1 %v9394_v27 }
 0x32e   : > { %v8603_v39 = vpop.f32.mrf.mxu1  ;;  %v8659_v9 = vpop.f32.mrf.mxu0  ;;  %8961 = vmatprep.mubr.msk.bf16.mxu0 %vm9451_vm0, %v9450_v1  ;;  %8991 = vmatprep.subr.bf16.mxu1 %v9450_v1 }
 0x32f   : > { %9045 = vmatprep.subr.bf16.mxu0 %v9450_v1  ;;  %v11925_v21 = vadd.f32 %v4365_v30, %v4132_v13  ;;  %v5467_v13 = vshrl.u32 %v11902_v54, 16 }
 0x330   : > { %v4089_v34 = vpop.f32.mrf.mxu1  ;;  %v4376_v63 = vpop.f32.mrf.mxu0  ;;  %9046 = vmatpush3.bf16.msra.mxu0 %v9402_v56  ;;  %v5711_v56 = vsel %vm684_vm3, %v5708_v2, %v5710_v46 }
 0x331   : > { %v4133_v28 = vadd.f32 %v4089_v34, %v11724_v44  ;;  %8992 = vmatpush3.bf16.msra.mxu1 %v9397_v6  ;;  %9047 = vmatprep.subr.bf16.mxu0 %v9450_v1  ;;  %v9405_v44 = vld [vmem:[%s12382_s1 + $0x610] sm:$0xff]  }
 0x332   : > { %v8604_v30 = vpop.f32.mrf.mxu1  ;;  %v8660_v22 = vpop.f32.mrf.mxu0  ;;  %8993 = vmatprep.subr.bf16.mxu1 %v9450_v1 }
 0x333   : > { %v11943_v25 = vadd.f32 %v4368_v26, %v4133_v28 }
 0x334   : > { %v4094_v12 = vpop.f32.mrf.mxu1  ;;  %8906 = vmatmul.mubr.bf16.gmra.mxu1 %v5458_v61  ;;  %v4381_v45 = vpop.f32.mrf.mxu0  ;;  %8962 = vmatmul.mubr.bf16.gmra.mxu0 %v5709_v16  ;;  %v5469_v61 = vor.u32 %v5467_v13, %v5465_v32  ;;  %v5473_v16 = vrot.slane %v5471_v37, 1  ;;  %v5479_v32 = vshll.u32 %v11971_v18, 16 }
 0x335   : > { %v4134_v15 = vadd.f32 %v4094_v12, %v11740_v41  ;;  %8909 = vmatprep.mubr.msk.bf16.mxu1 %vm9451_vm0, %v9450_v1  ;;  %8965 = vmatprep.mubr.msk.bf16.mxu0 %vm9451_vm0, %v9450_v1  ;;  %v9408_v41 = vld [vmem:[%s12382_s1 + $0x608] sm:$0xff]  }
 0x336   : > { %v8607_v62 = vpop.f32.mrf.mxu1  ;;  %v8663_v26 = vpop.f32.mrf.mxu0  ;;  %8994 = vmatpush3.bf16.msra.mxu1 %v9401_v38  ;;  %9048 = vmatpush3.bf16.msra.mxu0 %v9405_v44 }
 0x337   : > { %8995 = vmatprep.subr.bf16.mxu1 %v9450_v1  ;;  %9049 = vmatprep.subr.bf16.mxu0 %v9450_v1  ;;  %v11963_v42 = vadd.f32 %v4373_v14, %v4134_v15  ;;  %v9407_v14 = vld [vmem:[%s12382_s1 + $0x5c8] sm:$0xff]   ;;  %v12002_v15 = vld [vmem:[%s9505_s23 + $0x54] sm:$0xff]   ;;  %v5474_v26 = vsel %vm268_vm1, %v5469_v61, %v5473_v16 }
 0x338   : > { %v4097_v27 = vpop.f32.mrf.mxu1  ;;  %v4384_v55 = vpop.f32.mrf.mxu0 }
 0x339   : > { %v4135_v60 = vadd.f32 %v4097_v27, %v11753_v17  ;;  %v9410_v17 = vld [vmem:[%s12382_s1 + $0x600] sm:$0xff]  }
 0x33a   : > { %v8608_v6 = vpop.f32.mrf.mxu1  ;;  %v8664_v39 = vpop.f32.mrf.mxu0  ;;  %8996 = vmatpush3.bf16.msra.mxu1 %v9404_v5  ;;  %9050 = vmatpush3.bf16.msra.mxu0 %v9408_v41 }
 0x33b   : > { %8997 = vmatprep.subr.bf16.mxu1 %v9450_v1  ;;  %9051 = vmatprep.subr.bf16.mxu0 %v9450_v1  ;;  %v11981_v2 = vadd.f32 %v4376_v63, %v4135_v60  ;;  %v5712_v63 = vrot.slane %v11971_v18, 1  ;;  %v5714_v6 = vrot.slane %v12002_v15, 1 }
 0x33c   : > { %v4102_v9 = vpop.f32.mrf.mxu1  ;;  %8910 = vmatmul.mubr.bf16.gmra.mxu1 %v5466_v59  ;;  %v4389_v34 = vpop.f32.mrf.mxu0  ;;  %8966 = vmatmul.mubr.bf16.gmra.mxu0 %v5711_v56  ;;  %v5477_v56 = vor.u32 %v5475_v57, %v5473_v16 }
 0x33d   : > { %v4136_v28 = vadd.f32 %v4102_v9, %v11766_v19  ;;  %8913 = vmatprep.mubr.msk.bf16.mxu1 %vm9451_vm0, %v9450_v1  ;;  %8969 = vmatprep.mubr.msk.bf16.mxu0 %vm9451_vm0, %v9450_v1  ;;  %v9409_v19 = vld [vmem:[%s12382_s1 + $0x5c0] sm:$0xff]   ;;  %v5713_v5 = vsel %vm684_vm3, %v5710_v46, %v5712_v63 }
 0x33e   : > { %v8611_v30 = vpop.f32.mrf.mxu1  ;;  %v8667_v22 = vpop.f32.mrf.mxu0  ;;  %8998 = vmatpush3.bf16.msra.mxu1 %v9407_v14  ;;  %9052 = vmatpush3.bf16.msra.mxu0 %v9410_v17  ;;  %v12020_v14 = vld [vmem:[%s9505_s23 + $0x5c] sm:$0xf]  ;;  %v5368_v17 = vld [vmem:[%s9505_s23 + $0x60] sm:$0x1] }
 0x33f   : > { %8999 = vmatprep.subr.bf16.mxu1 %v9450_v1  ;;  %v11997_v38 = vadd.f32 %v4381_v45, %v4136_v28  ;;  %v5715_v30 = vsel %vm684_vm3, %v5712_v63, %v5714_v6  ;;  %v5483_v22 = vshrl.u32 %v11971_v18, 16 }
 0x340   : > { %v4105_v44 = vpop.f32.mrf.mxu1  ;;  %v4392_v12 = vpop.f32.mrf.mxu0 }
 0x341   : > { %v4137_v62 = vadd.f32 %v4105_v44, %v11772_v52  ;;  %v5481_v52 = vrot.slane %v5479_v32, 1  ;;  %v12031_v44 = vcombine.low %v12020_v14, %v5368_v17 }
 0x342   : > { %v8612_v41 = vpop.f32.mrf.mxu1  ;;  %v8668_v27 = vpop.f32.mrf.mxu0  ;;  %9000 = vmatpush3.bf16.msra.mxu1 %v9409_v19  ;;  %v5487_v19 = vshll.u32 %v12002_v15, 16 }
 0x343   : > { %v12007_v45 = vadd.f32 %v4384_v55, %v4137_v62  ;;  %v5482_v61 = vsel %vm268_vm1, %v5477_v56, %v5481_v52 }
 0x344   : > { %v4110_v59 = vpop.f32.mrf.mxu1  ;;  %8914 = vmatmul.mubr.bf16.gmra.mxu1 %v5474_v26  ;;  %v4397_v60 = vpop.f32.mrf.mxu0  ;;  %8970 = vmatmul.mubr.bf16.gmra.mxu0 %v5713_v5  ;;  %v5489_v63 = vrot.slane %v5487_v19, 1 }
 0x345   : > { %v4138_v46 = vadd.f32 %v4110_v59, %v11780_v58  ;;  %8917 = vmatprep.mubr.msk.bf16.mxu1 %vm9451_vm0, %v9450_v1  ;;  %8973 = vmatprep.mubr.msk.bf16.mxu0 %vm9451_vm0, %v9450_v1 }
 0x346   : > { %v8615_v55 = vpop.f32.mrf.mxu1  ;;  %v8671_v39 = vpop.f32.mrf.mxu0 }
 0x347   : > { %v12023_v9 = vadd.f32 %v4389_v34, %v4138_v46 }
 0x348   : > { %v4113_v28 = vpop.f32.mrf.mxu1  ;;  %v4400_v16 = vpop.f32.mrf.mxu0 }
 0x349   : > { %v4139_v58 = vadd.f32 %v4113_v28, %v11785_v29  ;;  %v5485_v29 = vor.u32 %v5483_v22, %v5481_v52  ;;  %v5491_v52 = vshrl.u32 %v12002_v15, 16  ;;  %v5495_v28 = vshll.u32 %v12031_v44, 16 }
 0x34a   : > { %v8616_v62 = vpop.f32.mrf.mxu1  ;;  %v8672_v26 = vpop.f32.mrf.mxu0 }
 0x34b   : > { %v12033_v5 = vadd.f32 %v4392_v12, %v4139_v58  ;;  %v5716_v12 = vrot.slane %v12031_v44, 1  ;;  %v5490_v39 = vsel %vm268_vm1, %v5485_v29, %v5489_v63  ;;  %v5493_v62 = vor.u32 %v5491_v52, %v5489_v63 }
 0x34c   : > { %v4118_v34 = vpop.f32.mrf.mxu1  ;;  %8918 = vmatmul.mubr.bf16.gmra.mxu1 %v5482_v61  ;;  %v4793_v41 = vpop.f32.mrf.mxu0  ;;  %8974 = vmatmul.mubr.bf16.gmra.mxu0 %v5715_v30 }
 0x34d   : > { %v4140_v27 = vadd.f32 %v4118_v34, %v11793_v20  ;;  %8921 = vmatprep.mubr.msk.bf16.mxu1 %vm9451_vm0, %v9450_v1  ;;  %8977 = vmatprep.mubr.msk.bf16.mxu0 %vm9451_vm0, %v9450_v1  ;;  %v5717_v17 = vsel %vm684_vm3, %v5714_v6, %v5716_v12  ;;  %v5497_v6 = vrot.slane %v5495_v28, 1 }
 0x34e   : > { %v8619_v59 = vpop.f32.mrf.mxu1  ;;  %v8743_v56 = vpop.f32.mrf.mxu0 }
 0x34f   : > { %v12045_v46 = vadd.f32 %v4397_v60, %v4140_v27  ;;  %v6140_v27 = vld [vmem:[%s9505_s23 + $0x1c] sm:$0xc] }
 0x350   : > { %v4121_v55 = vpop.f32.mrf.mxu1  ;;  %v4796_v20 = vpop.f32.mrf.mxu0 }
 0x352   : > { %v8620_v61 = vpop.f32.mrf.mxu1  ;;  %v8744_v16 = vpop.f32.mrf.mxu0 }
 0x354   : > { %v4549_v30 = vpop.f32.mrf.mxu1  ;;  %8922 = vmatmul.mubr.bf16.gmra.mxu1 %v5490_v39  ;;  %v4801_v58 = vpop.f32.mrf.mxu0  ;;  %8978 = vmatmul.mubr.bf16.gmra.mxu0 %v5717_v17  ;;  %v7338_v39 = vcombine.low %v6140_v27, %v11804_v31 }
 0x355   : > { %v4619_v60 = vadd.f32 %v4549_v30, %v11808_v10  ;;  %8925 = vmatprep.mubr.msk.bf16.mxu1 %vm9451_vm0, %v9450_v1  ;;  %8981 = vmatprep.mubr.msk.bf16.mxu0 %vm9451_vm0, %v9450_v1  ;;  %v5498_v10 = vsel %vm268_vm1, %v5493_v62, %v5497_v6  ;;  %v5499_v30 = vshrl.u32 %v12031_v44, 16  ;;  %v5925_v44 = vrot.slane %v5443_v11, 1 }
 0x356   : > { %v8691_v26 = vpop.f32.mrf.mxu1  ;;  %v8747_v34 = vpop.f32.mrf.mxu0  ;;  %v6161_v31 = vrot.slane %v7338_v39, 2 }
 0x357   : > { %v12059_v29 = vadd.f32 %v4793_v41, %v4619_v60  ;;  %v5918_v41 = vshrl.u32 %v11815_v4, 16  ;;  %v5921_v60 = vshll.u32 %v11815_v4, 16  ;;  %v5501_v4 = vor.u32 %v5499_v30, %v5497_v6 }
 0x358   : > { %v4552_v59 = vpop.f32.mrf.mxu1  ;;  %v4804_v56 = vpop.f32.mrf.mxu0 }
 0x359   : > { %v4620_v55 = vadd.f32 %v4552_v59, %v11820_v49  ;;  %v5923_v59 = vrot.slane %v5921_v60, 2 }
 0x35a   : > { %v8692_v17 = vpop.f32.mrf.mxu1  ;;  %v8748_v61 = vpop.f32.mrf.mxu0 }
 0x35b   : > { %v12064_v63 = vadd.f32 %v4796_v20, %v4620_v55  ;;  %v6162_v20 = vrot.slane %v11812_v48, 2  ;;  %v5926_v55 = vrot.slane %v5439_v7, 2  ;;  %v6164_v48 = vrot.slane %v11838_v3, 2 }
 0x35c   : > { %v4557_v28 = vpop.f32.mrf.mxu1  ;;  %8926 = vmatmul.mubr.bf16.gmra.mxu1 %v5498_v10  ;;  %v4809_v16 = vpop.f32.mrf.mxu0  ;;  %8982 = vmatmul.mubr.bf16.gmra.mxu0 %v5716_v12  ;;  %v6166_v3 = vrot.slane %v11865_v33, 2  ;;  %v6168_v33 = vrot.slane %v11902_v54, 2  ;;  %v6170_v54 = vrot.slane %v11933_v24, 2  ;;  %v6172_v24 = vrot.slane %v11971_v18, 2 }
 0x35d   : > { %v4621_v49 = vadd.f32 %v4557_v28, %v11829_v23  ;;  %8929 = vmatprep.mubr.msk.bf16.mxu1 %vm9451_vm0, %v9450_v1  ;;  %9053 = vmatprep.mubr.msk.bf16.mxu0 %vm9451_vm0, %v9450_v1  ;;  %v5920_v23 = vrot.slane %v5918_v41, 1  ;;  %v6163_v39 = vsel %vm1146_vm4, %v6161_v31, %v6162_v20  ;;  %v5927_v6 = vor.u32 %v5926_v55, %v5925_v44 }
 0x35e   : > { %v8695_v62 = vpop.f32.mrf.mxu1  ;;  %v8751_v26 = vpop.f32.mrf.mxu0  ;;  %v5930_v44 = vrot.slane %v5447_v53, 2  ;;  %v6174_v18 = vrot.slane %v12002_v15, 2 }
 0x35f   : > { %v12077_v12 = vadd.f32 %v4801_v58, %v4621_v49  ;;  %v5924_v58 = vor.u32 %v5923_v59, %v5920_v23  ;;  %v5929_v26 = vrot.slane %v5451_v51, 1 }
 0x360   : > { %v4560_v34 = vpop.f32.mrf.mxu1  ;;  %v4812_v27 = vpop.f32.mrf.mxu0 }
 0x361   : > { %v4622_v10 = vadd.f32 %v4560_v34, %v11840_v8  ;;  %v5928_v60 = vsel %vm901_vm2, %v5924_v58, %v5927_v6 }
 0x362   : > { %v8696_v17 = vpop.f32.mrf.mxu1  ;;  %v8752_v61 = vpop.f32.mrf.mxu0 }
 0x363   : > { %v12083_v28 = vadd.f32 %v4804_v56, %v4622_v10 }
 0x364   : > { %v4565_v62 = vpop.f32.mrf.mxu1  ;;  %8930 = vmatmul.mubr.bf16.gmra.mxu1 %v5501_v4  ;;  %v4817_v11 = vpop.f32.mrf.mxu0  ;;  %9054 = vmatmul.mubr.bf16.vlgmr.msra.gmra.mxu0 %v6163_v39  ;;  %v5933_v39 = vrot.slane %v5459_v40, 1 }
 0x365   : > { %v4623_v30 = vadd.f32 %v4565_v62, %v11854_v36  ;;  %9001 = vmatprep.mubr.msk.bf16.mxu1 %vm9451_vm0, %v9450_v1  ;;  %9057 = vmatprep.mubr.msk.bf16.mxu0 %vm9451_vm0, %v9450_v1  ;;  %v6165_v36 = vsel %vm1146_vm4, %v6162_v20, %v6164_v48  ;;  %v6167_v62 = vsel %vm1146_vm4, %v6164_v48, %v6166_v3 }
 0x366   : > { %v8699_v7 = vpop.f32.mrf.mxu1  ;;  %v8755_v8 = vpop.f32.mrf.mxu0 }
 0x367   : > { %v12091_v56 = vadd.f32 %v4809_v16, %v4623_v30 }
 0x368   : > { %v4568_v41 = vpop.f32.mrf.mxu1  ;;  %v4820_v49 = vpop.f32.mrf.mxu0 }
 0x369   : > { %v4624_v31 = vadd.f32 %v4568_v41, %v11871_v0  ;;  %v5931_v0 = vor.u32 %v5930_v44, %v5929_v26  ;;  %v5938_v26 = vrot.slane %v5463_v35, 2 }
 0x36a   : > { %v8700_v34 = vpop.f32.mrf.mxu1  ;;  %v8756_v4 = vpop.f32.mrf.mxu0 }
 0x36b   : > { %v12100_v23 = vadd.f32 %v4812_v27, %v4624_v31  ;;  %v5932_v61 = vsel %vm901_vm2, %v5927_v6, %v5931_v0 }
 0x36c   : > { %v4573_v16 = vpop.f32.mrf.mxu1  ;;  %9002 = vmatmul.mubr.bf16.vlgmr.msra.gmra.mxu1 %v5928_v60  ;;  %v4825_v59 = vpop.f32.mrf.mxu0  ;;  %9058 = vmatmul.mubr.bf16.gmra.mxu0 %v6165_v36  ;;  %v5937_v36 = vrot.slane %v5467_v13, 1 }
 0x36d   : > { %v4625_v55 = vadd.f32 %v4573_v16, %v11890_v43  ;;  %9005 = vmatprep.mubr.msk.bf16.mxu1 %vm9451_vm0, %v9450_v1  ;;  %9061 = vmatprep.mubr.msk.bf16.mxu0 %vm9451_vm0, %v9450_v1  ;;  %v5934_v43 = vrot.slane %v5455_v47, 2 }
 0x36e   : > { %v8703_v53 = vpop.f32.mrf.mxu1  ;;  %v8759_v51 = vpop.f32.mrf.mxu0 }
 0x36f   : > { %v12108_v20 = vadd.f32 %v4817_v11, %v4625_v55  ;;  %v5935_v41 = vor.u32 %v5934_v43, %v5933_v39  ;;  %v5941_v51 = vrot.slane %v5475_v57, 1  ;;  %v6171_v39 = vsel %vm1146_vm4, %v6168_v33, %v6170_v54 }
 0x370   : > { %v4576_v27 = vpop.f32.mrf.mxu1  ;;  %v4828_v10 = vpop.f32.mrf.mxu0 }
 0x371   : > { %v4626_v17 = vadd.f32 %v4576_v27, %v11905_v50  ;;  %v5936_v60 = vsel %vm901_vm2, %v5931_v0, %v5935_v41 }
 0x372   : > { %v8704_v58 = vpop.f32.mrf.mxu1  ;;  %v8760_v30 = vpop.f32.mrf.mxu0 }
 0x373   : > { %v12117_v7 = vadd.f32 %v4820_v49, %v4626_v17 }
 0x374   : > { %v4581_v11 = vpop.f32.mrf.mxu1  ;;  %9006 = vmatmul.mubr.bf16.gmra.mxu1 %v5932_v61  ;;  %v4833_v8 = vpop.f32.mrf.mxu0  ;;  %9062 = vmatmul.mubr.bf16.gmra.mxu0 %v6167_v62 }
 0x375   : > { %v4627_v40 = vadd.f32 %v4581_v11, %v11925_v21  ;;  %9009 = vmatprep.mubr.msk.bf16.mxu1 %vm9451_vm0, %v9450_v1  ;;  %9065 = vmatprep.mubr.msk.bf16.mxu0 %vm9451_vm0, %v9450_v1  ;;  %v6169_v21 = vsel %vm1146_vm4, %v6166_v3, %v6168_v33 }
 0x376   : > { %v8707_v47 = vpop.f32.mrf.mxu1  ;;  %v8763_v50 = vpop.f32.mrf.mxu0 }
 0x377   : > { %v12125_v6 = vadd.f32 %v4825_v59, %v4627_v40  ;;  %v5945_v47 = vrot.slane %v5483_v22, 1  ;;  %v5946_v50 = vrot.slane %v5479_v32, 2 }
 0x378   : > { %v4584_v48 = vpop.f32.mrf.mxu1  ;;  %v4836_v49 = vpop.f32.mrf.mxu0 }
 0x379   : > { %v4628_v31 = vadd.f32 %v4584_v48, %v11943_v25  ;;  %v5939_v25 = vor.u32 %v5938_v26, %v5937_v36  ;;  %v5896_v26 = vld [vmem:[%s9505_s23 + $0x60] sm:$0x3] }
 0x37a   : > { %v8708_v44 = vpop.f32.mrf.mxu1  ;;  %v8764_v34 = vpop.f32.mrf.mxu0 }
 0x37b   : > { %v12134_v4 = vadd.f32 %v4828_v10, %v4628_v31  ;;  %v5940_v10 = vsel %vm901_vm2, %v5935_v41, %v5939_v25 }
 0x37c   : > { %v4589_v16 = vpop.f32.mrf.mxu1  ;;  %9010 = vmatmul.mubr.bf16.gmra.mxu1 %v5936_v60  ;;  %v4841_v59 = vpop.f32.mrf.mxu0  ;;  %9066 = vmatmul.mubr.bf16.gmra.mxu0 %v6169_v21 }
 0x37d   : > { %v4629_v55 = vadd.f32 %v4589_v16, %v11963_v42  ;;  %9013 = vmatprep.mubr.msk.bf16.mxu1 %vm9451_vm0, %v9450_v1  ;;  %9069 = vmatprep.mubr.msk.bf16.mxu0 %vm9451_vm0, %v9450_v1  ;;  %v5942_v42 = vrot.slane %v5471_v37, 2 }
 0x37e   : > { %v8711_v35 = vpop.f32.mrf.mxu1  ;;  %v8767_v13 = vpop.f32.mrf.mxu0 }
 0x37f   : > { %v12142_v0 = vadd.f32 %v4833_v8, %v4629_v55  ;;  %v5943_v30 = vor.u32 %v5942_v42, %v5941_v51  ;;  %v7313_v35 = vcombine.low %v12020_v14, %v5896_v26 }
 0x380   : > { %v4592_v3 = vpop.f32.mrf.mxu1  ;;  %v4844_v53 = vpop.f32.mrf.mxu0 }
 0x381   : > { %v4630_v27 = vadd.f32 %v4592_v3, %v11981_v2  ;;  %v5944_v41 = vsel %vm901_vm2, %v5939_v25, %v5943_v30  ;;  %v5957_v14 = vshll.u32 %v7313_v35, 16 }
 0x382   : > { %v8712_v43 = vpop.f32.mrf.mxu1  ;;  %v8768_v17 = vpop.f32.mrf.mxu0 }
 0x383   : > { %v12151_v61 = vadd.f32 %v4836_v49, %v4630_v27 }
 0x384   : > { %v4597_v62 = vpop.f32.mrf.mxu1  ;;  %9014 = vmatmul.mubr.bf16.gmra.mxu1 %v5940_v10  ;;  %v4849_v58 = vpop.f32.mrf.mxu0  ;;  %9070 = vmatmul.mubr.bf16.gmra.mxu0 %v6171_v39 }
 0x385   : > { %v4631_v57 = vadd.f32 %v4597_v62, %v11997_v38  ;;  %9017 = vmatprep.mubr.msk.bf16.mxu1 %vm9451_vm0, %v9450_v1  ;;  %9073 = vmatprep.mubr.msk.bf16.mxu0 %vm9451_vm0, %v9450_v1  ;;  %v6173_v38 = vsel %vm1146_vm4, %v6170_v54, %v6172_v24  ;;  %v6175_v54 = vsel %vm1146_vm4, %v6172_v24, %v6174_v18 }
 0x386   : > { %v8715_v37 = vpop.f32.mrf.mxu1  ;;  %v8771_v2 = vpop.f32.mrf.mxu0 }
 0x387   : > { %v12159_v11 = vadd.f32 %v4841_v59, %v4631_v57  ;;  %v5949_v59 = vrot.slane %v5491_v52, 1 }
 0x388   : > { %v4600_v8 = vpop.f32.mrf.mxu1  ;;  %v4852_v40 = vpop.f32.mrf.mxu0 }
 0x389   : > { %v4632_v33 = vadd.f32 %v4600_v8, %v12007_v45  ;;  %v5947_v45 = vor.u32 %v5946_v50, %v5945_v47 }
 0x38a   : > { %v8716_v48 = vpop.f32.mrf.mxu1  ;;  %v8772_v60 = vpop.f32.mrf.mxu0 }
 0x38b   : > { %v12168_v49 = vadd.f32 %v4844_v53, %v4632_v33  ;;  %v5948_v25 = vsel %vm901_vm2, %v5943_v30, %v5947_v45  ;;  %v5959_v30 = vrot.slane %v5957_v14, 2 }
 0x38c   : > { %v4605_v31 = vpop.f32.mrf.mxu1  ;;  %9018 = vmatmul.mubr.bf16.gmra.mxu1 %v5944_v41  ;;  %v4857_v21 = vpop.f32.mrf.mxu0  ;;  %9074 = vmatmul.mubr.bf16.gmra.mxu0 %v6173_v38 }
 0x38d   : > { %v4633_v36 = vadd.f32 %v4605_v31, %v12023_v9  ;;  %9021 = vmatprep.mubr.msk.bf16.mxu1 %vm9451_vm0, %v9450_v1  ;;  %9077 = vmatprep.mubr.msk.bf16.mxu0 %vm9451_vm0, %v9450_v1  ;;  %v5950_v9 = vrot.slane %v5487_v19, 2  ;;  %v6176_v19 = vrot.slane %v7313_v35, 2 }
 0x38e   : > { %v8719_v32 = vpop.f32.mrf.mxu1  ;;  %v8775_v22 = vpop.f32.mrf.mxu0 }
 0x38f   : > { %v12177_v44 = vadd.f32 %v4849_v58, %v4633_v36  ;;  %v5951_v52 = vor.u32 %v5950_v9, %v5949_v59  ;;  %v6177_v58 = vsel %vm1146_vm4, %v6174_v18, %v6176_v19 }
 0x390   : > { %v4608_v34 = vpop.f32.mrf.mxu1  ;;  %v4860_v16 = vpop.f32.mrf.mxu0 }
 0x391   : > { %v4634_v55 = vadd.f32 %v4608_v34, %v12033_v5  ;;  %v5954_v5 = vshrl.u32 %v7313_v35, 16  ;;  %v5952_v62 = vsel %vm901_vm2, %v5947_v45, %v5951_v52 }
 0x392   : > { %v8720_v13 = vpop.f32.mrf.mxu1  ;;  %v8776_v3 = vpop.f32.mrf.mxu0 }
 0x393   : > { %v12187_v53 = vadd.f32 %v4852_v40, %v4634_v55 }
 0x394   : > { %v4613_v51 = vpop.f32.mrf.mxu1  ;;  %9022 = vmatmul.mubr.bf16.gmra.mxu1 %v5948_v25  ;;  %v5264_v42 = vpop.f32.mrf.mxu0  ;;  %9078 = vmatmul.mubr.bf16.gmra.mxu0 %v6175_v54 }
 0x395   : > { %v4635_v15 = vadd.f32 %v4613_v51, %v12045_v46  ;;  %9025 = vmatprep.mubr.msk.bf16.mxu1 %vm9451_vm0, %v9450_v1  ;;  %9081 = vmatprep.mubr.msk.bf16.mxu0 %vm9451_vm0, %v9450_v1  ;;  %v5956_v46 = vrot.slane %v5954_v5, 1 }
 0x396   : > { %v8723_v27 = vpop.f32.mrf.mxu1  ;;  %v8847_v10 = vpop.f32.mrf.mxu0 }
 0x397   : > { %v12194_v39 = vadd.f32 %v4857_v21, %v4635_v15  ;;  %v5960_v41 = vor.u32 %v5959_v30, %v5956_v46 }
 0x398   : > { %v4616_v43 = vpop.f32.mrf.mxu1  ;;  %v5267_v17 = vpop.f32.mrf.mxu0 }
 0x399   : > { %v5961_v60 = vsel %vm901_vm2, %v5951_v52, %v5960_v41 }
 0x39a   : > { %v8724_v57 = vpop.f32.mrf.mxu1  ;;  %v8848_v24 = vpop.f32.mrf.mxu0 }
 0x39c   : > { %v5009_v37 = vpop.f32.mrf.mxu1  ;;  %9026 = vmatmul.mubr.bf16.gmra.mxu1 %v5952_v62  ;;  %v5272_v2 = vpop.f32.mrf.mxu0  ;;  %9082 = vmatmul.mubr.bf16.gmra.mxu0 %v6177_v58 }
 0x39d   : > { %v5079_v8 = vadd.f32 %v5009_v37, %v12059_v29  ;;  %9029 = vmatprep.mubr.msk.bf16.mxu1 %vm9451_vm0, %v9450_v1  ;;  %9085 = vmatprep.mubr.msk.bf16.mxu0 %vm9451_vm0, %v9450_v1 }
 0x39e   : > { %v8795_v40 = vpop.f32.mrf.mxu1  ;;  %v8851_v33 = vpop.f32.mrf.mxu0 }
 0x39f   : > { %v12203_v38 = vadd.f32 %v5264_v42, %v5079_v8 }
 0x3a0   : > { %v5012_v47 = vpop.f32.mrf.mxu1  ;;  %v5275_v50 = vpop.f32.mrf.mxu0 }
 0x3a1   : > { %v5080_v48 = vadd.f32 %v5012_v47, %v12064_v63 }
 0x3a2   : > { %v8796_v31 = vpop.f32.mrf.mxu1  ;;  %v8852_v21 = vpop.f32.mrf.mxu0 }
 0x3a3   : > { %v12207_v29 = vadd.f32 %v5267_v17, %v5080_v48 }
 0x3a4   : > { %v5017_v36 = vpop.f32.mrf.mxu1  ;;  %9030 = vmatmul.mubr.bf16.gmra.mxu1 %v5961_v60  ;;  %v5280_v45 = vpop.f32.mrf.mxu0  ;;  %9086 = vmatmul.mubr.bf16.gmra.mxu0 %v6176_v19 }
 0x3a5   : > { %v5081_v18 = vadd.f32 %v5017_v36, %v12077_v12  ;;  %9033 = vmatprep.mubr.msk.bf16.mxu1 %vm9451_vm0, %v9450_v1 }
 0x3a6   : > { %v8799_v32 = vpop.f32.mrf.mxu1  ;;  %v8855_v22 = vpop.f32.mrf.mxu0 }
 0x3a7   : > { %v12212_v26 = vadd.f32 %v5272_v2, %v5081_v18 }
 0x3a8   : > { %v5020_v63 = vpop.f32.mrf.mxu1  ;;  %v5283_v34 = vpop.f32.mrf.mxu0 }
 0x3a9   : > { %v5082_v16 = vadd.f32 %v5020_v63, %v12083_v28 }
 0x3aa   : > { %v8800_v59 = vpop.f32.mrf.mxu1  ;;  %v8856_v9 = vpop.f32.mrf.mxu0 }
 0x3ab   : > { %v12215_v55 = vadd.f32 %v5275_v50, %v5082_v16 }
 0x3ac   : > { %v5025_v25 = vpop.f32.mrf.mxu1  ;;  %9034 = vmatmul.mubr.bf16.gmra.mxu1 %v5960_v41  ;;  %v5288_v54 = vpop.f32.mrf.mxu0 }
 0x3ad   : > { %v5083_v12 = vadd.f32 %v5025_v25, %v12091_v56 }
 0x3ae   : > { %v8803_v35 = vpop.f32.mrf.mxu1  ;;  %v8859_v13 = vpop.f32.mrf.mxu0 }
 0x3af   : > { %v12218_v1 = vadd.f32 %v5280_v45, %v5083_v12 }
 0x3b0   : > { %v5028_v3 = vpop.f32.mrf.mxu1  ;;  %v5291_v51 = vpop.f32.mrf.mxu0 }
 0x3b1   : > { %v5084_v42 = vadd.f32 %v5028_v3, %v12100_v23 }
 0x3b2   : > { %v8804_v52 = vpop.f32.mrf.mxu1  ;;  %v8860_v15 = vpop.f32.mrf.mxu0 }
 0x3b3   : > { %v12221_v28 = vadd.f32 %v5283_v34, %v5084_v42 }
 0x3b4   : > { %v5033_v19 = vpop.f32.mrf.mxu1  ;;  %v5296_v5 = vpop.f32.mrf.mxu0 }
 0x3b5   : > { %v5085_v14 = vadd.f32 %v5033_v19, %v12108_v20 }
 0x3b6   : > { %v8807_v27 = vpop.f32.mrf.mxu1  ;;  %v8863_v10 = vpop.f32.mrf.mxu0 }
 0x3b7   : > { %v12224_v43 = vadd.f32 %v5288_v54, %v5085_v14 }
 0x3b8   : > { %v5036_v56 = vpop.f32.mrf.mxu1  ;;  %v5299_v17 = vpop.f32.mrf.mxu0 }
 0x3b9   : > { %v5086_v62 = vadd.f32 %v5036_v56, %v12117_v7 }
 0x3ba   : > { %v8808_v58 = vpop.f32.mrf.mxu1  ;;  %v8864_v46 = vpop.f32.mrf.mxu0 }
 0x3bb   : > { %v12227_v30 = vadd.f32 %v5291_v51, %v5086_v62 }
 0x3bc   : > { %v5041_v23 = vpop.f32.mrf.mxu1  ;;  %v5304_v57 = vpop.f32.mrf.mxu0 }
 0x3bd   : > { %v5087_v24 = vadd.f32 %v5041_v23, %v12125_v6 }
 0x3be   : > { %v8811_v37 = vpop.f32.mrf.mxu1  ;;  %v8867_v2 = vpop.f32.mrf.mxu0 }
 0x3bf   : > { %v12230_v8 = vadd.f32 %v5296_v5, %v5087_v24 }
 0x3c0   : > { %v5044_v20 = vpop.f32.mrf.mxu1  ;;  %v5307_v41 = vpop.f32.mrf.mxu0 }
 0x3c1   : > { %v5088_v40 = vadd.f32 %v5044_v20, %v12134_v4 }
 0x3c2   : > { %v8812_v33 = vpop.f32.mrf.mxu1  ;;  %v8868_v47 = vpop.f32.mrf.mxu0 }
 0x3c3   : > { %v12233_v50 = vadd.f32 %v5299_v17, %v5088_v40 }
 0x3c4   : > { %v5049_v7 = vpop.f32.mrf.mxu1  ;;  %v5312_v48 = vpop.f32.mrf.mxu0 }
 0x3c5   : > { %v5089_v60 = vadd.f32 %v5049_v7, %v12142_v0 }
 0x3c6   : > { %v8815_v31 = vpop.f32.mrf.mxu1  ;;  %v8871_v21 = vpop.f32.mrf.mxu0 }
 0x3c7   : > { %v12236_v36 = vadd.f32 %v5304_v57, %v5089_v60 }
 0x3c8   : > { %v5052_v6 = vpop.f32.mrf.mxu1  ;;  %v5315_v45 = vpop.f32.mrf.mxu0 }
 0x3c9   : > { %v5090_v18 = vadd.f32 %v5052_v6, %v12151_v61 }
 0x3ca   : > { %v8816_v32 = vpop.f32.mrf.mxu1  ;;  %v8872_v22 = vpop.f32.mrf.mxu0 }
 0x3cb   : > { %v12239_v63 = vadd.f32 %v5307_v41, %v5090_v18 }
 0x3cc   : > { %v5057_v4 = vpop.f32.mrf.mxu1  ;;  %v5320_v34 = vpop.f32.mrf.mxu0 }
 0x3cd   : > { %v5091_v16 = vadd.f32 %v5057_v4, %v12159_v11 }
 0x3ce   : > { %v8819_v59 = vpop.f32.mrf.mxu1  ;;  %v8875_v9 = vpop.f32.mrf.mxu0 }
 0x3cf   : > { %v12242_v25 = vadd.f32 %v5312_v48, %v5091_v16 }
 0x3d0   : > { %v5060_v0 = vpop.f32.mrf.mxu1  ;;  %v5323_v54 = vpop.f32.mrf.mxu0 }
 0x3d1   : > { %v5092_v12 = vadd.f32 %v5060_v0, %v12168_v49 }
 0x3d2   : > { %v8820_v35 = vpop.f32.mrf.mxu1  ;;  %v8876_v13 = vpop.f32.mrf.mxu0 }
 0x3d3   : > { %v12245_v3 = vadd.f32 %v5315_v45, %v5092_v12 }
 0x3d4   : > { %v5065_v61 = vpop.f32.mrf.mxu1  ;;  %v5328_v51 = vpop.f32.mrf.mxu0 }
 0x3d5   : > { %v5093_v42 = vadd.f32 %v5065_v61, %v12177_v44 }
 0x3d6   : > { %v8823_v52 = vpop.f32.mrf.mxu1  ;;  %v8879_v15 = vpop.f32.mrf.mxu0 }
 0x3d7   : > { %v12248_v19 = vadd.f32 %v5320_v34, %v5093_v42 }
 0x3d8   : > { %v5068_v11 = vpop.f32.mrf.mxu1  ;;  %v5331_v5 = vpop.f32.mrf.mxu0 }
 0x3d9   : > { %v5094_v14 = vadd.f32 %v5068_v11, %v12187_v53 }
 0x3da   : > { %v8824_v27 = vpop.f32.mrf.mxu1  ;;  %v8880_v10 = vpop.f32.mrf.mxu0 }
 0x3db   : > { %v12251_v56 = vadd.f32 %v5323_v54, %v5094_v14 }
 0x3dc   : > { %v5073_v49 = vpop.f32.mrf.mxu1  ;;  %v5809_v17 = vpop.f32.mrf.mxu0 }
 0x3dd   : > { %v5095_v62 = vadd.f32 %v5073_v49, %v12194_v39 }
 0x3de   : > { %v8827_v58 = vpop.f32.mrf.mxu1  ;;  %v8951_v46 = vpop.f32.mrf.mxu0 }
 0x3df   : > { %v12254_v23 = vadd.f32 %v5328_v51, %v5095_v62 }
 0x3e0   : > { %v5076_v44 = vpop.f32.mrf.mxu1  ;;  %v5812_v57 = vpop.f32.mrf.mxu0 }
 0x3e2   : > { %v8828_v24 = vpop.f32.mrf.mxu1  ;;  %v8952_v37 = vpop.f32.mrf.mxu0 }
 0x3e4   : > { %v5593_v2 = vpop.f32.mrf.mxu1  ;;  %v5817_v20 = vpop.f32.mrf.mxu0 }
 0x3e5   : > { %v5663_v53 = vadd.f32 %v5593_v2, %v12203_v38 }
 0x3e6   : > { %v8899_v41 = vpop.f32.mrf.mxu1  ;;  %v8955_v40 = vpop.f32.mrf.mxu0 }
 0x3e7   : > { %v12257_v33 = vadd.f32 %v5809_v17, %v5663_v53 }
 0x3e8   : > { %v5596_v47 = vpop.f32.mrf.mxu1  ;;  %v5820_v7 = vpop.f32.mrf.mxu0 }
 0x3e9   : > { %v5664_v39 = vadd.f32 %v5596_v47, %v12207_v29 }
 0x3ea   : > { %v8900_v48 = vpop.f32.mrf.mxu1  ;;  %v8956_v60 = vpop.f32.mrf.mxu0 }
 0x3eb   : > { %v12260_v31 = vadd.f32 %v5812_v57, %v5664_v39 }
 0x3ec   : > { %v5601_v21 = vpop.f32.mrf.mxu1  ;;  %v5825_v6 = vpop.f32.mrf.mxu0 }
 0x3ed   : > { %v5665_v45 = vadd.f32 %v5601_v21, %v12212_v26 }
 0x3ee   : > { %v8903_v18 = vpop.f32.mrf.mxu1  ;;  %v8959_v32 = vpop.f32.mrf.mxu0 }
 0x3ef   : > { %v12263_v22 = vadd.f32 %v5817_v20, %v5665_v45 }
 0x3f0   : > { %v5604_v38 = vpop.f32.mrf.mxu1  ;;  %v5828_v4 = vpop.f32.mrf.mxu0 }
 0x3f1   : > { %v5666_v34 = vadd.f32 %v5604_v38, %v12215_v55 }
 0x3f2   : > { %v8904_v16 = vpop.f32.mrf.mxu1  ;;  %v8960_v59 = vpop.f32.mrf.mxu0 }
 0x3f3   : > { %v12266_v9 = vadd.f32 %v5820_v7, %v5666_v34 }
 0x3f4   : > { %v5609_v29 = vpop.f32.mrf.mxu1  ;;  %v5833_v0 = vpop.f32.mrf.mxu0 }
 0x3f5   : > { %v5667_v54 = vadd.f32 %v5609_v29, %v12218_v1 }
 0x3f6   : > { %v8907_v12 = vpop.f32.mrf.mxu1  ;;  %v8963_v35 = vpop.f32.mrf.mxu0 }
 0x3f7   : > { %v12269_v13 = vadd.f32 %v5825_v6, %v5667_v54 }
 0x3f8   : > { %v5612_v26 = vpop.f32.mrf.mxu1  ;;  %v5836_v61 = vpop.f32.mrf.mxu0 }
 0x3f9   : > { %v5668_v51 = vadd.f32 %v5612_v26, %v12221_v28 }
 0x3fa   : > { %v8908_v42 = vpop.f32.mrf.mxu1  ;;  %v8964_v52 = vpop.f32.mrf.mxu0 }
 0x3fb   : > { %v12272_v15 = vadd.f32 %v5828_v4, %v5668_v51 }
 0x3fc   : > { %v5617_v55 = vpop.f32.mrf.mxu1  ;;  %v5841_v11 = vpop.f32.mrf.mxu0 }
 0x3fd   : > { %v5669_v5 = vadd.f32 %v5617_v55, %v12224_v43 }
 0x3fe   : > { %v8911_v14 = vpop.f32.mrf.mxu1  ;;  %v8967_v27 = vpop.f32.mrf.mxu0 }
 0x3ff   : > { %v12275_v10 = vadd.f32 %v5833_v0, %v5669_v5 }
 0x400   : > { %v5620_v1 = vpop.f32.mrf.mxu1  ;;  %v5844_v49 = vpop.f32.mrf.mxu0 }
 0x401   : > { %v5670_v17 = vadd.f32 %v5620_v1, %v12227_v30 }
 0x402   : > { %v8912_v62 = vpop.f32.mrf.mxu1  ;;  %v8968_v58 = vpop.f32.mrf.mxu0 }
 0x403   : > { %v12278_v46 = vadd.f32 %v5836_v61, %v5670_v17 }
 0x404   : > { %v5625_v28 = vpop.f32.mrf.mxu1  ;;  %v5849_v44 = vpop.f32.mrf.mxu0 }
 0x405   : > { %v5671_v57 = vadd.f32 %v5625_v28, %v12230_v8 }
 0x406   : > { %v8915_v24 = vpop.f32.mrf.mxu1  ;;  %v8971_v37 = vpop.f32.mrf.mxu0 }
 0x407   : > { %v12281_v2 = vadd.f32 %v5841_v11, %v5671_v57 }
 0x408   : > { %v5628_v43 = vpop.f32.mrf.mxu1  ;;  %v5852_v20 = vpop.f32.mrf.mxu0 }
 0x409   : > { %v5672_v53 = vadd.f32 %v5628_v43, %v12233_v50 }
 0x40a   : > { %v8916_v41 = vpop.f32.mrf.mxu1  ;;  %v8972_v40 = vpop.f32.mrf.mxu0 }
 0x40b   : > { %v12284_v47 = vadd.f32 %v5844_v49, %v5672_v53 }
 0x40c   : > { %v5633_v30 = vpop.f32.mrf.mxu1  ;;  %v5857_v7 = vpop.f32.mrf.mxu0 }
 0x40d   : > { %v5673_v39 = vadd.f32 %v5633_v30, %v12236_v36 }
 0x40e   : > { %v8919_v48 = vpop.f32.mrf.mxu1  ;;  %v8975_v60 = vpop.f32.mrf.mxu0 }
 0x40f   : > { %v12287_v21 = vadd.f32 %v5849_v44, %v5673_v39 }
 0x410   : > { %v5636_v8 = vpop.f32.mrf.mxu1  ;;  %v5860_v6 = vpop.f32.mrf.mxu0 }
 0x411   : > { %v5674_v45 = vadd.f32 %v5636_v8, %v12239_v63 }
 0x412   : > { %v8920_v18 = vpop.f32.mrf.mxu1  ;;  %v8976_v32 = vpop.f32.mrf.mxu0 }
 0x413   : > { %v12290_v38 = vadd.f32 %v5852_v20, %v5674_v45 }
 0x414   : > { %v5641_v50 = vpop.f32.mrf.mxu1  ;;  %v5865_v4 = vpop.f32.mrf.mxu0 }
 0x415   : > { %v5675_v34 = vadd.f32 %v5641_v50, %v12242_v25 }
 0x416   : > { %v8923_v16 = vpop.f32.mrf.mxu1  ;;  %v8979_v59 = vpop.f32.mrf.mxu0 }
 0x417   : > { %v12293_v29 = vadd.f32 %v5857_v7, %v5675_v34 }
 0x418   : > { %v5644_v36 = vpop.f32.mrf.mxu1  ;;  %v5868_v0 = vpop.f32.mrf.mxu0 }
 0x419   : > { %v5676_v54 = vadd.f32 %v5644_v36, %v12245_v3 }
 0x41a   : > { %v8924_v12 = vpop.f32.mrf.mxu1  ;;  %v8980_v35 = vpop.f32.mrf.mxu0 }
 0x41b   : > { %v12296_v26 = vadd.f32 %v5860_v6, %v5676_v54 }
 0x41c   : > { %v5649_v63 = vpop.f32.mrf.mxu1  ;;  %v5873_v61 = vpop.f32.mrf.mxu0 }
 0x41d   : > { %v5677_v51 = vadd.f32 %v5649_v63, %v12248_v19 }
 0x41e   : > { %v8927_v42 = vpop.f32.mrf.mxu1  ;;  %v8983_v52 = vpop.f32.mrf.mxu0 }
 0x41f   : > { %v12299_v55 = vadd.f32 %v5865_v4, %v5677_v51 }
 0x420   : > { %v5652_v25 = vpop.f32.mrf.mxu1  ;;  %v5876_v11 = vpop.f32.mrf.mxu0 }
 0x421   : > { %v5678_v5 = vadd.f32 %v5652_v25, %v12251_v56 }
 0x422   : > { %v8928_v14 = vpop.f32.mrf.mxu1  ;;  %v8984_v27 = vpop.f32.mrf.mxu0 }
 0x423   : > { %v12302_v1 = vadd.f32 %v5868_v0, %v5678_v5 }
 0x424   : > { %v5657_v3 = vpop.f32.mrf.mxu1  ;;  %v6269_v49 = vpop.f32.mrf.mxu0 }
 0x425   : > { %v5679_v17 = vadd.f32 %v5657_v3, %v12254_v23 }
 0x426   : > { %v8931_v62 = vpop.f32.mrf.mxu1  ;;  %v9055_v58 = vpop.f32.mrf.mxu0 }
 0x427   : > { %v12305_v28 = vadd.f32 %v5873_v61, %v5679_v17 }
 0x428   : > { %v5660_v19 = vpop.f32.mrf.mxu1  ;;  %v6272_v44 = vpop.f32.mrf.mxu0 }
 0x42a   : > { %v8932_v57 = vpop.f32.mrf.mxu1  ;;  %v9056_v24 = vpop.f32.mrf.mxu0 }
 0x42c   : > { %v6053_v37 = vpop.f32.mrf.mxu1  ;;  %v6277_v43 = vpop.f32.mrf.mxu0 }
 0x42d   : > { %v6123_v8 = vadd.f32 %v6053_v37, %v12257_v33 }
 0x42e   : > { %v9003_v20 = vpop.f32.mrf.mxu1  ;;  %v9059_v56 = vpop.f32.mrf.mxu0 }
 0x430   : > { %v6056_v53 = vpop.f32.mrf.mxu1  ;;  %v6280_v41 = vpop.f32.mrf.mxu0 }
 0x431   : > { %v6124_v40 = vadd.f32 %v6056_v53, %v12260_v31  ;;  %v6339_v31 = vadd.f32 %v6269_v49, %v6123_v8 }
 0x432   : > { %v9004_v30 = vpop.f32.mrf.mxu1  ;;  %v9060_v7 = vpop.f32.mrf.mxu0 }
 0x433   : > { %v6340_v48 = vadd.f32 %v6272_v44, %v6124_v40 }
 0x434   : > { %v6061_v39 = vpop.f32.mrf.mxu1  ;;  %v6285_v23 = vpop.f32.mrf.mxu0 }
 0x435   : > { %v6125_v60 = vadd.f32 %v6061_v39, %v12263_v22  ;;  %v6373_v4 = vrot.slane %v6340_v48, 6 }
 0x436   : > { %v9007_v6 = vpop.f32.mrf.mxu1  ;;  %v9063_v45 = vpop.f32.mrf.mxu0 }
 0x437   : > { %v6341_v18 = vadd.f32 %v6277_v43, %v6125_v60 }
 0x438   : > { %v6064_v32 = vpop.f32.mrf.mxu1  ;;  %v6288_v50 = vpop.f32.mrf.mxu0 }
 0x439   : > { %v6374_v34 = vrot.slane %v6341_v18, 6  ;;  %v6126_v16 = vadd.f32 %v6064_v32, %v12266_v9 }
 0x43a   : > { %v9008_v59 = vpop.f32.mrf.mxu1  ;;  %v9064_v36 = vpop.f32.mrf.mxu0 }
 0x43b   : > { %v6375_v0 = vsel %vm6372_vm8, %v6373_v4, %v6374_v34  ;;  %v6342_v54 = vadd.f32 %v6280_v41, %v6126_v16 }
 0x43c   : > { %v6416_v12 = vmax.f32 %v6339_v31, %v6375_v0  ;;  %v6069_v22 = vpop.f32.mrf.mxu1  ;;  %v6293_v35 = vpop.f32.mrf.mxu0 }
 0x43d   : > { %v6376_v33 = vrot.slane %v6342_v54, 6  ;;  %v6127_v63 = vadd.f32 %v6069_v22, %v12269_v13 }
 0x43e   : > { %v9011_v61 = vpop.f32.mrf.mxu1  ;;  %v9067_v51 = vpop.f32.mrf.mxu0  ;;  %v6445_v27 = vrot.slane %v6416_v12, 1 }
 0x43f   : > { %v6377_v42 = vsel %vm6372_vm8, %v6374_v34, %v6376_v33  ;;  %v6343_v52 = vadd.f32 %v6285_v23, %v6127_v63 }
 0x440   : > { %v6417_v25 = vmax.f32 %v6340_v48, %v6377_v42  ;;  %v6072_v11 = vpop.f32.mrf.mxu1  ;;  %v6296_v9 = vpop.f32.mrf.mxu0 }
 0x441   : > { %v6378_v5 = vrot.slane %v6343_v52, 6  ;;  %v6128_v14 = vadd.f32 %v6072_v11, %v12272_v15 }
 0x442   : > { %v6446_v3 = vrot.slane %v6417_v25, 1  ;;  %v9012_v49 = vpop.f32.mrf.mxu1  ;;  %v9068_v17 = vpop.f32.mrf.mxu0 }
 0x443   : > { %v6379_v62 = vsel %vm6372_vm8, %v6376_v33, %v6378_v5  ;;  %v6344_v58 = vadd.f32 %v6288_v50, %v6128_v14 }
 0x444   : > { %v6447_v13 = vsel %vm684_vm3, %v6445_v27, %v6446_v3  ;;  %v6418_v19 = vmax.f32 %v6341_v18, %v6379_v62  ;;  %v6077_v44 = vpop.f32.mrf.mxu1  ;;  %v6301_v57 = vpop.f32.mrf.mxu0 }
 0x445   : > { %v6478_v24 = vmax.f32 %v6416_v12, %v6447_v13  ;;  %v6380_v37 = vrot.slane %v6344_v58, 6  ;;  %v6129_v43 = vadd.f32 %v6077_v44, %v12275_v10 }
 0x446   : > { %v6448_v20 = vrot.slane %v6418_v19, 1  ;;  %v9015_v56 = vpop.f32.mrf.mxu1  ;;  %v9071_v53 = vpop.f32.mrf.mxu0 }
 0x447   : > { %v6489_v15 = vrot.slane %v6478_v24, 1  ;;  %v6491_v41 = vrot.slane %v6478_v24, 2  ;;  %v6381_v40 = vsel %vm6372_vm8, %v6378_v5, %v6380_v37  ;;  %v6345_v39 = vadd.f32 %v6293_v35, %v6129_v43 }
 0x448   : > { %v6449_v30 = vsel %vm684_vm3, %v6446_v3, %v6448_v20  ;;  %v6419_v7 = vmax.f32 %v6342_v54, %v6381_v40  ;;  %v6080_v23 = vpop.f32.mrf.mxu1  ;;  %v6304_v48 = vpop.f32.mrf.mxu0  ;;  %v6493_v60 = vrot.slane %v6478_v24, 3 }
 0x449   : > { %v6479_v8 = vmax.f32 %v6417_v25, %v6449_v30  ;;  %v6130_v6 = vadd.f32 %v6080_v23, %v12278_v46  ;;  %v6522_v10 = vsel %vm6521_vm9, %v6478_v24, %v6489_v15  ;;  %v6382_v45 = vrot.slane %v6345_v39, 6 }
 0x44a   : > { %v9016_v18 = vpop.f32.mrf.mxu1  ;;  %v9072_v32 = vpop.f32.mrf.mxu0  ;;  %v6523_v50 = vsel %vm6372_vm8, %v6522_v10, %v6491_v41  ;;  %v6450_v33 = vrot.slane %v6419_v7, 1 }
 0x44b   : > { %v6496_v4 = vrot.slane %v6479_v8, 4  ;;  %v6346_v34 = vadd.f32 %v6296_v9, %v6130_v6  ;;  %v6525_v16 = vsel %vm6524_vm10, %v6523_v50, %v6493_v60  ;;  %v6383_v31 = vsel %vm6372_vm8, %v6380_v37, %v6382_v45 }
 0x44c   : > { %v6085_v59 = vpop.f32.mrf.mxu1  ;;  %v6309_v36 = vpop.f32.mrf.mxu0  ;;  %v6420_v0 = vmax.f32 %v6343_v52, %v6383_v31 }
 0x44d   : > { %v6384_v54 = vrot.slane %v6346_v34, 6  ;;  %v6131_v46 = vadd.f32 %v6085_v59, %v12281_v2  ;;  %v6527_v12 = vsel %vm6526_vm11, %v6525_v16, %v6496_v4 }
 0x44e   : > { %v9019_v22 = vpop.f32.mrf.mxu1  ;;  %v9075_v35 = vpop.f32.mrf.mxu0  ;;  %v6451_v63 = vrot.slane %v6420_v0, 1 }
 0x44f   : > { %v6385_v61 = vsel %vm6372_vm8, %v6382_v45, %v6384_v54  ;;  %v6347_v9 = vadd.f32 %v6301_v57, %v6131_v46 }
 0x450   : > { %v6421_v51 = vmax.f32 %v6344_v58, %v6385_v61  ;;  %v6088_v42 = vpop.f32.mrf.mxu1  ;;  %v6312_v25 = vpop.f32.mrf.mxu0  ;;  %v6452_v11 = vsel %vm684_vm3, %v6450_v33, %v6451_v63 }
 0x451   : > { %v6132_v5 = vadd.f32 %v6088_v42, %v12284_v47  ;;  %v6480_v52 = vmax.f32 %v6419_v7, %v6452_v11  ;;  %v6386_v44 = vrot.slane %v6347_v9, 6 }
 0x452   : > { %v6453_v14 = vrot.slane %v6421_v51, 1  ;;  %v9020_v27 = vpop.f32.mrf.mxu1  ;;  %v9076_v2 = vpop.f32.mrf.mxu0 }
 0x453   : > { %v6348_v3 = vadd.f32 %v6304_v48, %v6132_v5  ;;  %v6499_v49 = vrot.slane %v6480_v52, 7 }
 0x454   : > { %v6454_v17 = vsel %vm684_vm3, %v6451_v63, %v6453_v14  ;;  %v6093_v62 = vpop.f32.mrf.mxu1  ;;  %v6317_v13 = vpop.f32.mrf.mxu0 }
 0x455   : > { %v6481_v19 = vmax.f32 %v6420_v0, %v6454_v17  ;;  %v6387_v58 = vrot.slane %v6348_v3, 6  ;;  %v6133_v24 = vadd.f32 %v6093_v62, %v12287_v21  ;;  %v6529_v57 = vsel %vm1422_vm6, %v6527_v12, %v6499_v49 }
 0x456   : > { %v9023_v37 = vpop.f32.mrf.mxu1  ;;  %v9079_v43 = vpop.f32.mrf.mxu0  ;;  %v6531_v40 = vsel %vm1146_vm4, %v6529_v57, %v6480_v52 }
 0x457   : > { %v6502_v47 = vrot.slane %v6481_v19, 1  ;;  %v6388_v20 = vsel %vm6372_vm8, %v6386_v44, %v6387_v58  ;;  %v6349_v53 = vadd.f32 %v6309_v36, %v6133_v24  ;;  %v6504_v31 = vrot.slane %v6481_v19, 2 }
 0x458   : > { %v6422_v56 = vmax.f32 %v6346_v34, %v6388_v20  ;;  %v6096_v15 = vpop.f32.mrf.mxu1  ;;  %v6320_v41 = vpop.f32.mrf.mxu0  ;;  %v6506_v59 = vrot.slane %v6481_v19, 3 }
 0x459   : > { %v6134_v30 = vadd.f32 %v6096_v15, %v12290_v38  ;;  %v12337_v7 = vsel %vm684_vm3, %v6531_v40, %v6502_v47  ;;  %v6389_v39 = vrot.slane %v6349_v53, 6 }
 0x45a   : > { %v9024_v21 = vpop.f32.mrf.mxu1  ;;  %v9080_v23 = vpop.f32.mrf.mxu0  ;;  %v6455_v4 = vrot.slane %v6422_v56, 1  ;;  %v6533_v5 = vsel %vm6521_vm9, %v6504_v31, %v6506_v59 }
 0x45b   : > { %v6350_v48 = vadd.f32 %v6312_v25, %v6134_v30  ;;  %v6390_v60 = vsel %vm6372_vm8, %v6387_v58, %v6389_v39 }
 0x45c   : > { %v6101_v8 = vpop.f32.mrf.mxu1  ;;  %v6325_v6 = vpop.f32.mrf.mxu0  ;;  %v6423_v10 = vmax.f32 %v6347_v9, %v6390_v60 }
 0x45d   : > { %v6391_v45 = vrot.slane %v6350_v48, 6  ;;  %v6135_v18 = vadd.f32 %v6101_v8, %v12293_v29  ;;  %v7347_v8 = vld [vmem:[%s12383_s2] ss:$0 sm:$0xff] }
 0x45e   : > { %v9027_v32 = vpop.f32.mrf.mxu1  ;;  %v9083_v50 = vpop.f32.mrf.mxu0  ;;  %v6456_v34 = vrot.slane %v6423_v10, 1 }
 0x45f   : > { %v6392_v38 = vsel %vm6372_vm8, %v6389_v39, %v6391_v45  ;;  %v6351_v16 = vadd.f32 %v6317_v13, %v6135_v18  ;;  %v6570_v50 = vadd.f32 %v7347_v8, %v12337_v7 }
 0x460   : > { %v6424_v36 = vmax.f32 %v6348_v3, %v6392_v38  ;;  %v6104_v0 = vpop.f32.mrf.mxu1  ;;  %v6328_v54 = vpop.f32.mrf.mxu0  ;;  %v6457_v46 = vsel %vm684_vm3, %v6455_v4, %v6456_v34 }
 0x461   : > { %v6393_v12 = vrot.slane %v6351_v16, 6  ;;  %v6136_v22 = vadd.f32 %v6104_v0, %v12296_v26  ;;  %v6482_v35 = vmax.f32 %v6422_v56, %v6457_v46 }
 0x462   : > { %v6458_v33 = vrot.slane %v6424_v36, 1  ;;  %v9028_v29 = vpop.f32.mrf.mxu1  ;;  %v9084_v63 = vpop.f32.mrf.mxu0 }
 0x463   : > { %v6394_v61 = vsel %vm6372_vm8, %v6391_v45, %v6393_v12  ;;  %v6352_v51 = vadd.f32 %v6320_v41, %v6136_v22  ;;  %v6509_v42 = vrot.slane %v6482_v35, 6  ;;  %v6511_v25 = vrot.slane %v6482_v35, 7 }
 0x464   : > { %v6459_v11 = vsel %vm684_vm3, %v6456_v34, %v6458_v33  ;;  %v6109_v9 = vpop.f32.mrf.mxu1  ;;  %v6333_v52 = vpop.f32.mrf.mxu0  ;;  %v6425_v27 = vmax.f32 %v6349_v53, %v6394_v61  ;;  %v6513_v44 = vrot.slane %v6482_v35, 1  ;;  %v6574_v22 = vmax.f32 %v6570_v50, 0.0 }
 0x465   : > { %v6483_v14 = vmax.f32 %v6423_v10, %v6459_v11  ;;  %v6395_v2 = vrot.slane %v6352_v51, 6  ;;  %v6137_v26 = vadd.f32 %v6109_v9, %v12299_v55  ;;  %v6534_v17 = vsel %vm6372_vm8, %v6533_v5, %v6509_v42 }
 0x466   : > { %v9031_v3 = vpop.f32.mrf.mxu1  ;;  %v9087_v49 = vpop.f32.mrf.mxu0  ;;  %v6535_v37 = vsel %vm6524_vm10, %v6534_v17, %v6511_v25  ;;  %v6460_v55 = vrot.slane %v6425_v27, 1 }
 0x467   : > { %v6516_v62 = vrot.slane %v6483_v14, 2  ;;  %v6396_v13 = vsel %vm6372_vm8, %v6393_v12, %v6395_v2  ;;  %v6353_v19 = vadd.f32 %v6325_v6, %v6137_v26  ;;  %v6536_v20 = vsel %vm6526_vm11, %v6535_v37, %v6482_v35  ;;  %v6600_v3 = vld [vmem:[%s170_s11 + $0xc] sm:$0x1] }
 0x468   : > { %v6426_v58 = vmax.f32 %v6350_v48, %v6396_v13  ;;  %v6112_v24 = vpop.f32.mrf.mxu1  ;;  %v6336_v43 = vpop.f32.mrf.mxu0  ;;  %v6537_v15 = vsel %vm1422_vm6, %v6536_v20, %v6513_v44 }
 0x469   : > { %v6397_v57 = vrot.slane %v6353_v19, 6  ;;  %v6138_v47 = vadd.f32 %v6112_v24, %v12302_v1  ;;  %v6538_v30 = vsel %vm1146_vm4, %v6537_v15, %v6516_v62 }
 0x46a   : > { %v6461_v56 = vrot.slane %v6426_v58, 1  ;;  %v9032_v53 = vpop.f32.mrf.mxu1  ;;  %v9088_v41 = vpop.f32.mrf.mxu0 }
 0x46b   : > { %v6398_v40 = vsel %vm6372_vm8, %v6395_v2, %v6397_v57  ;;  %v6354_v60 = vadd.f32 %v6328_v54, %v6138_v47 }
 0x46c   : > { %v6462_v39 = vsel %vm684_vm3, %v6460_v55, %v6461_v56  ;;  %v6427_v21 = vmax.f32 %v6351_v16, %v6398_v40  ;;  %v6117_v23 = vpop.f32.mrf.mxu1 }
 0x46d   : > { %v6484_v48 = vmax.f32 %v6425_v27, %v6462_v39  ;;  %v6139_v1 = vadd.f32 %v6117_v23, %v12305_v28  ;;  %v6399_v38 = vrot.slane %v6354_v60, 6 }
 0x46e   : > { %v6463_v6 = vrot.slane %v6427_v21, 1  ;;  %v9035_v10 = vpop.f32.mrf.mxu1 }
 0x46f   : > { %v6519_v45 = vrot.slane %v6484_v48, 5  ;;  %v6355_v18 = vadd.f32 %v6333_v52, %v6139_v1  ;;  %v6540_v36 = vrot.slane %v6484_v48, 6 }
 0x470   : > { %v6464_v32 = vsel %vm684_vm3, %v6461_v56, %v6463_v6  ;;  %v6120_v4 = vpop.f32.mrf.mxu1 }
 0x471   : > { %v6485_v34 = vmax.f32 %v6426_v58, %v6464_v32  ;;  %v6400_v16 = vrot.slane %v6355_v18, 6  ;;  %v6539_v31 = vsel %vm684_vm3, %v6538_v30, %v6519_v45 }
 0x472   : > { %v6571_v28 = vadd.f32 %v7347_v8, %v6539_v31  ;;  %v9036_v59 = vpop.f32.mrf.mxu1 }
 0x473   : > { %v6543_v0 = vrot.slane %v6485_v34, 7  ;;  %v6401_v54 = vsel %vm6372_vm8, %v6399_v38, %v6400_v16  ;;  %v6429_v46 = vmax.f32 %v6354_v60, %v6400_v16  ;;  %v6545_v33 = vrot.slane %v6485_v34, 1 }
 0x474   : > { %v6428_v12 = vmax.f32 %v6353_v19, %v6401_v54  ;;  %v6575_v35 = vmax.f32 %v6571_v28, 0.0 }
 0x475   : > { %v6556_v7 = vsel %vm6521_vm9, %v6540_v36, %v6543_v0  ;;  %v6466_v29 = vrot.slane %v6429_v46, 1 }
 0x476   : > { %v6557_v63 = vsel %vm6372_vm8, %v6556_v7, %v6485_v34  ;;  %v6465_v61 = vrot.slane %v6428_v12, 1  ;;  %v7362_v51 = vpack.c.bf16 %v6575_v35, %v6574_v22 }
 0x477   : > { %v6558_v42 = vsel %vm6524_vm10, %v6557_v63, %v6545_v33  ;;  %v6487_v25 = vmax.f32 %v6429_v46, %v6466_v29 }
 0x478   : > { %v6467_v11 = vsel %vm684_vm3, %v6465_v61, %v6466_v29  ;;  %7363 = vst [vmem:[%s170_s11] sm:$0xff] %v7362_v51  }
 0x479   : > { %v6486_v9 = vmax.f32 %v6428_v12, %v6467_v11  ;;  %v6573_v5 = vadd.f32 %v7347_v8, %v6487_v25 }
 0x47b   : > { %v6548_v52 = vrot.slane %v6486_v9, 4  ;;  %v6550_v14 = vrot.slane %v6486_v9, 5  ;;  %v6577_v27 = vmax.f32 %v6573_v5, 0.0  ;;  %v6552_v2 = vrot.slane %v6486_v9, 6 }
 0x47c   : > { %v6554_v49 = vrot.slane %v6486_v9, 7 }
 0x47d   : > { %v6559_v26 = vsel %vm6526_vm11, %v6558_v42, %v6548_v52  ;;  %v7358_v62 = vpack.c.bf16 %v6577_v27, %v6577_v27 }
 0x47e   : > { %v6560_v17 = vsel %vm1422_vm6, %v6559_v26, %v6550_v14 }
 0x47f   : > { %v6561_v13 = vsel %vm1146_vm4, %v6560_v17, %v6552_v2  ;;  %v6601_v44 = vsel %vm6599_vm13, %v7358_v62, %v6600_v3 }
 0x480   : > { %v6562_v19 = vsel %vm684_vm3, %v6561_v13, %v6554_v49  ;;  %6602 = vst [vmem:[%s170_s11 + $0xc] sm:$0x1] %v6601_v44 }
 0x481   : > { %v6572_v58 = vadd.f32 %v7347_v8, %v6562_v19 }
 0x483   : > { %v6576_v24 = vmax.f32 %v6572_v58, 0.0 }
 0x485   : > { %v7357_v37 = vpack.c.bf16 %v6576_v24, %v6576_v24 }
 0x487   : > { %6596 = vst [vmem:[%s170_s11 + $0x8] sm:$0xf] %v7357_v37 }
 0x488 PF: > { %s13_s12 = sadd.s32 1, %s9448_s12  }
 0x489   : > { %p10_p4 = scmp.ge.s32.totalorder %s13_s12, 4  }
 0x48b   :  { %12 = sbr.rel (!%p10_p4) target bundleno = 1 (0x1), region = 86 }

</bundles_post_ra>
